<compile_context>
chip_gen: v7x
topology: tpu7x:2x2x1
jax: 0.10.0
libtpu: 0.0.40
codegen_flags: <defaults>
</compile_context>

<pallas_src>
import jax
import jax.numpy as jnp
from jax import lax
from jax.experimental import pallas as pl
from jax.experimental.pallas import tpu as pltpu

EPS = 1e-5  # PyTorch BatchNorm3d default eps
HIGHEST = lax.Precision.HIGHEST


def _band_w_taps(wt, W):
    """DHWIO (3,3,3,Cin,Cout) conv weights -> (9, W*Cin, W*Cout) banded tap matrices.

    Tap (kd, kh)'s matrix M satisfies, for a zero-padded 'same' conv along W:
      out[.., wo, co] += sum_{wi, ci} in[.., wi, ci] * M[wi*Cin + ci, wo*Cout + co]
    so the kw taps (and the W boundary) fold into the MXU contraction, while kd/kh stay
    unrolled as 9 shifted-slab matmuls with rows = N*D*H.
    """
    kD, kH, kW, Cin, Cout = wt.shape
    dw = jnp.arange(W)[:, None] - jnp.arange(W)[None, :] + 1     # (wi, wo) -> kw index
    g = wt[:, :, jnp.clip(dw, 0, kW - 1)]                        # (kd, kh, wi, wo, ci, co)
    valid = (dw >= 0) & (dw < kW)                                 # (wi, wo) in-band mask
    g = jnp.where(valid[None, None, :, :, None, None], g, 0.0)
    g = jnp.transpose(g, (0, 1, 2, 4, 3, 5))                      # (kd, kh, wi, ci, wo, co)
    return g.reshape(kD * kH, W * Cin, W * Cout)


def convblock_kernel(x_ref, w1_ref, w2_ref, g1_ref, be1_ref, g2_ref, be2_ref,
                     o_ref, xp1_ref, xp2_ref):
    N, Dp, Hp, K1 = xp1_ref.shape          # K1 = W*Cin, Dp = D+2, Hp = H+2
    D, H = Dp - 2, Hp - 2
    K2 = o_ref.shape[-1]                   # K2 = W*Cout
    Cout = g1_ref.shape[-1]
    W = K2 // Cout
    rows = N * D * H                       # MXU M dimension (128 at the test shape)
    cdt = x_ref.dtype                      # matmul / scratch dtype (bf16 or f32)
    conv_prec = HIGHEST if cdt == jnp.float32 else None
    inv_cnt = 1.0 / float(rows * W)        # per-channel BN sample count = N*D*H*W

    # One-hot per-channel reduce (K2 -> Cout) and expand (Cout -> K2) maps; accumulator
    # column j holds channel j % Cout.
    csum = (lax.broadcasted_iota(jnp.int32, (K2, Cout), 0) % Cout
            == lax.broadcasted_iota(jnp.int32, (K2, Cout), 1)).astype(jnp.float32)
    cexp = (lax.broadcasted_iota(jnp.int32, (Cout, K2), 0)
            == lax.broadcasted_iota(jnp.int32, (Cout, K2), 1) % Cout).astype(jnp.float32)

    def pad_into(dst_ref, src, kin):
        # Zero only the D/H halo shell (W needs no halo), then write the interior.
        dst_ref[:, 0:1, :, :] = jnp.zeros((N, 1, Hp, kin), cdt)
        dst_ref[:, D + 1:D + 2, :, :] = jnp.zeros((N, 1, Hp, kin), cdt)
        dst_ref[:, 1:D + 1, 0:1, :] = jnp.zeros((N, D, 1, kin), cdt)
        dst_ref[:, 1:D + 1, H + 1:H + 2, :] = jnp.zeros((N, D, 1, kin), cdt)
        dst_ref[:, 1:D + 1, 1:H + 1, :] = src

    def conv(src_ref, w_ref, kin):
        # 9 shifted-slab MXU matmuls, f32 accumulation, chained (v7x MRB friendly).
        acc = jnp.zeros((rows, K2), jnp.float32)
        for kd in range(3):                       # static unroll
            for kh in range(3):
                slab = src_ref[:, kd:kd + D, kh:kh + H, :].reshape(rows, kin)
                acc = acc + jnp.dot(slab, w_ref[kd * 3 + kh],
                                    preferred_element_type=jnp.float32,
                                    precision=conv_prec)
        return acc

    def bn(acc, g_ref, be_ref):
        # Training-mode BatchNorm over (N, D, H, W): two-pass (mean, then centered
        # variance) to avoid E[x^2]-E[x]^2 cancellation; folded to one scale/shift FMA.
        mean = jnp.dot(jnp.sum(acc, axis=0, keepdims=True), csum,
                       preferred_element_type=jnp.float32, precision=HIGHEST) * inv_cnt
        d = acc - jnp.dot(mean, cexp, preferred_element_type=jnp.float32,
                          precision=HIGHEST)
        var = jnp.dot(jnp.sum(d * d, axis=0, keepdims=True), csum,
                      preferred_element_type=jnp.float32, precision=HIGHEST) * inv_cnt
        scale = g_ref[...] * lax.rsqrt(var + EPS)                  # (1, Cout) f32
        return (d * jnp.dot(scale, cexp, preferred_element_type=jnp.float32,
                            precision=HIGHEST)
                + jnp.dot(be_ref[...], cexp, preferred_element_type=jnp.float32,
                          precision=HIGHEST))

    # ---- conv1 + bn1 ----
    pad_into(xp1_ref, x_ref[...], K1)
    y = bn(conv(xp1_ref, w1_ref, K1), g1_ref, be1_ref)

    # ---- conv2 + bn2 ----
    pad_into(xp2_ref, y.reshape(N, D, H, K2).astype(cdt), K2)
    o_ref[...] = bn(conv(xp2_ref, w2_ref, K2), g2_ref, be2_ref)


def _vmem_cap_bytes():
    """Physical VMEM per core (generation-aware), with a conservative v7x-sized fallback."""
    try:
        cap = getattr(pltpu.get_tpu_info(), "vmem_capacity_bytes", None)
        if cap:
            return int(cap)
    except Exception:
        pass
    return 64 << 20


def prepare_conv_block(params, W, *, compute_dtype=jnp.bfloat16):
    """Build banded tap matrices + BN params once per parameter update (off the call path)."""
    w1, b1, g1, be1, w2, b2, g2, be2 = params
    del b1, b2   # exactly cancelled by the training-mode BN mean subtraction that follows
    Cout = w1.shape[-1]
    return (_band_w_taps(w1, W).astype(compute_dtype),
            _band_w_taps(w2, W).astype(compute_dtype),
            g1.reshape(1, Cout).astype(jnp.float32),
            be1.reshape(1, Cout).astype(jnp.float32),
            g2.reshape(1, Cout).astype(jnp.float32),
            be2.reshape(1, Cout).astype(jnp.float32))


def conv_block(x, prepared):
    """x: (N, D, H, W, Cin) float32 NDHWC.  prepared: output of prepare_conv_block()."""
    wm1, wm2, g1, be1, g2, be2 = prepared
    N, D, H, W, Cin = x.shape
    Cout = g1.shape[-1]
    K1, K2 = W * Cin, W * Cout
    compute_dtype = wm1.dtype

    x4d = x.reshape(N, D, H, K1).astype(compute_dtype)    # lane dim = W*Cin, no HBM padding

    # VMEM budget: inputs + halo scratch + f32 accumulators/output + headroom, capped at
    # ~85% of this generation's physical VMEM (don't request all of v7x's 64 MiB, don't
    # throttle v5e/v6e's 128 MiB).
    isz = jnp.dtype(compute_dtype).itemsize
    working = ((x4d.size + wm1.size + wm2.size) * isz
               + N * (D + 2) * (H + 2) * (K1 + K2) * isz
               + N * D * H * K2 * 4 * 2)
    vmem_limit = int(min(max(2 * working + (8 << 20), 16 << 20),
                         (85 * _vmem_cap_bytes()) // 100))

    vmem = pl.BlockSpec(memory_space=pltpu.MemorySpace.VMEM)
    out2d = pl.pallas_call(
        convblock_kernel,
        out_shape=jax.ShapeDtypeStruct((N * D * H, K2), jnp.float32),
        in_specs=[vmem] * 7,
        out_specs=vmem,
        scratch_shapes=[pltpu.VMEM((N, D + 2, H + 2, K1), compute_dtype),
                        pltpu.VMEM((N, D + 2, H + 2, K2), compute_dtype)],
        compiler_params=pltpu.CompilerParams(vmem_limit_bytes=vmem_limit),
    )(x4d, wm1, wm2, g1, be1, g2, be2)

    return out2d.reshape(N, D, H, W, Cout)


def conv_block_reference(x, params):
    """Pure-JAX reference matching PyTorch ConvBlock.forward (training-mode BN, with biases)."""
    w1, b1, g1, be1, w2, b2, g2, be2 = params
    dn = lax.conv_dimension_numbers(x.shape, w1.shape, ('NDHWC', 'DHWIO', 'NDHWC'))

    def conv(a, w, b):
        return lax.conv_general_dilated(a, w, (1, 1, 1), ((1, 1), (1, 1), (1, 1)),
                                        dimension_numbers=dn, precision=HIGHEST) + b

    def bn(a, g, be):
        mean = jnp.mean(a, axis=(0, 1, 2, 3), keepdims=True)
        var = jnp.var(a, axis=(0, 1, 2, 3), keepdims=True)
        return (a - mean) * lax.rsqrt(var + EPS) * g + be

    y = bn(conv(x, w1, b1), g1, be1)
    return bn(conv(y, w2, b2), g2, be2)


if __name__ == "__main__":
    in_c, out_c = 4, 8
    N, D, H, W = 2, 8, 8, 8

    key = jax.random.PRNGKey(0)
    keys = jax.random.split(key, 9)
    # Deterministic synthetic parameters (shapes match nn.Conv3d / nn.BatchNorm3d).
    w1 = 0.1 * jax.random.normal(keys[0], (3, 3, 3, in_c, out_c), jnp.float32)
    b1 = 0.1 * jax.random.normal(keys[1], (out_c,), jnp.float32)
    g1 = 1.0 + 0.1 * jax.random.normal(keys[2], (out_c,), jnp.float32)
    be1 = 0.1 * jax.random.normal(keys[3], (out_c,), jnp.float32)
    w2 = 0.1 * jax.random.normal(keys[4], (3, 3, 3, out_c, out_c), jnp.float32)
    b2 = 0.1 * jax.random.normal(keys[5], (out_c,), jnp.float32)
    g2 = 1.0 + 0.1 * jax.random.normal(keys[6], (out_c,), jnp.float32)
    be2 = 0.1 * jax.random.normal(keys[7], (out_c,), jnp.float32)
    params = (w1, b1, g1, be1, w2, b2, g2, be2)

    # NDHWC input; PyTorch equivalent is (N, in_c, D, H, W) = (2, 4, 8, 8, 8).
    x = jax.random.normal(keys[8], (N, D, H, W, in_c), jnp.float32)

    ref = jax.block_until_ready(conv_block_reference(x, params))

    # Near-exact path: f32 matmul inputs.
    prep_f32 = prepare_conv_block(params, W, compute_dtype=jnp.float32)
    out_f32 = jax.block_until_ready(conv_block(x, prep_f32))
    assert out_f32.shape == (N, D, H, W, out_c)
    err_f32 = float(jnp.max(jnp.abs(out_f32 - ref)))
    assert jnp.allclose(out_f32, ref, atol=2e-3, rtol=2e-3), f"f32 max abs err {err_f32}"

    # Fast path: bf16 MXU inputs, f32 accumulation / BN (expected ~1e-2 max abs deviation).
    prep_bf16 = prepare_conv_block(params, W, compute_dtype=jnp.bfloat16)
    out_bf16 = jax.block_until_ready(conv_block(x, prep_bf16))
    assert out_bf16.shape == (N, D, H, W, out_c)
    err_bf16 = float(jnp.max(jnp.abs(out_bf16 - ref)))
    assert jnp.allclose(out_bf16, ref, atol=5e-2, rtol=5e-2), f"bf16 max abs err {err_bf16}"

    print("KERNEL_OK")
</pallas_src>

<mosaic_0001>
module attributes {stable_mosaic.version = 11 : i64} {
  func.func @convblock_kernel(%arg0: memref<2x8x8x32xf32, #tpu.memory_space<vmem>>, %arg1: memref<9x32x64xf32, #tpu.memory_space<vmem>>, %arg2: memref<9x64x64xf32, #tpu.memory_space<vmem>>, %arg3: memref<1x8xf32, #tpu.memory_space<vmem>>, %arg4: memref<1x8xf32, #tpu.memory_space<vmem>>, %arg5: memref<1x8xf32, #tpu.memory_space<vmem>>, %arg6: memref<1x8xf32, #tpu.memory_space<vmem>>, %arg7: memref<128x64xf32, #tpu.memory_space<vmem>>, %arg8: memref<2x10x10x32xf32, #tpu.memory_space<vmem>>, %arg9: memref<2x10x10x64xf32, #tpu.memory_space<vmem>>) attributes {dimension_semantics = [], scalar_prefetch = 0 : i64, scratch_operands = 2 : i64, tpu.core_type = #tpu.core_type<tc>} {
    %0 = tpu.iota {dimensions = array<i32: 0>} : vector<64x8xi32>
    %c8_i32 = arith.constant 8 : i32
    %c0_i32 = arith.constant 0 : i32
    %1 = arith.cmpi eq, %c8_i32, %c0_i32 : i32
    %c1_i32 = arith.constant 1 : i32
    %2 = arith.select %1, %c1_i32, %c8_i32 : i32
    %3 = vector.broadcast %2 : i32 to vector<64x8xi32>
    %4 = arith.remsi %0, %3 : vector<64x8xi32>
    %c0_i32_0 = arith.constant 0 : i32
    %5 = vector.broadcast %c0_i32_0 : i32 to vector<64x8xi32>
    %6 = arith.cmpi ne, %4, %5 : vector<64x8xi32>
    %c0_i32_1 = arith.constant 0 : i32
    %7 = vector.broadcast %c0_i32_1 : i32 to vector<64x8xi32>
    %8 = arith.cmpi slt, %4, %7 : vector<64x8xi32>
    %c0_i32_2 = arith.constant 0 : i32
    %9 = arith.cmpi slt, %2, %c0_i32_2 : i32
    %10 = vector.broadcast %9 : i1 to vector<64x8xi1>
    %11 = vector.broadcast %10 : vector<64x8xi1> to vector<64x8xi1>
    %12 = arith.xori %8, %11 : vector<64x8xi1>
    %13 = arith.andi %12, %6 : vector<64x8xi1>
    %14 = vector.broadcast %2 : i32 to vector<64x8xi32>
    %15 = arith.addi %4, %14 : vector<64x8xi32>
    %16 = arith.select %13, %15, %4 : vector<64x8xi1>, vector<64x8xi32>
    %17 = tpu.iota {dimensions = array<i32: 1>} : vector<64x8xi32>
    %18 = arith.cmpi eq, %16, %17 : vector<64x8xi32>
    %19 = arith.extui %18 : vector<64x8xi1> to vector<64x8xi32>
    %20 = arith.sitofp %19 : vector<64x8xi32> to vector<64x8xf32>
    %21 = tpu.iota {dimensions = array<i32: 0>} : vector<8x64xi32>
    %22 = tpu.iota {dimensions = array<i32: 1>} : vector<8x64xi32>
    %c8_i32_3 = arith.constant 8 : i32
    %c0_i32_4 = arith.constant 0 : i32
    %23 = arith.cmpi eq, %c8_i32_3, %c0_i32_4 : i32
    %c1_i32_5 = arith.constant 1 : i32
    %24 = arith.select %23, %c1_i32_5, %c8_i32_3 : i32
    %25 = vector.broadcast %24 : i32 to vector<8x64xi32>
    %26 = arith.remsi %22, %25 : vector<8x64xi32>
    %c0_i32_6 = arith.constant 0 : i32
    %27 = vector.broadcast %c0_i32_6 : i32 to vector<8x64xi32>
    %28 = arith.cmpi ne, %26, %27 : vector<8x64xi32>
    %c0_i32_7 = arith.constant 0 : i32
    %29 = vector.broadcast %c0_i32_7 : i32 to vector<8x64xi32>
    %30 = arith.cmpi slt, %26, %29 : vector<8x64xi32>
    %c0_i32_8 = arith.constant 0 : i32
    %31 = arith.cmpi slt, %24, %c0_i32_8 : i32
    %32 = vector.broadcast %31 : i1 to vector<8x64xi1>
    %33 = vector.broadcast %32 : vector<8x64xi1> to vector<8x64xi1>
    %34 = arith.xori %30, %33 : vector<8x64xi1>
    %35 = arith.andi %34, %28 : vector<8x64xi1>
    %36 = vector.broadcast %24 : i32 to vector<8x64xi32>
    %37 = arith.addi %26, %36 : vector<8x64xi32>
    %38 = arith.select %35, %37, %26 : vector<8x64xi1>, vector<8x64xi32>
    %39 = arith.cmpi eq, %21, %38 : vector<8x64xi32>
    %40 = arith.extui %39 : vector<8x64xi1> to vector<8x64xi32>
    %41 = arith.sitofp %40 : vector<8x64xi32> to vector<8x64xf32>
    %c0 = arith.constant 0 : index
    %c0_9 = arith.constant 0 : index
    %c0_10 = arith.constant 0 : index
    %c0_11 = arith.constant 0 : index
    %42 = vector.load %arg0[%c0, %c0_9, %c0_10, %c0_11] : memref<2x8x8x32xf32, #tpu.memory_space<vmem>>, vector<2x8x8x32xf32>
    %cst = arith.constant 0.000000e+00 : f32
    %43 = vector.broadcast %cst : f32 to vector<2x1x10x32xf32>
    %c0_12 = arith.constant 0 : index
    %c0_13 = arith.constant 0 : index
    %c0_14 = arith.constant 0 : index
    %c0_15 = arith.constant 0 : index
    %44 = vector.load %arg8[%c0_12, %c0_13, %c0_14, %c0_15] : memref<2x10x10x32xf32, #tpu.memory_space<vmem>>, vector<2x1x10x32xf32>
    tpu.vector_store %arg8[%c0_12, %c0_13, %c0_14, %c0_15], %43 {strides = array<i32>} : memref<2x10x10x32xf32, #tpu.memory_space<vmem>>, vector<2x1x10x32xf32>,
    %cst_16 = arith.constant 0.000000e+00 : f32
    %45 = vector.broadcast %cst_16 : f32 to vector<2x1x10x32xf32>
    %c0_17 = arith.constant 0 : index
    %c9 = arith.constant 9 : index
    %c0_18 = arith.constant 0 : index
    %c0_19 = arith.constant 0 : index
    %46 = vector.load %arg8[%c0_17, %c9, %c0_18, %c0_19] : memref<2x10x10x32xf32, #tpu.memory_space<vmem>>, vector<2x1x10x32xf32>
    tpu.vector_store %arg8[%c0_17, %c9, %c0_18, %c0_19], %45 {strides = array<i32>} : memref<2x10x10x32xf32, #tpu.memory_space<vmem>>, vector<2x1x10x32xf32>,
    %cst_20 = arith.constant 0.000000e+00 : f32
    %47 = vector.broadcast %cst_20 : f32 to vector<2x8x1x32xf32>
    %c0_21 = arith.constant 0 : index
    %c1 = arith.constant 1 : index
    %c0_22 = arith.constant 0 : index
    %c0_23 = arith.constant 0 : index
    %48 = vector.load %arg8[%c0_21, %c1, %c0_22, %c0_23] : memref<2x10x10x32xf32, #tpu.memory_space<vmem>>, vector<2x8x1x32xf32>
    tpu.vector_store %arg8[%c0_21, %c1, %c0_22, %c0_23], %47 {strides = array<i32>} : memref<2x10x10x32xf32, #tpu.memory_space<vmem>>, vector<2x8x1x32xf32>,
    %cst_24 = arith.constant 0.000000e+00 : f32
    %49 = vector.broadcast %cst_24 : f32 to vector<2x8x1x32xf32>
    %c0_25 = arith.constant 0 : index
    %c1_26 = arith.constant 1 : index
    %c9_27 = arith.constant 9 : index
    %c0_28 = arith.constant 0 : index
    %50 = vector.load %arg8[%c0_25, %c1_26, %c9_27, %c0_28] : memref<2x10x10x32xf32, #tpu.memory_space<vmem>>, vector<2x8x1x32xf32>
    tpu.vector_store %arg8[%c0_25, %c1_26, %c9_27, %c0_28], %49 {strides = array<i32>} : memref<2x10x10x32xf32, #tpu.memory_space<vmem>>, vector<2x8x1x32xf32>,
    %c0_29 = arith.constant 0 : index
    %c1_30 = arith.constant 1 : index
    %c1_31 = arith.constant 1 : index
    %c0_32 = arith.constant 0 : index
    %51 = vector.load %arg8[%c0_29, %c1_30, %c1_31, %c0_32] : memref<2x10x10x32xf32, #tpu.memory_space<vmem>>, vector<2x8x8x32xf32>
    tpu.vector_store %arg8[%c0_29, %c1_30, %c1_31, %c0_32], %42 {strides = array<i32>} : memref<2x10x10x32xf32, #tpu.memory_space<vmem>>, vector<2x8x8x32xf32>,
    %cst_33 = arith.constant 0.000000e+00 : f32
    %52 = vector.broadcast %cst_33 : f32 to vector<128x64xf32>
    %c0_34 = arith.constant 0 : index
    %c0_35 = arith.constant 0 : index
    %c0_36 = arith.constant 0 : index
    %c0_37 = arith.constant 0 : index
    %53 = vector.load %arg8[%c0_34, %c0_35, %c0_36, %c0_37] : memref<2x10x10x32xf32, #tpu.memory_space<vmem>>, vector<2x8x8x32xf32>
    %54 = vector.shape_cast %53 : vector<2x8x8x32xf32> to vector<128x32xf32>
    %c0_38 = arith.constant 0 : index
    %c0_39 = arith.constant 0 : index
    %c0_40 = arith.constant 0 : index
    %55 = vector.load %arg1[%c0_38, %c0_39, %c0_40] : memref<9x32x64xf32, #tpu.memory_space<vmem>>, vector<1x32x64xf32>
    %56 = vector.shape_cast %55 : vector<1x32x64xf32> to vector<32x64xf32>
    %cst_41 = arith.constant dense<0.000000e+00> : vector<128x64xf32>
    %57 = tpu.matmul %54, %56, %cst_41 {dimension_numbers = #tpu.dot_dimension_numbers<[1], [0], [0], [1], [0, 0, 1, 1], [], []>, precision = #tpu.contract_precision<fp32>} : vector<128x32xf32>, vector<32x64xf32>, vector<128x64xf32> -> vector<128x64xf32>
    %58 = arith.addf %52, %57 : vector<128x64xf32>
    %c0_42 = arith.constant 0 : index
    %c0_43 = arith.constant 0 : index
    %c1_44 = arith.constant 1 : index
    %c0_45 = arith.constant 0 : index
    %59 = vector.load %arg8[%c0_42, %c0_43, %c1_44, %c0_45] : memref<2x10x10x32xf32, #tpu.memory_space<vmem>>, vector<2x8x8x32xf32>
    %60 = vector.shape_cast %59 : vector<2x8x8x32xf32> to vector<128x32xf32>
    %c1_46 = arith.constant 1 : index
    %c0_47 = arith.constant 0 : index
    %c0_48 = arith.constant 0 : index
    %61 = vector.load %arg1[%c1_46, %c0_47, %c0_48] : memref<9x32x64xf32, #tpu.memory_space<vmem>>, vector<1x32x64xf32>
    %62 = vector.shape_cast %61 : vector<1x32x64xf32> to vector<32x64xf32>
    %cst_49 = arith.constant dense<0.000000e+00> : vector<128x64xf32>
    %63 = tpu.matmul %60, %62, %cst_49 {dimension_numbers = #tpu.dot_dimension_numbers<[1], [0], [0], [1], [0, 0, 1, 1], [], []>, precision = #tpu.contract_precision<fp32>} : vector<128x32xf32>, vector<32x64xf32>, vector<128x64xf32> -> vector<128x64xf32>
    %64 = arith.addf %58, %63 : vector<128x64xf32>
    %c0_50 = arith.constant 0 : index
    %c0_51 = arith.constant 0 : index
    %c2 = arith.constant 2 : index
    %c0_52 = arith.constant 0 : index
    %65 = vector.load %arg8[%c0_50, %c0_51, %c2, %c0_52] : memref<2x10x10x32xf32, #tpu.memory_space<vmem>>, vector<2x8x8x32xf32>
    %66 = vector.shape_cast %65 : vector<2x8x8x32xf32> to vector<128x32xf32>
    %c2_53 = arith.constant 2 : index
    %c0_54 = arith.constant 0 : index
    %c0_55 = arith.constant 0 : index
    %67 = vector.load %arg1[%c2_53, %c0_54, %c0_55] : memref<9x32x64xf32, #tpu.memory_space<vmem>>, vector<1x32x64xf32>
    %68 = vector.shape_cast %67 : vector<1x32x64xf32> to vector<32x64xf32>
    %cst_56 = arith.constant dense<0.000000e+00> : vector<128x64xf32>
    %69 = tpu.matmul %66, %68, %cst_56 {dimension_numbers = #tpu.dot_dimension_numbers<[1], [0], [0], [1], [0, 0, 1, 1], [], []>, precision = #tpu.contract_precision<fp32>} : vector<128x32xf32>, vector<32x64xf32>, vector<128x64xf32> -> vector<128x64xf32>
    %70 = arith.addf %64, %69 : vector<128x64xf32>
    %c0_57 = arith.constant 0 : index
    %c1_58 = arith.constant 1 : index
    %c0_59 = arith.constant 0 : index
    %c0_60 = arith.constant 0 : index
    %71 = vector.load %arg8[%c0_57, %c1_58, %c0_59, %c0_60] : memref<2x10x10x32xf32, #tpu.memory_space<vmem>>, vector<2x8x8x32xf32>
    %72 = vector.shape_cast %71 : vector<2x8x8x32xf32> to vector<128x32xf32>
    %c3 = arith.constant 3 : index
    %c0_61 = arith.constant 0 : index
    %c0_62 = arith.constant 0 : index
    %73 = vector.load %arg1[%c3, %c0_61, %c0_62] : memref<9x32x64xf32, #tpu.memory_space<vmem>>, vector<1x32x64xf32>
    %74 = vector.shape_cast %73 : vector<1x32x64xf32> to vector<32x64xf32>
    %cst_63 = arith.constant dense<0.000000e+00> : vector<128x64xf32>
    %75 = tpu.matmul %72, %74, %cst_63 {dimension_numbers = #tpu.dot_dimension_numbers<[1], [0], [0], [1], [0, 0, 1, 1], [], []>, precision = #tpu.contract_precision<fp32>} : vector<128x32xf32>, vector<32x64xf32>, vector<128x64xf32> -> vector<128x64xf32>
    %76 = arith.addf %70, %75 : vector<128x64xf32>
    %c0_64 = arith.constant 0 : index
    %c1_65 = arith.constant 1 : index
    %c1_66 = arith.constant 1 : index
    %c0_67 = arith.constant 0 : index
    %77 = vector.load %arg8[%c0_64, %c1_65, %c1_66, %c0_67] : memref<2x10x10x32xf32, #tpu.memory_space<vmem>>, vector<2x8x8x32xf32>
    %78 = vector.shape_cast %77 : vector<2x8x8x32xf32> to vector<128x32xf32>
    %c4 = arith.constant 4 : index
    %c0_68 = arith.constant 0 : index
    %c0_69 = arith.constant 0 : index
    %79 = vector.load %arg1[%c4, %c0_68, %c0_69] : memref<9x32x64xf32, #tpu.memory_space<vmem>>, vector<1x32x64xf32>
    %80 = vector.shape_cast %79 : vector<1x32x64xf32> to vector<32x64xf32>
    %cst_70 = arith.constant dense<0.000000e+00> : vector<128x64xf32>
    %81 = tpu.matmul %78, %80, %cst_70 {dimension_numbers = #tpu.dot_dimension_numbers<[1], [0], [0], [1], [0, 0, 1, 1], [], []>, precision = #tpu.contract_precision<fp32>} : vector<128x32xf32>, vector<32x64xf32>, vector<128x64xf32> -> vector<128x64xf32>
    %82 = arith.addf %76, %81 : vector<128x64xf32>
    %c0_71 = arith.constant 0 : index
    %c1_72 = arith.constant 1 : index
    %c2_73 = arith.constant 2 : index
    %c0_74 = arith.constant 0 : index
    %83 = vector.load %arg8[%c0_71, %c1_72, %c2_73, %c0_74] : memref<2x10x10x32xf32, #tpu.memory_space<vmem>>, vector<2x8x8x32xf32>
    %84 = vector.shape_cast %83 : vector<2x8x8x32xf32> to vector<128x32xf32>
    %c5 = arith.constant 5 : index
    %c0_75 = arith.constant 0 : index
    %c0_76 = arith.constant 0 : index
    %85 = vector.load %arg1[%c5, %c0_75, %c0_76] : memref<9x32x64xf32, #tpu.memory_space<vmem>>, vector<1x32x64xf32>
    %86 = vector.shape_cast %85 : vector<1x32x64xf32> to vector<32x64xf32>
    %cst_77 = arith.constant dense<0.000000e+00> : vector<128x64xf32>
    %87 = tpu.matmul %84, %86, %cst_77 {dimension_numbers = #tpu.dot_dimension_numbers<[1], [0], [0], [1], [0, 0, 1, 1], [], []>, precision = #tpu.contract_precision<fp32>} : vector<128x32xf32>, vector<32x64xf32>, vector<128x64xf32> -> vector<128x64xf32>
    %88 = arith.addf %82, %87 : vector<128x64xf32>
    %c0_78 = arith.constant 0 : index
    %c2_79 = arith.constant 2 : index
    %c0_80 = arith.constant 0 : index
    %c0_81 = arith.constant 0 : index
    %89 = vector.load %arg8[%c0_78, %c2_79, %c0_80, %c0_81] : memref<2x10x10x32xf32, #tpu.memory_space<vmem>>, vector<2x8x8x32xf32>
    %90 = vector.shape_cast %89 : vector<2x8x8x32xf32> to vector<128x32xf32>
    %c6 = arith.constant 6 : index
    %c0_82 = arith.constant 0 : index
    %c0_83 = arith.constant 0 : index
    %91 = vector.load %arg1[%c6, %c0_82, %c0_83] : memref<9x32x64xf32, #tpu.memory_space<vmem>>, vector<1x32x64xf32>
    %92 = vector.shape_cast %91 : vector<1x32x64xf32> to vector<32x64xf32>
    %cst_84 = arith.constant dense<0.000000e+00> : vector<128x64xf32>
    %93 = tpu.matmul %90, %92, %cst_84 {dimension_numbers = #tpu.dot_dimension_numbers<[1], [0], [0], [1], [0, 0, 1, 1], [], []>, precision = #tpu.contract_precision<fp32>} : vector<128x32xf32>, vector<32x64xf32>, vector<128x64xf32> -> vector<128x64xf32>
    %94 = arith.addf %88, %93 : vector<128x64xf32>
    %c0_85 = arith.constant 0 : index
    %c2_86 = arith.constant 2 : index
    %c1_87 = arith.constant 1 : index
    %c0_88 = arith.constant 0 : index
    %95 = vector.load %arg8[%c0_85, %c2_86, %c1_87, %c0_88] : memref<2x10x10x32xf32, #tpu.memory_space<vmem>>, vector<2x8x8x32xf32>
    %96 = vector.shape_cast %95 : vector<2x8x8x32xf32> to vector<128x32xf32>
    %c7 = arith.constant 7 : index
    %c0_89 = arith.constant 0 : index
    %c0_90 = arith.constant 0 : index
    %97 = vector.load %arg1[%c7, %c0_89, %c0_90] : memref<9x32x64xf32, #tpu.memory_space<vmem>>, vector<1x32x64xf32>
    %98 = vector.shape_cast %97 : vector<1x32x64xf32> to vector<32x64xf32>
    %cst_91 = arith.constant dense<0.000000e+00> : vector<128x64xf32>
    %99 = tpu.matmul %96, %98, %cst_91 {dimension_numbers = #tpu.dot_dimension_numbers<[1], [0], [0], [1], [0, 0, 1, 1], [], []>, precision = #tpu.contract_precision<fp32>} : vector<128x32xf32>, vector<32x64xf32>, vector<128x64xf32> -> vector<128x64xf32>
    %100 = arith.addf %94, %99 : vector<128x64xf32>
    %c0_92 = arith.constant 0 : index
    %c2_93 = arith.constant 2 : index
    %c2_94 = arith.constant 2 : index
    %c0_95 = arith.constant 0 : index
    %101 = vector.load %arg8[%c0_92, %c2_93, %c2_94, %c0_95] : memref<2x10x10x32xf32, #tpu.memory_space<vmem>>, vector<2x8x8x32xf32>
    %102 = vector.shape_cast %101 : vector<2x8x8x32xf32> to vector<128x32xf32>
    %c8 = arith.constant 8 : index
    %c0_96 = arith.constant 0 : index
    %c0_97 = arith.constant 0 : index
    %103 = vector.load %arg1[%c8, %c0_96, %c0_97] : memref<9x32x64xf32, #tpu.memory_space<vmem>>, vector<1x32x64xf32>
    %104 = vector.shape_cast %103 : vector<1x32x64xf32> to vector<32x64xf32>
    %cst_98 = arith.constant dense<0.000000e+00> : vector<128x64xf32>
    %105 = tpu.matmul %102, %104, %cst_98 {dimension_numbers = #tpu.dot_dimension_numbers<[1], [0], [0], [1], [0, 0, 1, 1], [], []>, precision = #tpu.contract_precision<fp32>} : vector<128x32xf32>, vector<32x64xf32>, vector<128x64xf32> -> vector<128x64xf32>
    %106 = arith.addf %100, %105 : vector<128x64xf32>
    %cst_99 = arith.constant dense<0.000000e+00> : vector<64xf32>
    %107 = vector.multi_reduction <add>, %106, %cst_99 [0] : vector<128x64xf32> to vector<64xf32>
    %108 = vector.shape_cast %107 : vector<64xf32> to vector<1x64xf32>
    %cst_100 = arith.constant dense<0.000000e+00> : vector<1x8xf32>
    %109 = tpu.matmul %108, %20, %cst_100 {dimension_numbers = #tpu.dot_dimension_numbers<[1], [0], [0], [1], [0, 0, 1, 1], [], []>, precision = #tpu.contract_precision<fp32>} : vector<1x64xf32>, vector<64x8xf32>, vector<1x8xf32> -> vector<1x8xf32>
    %cst_101 = arith.constant 9.765625E-4 : f32
    %110 = vector.broadcast %cst_101 : f32 to vector<1x8xf32>
    %111 = arith.mulf %109, %110 : vector<1x8xf32>
    %cst_102 = arith.constant dense<0.000000e+00> : vector<1x64xf32>
    %112 = tpu.matmul %111, %41, %cst_102 {dimension_numbers = #tpu.dot_dimension_numbers<[1], [0], [0], [1], [0, 0, 1, 1], [], []>, precision = #tpu.contract_precision<fp32>} : vector<1x8xf32>, vector<8x64xf32>, vector<1x64xf32> -> vector<1x64xf32>
    %113 = vector.broadcast %112 : vector<1x64xf32> to vector<128x64xf32>
    %114 = arith.subf %106, %113 : vector<128x64xf32>
    %115 = arith.mulf %114, %114 : vector<128x64xf32>
    %cst_103 = arith.constant dense<0.000000e+00> : vector<64xf32>
    %116 = vector.multi_reduction <add>, %115, %cst_103 [0] : vector<128x64xf32> to vector<64xf32>
    %117 = vector.shape_cast %116 : vector<64xf32> to vector<1x64xf32>
    %cst_104 = arith.constant dense<0.000000e+00> : vector<1x8xf32>
    %118 = tpu.matmul %117, %20, %cst_104 {dimension_numbers = #tpu.dot_dimension_numbers<[1], [0], [0], [1], [0, 0, 1, 1], [], []>, precision = #tpu.contract_precision<fp32>} : vector<1x64xf32>, vector<64x8xf32>, vector<1x8xf32> -> vector<1x8xf32>
    %cst_105 = arith.constant 9.765625E-4 : f32
    %119 = vector.broadcast %cst_105 : f32 to vector<1x8xf32>
    %120 = arith.mulf %118, %119 : vector<1x8xf32>
    %c0_106 = arith.constant 0 : index
    %c0_107 = arith.constant 0 : index
    %121 = vector.load %arg3[%c0_106, %c0_107] : memref<1x8xf32, #tpu.memory_space<vmem>>, vector<1x8xf32>
    %cst_108 = arith.constant 9.99999974E-6 : f32
    %122 = vector.broadcast %cst_108 : f32 to vector<1x8xf32>
    %123 = arith.addf %120, %122 : vector<1x8xf32>
    %124 = math.rsqrt %123 : vector<1x8xf32>
    %125 = arith.mulf %121, %124 : vector<1x8xf32>
    %cst_109 = arith.constant dense<0.000000e+00> : vector<1x64xf32>
    %126 = tpu.matmul %125, %41, %cst_109 {dimension_numbers = #tpu.dot_dimension_numbers<[1], [0], [0], [1], [0, 0, 1, 1], [], []>, precision = #tpu.contract_precision<fp32>} : vector<1x8xf32>, vector<8x64xf32>, vector<1x64xf32> -> vector<1x64xf32>
    %127 = vector.broadcast %126 : vector<1x64xf32> to vector<128x64xf32>
    %128 = arith.mulf %114, %127 : vector<128x64xf32>
    %c0_110 = arith.constant 0 : index
    %c0_111 = arith.constant 0 : index
    %129 = vector.load %arg4[%c0_110, %c0_111] : memref<1x8xf32, #tpu.memory_space<vmem>>, vector<1x8xf32>
    %cst_112 = arith.constant dense<0.000000e+00> : vector<1x64xf32>
    %130 = tpu.matmul %129, %41, %cst_112 {dimension_numbers = #tpu.dot_dimension_numbers<[1], [0], [0], [1], [0, 0, 1, 1], [], []>, precision = #tpu.contract_precision<fp32>} : vector<1x8xf32>, vector<8x64xf32>, vector<1x64xf32> -> vector<1x64xf32>
    %131 = vector.broadcast %130 : vector<1x64xf32> to vector<128x64xf32>
    %132 = arith.addf %128, %131 : vector<128x64xf32>
    %133 = vector.shape_cast %132 : vector<128x64xf32> to vector<2x8x8x64xf32>
    %cst_113 = arith.constant 0.000000e+00 : f32
    %134 = vector.broadcast %cst_113 : f32 to vector<2x1x10x64xf32>
    %c0_114 = arith.constant 0 : index
    %c0_115 = arith.constant 0 : index
    %c0_116 = arith.constant 0 : index
    %c0_117 = arith.constant 0 : index
    %135 = vector.load %arg9[%c0_114, %c0_115, %c0_116, %c0_117] : memref<2x10x10x64xf32, #tpu.memory_space<vmem>>, vector<2x1x10x64xf32>
    tpu.vector_store %arg9[%c0_114, %c0_115, %c0_116, %c0_117], %134 {strides = array<i32>} : memref<2x10x10x64xf32, #tpu.memory_space<vmem>>, vector<2x1x10x64xf32>,
    %cst_118 = arith.constant 0.000000e+00 : f32
    %136 = vector.broadcast %cst_118 : f32 to vector<2x1x10x64xf32>
    %c0_119 = arith.constant 0 : index
    %c9_120 = arith.constant 9 : index
    %c0_121 = arith.constant 0 : index
    %c0_122 = arith.constant 0 : index
    %137 = vector.load %arg9[%c0_119, %c9_120, %c0_121, %c0_122] : memref<2x10x10x64xf32, #tpu.memory_space<vmem>>, vector<2x1x10x64xf32>
    tpu.vector_store %arg9[%c0_119, %c9_120, %c0_121, %c0_122], %136 {strides = array<i32>} : memref<2x10x10x64xf32, #tpu.memory_space<vmem>>, vector<2x1x10x64xf32>,
    %cst_123 = arith.constant 0.000000e+00 : f32
    %138 = vector.broadcast %cst_123 : f32 to vector<2x8x1x64xf32>
    %c0_124 = arith.constant 0 : index
    %c1_125 = arith.constant 1 : index
    %c0_126 = arith.constant 0 : index
    %c0_127 = arith.constant 0 : index
    %139 = vector.load %arg9[%c0_124, %c1_125, %c0_126, %c0_127] : memref<2x10x10x64xf32, #tpu.memory_space<vmem>>, vector<2x8x1x64xf32>
    tpu.vector_store %arg9[%c0_124, %c1_125, %c0_126, %c0_127], %138 {strides = array<i32>} : memref<2x10x10x64xf32, #tpu.memory_space<vmem>>, vector<2x8x1x64xf32>,
    %cst_128 = arith.constant 0.000000e+00 : f32
    %140 = vector.broadcast %cst_128 : f32 to vector<2x8x1x64xf32>
    %c0_129 = arith.constant 0 : index
    %c1_130 = arith.constant 1 : index
    %c9_131 = arith.constant 9 : index
    %c0_132 = arith.constant 0 : index
    %141 = vector.load %arg9[%c0_129, %c1_130, %c9_131, %c0_132] : memref<2x10x10x64xf32, #tpu.memory_space<vmem>>, vector<2x8x1x64xf32>
    tpu.vector_store %arg9[%c0_129, %c1_130, %c9_131, %c0_132], %140 {strides = array<i32>} : memref<2x10x10x64xf32, #tpu.memory_space<vmem>>, vector<2x8x1x64xf32>,
    %c0_133 = arith.constant 0 : index
    %c1_134 = arith.constant 1 : index
    %c1_135 = arith.constant 1 : index
    %c0_136 = arith.constant 0 : index
    %142 = vector.load %arg9[%c0_133, %c1_134, %c1_135, %c0_136] : memref<2x10x10x64xf32, #tpu.memory_space<vmem>>, vector<2x8x8x64xf32>
    tpu.vector_store %arg9[%c0_133, %c1_134, %c1_135, %c0_136], %133 {strides = array<i32>} : memref<2x10x10x64xf32, #tpu.memory_space<vmem>>, vector<2x8x8x64xf32>,
    %cst_137 = arith.constant 0.000000e+00 : f32
    %143 = vector.broadcast %cst_137 : f32 to vector<128x64xf32>
    %c0_138 = arith.constant 0 : index
    %c0_139 = arith.constant 0 : index
    %c0_140 = arith.constant 0 : index
    %c0_141 = arith.constant 0 : index
    %144 = vector.load %arg9[%c0_138, %c0_139, %c0_140, %c0_141] : memref<2x10x10x64xf32, #tpu.memory_space<vmem>>, vector<2x8x8x64xf32>
    %145 = vector.shape_cast %144 : vector<2x8x8x64xf32> to vector<128x64xf32>
    %c0_142 = arith.constant 0 : index
    %c0_143 = arith.constant 0 : index
    %c0_144 = arith.constant 0 : index
    %146 = vector.load %arg2[%c0_142, %c0_143, %c0_144] : memref<9x64x64xf32, #tpu.memory_space<vmem>>, vector<1x64x64xf32>
    %147 = vector.shape_cast %146 : vector<1x64x64xf32> to vector<64x64xf32>
    %cst_145 = arith.constant dense<0.000000e+00> : vector<128x64xf32>
    %148 = tpu.matmul %145, %147, %cst_145 {dimension_numbers = #tpu.dot_dimension_numbers<[1], [0], [0], [1], [0, 0, 1, 1], [], []>, precision = #tpu.contract_precision<fp32>} : vector<128x64xf32>, vector<64x64xf32>, vector<128x64xf32> -> vector<128x64xf32>
    %149 = arith.addf %143, %148 : vector<128x64xf32>
    %c0_146 = arith.constant 0 : index
    %c0_147 = arith.constant 0 : index
    %c1_148 = arith.constant 1 : index
    %c0_149 = arith.constant 0 : index
    %150 = vector.load %arg9[%c0_146, %c0_147, %c1_148, %c0_149] : memref<2x10x10x64xf32, #tpu.memory_space<vmem>>, vector<2x8x8x64xf32>
    %151 = vector.shape_cast %150 : vector<2x8x8x64xf32> to vector<128x64xf32>
    %c1_150 = arith.constant 1 : index
    %c0_151 = arith.constant 0 : index
    %c0_152 = arith.constant 0 : index
    %152 = vector.load %arg2[%c1_150, %c0_151, %c0_152] : memref<9x64x64xf32, #tpu.memory_space<vmem>>, vector<1x64x64xf32>
    %153 = vector.shape_cast %152 : vector<1x64x64xf32> to vector<64x64xf32>
    %cst_153 = arith.constant dense<0.000000e+00> : vector<128x64xf32>
    %154 = tpu.matmul %151, %153, %cst_153 {dimension_numbers = #tpu.dot_dimension_numbers<[1], [0], [0], [1], [0, 0, 1, 1], [], []>, precision = #tpu.contract_precision<fp32>} : vector<128x64xf32>, vector<64x64xf32>, vector<128x64xf32> -> vector<128x64xf32>
    %155 = arith.addf %149, %154 : vector<128x64xf32>
    %c0_154 = arith.constant 0 : index
    %c0_155 = arith.constant 0 : index
    %c2_156 = arith.constant 2 : index
    %c0_157 = arith.constant 0 : index
    %156 = vector.load %arg9[%c0_154, %c0_155, %c2_156, %c0_157] : memref<2x10x10x64xf32, #tpu.memory_space<vmem>>, vector<2x8x8x64xf32>
    %157 = vector.shape_cast %156 : vector<2x8x8x64xf32> to vector<128x64xf32>
    %c2_158 = arith.constant 2 : index
    %c0_159 = arith.constant 0 : index
    %c0_160 = arith.constant 0 : index
    %158 = vector.load %arg2[%c2_158, %c0_159, %c0_160] : memref<9x64x64xf32, #tpu.memory_space<vmem>>, vector<1x64x64xf32>
    %159 = vector.shape_cast %158 : vector<1x64x64xf32> to vector<64x64xf32>
    %cst_161 = arith.constant dense<0.000000e+00> : vector<128x64xf32>
    %160 = tpu.matmul %157, %159, %cst_161 {dimension_numbers = #tpu.dot_dimension_numbers<[1], [0], [0], [1], [0, 0, 1, 1], [], []>, precision = #tpu.contract_precision<fp32>} : vector<128x64xf32>, vector<64x64xf32>, vector<128x64xf32> -> vector<128x64xf32>
    %161 = arith.addf %155, %160 : vector<128x64xf32>
    %c0_162 = arith.constant 0 : index
    %c1_163 = arith.constant 1 : index
    %c0_164 = arith.constant 0 : index
    %c0_165 = arith.constant 0 : index
    %162 = vector.load %arg9[%c0_162, %c1_163, %c0_164, %c0_165] : memref<2x10x10x64xf32, #tpu.memory_space<vmem>>, vector<2x8x8x64xf32>
    %163 = vector.shape_cast %162 : vector<2x8x8x64xf32> to vector<128x64xf32>
    %c3_166 = arith.constant 3 : index
    %c0_167 = arith.constant 0 : index
    %c0_168 = arith.constant 0 : index
    %164 = vector.load %arg2[%c3_166, %c0_167, %c0_168] : memref<9x64x64xf32, #tpu.memory_space<vmem>>, vector<1x64x64xf32>
    %165 = vector.shape_cast %164 : vector<1x64x64xf32> to vector<64x64xf32>
    %cst_169 = arith.constant dense<0.000000e+00> : vector<128x64xf32>
    %166 = tpu.matmul %163, %165, %cst_169 {dimension_numbers = #tpu.dot_dimension_numbers<[1], [0], [0], [1], [0, 0, 1, 1], [], []>, precision = #tpu.contract_precision<fp32>} : vector<128x64xf32>, vector<64x64xf32>, vector<128x64xf32> -> vector<128x64xf32>
    %167 = arith.addf %161, %166 : vector<128x64xf32>
    %c0_170 = arith.constant 0 : index
    %c1_171 = arith.constant 1 : index
    %c1_172 = arith.constant 1 : index
    %c0_173 = arith.constant 0 : index
    %168 = vector.load %arg9[%c0_170, %c1_171, %c1_172, %c0_173] : memref<2x10x10x64xf32, #tpu.memory_space<vmem>>, vector<2x8x8x64xf32>
    %169 = vector.shape_cast %168 : vector<2x8x8x64xf32> to vector<128x64xf32>
    %c4_174 = arith.constant 4 : index
    %c0_175 = arith.constant 0 : index
    %c0_176 = arith.constant 0 : index
    %170 = vector.load %arg2[%c4_174, %c0_175, %c0_176] : memref<9x64x64xf32, #tpu.memory_space<vmem>>, vector<1x64x64xf32>
    %171 = vector.shape_cast %170 : vector<1x64x64xf32> to vector<64x64xf32>
    %cst_177 = arith.constant dense<0.000000e+00> : vector<128x64xf32>
    %172 = tpu.matmul %169, %171, %cst_177 {dimension_numbers = #tpu.dot_dimension_numbers<[1], [0], [0], [1], [0, 0, 1, 1], [], []>, precision = #tpu.contract_precision<fp32>} : vector<128x64xf32>, vector<64x64xf32>, vector<128x64xf32> -> vector<128x64xf32>
    %173 = arith.addf %167, %172 : vector<128x64xf32>
    %c0_178 = arith.constant 0 : index
    %c1_179 = arith.constant 1 : index
    %c2_180 = arith.constant 2 : index
    %c0_181 = arith.constant 0 : index
    %174 = vector.load %arg9[%c0_178, %c1_179, %c2_180, %c0_181] : memref<2x10x10x64xf32, #tpu.memory_space<vmem>>, vector<2x8x8x64xf32>
    %175 = vector.shape_cast %174 : vector<2x8x8x64xf32> to vector<128x64xf32>
    %c5_182 = arith.constant 5 : index
    %c0_183 = arith.constant 0 : index
    %c0_184 = arith.constant 0 : index
    %176 = vector.load %arg2[%c5_182, %c0_183, %c0_184] : memref<9x64x64xf32, #tpu.memory_space<vmem>>, vector<1x64x64xf32>
    %177 = vector.shape_cast %176 : vector<1x64x64xf32> to vector<64x64xf32>
    %cst_185 = arith.constant dense<0.000000e+00> : vector<128x64xf32>
    %178 = tpu.matmul %175, %177, %cst_185 {dimension_numbers = #tpu.dot_dimension_numbers<[1], [0], [0], [1], [0, 0, 1, 1], [], []>, precision = #tpu.contract_precision<fp32>} : vector<128x64xf32>, vector<64x64xf32>, vector<128x64xf32> -> vector<128x64xf32>
    %179 = arith.addf %173, %178 : vector<128x64xf32>
    %c0_186 = arith.constant 0 : index
    %c2_187 = arith.constant 2 : index
    %c0_188 = arith.constant 0 : index
    %c0_189 = arith.constant 0 : index
    %180 = vector.load %arg9[%c0_186, %c2_187, %c0_188, %c0_189] : memref<2x10x10x64xf32, #tpu.memory_space<vmem>>, vector<2x8x8x64xf32>
    %181 = vector.shape_cast %180 : vector<2x8x8x64xf32> to vector<128x64xf32>
    %c6_190 = arith.constant 6 : index
    %c0_191 = arith.constant 0 : index
    %c0_192 = arith.constant 0 : index
    %182 = vector.load %arg2[%c6_190, %c0_191, %c0_192] : memref<9x64x64xf32, #tpu.memory_space<vmem>>, vector<1x64x64xf32>
    %183 = vector.shape_cast %182 : vector<1x64x64xf32> to vector<64x64xf32>
    %cst_193 = arith.constant dense<0.000000e+00> : vector<128x64xf32>
    %184 = tpu.matmul %181, %183, %cst_193 {dimension_numbers = #tpu.dot_dimension_numbers<[1], [0], [0], [1], [0, 0, 1, 1], [], []>, precision = #tpu.contract_precision<fp32>} : vector<128x64xf32>, vector<64x64xf32>, vector<128x64xf32> -> vector<128x64xf32>
    %185 = arith.addf %179, %184 : vector<128x64xf32>
    %c0_194 = arith.constant 0 : index
    %c2_195 = arith.constant 2 : index
    %c1_196 = arith.constant 1 : index
    %c0_197 = arith.constant 0 : index
    %186 = vector.load %arg9[%c0_194, %c2_195, %c1_196, %c0_197] : memref<2x10x10x64xf32, #tpu.memory_space<vmem>>, vector<2x8x8x64xf32>
    %187 = vector.shape_cast %186 : vector<2x8x8x64xf32> to vector<128x64xf32>
    %c7_198 = arith.constant 7 : index
    %c0_199 = arith.constant 0 : index
    %c0_200 = arith.constant 0 : index
    %188 = vector.load %arg2[%c7_198, %c0_199, %c0_200] : memref<9x64x64xf32, #tpu.memory_space<vmem>>, vector<1x64x64xf32>
    %189 = vector.shape_cast %188 : vector<1x64x64xf32> to vector<64x64xf32>
    %cst_201 = arith.constant dense<0.000000e+00> : vector<128x64xf32>
    %190 = tpu.matmul %187, %189, %cst_201 {dimension_numbers = #tpu.dot_dimension_numbers<[1], [0], [0], [1], [0, 0, 1, 1], [], []>, precision = #tpu.contract_precision<fp32>} : vector<128x64xf32>, vector<64x64xf32>, vector<128x64xf32> -> vector<128x64xf32>
    %191 = arith.addf %185, %190 : vector<128x64xf32>
    %c0_202 = arith.constant 0 : index
    %c2_203 = arith.constant 2 : index
    %c2_204 = arith.constant 2 : index
    %c0_205 = arith.constant 0 : index
    %192 = vector.load %arg9[%c0_202, %c2_203, %c2_204, %c0_205] : memref<2x10x10x64xf32, #tpu.memory_space<vmem>>, vector<2x8x8x64xf32>
    %193 = vector.shape_cast %192 : vector<2x8x8x64xf32> to vector<128x64xf32>
    %c8_206 = arith.constant 8 : index
    %c0_207 = arith.constant 0 : index
    %c0_208 = arith.constant 0 : index
    %194 = vector.load %arg2[%c8_206, %c0_207, %c0_208] : memref<9x64x64xf32, #tpu.memory_space<vmem>>, vector<1x64x64xf32>
    %195 = vector.shape_cast %194 : vector<1x64x64xf32> to vector<64x64xf32>
    %cst_209 = arith.constant dense<0.000000e+00> : vector<128x64xf32>
    %196 = tpu.matmul %193, %195, %cst_209 {dimension_numbers = #tpu.dot_dimension_numbers<[1], [0], [0], [1], [0, 0, 1, 1], [], []>, precision = #tpu.contract_precision<fp32>} : vector<128x64xf32>, vector<64x64xf32>, vector<128x64xf32> -> vector<128x64xf32>
    %197 = arith.addf %191, %196 : vector<128x64xf32>
    %cst_210 = arith.constant dense<0.000000e+00> : vector<64xf32>
    %198 = vector.multi_reduction <add>, %197, %cst_210 [0] : vector<128x64xf32> to vector<64xf32>
    %199 = vector.shape_cast %198 : vector<64xf32> to vector<1x64xf32>
    %cst_211 = arith.constant dense<0.000000e+00> : vector<1x8xf32>
    %200 = tpu.matmul %199, %20, %cst_211 {dimension_numbers = #tpu.dot_dimension_numbers<[1], [0], [0], [1], [0, 0, 1, 1], [], []>, precision = #tpu.contract_precision<fp32>} : vector<1x64xf32>, vector<64x8xf32>, vector<1x8xf32> -> vector<1x8xf32>
    %cst_212 = arith.constant 9.765625E-4 : f32
    %201 = vector.broadcast %cst_212 : f32 to vector<1x8xf32>
    %202 = arith.mulf %200, %201 : vector<1x8xf32>
    %cst_213 = arith.constant dense<0.000000e+00> : vector<1x64xf32>
    %203 = tpu.matmul %202, %41, %cst_213 {dimension_numbers = #tpu.dot_dimension_numbers<[1], [0], [0], [1], [0, 0, 1, 1], [], []>, precision = #tpu.contract_precision<fp32>} : vector<1x8xf32>, vector<8x64xf32>, vector<1x64xf32> -> vector<1x64xf32>
    %204 = vector.broadcast %203 : vector<1x64xf32> to vector<128x64xf32>
    %205 = arith.subf %197, %204 : vector<128x64xf32>
    %206 = arith.mulf %205, %205 : vector<128x64xf32>
    %cst_214 = arith.constant dense<0.000000e+00> : vector<64xf32>
    %207 = vector.multi_reduction <add>, %206, %cst_214 [0] : vector<128x64xf32> to vector<64xf32>
    %208 = vector.shape_cast %207 : vector<64xf32> to vector<1x64xf32>
    %cst_215 = arith.constant dense<0.000000e+00> : vector<1x8xf32>
    %209 = tpu.matmul %208, %20, %cst_215 {dimension_numbers = #tpu.dot_dimension_numbers<[1], [0], [0], [1], [0, 0, 1, 1], [], []>, precision = #tpu.contract_precision<fp32>} : vector<1x64xf32>, vector<64x8xf32>, vector<1x8xf32> -> vector<1x8xf32>
    %cst_216 = arith.constant 9.765625E-4 : f32
    %210 = vector.broadcast %cst_216 : f32 to vector<1x8xf32>
    %211 = arith.mulf %209, %210 : vector<1x8xf32>
    %c0_217 = arith.constant 0 : index
    %c0_218 = arith.constant 0 : index
    %212 = vector.load %arg5[%c0_217, %c0_218] : memref<1x8xf32, #tpu.memory_space<vmem>>, vector<1x8xf32>
    %cst_219 = arith.constant 9.99999974E-6 : f32
    %213 = vector.broadcast %cst_219 : f32 to vector<1x8xf32>
    %214 = arith.addf %211, %213 : vector<1x8xf32>
    %215 = math.rsqrt %214 : vector<1x8xf32>
    %216 = arith.mulf %212, %215 : vector<1x8xf32>
    %cst_220 = arith.constant dense<0.000000e+00> : vector<1x64xf32>
    %217 = tpu.matmul %216, %41, %cst_220 {dimension_numbers = #tpu.dot_dimension_numbers<[1], [0], [0], [1], [0, 0, 1, 1], [], []>, precision = #tpu.contract_precision<fp32>} : vector<1x8xf32>, vector<8x64xf32>, vector<1x64xf32> -> vector<1x64xf32>
    %218 = vector.broadcast %217 : vector<1x64xf32> to vector<128x64xf32>
    %219 = arith.mulf %205, %218 : vector<128x64xf32>
    %c0_221 = arith.constant 0 : index
    %c0_222 = arith.constant 0 : index
    %220 = vector.load %arg6[%c0_221, %c0_222] : memref<1x8xf32, #tpu.memory_space<vmem>>, vector<1x8xf32>
    %cst_223 = arith.constant dense<0.000000e+00> : vector<1x64xf32>
    %221 = tpu.matmul %220, %41, %cst_223 {dimension_numbers = #tpu.dot_dimension_numbers<[1], [0], [0], [1], [0, 0, 1, 1], [], []>, precision = #tpu.contract_precision<fp32>} : vector<1x8xf32>, vector<8x64xf32>, vector<1x64xf32> -> vector<1x64xf32>
    %222 = vector.broadcast %221 : vector<1x64xf32> to vector<128x64xf32>
    %223 = arith.addf %219, %222 : vector<128x64xf32>
    %c0_224 = arith.constant 0 : index
    %c0_225 = arith.constant 0 : index
    %224 = vector.load %arg7[%c0_224, %c0_225] : memref<128x64xf32, #tpu.memory_space<vmem>>, vector<128x64xf32>
    tpu.vector_store %arg7[%c0_224, %c0_225], %223 {strides = array<i32>} : memref<128x64xf32, #tpu.memory_space<vmem>>, vector<128x64xf32>,
    return
  }
}

</mosaic_0001>

<bundles_post_ra>
// kernel: tpu_custom_call.1
= control target key start
LH: loop header
LB: loop body
LE: loop exit
PB: predicated region body
PF: predicated region fallthrough
CT: control target
= control target key end

     0   :  { %12 = vsyncpa [#allocation5], 0  ;;  %s46386_s0 = inlined_call_operand.hbm [shape: f32[2,8,8,32], index: 0, kind: input, shape index: {}]   ;;  %s46387_s1 = inlined_call_operand.hbm [shape: f32[9,32,64], index: 1, kind: input, shape index: {}]   ;;  %s46388_s2 = inlined_call_operand.hbm [shape: f32[9,64,64], index: 2, kind: input, shape index: {}]   ;;  %s46389_s3 = inlined_call_operand.vmem [shape: f32[1,8], index: 3, kind: input, shape index: {}]   ;;  %s46390_s4 = inlined_call_operand.vmem [shape: f32[1,8], index: 4, kind: input, shape index: {}]   ;;  %s46391_s5 = inlined_call_operand.vmem [shape: f32[1,8], index: 5, kind: input, shape index: {}]   ;;  %s46392_s6 = inlined_call_operand.vmem [shape: f32[1,8], index: 6, kind: input, shape index: {}]   ;;  %s46393_s7 = inlined_call_operand.vmem [shape: f32[128,64], index: 7, kind: output, shape index: {}]  }
   0x1   :  { %13 = vsyncpa [#allocation7], 0  ;;  %s38624_s24 = smov [#allocation6]   ;;  %s38625_s26 = smov [#allocation4]  }
   0x2   :  { %s31_s25 = sshll.u32 %s38624_s24, 4  ;;  %s19_s27 = sshll.u32 %s38625_s26, 4  ;;  %s32_s25 = int_to_ptr.vmem [resolvable:$true] %s31_s25  ;;  %s38674_s27 = int_to_ptr.vmem [resolvable:$true] %s19_s27 }
   0x3   :  { %s38554_s30 = scalar_lea.hbm %s46387_s1, 4608 }
   0x4   :  { %p38555_p0 = scmp.ne.s32.totalorder %s46387_s1, %s38554_s30  ;;  %p38558_p1 = scmp.lt.u32.totalorder %s38554_s30, %s46387_s1 }
   0x6   :  { %p38560_p2 = pnand %p38558_p1, %p38555_p0 }
   0x8   :  { %38563 = shalt.err (!%p38560_p2)
}
   0x9   :  { %s38564_s12 = scalar_lea.vmem %s32_s25, 4608  ;;  %p38569_p4 = scmp.lt.s32.totalorder %s32_s25, %s32_s25 }
   0xa   :  { %p38565_p3 = scmp.ne.s32.totalorder %s32_s25, %s38564_s12  ;;  %p38570_p5 = scmp.lt.s32.totalorder %s38564_s12, %s38564_s12 }
   0xc   :  { %p38571_p6 = por %p38570_p5, %p38569_p4 }
   0xe   :  { %p38572_p7 = pnand %p38571_p6, %p38565_p3 }
  0x10   :  { %38575 = shalt.err (!%p38572_p7)
}
  0x11   :  { %s38626_s13 = smov 128   ;;  %s38627_s14 = smov 8  }
  0x12   :  { %37 = dma.hbm_to_vmem [thread:$0]  %s46387_s1, 4608, %s32_s25, [#allocation7], %s38626_s13, %s38626_s13, %s38627_s14  }
  0x13   :  { %s38576_s19 = scalar_lea.hbm %s46386_s0, 2048 }
  0x14   :  { %p38577_p8 = scmp.ne.s32.totalorder %s46386_s0, %s38576_s19  ;;  %p38580_p9 = scmp.lt.u32.totalorder %s38576_s19, %s46386_s0 }
  0x16   :  { %p38582_p10 = pnand %p38580_p9, %p38577_p8 }
  0x18   :  { %38585 = shalt.err (!%p38582_p10)
}
  0x19   :  { %s38586_s24 = scalar_lea.vmem %s38674_s27, 2048  ;;  %p38591_p12 = scmp.lt.s32.totalorder %s38674_s27, %s38674_s27 }
  0x1a   :  { %p38587_p11 = scmp.ne.s32.totalorder %s38674_s27, %s38586_s24  ;;  %p38592_p13 = scmp.lt.s32.totalorder %s38586_s24, %s38586_s24 }
  0x1c   :  { %p38593_p0 = por %p38592_p13, %p38591_p12 }
  0x1e   :  { %p38594_p1 = pnand %p38593_p0, %p38587_p11 }
  0x20   :  { %38597 = shalt.err (!%p38594_p1)
}
  0x21   :  { %25 = dma.hbm_to_vmem [thread:$0]  %s46386_s0, 2048, %s38674_s27, [#allocation5], %s38626_s13, %s38626_s13, %s38627_s14  }
  0x22   :  { %s38628_s26 = smov [#allocation8]   ;;  %s38598_s8 = scalar_lea.hbm %s46388_s2, 9216 }
  0x23   :  { %s43_s28 = sshll.u32 %s38628_s26, 4  ;;  %p38599_p2 = scmp.ne.s32.totalorder %s46388_s2, %s38598_s8  ;;  %s44_s28 = int_to_ptr.vmem [resolvable:$true] %s43_s28 }
  0x24   :  { %p38602_p3 = scmp.lt.u32.totalorder %s38598_s8, %s46388_s2 }
  0x26   :  { %p38604_p4 = pnand %p38602_p3, %p38599_p2 }
  0x28   :  { %38607 = shalt.err (!%p38604_p4)
}
  0x29   :  { %s38608_s15 = scalar_lea.vmem %s44_s28, 9216  ;;  %p38613_p6 = scmp.lt.s32.totalorder %s44_s28, %s44_s28 }
  0x2a   :  { %p38609_p5 = scmp.ne.s32.totalorder %s44_s28, %s38608_s15  ;;  %p38614_p7 = scmp.lt.s32.totalorder %s38608_s15, %s38608_s15 }
  0x2c   :  { %p38615_p8 = por %p38614_p7, %p38613_p6 }
  0x2e   :  { %p38616_p9 = pnand %p38615_p8, %p38609_p5 }
  0x30   :  { %38619 = shalt.err (!%p38616_p9)
}
  0x31   :  { %49 = dma.hbm_to_vmem [thread:$0]  %s46388_s2, 9216, %s44_s28, [#allocation7], %s38626_s13, %s38626_s13, %s38627_s14  }
  0x32   :  { %38620 = dma.done.wait [#allocation5], 2048  }
  0x33   :  { %38621 = vsyncadd [#allocation5], 4294965248 }
  0x34   :  { %38622 = dma.done.wait [#allocation7], 13824  }
  0x35   :  { %38623 = vsyncadd [#allocation7], 4294953472  ;;  %vm229_vm0 = vcmask 261120   ;;  %vm231_vm1 = vcmask 254976   ;;  %v46396_v0 = vmov 0.0   ;;  %v327_v1 = vld [vmem:[#allocation6 + $0x20] sm:$0xff] }
  0x36   :  { %230 = vst.msk [vmem:[#allocation2] sm:$0xff] %vm229_vm0, %v46396_v0  ;;  %233 = vst.msk [vmem:[#allocation2 + $0xa0] sm:$0xff] %vm229_vm0, %v46396_v0  ;;  %v328_v2 = vld [vmem:[#allocation6 + $0x28] sm:$0xff]  ;;  %v329_v3 = vld [vmem:[#allocation6 + $0x30] sm:$0xff]  ;;  %v380_v4 = vand.u32 4294901760, %v327_v1  ;;  %vm241_vm2 = vcmask 253952  }
  0x37   :  { %232 = vst.msk [vmem:[#allocation2 + $0x8] sm:$0x3] %vm231_vm1, %v46396_v0  ;;  %234 = vst.msk [vmem:[#allocation2 + $0xa8] sm:$0x3] %vm231_vm1, %v46396_v0  ;;  %v383_v5 = vand.u32 4294901760, %v328_v2  ;;  %v330_v6 = vld [vmem:[#allocation6 + $0x38] sm:$0xff] }
  0x38   :  { %236 = vst.msk [vmem:[#allocation2 + $0x90] sm:$0xff] %vm229_vm0, %v46396_v0  ;;  %238 = vst.msk [vmem:[#allocation2 + $0x130] sm:$0xff] %vm229_vm0, %v46396_v0  ;;  %v386_v7 = vand.u32 4294901760, %v329_v3  ;;  %v213_v9 = vld [vmem:[#allocation4] sm:$0xff]  ;;  %v389_v10 = vand.u32 4294901760, %v330_v6  ;;  %v214_v12 = vld [vmem:[#allocation4 + $0x8] sm:$0xff]  ;;  %v610_v17 = vsub.f32 %v327_v1, %v380_v4 }
  0x39   :  { %237 = vst.msk [vmem:[#allocation2 + $0x98] sm:$0x3] %vm231_vm1, %v46396_v0  ;;  %239 = vst.msk [vmem:[#allocation2 + $0x138] sm:$0x3] %vm231_vm1, %v46396_v0  ;;  %v215_v13 = vld [vmem:[#allocation4 + $0x10] sm:$0xff]  ;;  %v216_v14 = vld [vmem:[#allocation4 + $0x18] sm:$0xff]  ;;  %v38740_v15 = vpack.c.bf16 %v383_v5, %v380_v4  ;;  %v617_v18 = vsub.f32 %v328_v2, %v383_v5 }
  0x3a   :  { %274 = vst.msk [vmem:[#allocation2 + $0x11] sm:$0xff] %vm229_vm0, %v213_v9  ;;  %275 = vst.msk [vmem:[#allocation2 + $0x21] sm:$0xff] %vm229_vm0, %v214_v12  ;;  %v217_v19 = vld [vmem:[#allocation4 + $0x20] sm:$0xff]  ;;  %v218_v20 = vld [vmem:[#allocation4 + $0x28] sm:$0xff]  ;;  %v38747_v22 = vpack.c.bf16 %v389_v10, %v386_v7  ;;  %v38752_v24 = vsub.f32 %v329_v3, %v386_v7  ;;  %v38754_v25 = vsub.f32 %v330_v6, %v389_v10  ;;  %v611_v29 = vand.u32 4294901760, %v610_v17 }
  0x3b   :  { %276 = vst.msk [vmem:[#allocation2 + $0x31] sm:$0xff] %vm229_vm0, %v215_v13  ;;  %277 = vst.msk [vmem:[#allocation2 + $0x41] sm:$0xff] %vm229_vm0, %v216_v14  ;;  %v219_v21 = vld [vmem:[#allocation4 + $0x30] sm:$0xff]  ;;  %v221_v26 = vld [vmem:[#allocation4 + $0x40] sm:$0xff]  ;;  %35164 = vmatprep.subr.bf16.mxu0 %v38740_v15  ;;  %v618_v30 = vand.u32 4294901760, %v617_v18  ;;  %v38775_v43 = vpack.c.bf16 %v617_v18, %v610_v17  ;;  %vm11193_vm3 = vcmask 523264  }
  0x3c   :  { %278 = vst.msk [vmem:[#allocation2 + $0x51] sm:$0xff] %vm229_vm0, %v217_v19  ;;  %279 = vst.msk [vmem:[#allocation2 + $0x61] sm:$0xff] %vm229_vm0, %v218_v20  ;;  %v222_v27 = vld [vmem:[#allocation4 + $0x48] sm:$0xff]  ;;  %v223_v32 = vld [vmem:[#allocation4 + $0x50] sm:$0xff]  ;;  %35166 = vmatpush3.bf16.msra.mxu0 %v38740_v15  ;;  %v625_v36 = vand.u32 4294901760, %v38752_v24  ;;  %v632_v37 = vand.u32 4294901760, %v38754_v25  ;;  %v612_v41 = vsub.f32 %v610_v17, %v611_v29 }
  0x3d   :  { %280 = vst.msk [vmem:[#allocation2 + $0x71] sm:$0xff] %vm229_vm0, %v219_v21  ;;  %282 = vst.msk [vmem:[#allocation2 + $0xb1] sm:$0xff] %vm229_vm0, %v221_v26  ;;  %v224_v33 = vld [vmem:[#allocation4 + $0x58] sm:$0xff]  ;;  %v225_v34 = vld [vmem:[#allocation4 + $0x60] sm:$0xff]  ;;  %35168 = vmatprep.subr.bf16.mxu0 %v38747_v22  ;;  %v619_v42 = vsub.f32 %v617_v18, %v618_v30  ;;  %v38777_v44 = vpack.c.bf16 %v618_v30, %v611_v29  ;;  %vm38632_vm14 = vmmov 0  }
  0x3e   :  { %v310_v8 = vld [vmem:[#allocation2 + $0x1] sm:$0xff]  ;;  %283 = vst.msk [vmem:[#allocation2 + $0xc1] sm:$0xff] %vm229_vm0, %v222_v27  ;;  %284 = vst.msk [vmem:[#allocation2 + $0xd1] sm:$0xff] %vm229_vm0, %v223_v32  ;;  %v227_v39 = vld [vmem:[#allocation4 + $0x70] sm:$0xff]  ;;  %v613_v46 = vand.u32 4294901760, %v612_v41  ;;  %v38782_v49 = vpack.c.bf16 %v632_v37, %v625_v36  ;;  %v626_v55 = vsub.f32 %v38752_v24, %v625_v36  ;;  %v633_v56 = vsub.f32 %v38754_v25, %v632_v37 }
  0x3f   :  { %v332_v11 = vsel %vm229_vm0, %v310_v8, 0  ;;  %v318_v23 = vld [vmem:[#allocation2 + $0xa1] sm:$0xff]  ;;  %285 = vst.msk [vmem:[#allocation2 + $0xe1] sm:$0xff] %vm229_vm0, %v224_v33  ;;  %286 = vst.msk [vmem:[#allocation2 + $0xf1] sm:$0xff] %vm229_vm0, %v225_v34  ;;  %v620_v47 = vand.u32 4294901760, %v619_v42 }
  0x40   :  { %v38742_v16 = vand.u32 4294901760, %v332_v11  ;;  %v356_v31 = vsel %vm229_vm0, %v318_v23, 0  ;;  %v226_v38 = vld [vmem:[#allocation4 + $0x68] sm:$0xff]  ;;  %288 = vst.msk [vmem:[#allocation2 + $0x111] sm:$0xff] %vm229_vm0, %v227_v39  ;;  %35170 = vmatpush3.bf16.msra.mxu0 %v38747_v22  ;;  %v627_v23 = vand.u32 4294901760, %v626_v55  ;;  %v634_v34 = vand.u32 4294901760, %v633_v56 }
  0x41   :  { %v38764_v35 = vand.u32 4294901760, %v356_v31  ;;  %287 = vst.msk [vmem:[#allocation2 + $0x101] sm:$0xff] %vm229_vm0, %v226_v38  ;;  %v311_v48 = vld [vmem:[#allocation2 + $0x11] sm:$0xff]  ;;  %v312_v51 = vld [vmem:[#allocation2 + $0x21] sm:$0xff]  ;;  %v35171_v58 = vpack.c.bf16 %v620_v47, %v613_v46 }
  0x42   :  { %v38758_v28 = vsub.f32 %v332_v11, %v38742_v16  ;;  %v335_v50 = vsel %vm229_vm0, %v311_v48, 0  ;;  %v313_v52 = vld [vmem:[#allocation2 + $0x31] sm:$0xff]  ;;  %v314_v53 = vld [vmem:[#allocation2 + $0x41] sm:$0xff]  ;;  %v338_v60 = vsel %vm229_vm0, %v312_v51, 0  ;;  %v35175_v48 = vpack.c.bf16 %v634_v34, %v627_v23  ;;  %242 = vst.msk [vmem:[#allocation2 + $0x10] sm:$0x1] %vm241_vm2, %v46396_v0 }
  0x43   :  { %v38787_v54 = vsub.f32 %v356_v31, %v38764_v35  ;;  %v38791_v59 = vand.u32 4294901760, %v335_v50  ;;  %v315_v61 = vld [vmem:[#allocation2 + $0x51] sm:$0xff]  ;;  %v316_v62 = vld [vmem:[#allocation2 + $0x61] sm:$0xff]  ;;  %v38794_v1 = vand.u32 4294901760, %v338_v60  ;;  %v341_v2 = vsel %vm229_vm0, %v313_v52, 0  ;;  %35172 = vmatprep.subr.bf16.mxu0 %v35171_v58 }
  0x44   :  { %v450_v40 = vand.u32 4294901760, %v38758_v28  ;;  %v317_v63 = vld [vmem:[#allocation2 + $0x71] sm:$0xff]  ;;  %v344_v3 = vsel %vm229_vm0, %v314_v53, 0  ;;  %v347_v4 = vsel %vm229_vm0, %v315_v61, 0  ;;  %v38802_v6 = vand.u32 4294901760, %v341_v2 }
  0x45   :  { %v38800_v5 = vsub.f32 %v335_v50, %v38791_v59  ;;  %v38804_v7 = vand.u32 4294901760, %v344_v3  ;;  %v38806_v8 = vand.u32 4294901760, %v347_v4  ;;  %v38809_v9 = vsub.f32 %v338_v60, %v38794_v1  ;;  %v319_v36 = vld [vmem:[#allocation2 + $0xb1] sm:$0xff]  ;;  %v320_v42 = vld [vmem:[#allocation2 + $0xc1] sm:$0xff]  ;;  %243 = vst.msk [vmem:[#allocation2 + $0x20] sm:$0x1] %vm241_vm2, %v46396_v0 }
  0x46   :  { %v451_v45 = vsub.f32 %v38758_v28, %v450_v40  ;;  %v350_v10 = vsel %vm229_vm0, %v316_v62, 0  ;;  %v353_v11 = vsel %vm229_vm0, %v317_v63, 0  ;;  %v530_v12 = vand.u32 4294901760, %v38787_v54  ;;  %v321_v50 = vld [vmem:[#allocation2 + $0xd1] sm:$0xff]  ;;  %v322_v51 = vld [vmem:[#allocation2 + $0xe1] sm:$0xff] }
  0x47   :  { %v460_v13 = vand.u32 4294901760, %v38800_v5  ;;  %v38816_v14 = vsub.f32 %v341_v2, %v38802_v6  ;;  %v38819_v17 = vsub.f32 %v344_v3, %v38804_v7  ;;  %v38822_v18 = vsub.f32 %v347_v4, %v38806_v8  ;;  %v323_v52 = vld [vmem:[#allocation2 + $0xf1] sm:$0xff]  ;;  %244 = vst.msk [vmem:[#allocation2 + $0x30] sm:$0x1] %vm241_vm2, %v46396_v0  ;;  %245 = vst.msk [vmem:[#allocation2 + $0x40] sm:$0x1] %vm241_vm2, %v46396_v0 }
  0x48   :  { %v452_v57 = vand.u32 4294901760, %v451_v45  ;;  %v470_v19 = vand.u32 4294901760, %v38809_v9  ;;  %v38825_v20 = vand.u32 4294901760, %v350_v10  ;;  %v38827_v21 = vand.u32 4294901760, %v353_v11  ;;  %v324_v2 = vld [vmem:[#allocation2 + $0x101] sm:$0xff] }
  0x49   :  { %v461_v26 = vsub.f32 %v38800_v5, %v460_v13  ;;  %v480_v27 = vand.u32 4294901760, %v38816_v14  ;;  %v490_v29 = vand.u32 4294901760, %v38819_v17  ;;  %v500_v30 = vand.u32 4294901760, %v38822_v18  ;;  %246 = vst.msk [vmem:[#allocation2 + $0x50] sm:$0x1] %vm241_vm2, %v46396_v0 }
  0x4a   :  { %30647 = vmatprep.mubr.f32.mxu0 %v452_v57  ;;  %v471_v31 = vsub.f32 %v38809_v9, %v470_v19  ;;  %v38839_v32 = vsub.f32 %v350_v10, %v38825_v20  ;;  %v38842_v33 = vsub.f32 %v353_v11, %v38827_v21  ;;  %v531_v56 = vsub.f32 %v38787_v54, %v530_v12  ;;  %v325_v11 = vld [vmem:[#allocation2 + $0x111] sm:$0xff] }
  0x4b   :  { %v462_v37 = vand.u32 4294901760, %v461_v26  ;;  %v481_v38 = vsub.f32 %v38816_v14, %v480_v27  ;;  %v491_v39 = vsub.f32 %v38819_v17, %v490_v29  ;;  %v501_v41 = vsub.f32 %v38822_v18, %v500_v30  ;;  %247 = vst.msk [vmem:[#allocation2 + $0x60] sm:$0x1] %vm241_vm2, %v46396_v0  ;;  %248 = vst.msk [vmem:[#allocation2 + $0x70] sm:$0x1] %vm241_vm2, %v46396_v0 }
  0x4c   :  { %v472_v45 = vand.u32 4294901760, %v471_v31  ;;  %v510_v46 = vand.u32 4294901760, %v38839_v32  ;;  %v520_v47 = vand.u32 4294901760, %v38842_v33  ;;  %v359_v57 = vsel %vm229_vm0, %v319_v36, 0  ;;  %249 = vst.msk [vmem:[#allocation2 + $0x80] sm:$0x1] %vm241_vm2, %v46396_v0 }
  0x4d   :  { %30648 = vmatmul.mubr.f32.vlgmr.msra.gmra.mrb[0].mxu0 %v462_v37  ;;  %v482_v53 = vand.u32 4294901760, %v481_v38  ;;  %v492_v55 = vand.u32 4294901760, %v491_v39  ;;  %v502_v60 = vand.u32 4294901760, %v501_v41  ;;  %v38862_v62 = vand.u32 4294901760, %v359_v57  ;;  %250 = vst.msk [vmem:[#allocation2 + $0xb0] sm:$0x1] %vm241_vm2, %v46396_v0 }
  0x4e   :  { %35174 = vmatpush3.bf16.msra.mxu0 %v35171_v58  ;;  %30650 = vmatprep.mubr.f32.mxu0 %v472_v45  ;;  %v511_v61 = vsub.f32 %v38839_v32, %v510_v46  ;;  %v362_v63 = vsel %vm229_vm0, %v320_v42, 0  ;;  %v365_v4 = vsel %vm229_vm0, %v321_v50, 0  ;;  %v368_v10 = vsel %vm229_vm0, %v322_v51, 0  ;;  %251 = vst.msk [vmem:[#allocation2 + $0xc0] sm:$0x1] %vm241_vm2, %v46396_v0 }
  0x4f   :  { %35176 = vmatprep.subr.bf16.mxu0 %v35175_v48  ;;  %v38865_v3 = vand.u32 4294901760, %v362_v63  ;;  %v371_v58 = vsel %vm229_vm0, %v323_v52, 0  ;;  %v521_v26 = vsub.f32 %v38842_v33, %v520_v47  ;;  %v38874_v31 = vsub.f32 %v359_v57, %v38862_v62  ;;  %252 = vst.msk [vmem:[#allocation2 + $0xd0] sm:$0x1] %vm241_vm2, %v46396_v0  ;;  %253 = vst.msk [vmem:[#allocation2 + $0xe0] sm:$0x1] %vm241_vm2, %v46396_v0 }
  0x50   :  { %v512_v23 = vand.u32 4294901760, %v511_v61  ;;  %v38876_v34 = vand.u32 4294901760, %v365_v4  ;;  %v38881_v37 = vand.u32 4294901760, %v368_v10  ;;  %v38883_v38 = vand.u32 4294901760, %v371_v58  ;;  %254 = vst.msk [vmem:[#allocation2 + $0xf0] sm:$0x1] %vm241_vm2, %v46396_v0 }
  0x51   :  { %30651 = vmatmul.mubr.f32.gmra.mrb[2].mxu0 %v482_v53  ;;  %v38879_v36 = vsub.f32 %v362_v63, %v38865_v3  ;;  %v374_v39 = vsel %vm229_vm0, %v324_v2, 0  ;;  %v540_v41 = vand.u32 4294901760, %v38874_v31  ;;  %v377_v50 = vsel %vm229_vm0, %v325_v11, 0  ;;  %255 = vst.msk [vmem:[#allocation2 + $0x100] sm:$0x1] %vm241_vm2, %v46396_v0 }
  0x52   :  { %30653 = vmatprep.mubr.f32.mxu0 %v492_v55  ;;  %35178 = vmatpush3.bf16.msra.mxu0 %v35175_v48  ;;  %v38888_v42 = vsub.f32 %v365_v4, %v38876_v34  ;;  %v38890_v45 = vand.u32 4294901760, %v374_v39  ;;  %v38895_v52 = vsub.f32 %v368_v10, %v38881_v37  ;;  %v522_v53 = vand.u32 4294901760, %v521_v26  ;;  %256 = vst.msk [vmem:[#allocation2 + $0x110] sm:$0x1] %vm241_vm2, %v46396_v0 }
  0x53   :  { %v46395_v51 = vand.u32 4294901760, %v38879_v36  ;;  %35180 = vmatprep.subr.bf16.mxu0 %v38775_v43  ;;  %v541_v48 = vsub.f32 %v38874_v31, %v540_v41  ;;  %v38903_v57 = vsub.f32 %v371_v58, %v38883_v38  ;;  %v38905_v61 = vand.u32 4294901760, %v377_v50  ;;  %257 = vst.msk [vmem:[#allocation2 + $0x120] sm:$0x1] %vm241_vm2, %v46396_v0  ;;  %258 = vst.msk [vmem:[#allocation2 + $0x19] sm:$0x1] %vm241_vm2, %v46396_v0 }
  0x54   :  { %v46394_v55 = vand.u32 4294901760, %v38888_v42  ;;  %v532_v63 = vand.u32 4294901760, %v531_v56  ;;  %v570_v4 = vand.u32 4294901760, %v38895_v52  ;;  %259 = vst.msk [vmem:[#allocation2 + $0x29] sm:$0x1] %vm241_vm2, %v46396_v0 }
  0x55   :  { %30654 = vmatmul.mubr.f32.gmra.mrb[4].mxu0 %v502_v60  ;;  %v551_v2 = vsub.f32 %v38879_v36, %v46395_v51  ;;  %v38912_v60 = vsub.f32 %v374_v39, %v38890_v45  ;;  %v542_v10 = vand.u32 4294901760, %v541_v48  ;;  %v580_v11 = vand.u32 4294901760, %v38903_v57  ;;  %260 = vst.msk [vmem:[#allocation2 + $0x39] sm:$0x1] %vm241_vm2, %v46396_v0  ;;  %261 = vst.msk [vmem:[#allocation2 + $0x49] sm:$0x1] %vm241_vm2, %v46396_v0 }
  0x56   :  { %30656 = vmatprep.mubr.f32.mxu0 %v512_v23  ;;  %v561_v58 = vsub.f32 %v38888_v42, %v46394_v55  ;;  %v38919_v23 = vsub.f32 %v377_v50, %v38905_v61  ;;  %v571_v26 = vsub.f32 %v38895_v52, %v570_v4  ;;  %262 = vst.msk [vmem:[#allocation2 + $0x59] sm:$0x1] %vm241_vm2, %v46396_v0  ;;  %263 = vst.msk [vmem:[#allocation2 + $0x69] sm:$0x1] %vm241_vm2, %v46396_v0 }
  0x57   :  { %v552_v56 = vand.u32 4294901760, %v551_v2  ;;  %v590_v39 = vand.u32 4294901760, %v38912_v60  ;;  %v581_v48 = vsub.f32 %v38903_v57, %v580_v11  ;;  %264 = vst.msk [vmem:[#allocation2 + $0x79] sm:$0x1] %vm241_vm2, %v46396_v0  ;;  %265 = vst.msk [vmem:[#allocation2 + $0x89] sm:$0x1] %vm241_vm2, %v46396_v0 }
  0x58   :  { %v600_v55 = vand.u32 4294901760, %v38919_v23  ;;  %v572_v51 = vand.u32 4294901760, %v571_v26  ;;  %266 = vst.msk [vmem:[#allocation2 + $0xb9] sm:$0x1] %vm241_vm2, %v46396_v0  ;;  %267 = vst.msk [vmem:[#allocation2 + $0xc9] sm:$0x1] %vm241_vm2, %v46396_v0 }
  0x59   :  { %30657 = vmatmul.mubr.f32.gmra.mrb[6].mxu0 %v522_v53  ;;  %v562_v53 = vand.u32 4294901760, %v561_v58  ;;  %v591_v50 = vsub.f32 %v38912_v60, %v590_v39  ;;  %268 = vst.msk [vmem:[#allocation2 + $0xd9] sm:$0x1] %vm241_vm2, %v46396_v0  ;;  %269 = vst.msk [vmem:[#allocation2 + $0xe9] sm:$0x1] %vm241_vm2, %v46396_v0  ;;  %v297_v26 = vld [vmem:[#allocation2 + $0x70] sm:$0xff] }
  0x5a   :  { %30659 = vmatprep.mubr.f32.mxu0 %v532_v63  ;;  %v582_v63 = vand.u32 4294901760, %v581_v48  ;;  %v601_v2 = vsub.f32 %v38919_v23, %v600_v55  ;;  %270 = vst.msk [vmem:[#allocation2 + $0xf9] sm:$0x1] %vm241_vm2, %v46396_v0  ;;  %271 = vst.msk [vmem:[#allocation2 + $0x109] sm:$0x1] %vm241_vm2, %v46396_v0 }
  0x5b   :  { %272 = vst.msk [vmem:[#allocation2 + $0x119] sm:$0x1] %vm241_vm2, %v46396_v0  ;;  %273 = vst.msk [vmem:[#allocation2 + $0x129] sm:$0x1] %vm241_vm2, %v46396_v0  ;;  %vm11772_vm2 = vcmask 64512  }
  0x5c   :  { %v602_v58 = vand.u32 4294901760, %v601_v2  ;;  %v1531_v2 = vsel %vm229_vm0, %v297_v26, 0  ;;  %v303_v26 = vld [vmem:[#allocation2 + $0xf0] sm:$0xff] }
  0x5d   :  { %30660 = vmatmul.mubr.f32.gmra.mrb[8].mxu0 %v542_v10  ;;  %v592_v10 = vand.u32 4294901760, %v591_v50 }
  0x5e   :  { %30662 = vmatprep.mubr.f32.mxu0 %v552_v56  ;;  %v35183_v56 = vpack.c.bf16 %v38754_v25, %v38752_v24  ;;  %v46640_v24 = vand.u32 4294901760, %v38879_v36  ;;  %v46641_v25 = vand.u32 4294901760, %v38888_v42 }
  0x61   :  { %30663 = vmatmul.mubr.f32.gmra.mrb[10].mxu0 %v562_v53 }
  0x62   :  { %30665 = vmatprep.mubr.f32.mxu0 %v572_v51 }
  0x65   :  { %30666 = vmatmul.mubr.f32.gmra.mrb[12].mxu0 %v582_v63 }
  0x66   :  { %30668 = vmatprep.mubr.f32.mxu0 %v592_v10 }
  0x69   :  { %30669 = vmatmul.mubr.f32.gmra.mrb[14].mxu0 %v602_v58 }
  0x6a   :  { %30679 = vmatprep.mubr.f32.mxu0 %v38742_v16 }
  0x6d   :  { %30680 = vmatmul.mubr.f32.vlgmr.msra.gmra.mrb[0].mxu0 %v38791_v59 }
  0x6e   :  { %35182 = vmatpush3.bf16.msra.mxu0 %v38775_v43  ;;  %30682 = vmatprep.mubr.f32.mxu0 %v38794_v1 }
  0x6f   :  { %35184 = vmatprep.subr.bf16.mxu0 %v35183_v56 }
  0x71   :  { %30683 = vmatmul.mubr.f32.gmra.mrb[2].mxu0 %v38802_v6 }
  0x72   :  { %30685 = vmatprep.mubr.f32.mxu0 %v38804_v7  ;;  %35186 = vmatpush3.bf16.msra.mxu0 %v35183_v56 }
  0x73   :  { %35188 = vmatprep.subr.bf16.mxu0 %v38740_v15 }
  0x75   :  { %30686 = vmatmul.mubr.f32.gmra.mrb[4].mxu0 %v38806_v8 }
  0x76   :  { %30688 = vmatprep.mubr.f32.mxu0 %v38825_v20 }
  0x79   :  { %30689 = vmatmul.mubr.f32.gmra.mrb[6].mxu0 %v38827_v21 }
  0x7a   :  { %30691 = vmatprep.mubr.f32.mxu0 %v38764_v35 }
  0x7d   :  { %30692 = vmatmul.mubr.f32.gmra.mrb[8].mxu0 %v38862_v62 }
  0x7e   :  { %30694 = vmatprep.mubr.f32.mxu0 %v38865_v3 }
  0x81   :  { %30695 = vmatmul.mubr.f32.gmra.mrb[10].mxu0 %v38876_v34 }
  0x82   :  { %30697 = vmatprep.mubr.f32.mxu0 %v38881_v37 }
  0x85   :  { %30698 = vmatmul.mubr.f32.gmra.mrb[12].mxu0 %v38883_v38 }
  0x86   :  { %30700 = vmatprep.mubr.f32.mxu0 %v38890_v45 }
  0x89   :  { %30701 = vmatmul.mubr.f32.gmra.mrb[14].mxu0 %v38905_v61 }
  0x8a   :  { %30711 = vmatprep.mubr.f32.mxu0 %v38758_v28  ;;  %v306_v28 = vld [vmem:[#allocation6] sm:$0xff] }
  0x8b   :  { %v1558_v43 = vand.u32 4294901760, %v306_v28 }
  0x8d   :  { %30712 = vmatmul.mubr.f32.vlgmr.msra.gmra.mrb[0].mxu0 %v38800_v5 }
  0x8e   :  { %35190 = vmatpush3.bf16.msra.mxu0 %v38740_v15  ;;  %30714 = vmatprep.mubr.f32.mxu0 %v38809_v9  ;;  %v308_v9 = vld [vmem:[#allocation6 + $0x10] sm:$0xff] }
  0x8f   :  { %35192 = vmatprep.subr.bf16.mxu0 %v38747_v22 }
  0x91   :  { %30715 = vmatmul.mubr.f32.gmra.mrb[2].mxu0 %v38816_v14 }
  0x92   :  { %30717 = vmatprep.mubr.f32.mxu0 %v38819_v17  ;;  %35194 = vmatpush3.bf16.msra.mxu0 %v38747_v22 }
  0x93   :  { %35196 = vmatprep.subr.bf16.mxu0 %v38777_v44 }
  0x95   :  { %30718 = vmatmul.mubr.f32.gmra.mrb[4].mxu0 %v38822_v18 }
  0x96   :  { %30720 = vmatprep.mubr.f32.mxu0 %v38839_v32  ;;  %v290_v32 = vld [vmem:[#allocation2] sm:$0xff] }
  0x99   :  { %30721 = vmatmul.mubr.f32.gmra.mrb[6].mxu0 %v38842_v33  ;;  %v292_v33 = vld [vmem:[#allocation2 + $0x20] sm:$0xff] }
  0x9a   :  { %30723 = vmatprep.mubr.f32.mxu0 %v38787_v54 }
  0x9d   :  { %30724 = vmatmul.mubr.f32.gmra.mrb[8].mxu0 %v38874_v31 }
  0x9e   :  { %30726 = vmatprep.mubr.f32.mxu0 %v38879_v36 }
  0xa1   :  { %30727 = vmatmul.mubr.f32.gmra.mrb[10].mxu0 %v38888_v42  ;;  %v296_v42 = vld [vmem:[#allocation2 + $0x60] sm:$0xff] }
  0xa2   :  { %30729 = vmatprep.mubr.f32.mxu0 %v38895_v52 }
  0xa5   :  { %30730 = vmatmul.mubr.f32.gmra.mrb[12].mxu0 %v38903_v57 }
  0xa6   :  { %30732 = vmatprep.mubr.f32.mxu0 %v38912_v60 }
  0xa9   :  { %30733 = vmatmul.mubr.f32.gmra.mrb[14].mxu0 %v38919_v23 }
  0xaa   :  { %30743 = vmatprep.mubr.f32.mxu0 %v450_v40  ;;  %v307_v40 = vld [vmem:[#allocation6 + $0x8] sm:$0xff] }
  0xad   :  { %30744 = vmatmul.mubr.f32.vlgmr.msra.gmra.mrb[0].mxu0 %v460_v13  ;;  %v1564_v13 = vand.u32 4294901760, %v308_v9 }
  0xae   :  { %35198 = vmatpush3.bf16.msra.mxu0 %v38777_v44  ;;  %30746 = vmatprep.mubr.f32.mxu0 %v470_v19  ;;  %v1561_v44 = vand.u32 4294901760, %v307_v40 }
  0xaf   :  { %35200 = vmatprep.subr.bf16.mxu0 %v38782_v49  ;;  %v39140_v52 = vsub.f32 %v308_v9, %v1564_v13 }
  0xb0   :  { %v39094_v54 = vsub.f32 %v307_v40, %v1561_v44 }
  0xb1   :  { %30747 = vmatmul.mubr.f32.gmra.mrb[2].mxu0 %v480_v27 }
  0xb2   :  { %30749 = vmatprep.mubr.f32.mxu0 %v490_v29  ;;  %35202 = vmatpush3.bf16.msra.mxu0 %v38782_v49  ;;  %v39080_v49 = vpack.c.bf16 %v1561_v44, %v1558_v43  ;;  %v1796_v5 = vand.u32 4294901760, %v39094_v54  ;;  %v300_v44 = vld [vmem:[#allocation2 + $0xc0] sm:$0xff] }
  0xb3   :  { %35204 = vmatprep.subr.bf16.mxu0 %v38740_v15 }
  0xb4   :  { %v1797_v18 = vsub.f32 %v39094_v54, %v1796_v5 }
  0xb5   :  { %30750 = vmatmul.mubr.f32.gmra.mrb[4].mxu0 %v500_v30 }
  0xb6   :  { %30752 = vmatprep.mubr.f32.mxu0 %v510_v46  ;;  %v1798_v29 = vand.u32 4294901760, %v1797_v18 }
  0xb9   :  { %30753 = vmatmul.mubr.f32.gmra.mrb[6].mxu0 %v520_v47  ;;  %v293_v47 = vld [vmem:[#allocation2 + $0x30] sm:$0xff] }
  0xba   :  { %30755 = vmatprep.mubr.f32.mxu0 %v530_v12  ;;  %v309_v12 = vld [vmem:[#allocation6 + $0x18] sm:$0xff] }
  0xbb   :  { %v1567_v14 = vand.u32 4294901760, %v309_v12 }
  0xbd   :  { %30756 = vmatmul.mubr.f32.gmra.mrb[8].mxu0 %v540_v41  ;;  %v39110_v19 = vpack.c.bf16 %v1567_v14, %v1564_v13  ;;  %v295_v41 = vld [vmem:[#allocation2 + $0x50] sm:$0xff] }
  0xbe   :  { %30758 = vmatprep.mubr.f32.mxu0 %v46640_v24  ;;  %v1525_v57 = vsel %vm229_vm0, %v295_v41, 0 }
  0xbf   :  { %v39161_v48 = vand.u32 4294901760, %v1525_v57 }
  0xc1   :  { %30759 = vmatmul.mubr.f32.gmra.mrb[10].mxu0 %v46641_v25 }
  0xc2   :  { %30761 = vmatprep.mubr.f32.mxu0 %v570_v4  ;;  %v1528_v4 = vsel %vm229_vm0, %v296_v42, 0 }
  0xc3   :  { %v39163_v50 = vand.u32 4294901760, %v1528_v4 }
  0xc5   :  { %30762 = vmatmul.mubr.f32.gmra.mrb[12].mxu0 %v580_v11  ;;  %v39190_v40 = vsub.f32 %v1528_v4, %v39163_v50 }
  0xc6   :  { %30764 = vmatprep.mubr.f32.mxu0 %v590_v39  ;;  %v1803_v39 = vand.u32 4294901760, %v39140_v52 }
  0xc8   :  { %v1804_v24 = vsub.f32 %v39140_v52, %v1803_v39 }
  0xc9   :  { %30765 = vmatmul.mubr.f32.gmra.mrb[14].mxu0 %v600_v55  ;;  %v39142_v55 = vsub.f32 %v309_v12, %v1567_v14 }
  0xca   :  { %30775 = vmatprep.mubr.f32.mxu0 %v38742_v16 }
  0xcb   :  { %v1810_v53 = vand.u32 4294901760, %v39142_v55 }
  0xcd   :  { %30776 = vmatmul.mubr.f32.vlgmr.msra.gmra.mrb[0].mxu0 %v38791_v59  ;;  %v1811_v25 = vsub.f32 %v39142_v55, %v1810_v53 }
  0xce   :  { %35206 = vmatpush3.bf16.msra.mxu0 %v38740_v15  ;;  %30778 = vmatprep.mubr.f32.mxu0 %v38794_v1  ;;  %v39092_v15 = vsub.f32 %v306_v28, %v1558_v43  ;;  %v39187_v28 = vsub.f32 %v1525_v57, %v39161_v48  ;;  %v39192_v43 = vand.u32 4294901760, %v1531_v2 }
  0xcf   :  { %35208 = vmatprep.subr.bf16.mxu0 %v38747_v22 }
  0xd1   :  { %30779 = vmatmul.mubr.f32.gmra.mrb[2].mxu0 %v38802_v6 }
  0xd2   :  { %30781 = vmatprep.mubr.f32.mxu0 %v38804_v7  ;;  %35210 = vmatpush3.bf16.msra.mxu0 %v38747_v22  ;;  %v1789_v22 = vand.u32 4294901760, %v39092_v15 }
  0xd3   :  { %35212 = vmatprep.subr.bf16.mxu0 %v39080_v49 }
  0xd4   :  { %v1790_v17 = vsub.f32 %v39092_v15, %v1789_v22 }
  0xd5   :  { %30782 = vmatmul.mubr.f32.gmra.mrb[4].mxu0 %v38806_v8 }
  0xd6   :  { %30784 = vmatprep.mubr.f32.mxu0 %v38825_v20  ;;  %v1791_v27 = vand.u32 4294901760, %v1790_v17 }
  0xd8   :  { %v39116_v30 = vpack.c.bf16 %v1798_v29, %v1791_v27  ;;  %v1812_v29 = vand.u32 4294901760, %v1811_v25 }
  0xd9   :  { %30785 = vmatmul.mubr.f32.gmra.mrb[6].mxu0 %v38827_v21 }
  0xda   :  { %30787 = vmatprep.mubr.f32.mxu0 %v38764_v35 }
  0xdd   :  { %30788 = vmatmul.mubr.f32.gmra.mrb[8].mxu0 %v38862_v62 }
  0xde   :  { %30790 = vmatprep.mubr.f32.mxu0 %v38865_v3 }
  0xe1   :  { %30791 = vmatmul.mubr.f32.gmra.mrb[10].mxu0 %v38876_v34 }
  0xe2   :  { %30793 = vmatprep.mubr.f32.mxu0 %v38881_v37 }
  0xe5   :  { %30794 = vmatmul.mubr.f32.gmra.mrb[12].mxu0 %v38883_v38 }
  0xe6   :  { %30796 = vmatprep.mubr.f32.mxu0 %v38890_v45 }
  0xe9   :  { %30797 = vmatmul.mubr.f32.gmra.mrb[14].mxu0 %v38905_v61 }
  0xea   :  { %30807 = vmatprep.mubr.f32.mxu0 %v38742_v16  ;;  %v1510_v16 = vsel %vm229_vm0, %v290_v32, 0  ;;  %v1540_v32 = vsel %vm229_vm0, %v300_v44, 0 }
  0xed   :  { %30808 = vmatmul.mubr.f32.vlgmr.msra.gmra.mrb[0].mxu0 %v38791_v59  ;;  %v291_v59 = vld [vmem:[#allocation2 + $0x10] sm:$0xff] }
  0xee   :  { %35214 = vmatpush3.bf16.msra.mxu0 %v39080_v49  ;;  %30810 = vmatprep.mubr.f32.mxu0 %v38794_v1  ;;  %v39125_v1 = vand.u32 4294901760, %v1510_v16  ;;  %v1513_v46 = vsel %vm229_vm0, %v291_v59, 0  ;;  %v1678_v59 = vand.u32 4294901760, %v39187_v28 }
  0xef   :  { %35216 = vmatprep.subr.bf16.mxu0 %v39110_v19  ;;  %v39130_v31 = vand.u32 4294901760, %v1513_v46 }
  0xf0   :  { %v39134_v36 = vsub.f32 %v1510_v16, %v39125_v1  ;;  %v301_v16 = vld [vmem:[#allocation2 + $0xd0] sm:$0xff] }
  0xf1   :  { %30811 = vmatmul.mubr.f32.gmra.mrb[2].mxu0 %v38802_v6  ;;  %v1516_v6 = vsel %vm229_vm0, %v292_v33, 0  ;;  %v46403_v33 = vand.u32 4294901760, %v39190_v40 }
  0xf2   :  { %30813 = vmatprep.mubr.f32.mxu0 %v38804_v7  ;;  %35218 = vmatpush3.bf16.msra.mxu0 %v39110_v19  ;;  %v294_v7 = vld [vmem:[#allocation2 + $0x40] sm:$0xff]  ;;  %v1628_v60 = vand.u32 4294901760, %v39134_v36 }
  0xf3   :  { %35220 = vmatprep.subr.bf16.mxu0 %v39116_v30  ;;  %v1522_v51 = vsel %vm229_vm0, %v294_v7, 0 }
  0xf4   :  { %v39157_v23 = vand.u32 4294901760, %v1522_v51  ;;  %v1629_v10 = vsub.f32 %v39134_v36, %v1628_v60 }
  0xf5   :  { %30814 = vmatmul.mubr.f32.gmra.mrb[4].mxu0 %v38806_v8  ;;  %v39136_v8 = vand.u32 4294901760, %v1516_v6 }
  0xf6   :  { %30816 = vmatprep.mubr.f32.mxu0 %v38825_v20  ;;  %v1519_v20 = vsel %vm229_vm0, %v293_v47, 0  ;;  %v39177_v56 = vsub.f32 %v1522_v51, %v39157_v23  ;;  %v1630_v14 = vand.u32 4294901760, %v1629_v10  ;;  %v39225_v51 = vand.u32 4294901760, %v1540_v32 }
  0xf7   :  { %v39155_v11 = vsub.f32 %v1516_v6, %v39136_v8 }
  0xf8   :  { %v1668_v18 = vand.u32 4294901760, %v39177_v56 }
  0xf9   :  { %30817 = vmatmul.mubr.f32.gmra.mrb[6].mxu0 %v38827_v21  ;;  %v39146_v21 = vsub.f32 %v1513_v46, %v39130_v31  ;;  %v1648_v58 = vand.u32 4294901760, %v39155_v11  ;;  %v302_v46 = vld [vmem:[#allocation2 + $0xe0] sm:$0xff] }
  0xfa   :  { %30819 = vmatprep.mubr.f32.mxu0 %v38764_v35  ;;  %v39148_v35 = vand.u32 4294901760, %v1519_v20  ;;  %v1669_v42 = vsub.f32 %v39177_v56, %v1668_v18  ;;  %v1546_v4 = vsel %vm229_vm0, %v302_v46, 0 }
  0xfb   :  { %v1649_v17 = vsub.f32 %v39155_v11, %v1648_v58 }
  0xfc   :  { %v39168_v63 = vsub.f32 %v1519_v20, %v39148_v35 }
  0xfd   :  { %30820 = vmatmul.mubr.f32.gmra.mrb[8].mxu0 %v38862_v62  ;;  %v298_v62 = vld [vmem:[#allocation2 + $0xa0] sm:$0xff]  ;;  %v1650_v41 = vand.u32 4294901760, %v1649_v17  ;;  %v39246_v17 = vand.u32 4294901760, %v1546_v4 }
  0xfe   :  { %30822 = vmatprep.mubr.f32.mxu0 %v38865_v3  ;;  %v1638_v3 = vand.u32 4294901760, %v39146_v21  ;;  %v1658_v12 = vand.u32 4294901760, %v39168_v63 }
 0x100   :  { %v1639_v9 = vsub.f32 %v39146_v21, %v1638_v3  ;;  %v1659_v47 = vsub.f32 %v39168_v63, %v1658_v12 }
 0x101   :  { %30823 = vmatmul.mubr.f32.gmra.mrb[10].mxu0 %v38876_v34  ;;  %v1534_v34 = vsel %vm229_vm0, %v298_v62, 0  ;;  %v1679_v62 = vsub.f32 %v39187_v28, %v1678_v59 }
 0x102   :  { %30825 = vmatprep.mubr.f32.mxu0 %v38881_v37  ;;  %v299_v37 = vld [vmem:[#allocation2 + $0xb0] sm:$0xff]  ;;  %v39199_v13 = vand.u32 4294901760, %v1534_v34  ;;  %v1640_v6 = vand.u32 4294901760, %v1639_v9  ;;  %v1670_v9 = vand.u32 4294901760, %v1669_v42 }
 0x103   :  { %v1537_v27 = vsel %vm229_vm0, %v299_v37, 0  ;;  %v1680_v46 = vand.u32 4294901760, %v1679_v62  ;;  %v39268_v62 = vsub.f32 %v1546_v4, %v39246_v17 }
 0x104   :  { %v39218_v7 = vsub.f32 %v1534_v34, %v39199_v13  ;;  %v39220_v20 = vand.u32 4294901760, %v1537_v27  ;;  %v304_v34 = vld [vmem:[#allocation2 + $0x100] sm:$0xff] }
 0x105   :  { %30826 = vmatmul.mubr.f32.gmra.mrb[12].mxu0 %v38883_v38  ;;  %v1805_v38 = vand.u32 4294901760, %v1804_v24  ;;  %v1660_v24 = vand.u32 4294901760, %v1659_v47 }
 0x106   :  { %30828 = vmatprep.mubr.f32.mxu0 %v38890_v45  ;;  %v39211_v45 = vsub.f32 %v1531_v2, %v39192_v43  ;;  %v1689_v2 = vsub.f32 %v39190_v40, %v46403_v33  ;;  %v46398_v25 = vand.u32 4294901760, %v39218_v7  ;;  %v39238_v37 = vsub.f32 %v1537_v27, %v39220_v20 }
 0x107   :  { %v35223_v57 = vpack.c.bf16 %v1812_v29, %v1805_v38  ;;  %v1549_v38 = vsel %vm229_vm0, %v303_v26, 0  ;;  %v1552_v29 = vsel %vm229_vm0, %v304_v34, 0  ;;  %v35227_v27 = vpack.c.bf16 %v39094_v54, %v39092_v15 }
 0x108   :  { %v46399_v10 = vand.u32 4294901760, %v39211_v45  ;;  %v39259_v47 = vand.u32 4294901760, %v39238_v37  ;;  %v39264_v42 = vand.u32 4294901760, %v1549_v38  ;;  %v35247_v15 = vpack.c.bf16 %v1810_v53, %v1803_v39 }
 0x109   :  { %30829 = vmatmul.mubr.f32.gmra.mrb[14].mxu0 %v38905_v61  ;;  %v1543_v61 = vsel %vm229_vm0, %v301_v16, 0  ;;  %v305_v16 = vld [vmem:[#allocation2 + $0x110] sm:$0xff]  ;;  %v46642_v54 = vand.u32 4294901760, %v39190_v40 }
 0x10a   :  { %30839 = vmatprep.mubr.f32.mxu0 %v1630_v14  ;;  %v39240_v44 = vand.u32 4294901760, %v1543_v61  ;;  %v39244_v14 = vsub.f32 %v1540_v32, %v39225_v51  ;;  %v1709_v32 = vsub.f32 %v39218_v7, %v46398_v25  ;;  %v1555_v34 = vsel %vm229_vm0, %v305_v16, 0 }
 0x10b   :  { %v46402_v16 = vand.u32 4294901760, %v39268_v62 }
 0x10c   :  { %v46400_v26 = vand.u32 4294901760, %v39244_v14  ;;  %v1710_v4 = vand.u32 4294901760, %v1709_v32 }
 0x10d   :  { %30840 = vmatmul.mubr.f32.vlgmr.msra.gmra.mrb[0].mxu0 %v1640_v6  ;;  %v1690_v6 = vand.u32 4294901760, %v1689_v2  ;;  %v39270_v2 = vand.u32 4294901760, %v1552_v29 }
 0x10e   :  { %35222 = vmatpush3.bf16.msra.mxu0 %v39116_v30  ;;  %30842 = vmatprep.mubr.f32.mxu0 %v1650_v41  ;;  %v1699_v30 = vsub.f32 %v39211_v45, %v46399_v10  ;;  %v39262_v41 = vsub.f32 %v1543_v61, %v39240_v44  ;;  %v1719_v61 = vsub.f32 %v39238_v37, %v39259_v47 }
 0x10f   :  { %35224 = vmatprep.subr.bf16.mxu0 %v35223_v57  ;;  %v1729_v25 = vsub.f32 %v39244_v14, %v46400_v26  ;;  %v1749_v26 = vsub.f32 %v39268_v62, %v46402_v16 }
 0x110   :  { %v46401_v0 = vand.u32 4294901760, %v39262_v41 }
 0x111   :  { %30843 = vmatmul.mubr.f32.gmra.mrb[2].mxu0 %v1660_v24  ;;  %v1700_v24 = vand.u32 4294901760, %v1699_v30  ;;  %v39288_v30 = vand.u32 4294901760, %v1719_v61  ;;  %v1730_v32 = vand.u32 4294901760, %v1729_v25 }
 0x112   :  { %30845 = vmatprep.mubr.f32.mxu0 %v1670_v9  ;;  %35226 = vmatpush3.bf16.msra.mxu0 %v35223_v57  ;;  %v39277_v9 = vsub.f32 %v1549_v38, %v39264_v42  ;;  %v39279_v57 = vand.u32 4294901760, %v1555_v34  ;;  %v1739_v38 = vsub.f32 %v39262_v41, %v46401_v0 }
 0x113   :  { %35228 = vmatprep.subr.bf16.mxu0 %v35227_v27 }
 0x114   :  { %v1758_v10 = vand.u32 4294901760, %v39277_v9 }
 0x115   :  { %30846 = vmatmul.mubr.f32.gmra.mrb[4].mxu0 %v1680_v46  ;;  %v39286_v46 = vsub.f32 %v1552_v29, %v39270_v2 }
 0x116   :  { %30848 = vmatprep.mubr.f32.mxu0 %v1690_v6  ;;  %v39295_v6 = vsub.f32 %v1555_v34, %v39279_v57  ;;  %v1759_v61 = vsub.f32 %v39277_v9, %v1758_v10  ;;  %v1750_v34 = vand.u32 4294901760, %v1749_v26  ;;  %v35231_v26 = vpack.c.bf16 %v39142_v55, %v39140_v52 }
 0x117   :  { %v1768_v29 = vand.u32 4294901760, %v39286_v46  ;;  %v46646_v52 = vand.u32 4294901760, %v39262_v41  ;;  %v46647_v55 = vand.u32 4294901760, %v39268_v62 }
 0x118   :  { %v1778_v0 = vand.u32 4294901760, %v39295_v6 }
 0x119   :  { %30849 = vmatmul.mubr.f32.gmra.mrb[6].mxu0 %v1700_v24  ;;  %v1740_v24 = vand.u32 4294901760, %v1739_v38  ;;  %v1769_v25 = vsub.f32 %v39286_v46, %v1768_v29 }
 0x11a   :  { %30851 = vmatprep.mubr.f32.mxu0 %v1710_v4  ;;  %v1760_v4 = vand.u32 4294901760, %v1759_v61  ;;  %v1779_v16 = vsub.f32 %v39295_v6, %v1778_v0 }
 0x11b   :  { %v1770_v38 = vand.u32 4294901760, %v1769_v25 }
 0x11c   :  { %v1780_v33 = vand.u32 4294901760, %v1779_v16  ;;  %v2692_v16 = vld [vmem:[#allocation2 + $0x52] sm:$0xff] }
 0x11d   :  { %30852 = vmatmul.mubr.f32.gmra.mrb[8].mxu0 %v39288_v30 }
 0x11e   :  { %30854 = vmatprep.mubr.f32.mxu0 %v1730_v32 }
 0x121   :  { %30855 = vmatmul.mubr.f32.gmra.mrb[10].mxu0 %v1740_v24  ;;  %v2724_v24 = vsel %vm229_vm0, %v2692_v16, 0 }
 0x122   :  { %30857 = vmatprep.mubr.f32.mxu0 %v1750_v34 }
 0x125   :  { %30858 = vmatmul.mubr.f32.gmra.mrb[12].mxu0 %v1760_v4 }
 0x126   :  { %30860 = vmatprep.mubr.f32.mxu0 %v1770_v38  ;;  %v2694_v38 = vld [vmem:[#allocation2 + $0x72] sm:$0xff] }
 0x129   :  { %30861 = vmatmul.mubr.f32.gmra.mrb[14].mxu0 %v1780_v33  ;;  %v35243_v33 = vpack.c.bf16 %v1796_v5, %v1789_v22  ;;  %v46643_v22 = vand.u32 4294901760, %v39211_v45  ;;  %v46644_v5 = vand.u32 4294901760, %v39218_v7 }
 0x12a   :  { %30871 = vmatprep.mubr.f32.mxu0 %v39125_v1 }
 0x12d   :  { %30872 = vmatmul.mubr.f32.vlgmr.msra.gmra.mrb[0].mxu0 %v39130_v31 }
 0x12e   :  { %35230 = vmatpush3.bf16.msra.mxu0 %v35227_v27  ;;  %30874 = vmatprep.mubr.f32.mxu0 %v39136_v8 }
 0x12f   :  { %35232 = vmatprep.subr.bf16.mxu0 %v35231_v26 }
 0x131   :  { %30875 = vmatmul.mubr.f32.gmra.mrb[2].mxu0 %v39148_v35 }
 0x132   :  { %30877 = vmatprep.mubr.f32.mxu0 %v39157_v23  ;;  %35234 = vmatpush3.bf16.msra.mxu0 %v35231_v26  ;;  %v2695_v26 = vld [vmem:[#allocation2 + $0xa2] sm:$0xff] }
 0x133   :  { %35236 = vmatprep.subr.bf16.mxu0 %v39080_v49 }
 0x135   :  { %30878 = vmatmul.mubr.f32.gmra.mrb[4].mxu0 %v39161_v48 }
 0x136   :  { %30880 = vmatprep.mubr.f32.mxu0 %v39163_v50 }
 0x139   :  { %30881 = vmatmul.mubr.f32.gmra.mrb[6].mxu0 %v39192_v43 }
 0x13a   :  { %30883 = vmatprep.mubr.f32.mxu0 %v39199_v13 }
 0x13d   :  { %30884 = vmatmul.mubr.f32.gmra.mrb[8].mxu0 %v39220_v20 }
 0x13e   :  { %30886 = vmatprep.mubr.f32.mxu0 %v39225_v51 }
 0x141   :  { %30887 = vmatmul.mubr.f32.gmra.mrb[10].mxu0 %v39240_v44 }
 0x142   :  { %30889 = vmatprep.mubr.f32.mxu0 %v39246_v17 }
 0x145   :  { %30890 = vmatmul.mubr.f32.gmra.mrb[12].mxu0 %v39264_v42 }
 0x146   :  { %30892 = vmatprep.mubr.f32.mxu0 %v39270_v2 }
 0x149   :  { %30893 = vmatmul.mubr.f32.gmra.mrb[14].mxu0 %v39279_v57 }
 0x14a   :  { %30903 = vmatprep.mubr.f32.mxu0 %v39134_v36  ;;  %v46645_v36 = vand.u32 4294901760, %v39244_v14 }
 0x14d   :  { %30904 = vmatmul.mubr.f32.vlgmr.msra.gmra.mrb[0].mxu0 %v39146_v21  ;;  %v2704_v21 = vld [vmem:[#allocation6 + $0x40] sm:$0xff] }
 0x14e   :  { %35238 = vmatpush3.bf16.msra.mxu0 %v39080_v49  ;;  %30906 = vmatprep.mubr.f32.mxu0 %v39155_v11  ;;  %v2757_v11 = vand.u32 4294901760, %v2704_v21 }
 0x14f   :  { %35240 = vmatprep.subr.bf16.mxu0 %v39110_v19 }
 0x151   :  { %30907 = vmatmul.mubr.f32.gmra.mrb[2].mxu0 %v39168_v63  ;;  %v2706_v63 = vld [vmem:[#allocation6 + $0x50] sm:$0xff] }
 0x152   :  { %30909 = vmatprep.mubr.f32.mxu0 %v39177_v56  ;;  %35242 = vmatpush3.bf16.msra.mxu0 %v39110_v19  ;;  %v2763_v56 = vand.u32 4294901760, %v2706_v63 }
 0x153   :  { %35244 = vmatprep.subr.bf16.mxu0 %v35243_v33 }
 0x154   :  { %v39455_v32 = vsub.f32 %v2706_v63, %v2763_v56 }
 0x155   :  { %30910 = vmatmul.mubr.f32.gmra.mrb[4].mxu0 %v39187_v28 }
 0x156   :  { %30912 = vmatprep.mubr.f32.mxu0 %v39190_v40 }
 0x159   :  { %30913 = vmatmul.mubr.f32.gmra.mrb[6].mxu0 %v39211_v45 }
 0x15a   :  { %30915 = vmatprep.mubr.f32.mxu0 %v39218_v7 }
 0x15d   :  { %30916 = vmatmul.mubr.f32.gmra.mrb[8].mxu0 %v39238_v37 }
 0x15e   :  { %30918 = vmatprep.mubr.f32.mxu0 %v39244_v14  ;;  %v2689_v14 = vld [vmem:[#allocation2 + $0x22] sm:$0xff] }
 0x161   :  { %30919 = vmatmul.mubr.f32.gmra.mrb[10].mxu0 %v39262_v41  ;;  %v2690_v41 = vld [vmem:[#allocation2 + $0x32] sm:$0xff] }
 0x162   :  { %30921 = vmatprep.mubr.f32.mxu0 %v39268_v62 }
 0x165   :  { %30922 = vmatmul.mubr.f32.gmra.mrb[12].mxu0 %v39277_v9 }
 0x166   :  { %30924 = vmatprep.mubr.f32.mxu0 %v39286_v46  ;;  %v2693_v46 = vld [vmem:[#allocation2 + $0x62] sm:$0xff] }
 0x167   :  { %v2727_v61 = vsel %vm229_vm0, %v2693_v46, 0 }
 0x169   :  { %30925 = vmatmul.mubr.f32.gmra.mrb[14].mxu0 %v39295_v6 }
 0x16a   :  { %30935 = vmatprep.mubr.f32.mxu0 %v1628_v60  ;;  %v2705_v60 = vld [vmem:[#allocation6 + $0x48] sm:$0xff] }
 0x16b   :  { %v2760_v39 = vand.u32 4294901760, %v2705_v60 }
 0x16d   :  { %30936 = vmatmul.mubr.f32.vlgmr.msra.gmra.mrb[0].mxu0 %v1638_v3  ;;  %v39395_v53 = vpack.c.bf16 %v2760_v39, %v2757_v11 }
 0x16e   :  { %35246 = vmatpush3.bf16.msra.mxu0 %v35243_v33  ;;  %30938 = vmatprep.mubr.f32.mxu0 %v1648_v58  ;;  %v2707_v58 = vld [vmem:[#allocation6 + $0x58] sm:$0xff]  ;;  %v3002_v33 = vand.u32 4294901760, %v39455_v32 }
 0x16f   :  { %35248 = vmatprep.subr.bf16.mxu0 %v35247_v15  ;;  %v2766_v28 = vand.u32 4294901760, %v2707_v58 }
 0x171   :  { %30939 = vmatmul.mubr.f32.gmra.mrb[2].mxu0 %v1658_v12 }
 0x172   :  { %30941 = vmatprep.mubr.f32.mxu0 %v1668_v18  ;;  %35250 = vmatpush3.bf16.msra.mxu0 %v35247_v15  ;;  %v39425_v18 = vpack.c.bf16 %v2766_v28, %v2763_v56  ;;  %v2697_v56 = vld [vmem:[#allocation2 + $0xc2] sm:$0xff] }
 0x173   :  { %35252 = vmatprep.subr.bf16.mxu0 %v39080_v49 }
 0x175   :  { %30942 = vmatmul.mubr.f32.gmra.mrb[4].mxu0 %v1678_v59 }
 0x176   :  { %30944 = vmatprep.mubr.f32.mxu0 %v46642_v54  ;;  %v39476_v54 = vand.u32 4294901760, %v2724_v24 }
 0x179   :  { %30945 = vmatmul.mubr.f32.gmra.mrb[6].mxu0 %v46643_v22  ;;  %v39478_v22 = vand.u32 4294901760, %v2727_v61 }
 0x17a   :  { %30947 = vmatprep.mubr.f32.mxu0 %v46644_v5 }
 0x17b   :  { %v39505_v63 = vsub.f32 %v2727_v61, %v39478_v22 }
 0x17d   :  { %30948 = vmatmul.mubr.f32.gmra.mrb[8].mxu0 %v39259_v47 }
 0x17e   :  { %30950 = vmatprep.mubr.f32.mxu0 %v46645_v36  ;;  %v2730_v36 = vsel %vm229_vm0, %v2694_v38, 0 }
 0x181   :  { %30951 = vmatmul.mubr.f32.gmra.mrb[10].mxu0 %v46646_v52 }
 0x182   :  { %30953 = vmatprep.mubr.f32.mxu0 %v46647_v55 }
 0x185   :  { %30954 = vmatmul.mubr.f32.gmra.mrb[12].mxu0 %v1758_v10  ;;  %v2687_v10 = vld [vmem:[#allocation2 + $0x2] sm:$0xff] }
 0x186   :  { %30956 = vmatprep.mubr.f32.mxu0 %v1768_v29  ;;  %v39457_v29 = vsub.f32 %v2707_v58, %v2766_v28  ;;  %v39507_v58 = vand.u32 4294901760, %v2730_v36 }
 0x188   :  { %v3009_v15 = vand.u32 4294901760, %v39457_v29 }
 0x189   :  { %30957 = vmatmul.mubr.f32.gmra.mrb[14].mxu0 %v1778_v0  ;;  %v39407_v0 = vsub.f32 %v2704_v21, %v2757_v11 }
 0x18a   :  { %30967 = vmatprep.mubr.f32.mxu0 %v39125_v1  ;;  %v3010_v11 = vsub.f32 %v39457_v29, %v3009_v15 }
 0x18d   :  { %30968 = vmatmul.mubr.f32.vlgmr.msra.gmra.mrb[0].mxu0 %v39130_v31 }
 0x18e   :  { %35254 = vmatpush3.bf16.msra.mxu0 %v39080_v49  ;;  %30970 = vmatprep.mubr.f32.mxu0 %v39136_v8  ;;  %v39409_v49 = vsub.f32 %v2705_v60, %v2760_v39  ;;  %v3003_v60 = vsub.f32 %v39455_v32, %v3002_v33  ;;  %v39502_v39 = vsub.f32 %v2724_v24, %v39476_v54 }
 0x18f   :  { %35256 = vmatprep.subr.bf16.mxu0 %v39110_v19 }
 0x190   :  { %v2995_v3 = vand.u32 4294901760, %v39409_v49 }
 0x191   :  { %30971 = vmatmul.mubr.f32.gmra.mrb[2].mxu0 %v39148_v35 }
 0x192   :  { %30973 = vmatprep.mubr.f32.mxu0 %v39157_v23  ;;  %35258 = vmatpush3.bf16.msra.mxu0 %v39110_v19  ;;  %v2988_v19 = vand.u32 4294901760, %v39407_v0  ;;  %v2996_v12 = vsub.f32 %v39409_v49, %v2995_v3 }
 0x193   :  { %35260 = vmatprep.subr.bf16.mxu0 %v39395_v53 }
 0x194   :  { %v2989_v40 = vsub.f32 %v39407_v0, %v2988_v19  ;;  %v2997_v45 = vand.u32 4294901760, %v2996_v12 }
 0x195   :  { %30974 = vmatmul.mubr.f32.gmra.mrb[4].mxu0 %v39161_v48 }
 0x196   :  { %30976 = vmatprep.mubr.f32.mxu0 %v39163_v50  ;;  %v2990_v59 = vand.u32 4294901760, %v2989_v40 }
 0x198   :  { %v39431_v7 = vpack.c.bf16 %v2997_v45, %v2990_v59 }
 0x199   :  { %30977 = vmatmul.mubr.f32.gmra.mrb[6].mxu0 %v39192_v43 }
 0x19a   :  { %30979 = vmatprep.mubr.f32.mxu0 %v39199_v13 }
 0x19d   :  { %30980 = vmatmul.mubr.f32.gmra.mrb[8].mxu0 %v39220_v20 }
 0x19e   :  { %30982 = vmatprep.mubr.f32.mxu0 %v39225_v51 }
 0x1a1   :  { %30983 = vmatmul.mubr.f32.gmra.mrb[10].mxu0 %v39240_v44 }
 0x1a2   :  { %30985 = vmatprep.mubr.f32.mxu0 %v39246_v17 }
 0x1a5   :  { %30986 = vmatmul.mubr.f32.gmra.mrb[12].mxu0 %v39264_v42 }
 0x1a6   :  { %30988 = vmatprep.mubr.f32.mxu0 %v39270_v2 }
 0x1a9   :  { %30989 = vmatmul.mubr.f32.gmra.mrb[14].mxu0 %v39279_v57 }
 0x1aa   :  { %30999 = vmatprep.mubr.f32.mxu0 %v39125_v1  ;;  %v2709_v1 = vsel %vm229_vm0, %v2687_v10, 0 }
 0x1ad   :  { %31000 = vmatmul.mubr.f32.vlgmr.msra.gmra.mrb[0].mxu0 %v39130_v31  ;;  %v2688_v31 = vld [vmem:[#allocation2 + $0x12] sm:$0xff] }
 0x1ae   :  { %35262 = vmatpush3.bf16.msra.mxu0 %v39395_v53  ;;  %31002 = vmatprep.mubr.f32.mxu0 %v39136_v8  ;;  %v39440_v8 = vand.u32 4294901760, %v2709_v1  ;;  %v2712_v27 = vsel %vm229_vm0, %v2688_v31, 0  ;;  %v3011_v31 = vand.u32 4294901760, %v3010_v11 }
 0x1af   :  { %35264 = vmatprep.subr.bf16.mxu0 %v39425_v18  ;;  %v39445_v62 = vand.u32 4294901760, %v2712_v27 }
 0x1b0   :  { %v39449_v9 = vsub.f32 %v2709_v1, %v39440_v8 }
 0x1b1   :  { %31003 = vmatmul.mubr.f32.gmra.mrb[2].mxu0 %v39148_v35  ;;  %v2715_v35 = vsel %vm229_vm0, %v2689_v14, 0  ;;  %v2739_v14 = vsel %vm229_vm0, %v2697_v56, 0 }
 0x1b2   :  { %31005 = vmatprep.mubr.f32.mxu0 %v39157_v23  ;;  %35266 = vmatpush3.bf16.msra.mxu0 %v39425_v18  ;;  %v2691_v23 = vld [vmem:[#allocation2 + $0x42] sm:$0xff]  ;;  %v2827_v34 = vand.u32 4294901760, %v39449_v9  ;;  %v39540_v38 = vand.u32 4294901760, %v2739_v14 }
 0x1b3   :  { %35268 = vmatprep.subr.bf16.mxu0 %v39431_v7  ;;  %v2721_v6 = vsel %vm229_vm0, %v2691_v23, 0  ;;  %v2699_v23 = vld [vmem:[#allocation2 + $0xe2] sm:$0xff] }
 0x1b4   :  { %v39472_v4 = vand.u32 4294901760, %v2721_v6  ;;  %v2828_v52 = vsub.f32 %v39449_v9, %v2827_v34 }
 0x1b5   :  { %31006 = vmatmul.mubr.f32.gmra.mrb[4].mxu0 %v39161_v48  ;;  %v39451_v48 = vand.u32 4294901760, %v2715_v35 }
 0x1b6   :  { %31008 = vmatprep.mubr.f32.mxu0 %v39163_v50  ;;  %v2718_v50 = vsel %vm229_vm0, %v2690_v41, 0  ;;  %v39492_v21 = vsub.f32 %v2721_v6, %v39472_v4  ;;  %v2829_v59 = vand.u32 4294901760, %v2828_v52  ;;  %v46404_v41 = vand.u32 4294901760, %v39505_v63  ;;  %v2700_v52 = vld [vmem:[#allocation2 + $0xf2] sm:$0xff] }
 0x1b7   :  { %v39470_v25 = vsub.f32 %v2715_v35, %v39451_v48  ;;  %v46405_v35 = vand.u32 4294901760, %v39502_v39 }
 0x1b8   :  { %v46409_v10 = vand.u32 4294901760, %v39492_v21 }
 0x1b9   :  { %31009 = vmatmul.mubr.f32.gmra.mrb[6].mxu0 %v39192_v43  ;;  %v39461_v43 = vsub.f32 %v2712_v27, %v39445_v62  ;;  %v2847_v55 = vand.u32 4294901760, %v39470_v25  ;;  %v2698_v27 = vld [vmem:[#allocation2 + $0xd2] sm:$0xff] }
 0x1ba   :  { %31011 = vmatprep.mubr.f32.mxu0 %v39199_v13  ;;  %v39463_v13 = vand.u32 4294901760, %v2718_v50  ;;  %v2868_v61 = vsub.f32 %v39492_v21, %v46409_v10 }
 0x1bb   :  { %v2848_v45 = vsub.f32 %v39470_v25, %v2847_v55 }
 0x1bc   :  { %v39483_v5 = vsub.f32 %v2718_v50, %v39463_v13 }
 0x1bd   :  { %31012 = vmatmul.mubr.f32.gmra.mrb[8].mxu0 %v39220_v20  ;;  %v2849_v24 = vand.u32 4294901760, %v2848_v45 }
 0x1be   :  { %31014 = vmatprep.mubr.f32.mxu0 %v39225_v51  ;;  %v2837_v51 = vand.u32 4294901760, %v39461_v43  ;;  %v46412_v40 = vand.u32 4294901760, %v39483_v5 }
 0x1c0   :  { %v2838_v28 = vsub.f32 %v39461_v43, %v2837_v51  ;;  %v2858_v16 = vsub.f32 %v39483_v5, %v46412_v40 }
 0x1c1   :  { %31015 = vmatmul.mubr.f32.gmra.mrb[10].mxu0 %v39240_v44  ;;  %v2733_v44 = vsel %vm229_vm0, %v2695_v26, 0 }
 0x1c2   :  { %31017 = vmatprep.mubr.f32.mxu0 %v39246_v17  ;;  %v2696_v17 = vld [vmem:[#allocation2 + $0xb2] sm:$0xff]  ;;  %v39514_v12 = vand.u32 4294901760, %v2733_v44  ;;  %v2839_v50 = vand.u32 4294901760, %v2838_v28  ;;  %v2859_v56 = vand.u32 4294901760, %v2858_v16 }
 0x1c3   :  { %v2736_v1 = vsel %vm229_vm0, %v2696_v17, 0  ;;  %v2701_v17 = vld [vmem:[#allocation2 + $0x102] sm:$0xff]  ;;  %v2702_v16 = vld [vmem:[#allocation2 + $0x112] sm:$0xff] }
 0x1c4   :  { %v39533_v46 = vsub.f32 %v2733_v44, %v39514_v12  ;;  %v39535_v6 = vand.u32 4294901760, %v2736_v1  ;;  %v2878_v44 = vsub.f32 %v39502_v39, %v46405_v35 }
 0x1c5   :  { %31018 = vmatmul.mubr.f32.gmra.mrb[12].mxu0 %v39264_v42  ;;  %v3004_v42 = vand.u32 4294901760, %v3003_v60  ;;  %v2888_v60 = vsub.f32 %v39505_v63, %v46404_v41 }
 0x1c6   :  { %31020 = vmatprep.mubr.f32.mxu0 %v39270_v2  ;;  %v39526_v2 = vsub.f32 %v2730_v36, %v39507_v58  ;;  %v2745_v36 = vsel %vm229_vm0, %v2699_v23, 0  ;;  %v46406_v28 = vand.u32 4294901760, %v39533_v46  ;;  %v2748_v23 = vsel %vm229_vm0, %v2700_v52, 0 }
 0x1c7   :  { %v35271_v26 = vpack.c.bf16 %v3011_v31, %v3004_v42  ;;  %v2869_v42 = vand.u32 4294901760, %v2868_v61  ;;  %v39559_v31 = vsub.f32 %v2739_v14, %v39540_v38  ;;  %v2879_v41 = vand.u32 4294901760, %v2878_v44 }
 0x1c8   :  { %v46407_v11 = vand.u32 4294901760, %v39526_v2  ;;  %v2889_v35 = vand.u32 4294901760, %v2888_v60  ;;  %v2908_v14 = vsub.f32 %v39533_v46, %v46406_v28  ;;  %v39577_v52 = vand.u32 4294901760, %v2748_v23 }
 0x1c9   :  { %31021 = vmatmul.mubr.f32.gmra.mrb[14].mxu0 %v39279_v57  ;;  %v2742_v57 = vsel %vm229_vm0, %v2698_v27, 0  ;;  %v39561_v27 = vand.u32 4294901760, %v2745_v36  ;;  %v46410_v44 = vand.u32 4294901760, %v39559_v31 }
 0x1ca   :  { %31031 = vmatprep.mubr.f32.mxu0 %v2829_v59  ;;  %v39553_v59 = vsub.f32 %v2736_v1, %v39535_v6  ;;  %v39555_v45 = vand.u32 4294901760, %v2742_v57  ;;  %v35275_v1 = vpack.c.bf16 %v39409_v49, %v39407_v0  ;;  %v35295_v0 = vpack.c.bf16 %v3009_v15, %v3002_v33  ;;  %v3919_v33 = vld [vmem:[#allocation6 + $0x60] sm:$0xff]  ;;  %v3920_v15 = vld [vmem:[#allocation6 + $0x68] sm:$0xff] }
 0x1cb   :  { %v39581_v60 = vsub.f32 %v2745_v36, %v39561_v27  ;;  %v2909_v36 = vand.u32 4294901760, %v2908_v14  ;;  %v46648_v49 = vand.u32 4294901760, %v39483_v5 }
 0x1cc   :  { %v39575_v61 = vsub.f32 %v2742_v57, %v39555_v45 }
 0x1cd   :  { %31032 = vmatmul.mubr.f32.vlgmr.msra.gmra.mrb[0].mxu0 %v2839_v50  ;;  %v2751_v50 = vsel %vm229_vm0, %v2701_v17, 0 }
 0x1ce   :  { %35270 = vmatpush3.bf16.msra.mxu0 %v39431_v7  ;;  %31034 = vmatprep.mubr.f32.mxu0 %v2849_v24  ;;  %v2898_v7 = vsub.f32 %v39526_v2, %v46407_v11  ;;  %v46408_v24 = vand.u32 4294901760, %v39553_v59  ;;  %v39583_v17 = vand.u32 4294901760, %v2751_v50  ;;  %v46411_v11 = vand.u32 4294901760, %v39575_v61 }
 0x1cf   :  { %35272 = vmatprep.subr.bf16.mxu0 %v35271_v26 }
 0x1d0   :  { %v2899_v28 = vand.u32 4294901760, %v2898_v7  ;;  %v2918_v57 = vsub.f32 %v39553_v59, %v46408_v24  ;;  %v2947_v7 = vand.u32 4294901760, %v39581_v60 }
 0x1d1   :  { %31035 = vmatmul.mubr.f32.gmra.mrb[2].mxu0 %v2859_v56  ;;  %v2754_v56 = vsel %vm229_vm0, %v2702_v16, 0  ;;  %v2928_v16 = vsub.f32 %v39559_v31, %v46410_v44 }
 0x1d2   :  { %31037 = vmatprep.mubr.f32.mxu0 %v2869_v42  ;;  %35274 = vmatpush3.bf16.msra.mxu0 %v35271_v26  ;;  %v39591_v26 = vsub.f32 %v2748_v23, %v39577_v52  ;;  %v39593_v42 = vand.u32 4294901760, %v2754_v56  ;;  %v2919_v24 = vand.u32 4294901760, %v2918_v57  ;;  %v2938_v23 = vsub.f32 %v39575_v61, %v46411_v11 }
 0x1d3   :  { %35276 = vmatprep.subr.bf16.mxu0 %v35275_v1  ;;  %v2929_v14 = vand.u32 4294901760, %v2928_v16  ;;  %v2948_v44 = vsub.f32 %v39581_v60, %v2947_v7 }
 0x1d4   :  { %v2957_v10 = vand.u32 4294901760, %v39591_v26 }
 0x1d5   :  { %31038 = vmatmul.mubr.f32.gmra.mrb[4].mxu0 %v2879_v41  ;;  %v39600_v41 = vsub.f32 %v2751_v50, %v39583_v17  ;;  %v2949_v40 = vand.u32 4294901760, %v2948_v44  ;;  %v35279_v44 = vpack.c.bf16 %v39457_v29, %v39455_v32  ;;  %v46652_v32 = vand.u32 4294901760, %v39526_v2 }
 0x1d6   :  { %31040 = vmatprep.mubr.f32.mxu0 %v2889_v35  ;;  %v39607_v35 = vsub.f32 %v2754_v56, %v39593_v42  ;;  %v2958_v57 = vsub.f32 %v39591_v26, %v2957_v10  ;;  %v46653_v29 = vand.u32 4294901760, %v39533_v46 }
 0x1d7   :  { %v2967_v50 = vand.u32 4294901760, %v39600_v41 }
 0x1d8   :  { %v2977_v11 = vand.u32 4294901760, %v39607_v35 }
 0x1d9   :  { %31041 = vmatmul.mubr.f32.gmra.mrb[6].mxu0 %v2899_v28  ;;  %v2939_v28 = vand.u32 4294901760, %v2938_v23  ;;  %v2968_v56 = vsub.f32 %v39600_v41, %v2967_v50 }
 0x1da   :  { %31043 = vmatprep.mubr.f32.mxu0 %v2909_v36  ;;  %v2959_v36 = vand.u32 4294901760, %v2958_v57  ;;  %v2978_v16 = vsub.f32 %v39607_v35, %v2977_v11 }
 0x1dc   :  { %v2979_v23 = vand.u32 4294901760, %v2978_v16  ;;  %v3908_v16 = vld [vmem:[#allocation2 + $0x70] sm:$0xff] }
 0x1dd   :  { %31044 = vmatmul.mubr.f32.gmra.mrb[8].mxu0 %v2919_v24  ;;  %v2969_v24 = vand.u32 4294901760, %v2968_v56  ;;  %v3907_v56 = vld [vmem:[#allocation2 + $0x60] sm:$0xff] }
 0x1de   :  { %31046 = vmatprep.mubr.f32.mxu0 %v2929_v14  ;;  %v228_v14 = vld [vmem:[#allocation4 + $0x78] sm:$0xff] }
 0x1df   :  { %289 = vst.msk [vmem:[#allocation2 + $0x121] sm:$0xff] %vm229_vm0, %v228_v14 }
 0x1e1   :  { %31047 = vmatmul.mubr.f32.gmra.mrb[10].mxu0 %v2939_v28 }
 0x1e2   :  { %31049 = vmatprep.mubr.f32.mxu0 %v2949_v40  ;;  %v220_v40 = vld [vmem:[#allocation4 + $0x38] sm:$0xff] }
 0x1e3   :  { %281 = vst.msk [vmem:[#allocation2 + $0x81] sm:$0xff] %vm229_vm0, %v220_v40 }
 0x1e5   :  { %31050 = vmatmul.mubr.f32.gmra.mrb[12].mxu0 %v2959_v36 }
 0x1e6   :  { %31052 = vmatprep.mubr.f32.mxu0 %v2969_v24 }
 0x1e9   :  { %31053 = vmatmul.mubr.f32.gmra.mrb[14].mxu0 %v2979_v23 }
 0x1ea   :  { %31063 = vmatprep.mubr.f32.mxu0 %v39440_v8 }
 0x1ed   :  { %31064 = vmatmul.mubr.f32.vlgmr.msra.gmra.mrb[0].mxu0 %v39445_v62 }
 0x1ee   :  { %35278 = vmatpush3.bf16.msra.mxu0 %v35275_v1  ;;  %31066 = vmatprep.mubr.f32.mxu0 %v39451_v48  ;;  %v35291_v1 = vpack.c.bf16 %v2995_v3, %v2988_v19  ;;  %v46649_v19 = vand.u32 4294901760, %v39492_v21  ;;  %v46650_v3 = vand.u32 4294901760, %v39502_v39 }
 0x1ef   :  { %35280 = vmatprep.subr.bf16.mxu0 %v35279_v44 }
 0x1f1   :  { %31067 = vmatmul.mubr.f32.gmra.mrb[2].mxu0 %v39463_v13 }
 0x1f2   :  { %31069 = vmatprep.mubr.f32.mxu0 %v39472_v4  ;;  %35282 = vmatpush3.bf16.msra.mxu0 %v35279_v44  ;;  %v3939_v44 = vsel %vm229_vm0, %v3907_v56, 0 }
 0x1f3   :  { %35284 = vmatprep.subr.bf16.mxu0 %v39395_v53 }
 0x1f5   :  { %31070 = vmatmul.mubr.f32.gmra.mrb[4].mxu0 %v39476_v54 }
 0x1f6   :  { %31072 = vmatprep.mubr.f32.mxu0 %v39478_v22 }
 0x1f9   :  { %31073 = vmatmul.mubr.f32.gmra.mrb[6].mxu0 %v39507_v58 }
 0x1fa   :  { %31075 = vmatprep.mubr.f32.mxu0 %v39514_v12 }
 0x1fd   :  { %31076 = vmatmul.mubr.f32.gmra.mrb[8].mxu0 %v39535_v6 }
 0x1fe   :  { %31078 = vmatprep.mubr.f32.mxu0 %v39540_v38 }
 0x201   :  { %31079 = vmatmul.mubr.f32.gmra.mrb[10].mxu0 %v39555_v45 }
 0x202   :  { %31081 = vmatprep.mubr.f32.mxu0 %v39561_v27 }
 0x205   :  { %31082 = vmatmul.mubr.f32.gmra.mrb[12].mxu0 %v39577_v52 }
 0x206   :  { %31084 = vmatprep.mubr.f32.mxu0 %v39583_v17 }
 0x209   :  { %31085 = vmatmul.mubr.f32.gmra.mrb[14].mxu0 %v39593_v42 }
 0x20a   :  { %31095 = vmatprep.mubr.f32.mxu0 %v39449_v9  ;;  %v46651_v9 = vand.u32 4294901760, %v39505_v63 }
 0x20d   :  { %31096 = vmatmul.mubr.f32.vlgmr.msra.gmra.mrb[0].mxu0 %v39461_v43  ;;  %v46654_v43 = vand.u32 4294901760, %v39553_v59 }
 0x20e   :  { %35286 = vmatpush3.bf16.msra.mxu0 %v39395_v53  ;;  %31098 = vmatprep.mubr.f32.mxu0 %v39470_v25  ;;  %v46656_v25 = vand.u32 4294901760, %v39575_v61 }
 0x20f   :  { %35288 = vmatprep.subr.bf16.mxu0 %v39425_v18 }
 0x211   :  { %31099 = vmatmul.mubr.f32.gmra.mrb[2].mxu0 %v39483_v5  ;;  %v3975_v5 = vand.u32 4294901760, %v3920_v15 }
 0x212   :  { %31101 = vmatprep.mubr.f32.mxu0 %v39492_v21  ;;  %35290 = vmatpush3.bf16.msra.mxu0 %v39425_v18 }
 0x213   :  { %35292 = vmatprep.subr.bf16.mxu0 %v35291_v1  ;;  %v39723_v21 = vsub.f32 %v3920_v15, %v3975_v5  ;;  %v3911_v15 = vld [vmem:[#allocation2 + $0xc0] sm:$0xff] }
 0x215   :  { %31102 = vmatmul.mubr.f32.gmra.mrb[4].mxu0 %v39502_v39  ;;  %v4210_v39 = vand.u32 4294901760, %v39723_v21 }
 0x216   :  { %31104 = vmatprep.mubr.f32.mxu0 %v39505_v63  ;;  %v3921_v63 = vld [vmem:[#allocation6 + $0x70] sm:$0xff] }
 0x219   :  { %31105 = vmatmul.mubr.f32.gmra.mrb[6].mxu0 %v39526_v2  ;;  %v3978_v2 = vand.u32 4294901760, %v3921_v63 }
 0x21a   :  { %31107 = vmatprep.mubr.f32.mxu0 %v39533_v46 }
 0x21b   :  { %v39769_v24 = vsub.f32 %v3921_v63, %v3978_v2 }
 0x21d   :  { %31108 = vmatmul.mubr.f32.gmra.mrb[8].mxu0 %v39553_v59  ;;  %v4211_v59 = vsub.f32 %v39723_v21, %v4210_v39 }
 0x21e   :  { %31110 = vmatprep.mubr.f32.mxu0 %v39559_v31 }
 0x221   :  { %31111 = vmatmul.mubr.f32.gmra.mrb[10].mxu0 %v39575_v61 }
 0x222   :  { %31113 = vmatprep.mubr.f32.mxu0 %v39581_v60  ;;  %v4212_v60 = vand.u32 4294901760, %v4211_v59 }
 0x225   :  { %31114 = vmatmul.mubr.f32.gmra.mrb[12].mxu0 %v39591_v26 }
 0x226   :  { %31116 = vmatprep.mubr.f32.mxu0 %v39600_v41  ;;  %v3904_v41 = vld [vmem:[#allocation2 + $0x30] sm:$0xff] }
 0x229   :  { %31117 = vmatmul.mubr.f32.gmra.mrb[14].mxu0 %v39607_v35 }
 0x22a   :  { %31127 = vmatprep.mubr.f32.mxu0 %v2827_v34  ;;  %v46655_v34 = vand.u32 4294901760, %v39559_v31 }
 0x22d   :  { %31128 = vmatmul.mubr.f32.vlgmr.msra.gmra.mrb[0].mxu0 %v2837_v51  ;;  %v3972_v51 = vand.u32 4294901760, %v3919_v33 }
 0x22e   :  { %35294 = vmatpush3.bf16.msra.mxu0 %v35291_v1  ;;  %31130 = vmatprep.mubr.f32.mxu0 %v2847_v55 }
 0x22f   :  { %35296 = vmatprep.subr.bf16.mxu0 %v35295_v0  ;;  %v39709_v55 = vpack.c.bf16 %v3975_v5, %v3972_v51  ;;  %v3912_v5 = vld [vmem:[#allocation2 + $0xd0] sm:$0xff] }
 0x231   :  { %31131 = vmatmul.mubr.f32.gmra.mrb[2].mxu0 %v46648_v49  ;;  %v3909_v49 = vld [vmem:[#allocation2 + $0x80] sm:$0xff] }
 0x232   :  { %31133 = vmatprep.mubr.f32.mxu0 %v46649_v19  ;;  %35298 = vmatpush3.bf16.msra.mxu0 %v35295_v0  ;;  %v3942_v0 = vsel %vm229_vm0, %v3908_v16, 0 }
 0x233   :  { %35300 = vmatprep.subr.bf16.mxu0 %v39395_v53 }
 0x235   :  { %31134 = vmatmul.mubr.f32.gmra.mrb[4].mxu0 %v46650_v3  ;;  %v39790_v3 = vand.u32 4294901760, %v3939_v44 }
 0x236   :  { %31136 = vmatprep.mubr.f32.mxu0 %v46651_v9 }
 0x239   :  { %31137 = vmatmul.mubr.f32.gmra.mrb[6].mxu0 %v46652_v32  ;;  %v39797_v32 = vand.u32 4294901760, %v3942_v0 }
 0x23a   :  { %31139 = vmatprep.mubr.f32.mxu0 %v46653_v29  ;;  %v3945_v29 = vsel %vm229_vm0, %v3909_v49, 0 }
 0x23d   :  { %31140 = vmatmul.mubr.f32.gmra.mrb[8].mxu0 %v46654_v43 }
 0x23e   :  { %31142 = vmatprep.mubr.f32.mxu0 %v46655_v34 }
 0x241   :  { %31143 = vmatmul.mubr.f32.gmra.mrb[10].mxu0 %v46656_v25 }
 0x242   :  { %31145 = vmatprep.mubr.f32.mxu0 %v2947_v7  ;;  %v3902_v7 = vld [vmem:[#allocation2 + $0x10] sm:$0xff] }
 0x245   :  { %31146 = vmatmul.mubr.f32.gmra.mrb[12].mxu0 %v2957_v10  ;;  %v3922_v10 = vld [vmem:[#allocation6 + $0x78] sm:$0xff] }
 0x246   :  { %31148 = vmatprep.mubr.f32.mxu0 %v2967_v50  ;;  %v3981_v46 = vand.u32 4294901760, %v3922_v10  ;;  %v3905_v50 = vld [vmem:[#allocation2 + $0x40] sm:$0xff] }
 0x248   :  { %v39739_v31 = vpack.c.bf16 %v3981_v46, %v3978_v2  ;;  %v39771_v23 = vsub.f32 %v3922_v10, %v3981_v46  ;;  %v39825_v2 = vsub.f32 %v3942_v0, %v39797_v32  ;;  %v3915_v0 = vld [vmem:[#allocation2 + $0x100] sm:$0xff] }
 0x249   :  { %31149 = vmatmul.mubr.f32.gmra.mrb[14].mxu0 %v2977_v11 }
 0x24a   :  { %31159 = vmatprep.mubr.f32.mxu0 %v39440_v8  ;;  %v4224_v19 = vand.u32 4294901760, %v39771_v23 }
 0x24d   :  { %31160 = vmatmul.mubr.f32.vlgmr.msra.gmra.mrb[0].mxu0 %v39445_v62 }
 0x24e   :  { %35302 = vmatpush3.bf16.msra.mxu0 %v39395_v53  ;;  %31162 = vmatprep.mubr.f32.mxu0 %v39451_v48  ;;  %v39721_v53 = vsub.f32 %v3919_v33, %v3972_v51  ;;  %v4225_v33 = vsub.f32 %v39771_v23, %v4224_v19  ;;  %v39817_v51 = vand.u32 4294901760, %v3945_v29 }
 0x24f   :  { %35304 = vmatprep.subr.bf16.mxu0 %v39425_v18 }
 0x251   :  { %31163 = vmatmul.mubr.f32.gmra.mrb[2].mxu0 %v39463_v13 }
 0x252   :  { %31165 = vmatprep.mubr.f32.mxu0 %v39472_v4  ;;  %35306 = vmatpush3.bf16.msra.mxu0 %v39425_v18  ;;  %v4203_v18 = vand.u32 4294901760, %v39721_v53 }
 0x253   :  { %35308 = vmatprep.subr.bf16.mxu0 %v39709_v55 }
 0x254   :  { %v4204_v11 = vsub.f32 %v39721_v53, %v4203_v18 }
 0x255   :  { %31166 = vmatmul.mubr.f32.gmra.mrb[4].mxu0 %v39476_v54 }
 0x256   :  { %31168 = vmatprep.mubr.f32.mxu0 %v39478_v22  ;;  %v4205_v61 = vand.u32 4294901760, %v4204_v11 }
 0x258   :  { %v39745_v26 = vpack.c.bf16 %v4212_v60, %v4205_v61  ;;  %v4226_v60 = vand.u32 4294901760, %v4225_v33 }
 0x259   :  { %31169 = vmatmul.mubr.f32.gmra.mrb[6].mxu0 %v39507_v58 }
 0x25a   :  { %31171 = vmatprep.mubr.f32.mxu0 %v39514_v12 }
 0x25d   :  { %31172 = vmatmul.mubr.f32.gmra.mrb[8].mxu0 %v39535_v6 }
 0x25e   :  { %31174 = vmatprep.mubr.f32.mxu0 %v39540_v38 }
 0x261   :  { %31175 = vmatmul.mubr.f32.gmra.mrb[10].mxu0 %v39555_v45 }
 0x262   :  { %31177 = vmatprep.mubr.f32.mxu0 %v39561_v27 }
 0x265   :  { %31178 = vmatmul.mubr.f32.gmra.mrb[12].mxu0 %v39577_v52 }
 0x266   :  { %31180 = vmatprep.mubr.f32.mxu0 %v39583_v17 }
 0x269   :  { %31181 = vmatmul.mubr.f32.gmra.mrb[14].mxu0 %v39593_v42 }
 0x26a   :  { %31191 = vmatprep.mubr.f32.mxu0 %v39440_v8  ;;  %v3924_v8 = vsel %vm229_vm0, %v3902_v7, 0  ;;  %v3954_v7 = vsel %vm229_vm0, %v3912_v5, 0 }
 0x26d   :  { %31192 = vmatmul.mubr.f32.vlgmr.msra.gmra.mrb[0].mxu0 %v39445_v62  ;;  %v3903_v62 = vld [vmem:[#allocation2 + $0x20] sm:$0xff] }
 0x26e   :  { %35310 = vmatpush3.bf16.msra.mxu0 %v39709_v55  ;;  %31194 = vmatprep.mubr.f32.mxu0 %v39451_v48  ;;  %v39754_v48 = vand.u32 4294901760, %v3924_v8  ;;  %v3927_v35 = vsel %vm229_vm0, %v3903_v62, 0 }
 0x26f   :  { %35312 = vmatprep.subr.bf16.mxu0 %v39739_v31  ;;  %v39759_v28 = vand.u32 4294901760, %v3927_v35 }
 0x270   :  { %v39763_v57 = vsub.f32 %v3924_v8, %v39754_v48  ;;  %v3913_v8 = vld [vmem:[#allocation2 + $0xe0] sm:$0xff] }
 0x271   :  { %31195 = vmatmul.mubr.f32.gmra.mrb[2].mxu0 %v39463_v13  ;;  %v3930_v13 = vsel %vm229_vm0, %v3904_v41, 0  ;;  %v39836_v41 = vsub.f32 %v3945_v29, %v39817_v51  ;;  %v3957_v16 = vsel %vm229_vm0, %v3913_v8, 0  ;;  %v3917_v8 = vld [vmem:[#allocation2 + $0x120] sm:$0xff] }
 0x272   :  { %31197 = vmatprep.mubr.f32.mxu0 %v39472_v4  ;;  %35314 = vmatpush3.bf16.msra.mxu0 %v39739_v31  ;;  %v3906_v4 = vld [vmem:[#allocation2 + $0x50] sm:$0xff]  ;;  %v4042_v40 = vand.u32 4294901760, %v39763_v57  ;;  %v39862_v5 = vand.u32 4294901760, %v3957_v16 }
 0x273   :  { %35316 = vmatprep.subr.bf16.mxu0 %v39745_v26  ;;  %v3936_v36 = vsel %vm229_vm0, %v3906_v4, 0  ;;  %v46414_v29 = vand.u32 4294901760, %v39836_v41 }
 0x274   :  { %v39785_v14 = vand.u32 4294901760, %v3936_v36  ;;  %v4043_v43 = vsub.f32 %v39763_v57, %v4042_v40 }
 0x275   :  { %31198 = vmatmul.mubr.f32.gmra.mrb[4].mxu0 %v39476_v54  ;;  %v39765_v54 = vand.u32 4294901760, %v3930_v13 }
 0x276   :  { %31200 = vmatprep.mubr.f32.mxu0 %v39478_v22  ;;  %v3933_v22 = vsel %vm229_vm0, %v3905_v50, 0  ;;  %v39806_v25 = vsub.f32 %v3936_v36, %v39785_v14  ;;  %v4044_v46 = vand.u32 4294901760, %v4043_v43  ;;  %v4102_v50 = vand.u32 4294901760, %v39825_v2  ;;  %v3916_v43 = vld [vmem:[#allocation2 + $0x110] sm:$0xff] }
 0x277   :  { %v39783_v1 = vsub.f32 %v3930_v13, %v39765_v54  ;;  %v39848_v36 = vand.u32 4294901760, %v3954_v7 }
 0x278   :  { %v4082_v59 = vand.u32 4294901760, %v39806_v25  ;;  %v4103_v33 = vsub.f32 %v39825_v2, %v4102_v50 }
 0x279   :  { %31201 = vmatmul.mubr.f32.gmra.mrb[6].mxu0 %v39507_v58  ;;  %v39775_v58 = vsub.f32 %v3927_v35, %v39759_v28  ;;  %v4062_v34 = vand.u32 4294901760, %v39783_v1 }
 0x27a   :  { %31203 = vmatprep.mubr.f32.mxu0 %v39514_v12  ;;  %v39777_v12 = vand.u32 4294901760, %v3933_v22  ;;  %v4083_v56 = vsub.f32 %v39806_v25, %v4082_v59 }
 0x27b   :  { %v4063_v11 = vsub.f32 %v39783_v1, %v4062_v34 }
 0x27c   :  { %v39795_v9 = vsub.f32 %v3933_v22, %v39777_v12 }
 0x27d   :  { %31204 = vmatmul.mubr.f32.gmra.mrb[8].mxu0 %v39535_v6  ;;  %v4217_v6 = vand.u32 4294901760, %v39769_v24  ;;  %v4064_v22 = vand.u32 4294901760, %v4063_v11 }
 0x27e   :  { %31206 = vmatprep.mubr.f32.mxu0 %v39540_v38  ;;  %v4052_v38 = vand.u32 4294901760, %v39775_v58  ;;  %v4072_v10 = vand.u32 4294901760, %v39795_v9 }
 0x280   :  { %v4053_v63 = vsub.f32 %v39775_v58, %v4052_v38  ;;  %v4073_v13 = vsub.f32 %v39795_v9, %v4072_v10 }
 0x281   :  { %31207 = vmatmul.mubr.f32.gmra.mrb[10].mxu0 %v39555_v45  ;;  %v4218_v45 = vsub.f32 %v39769_v24, %v4217_v6 }
 0x282   :  { %31209 = vmatprep.mubr.f32.mxu0 %v39561_v27  ;;  %v39815_v27 = vsub.f32 %v3939_v44, %v39790_v3  ;;  %v4054_v35 = vand.u32 4294901760, %v4053_v63  ;;  %v4084_v63 = vand.u32 4294901760, %v4083_v56 }
 0x283   :  { %v4219_v61 = vand.u32 4294901760, %v4218_v45  ;;  %v4074_v45 = vand.u32 4294901760, %v4073_v13  ;;  %v39879_v13 = vsub.f32 %v3957_v16, %v39862_v5 }
 0x284   :  { %v4092_v62 = vand.u32 4294901760, %v39815_v27 }
 0x285   :  { %31210 = vmatmul.mubr.f32.gmra.mrb[12].mxu0 %v39577_v52  ;;  %v3951_v52 = vsel %vm229_vm0, %v3911_v15, 0 }
 0x286   :  { %31212 = vmatprep.mubr.f32.mxu0 %v39583_v17  ;;  %v3914_v17 = vld [vmem:[#allocation2 + $0xf0] sm:$0xff]  ;;  %v39843_v4 = vand.u32 4294901760, %v3951_v52  ;;  %v4093_v49 = vsub.f32 %v39815_v27, %v4092_v62 }
 0x287   :  { %v3960_v44 = vsel %vm229_vm0, %v3914_v17, 0 }
 0x288   :  { %v39860_v15 = vsub.f32 %v3951_v52, %v39843_v4  ;;  %v39868_v11 = vand.u32 4294901760, %v3960_v44  ;;  %v35323_v52 = vpack.c.bf16 %v39723_v21, %v39721_v53  ;;  %v4094_v17 = vand.u32 4294901760, %v4093_v49 }
 0x289   :  { %31213 = vmatmul.mubr.f32.gmra.mrb[14].mxu0 %v39593_v42  ;;  %v35319_v42 = vpack.c.bf16 %v4226_v60, %v4219_v61  ;;  %v3963_v61 = vsel %vm229_vm0, %v3915_v0, 0  ;;  %v3966_v60 = vsel %vm229_vm0, %v3916_v43, 0  ;;  %v3969_v43 = vsel %vm229_vm0, %v3917_v8, 0 }
 0x28a   :  { %31223 = vmatprep.mubr.f32.mxu0 %v4044_v46  ;;  %v39866_v46 = vsub.f32 %v3954_v7, %v39848_v36  ;;  %v46413_v7 = vand.u32 4294901760, %v39860_v15  ;;  %v39885_v0 = vsub.f32 %v3960_v44, %v39868_v11  ;;  %v39887_v49 = vand.u32 4294901760, %v3966_v60 }
 0x28b   :  { %v46657_v53 = vand.u32 4294901760, %v39836_v41  ;;  %v46658_v21 = vand.u32 4294901760, %v39860_v15 }
 0x28c   :  { %v46415_v56 = vand.u32 4294901760, %v39866_v46  ;;  %v4133_v16 = vsub.f32 %v39860_v15, %v46413_v7  ;;  %v46417_v8 = vand.u32 4294901760, %v39885_v0 }
 0x28d   :  { %31224 = vmatmul.mubr.f32.vlgmr.msra.gmra.mrb[0].mxu0 %v4054_v35  ;;  %v4104_v35 = vand.u32 4294901760, %v4103_v33  ;;  %v46416_v33 = vand.u32 4294901760, %v39879_v13 }
 0x28e   :  { %35318 = vmatpush3.bf16.msra.mxu0 %v39745_v26  ;;  %31226 = vmatprep.mubr.f32.mxu0 %v4064_v22  ;;  %v4113_v26 = vsub.f32 %v39836_v41, %v46414_v29  ;;  %v39881_v22 = vand.u32 4294901760, %v3963_v61  ;;  %v4143_v44 = vsub.f32 %v39866_v46, %v46415_v56  ;;  %v4163_v56 = vsub.f32 %v39885_v0, %v46417_v8 }
 0x28f   :  { %35320 = vmatprep.subr.bf16.mxu0 %v35319_v42  ;;  %v4153_v7 = vsub.f32 %v39879_v13, %v46416_v33 }
 0x291   :  { %31227 = vmatmul.mubr.f32.gmra.mrb[2].mxu0 %v4074_v45  ;;  %v4114_v45 = vand.u32 4294901760, %v4113_v26  ;;  %v4134_v26 = vand.u32 4294901760, %v4133_v16 }
 0x292   :  { %31229 = vmatprep.mubr.f32.mxu0 %v4084_v63  ;;  %35322 = vmatpush3.bf16.msra.mxu0 %v35319_v42  ;;  %v39895_v42 = vsub.f32 %v3963_v61, %v39881_v22  ;;  %v39897_v63 = vand.u32 4294901760, %v3969_v43 }
 0x293   :  { %35324 = vmatprep.subr.bf16.mxu0 %v35323_v52 }
 0x294   :  { %v4172_v61 = vand.u32 4294901760, %v39895_v42  ;;  %v39911_v29 = vsub.f32 %v3969_v43, %v39897_v63  ;;  %v4164_v43 = vand.u32 4294901760, %v4163_v56  ;;  %v35327_v56 = vpack.c.bf16 %v39771_v23, %v39769_v24  ;;  %v5134_v24 = vld [vmem:[#allocation6 + $0x80] sm:$0xff] }
 0x295   :  { %31230 = vmatmul.mubr.f32.gmra.mrb[4].mxu0 %v4094_v17  ;;  %v39904_v17 = vsub.f32 %v3966_v60, %v39887_v49  ;;  %v5187_v23 = vand.u32 4294901760, %v5134_v24 }
 0x296   :  { %31232 = vmatprep.mubr.f32.mxu0 %v4104_v35  ;;  %v4144_v35 = vand.u32 4294901760, %v4143_v44  ;;  %v4173_v16 = vsub.f32 %v39895_v42, %v4172_v61  ;;  %v4192_v33 = vand.u32 4294901760, %v39911_v29 }
 0x297   :  { %v4182_v60 = vand.u32 4294901760, %v39904_v17 }
 0x298   :  { %v4174_v44 = vand.u32 4294901760, %v4173_v16  ;;  %v4193_v8 = vsub.f32 %v39911_v29, %v4192_v33 }
 0x299   :  { %31233 = vmatmul.mubr.f32.gmra.mrb[6].mxu0 %v4114_v45  ;;  %v4154_v45 = vand.u32 4294901760, %v4153_v7 }
 0x29a   :  { %31235 = vmatprep.mubr.f32.mxu0 %v39288_v30  ;;  %v4183_v30 = vsub.f32 %v39904_v17, %v4182_v60 }
 0x29c   :  { %v4184_v7 = vand.u32 4294901760, %v4183_v30 }
 0x29d   :  { %31236 = vmatmul.mubr.f32.gmra.mrb[8].mxu0 %v4134_v26  ;;  %v4194_v26 = vand.u32 4294901760, %v4193_v8 }
 0x29e   :  { %31238 = vmatprep.mubr.f32.mxu0 %v4144_v35 }
 0x2a1   :  { %31239 = vmatmul.mubr.f32.gmra.mrb[10].mxu0 %v4154_v45 }
 0x2a2   :  { %31241 = vmatprep.mubr.f32.mxu0 %v4164_v43  ;;  %v5124_v43 = vld [vmem:[#allocation2 + $0x81] sm:$0xff] }
 0x2a5   :  { %31242 = vmatmul.mubr.f32.gmra.mrb[12].mxu0 %v4174_v44 }
 0x2a6   :  { %31244 = vmatprep.mubr.f32.mxu0 %v4184_v7 }
 0x2a9   :  { %31245 = vmatmul.mubr.f32.gmra.mrb[14].mxu0 %v4194_v26 }
 0x2aa   :  { %31255 = vmatprep.mubr.f32.mxu0 %v39754_v48 }
 0x2ad   :  { %31256 = vmatmul.mubr.f32.vlgmr.msra.gmra.mrb[0].mxu0 %v39759_v28 }
 0x2ae   :  { %35326 = vmatpush3.bf16.msra.mxu0 %v35323_v52  ;;  %31258 = vmatprep.mubr.f32.mxu0 %v39765_v54  ;;  %v35339_v52 = vpack.c.bf16 %v4210_v39, %v4203_v18  ;;  %v46659_v18 = vand.u32 4294901760, %v39866_v46  ;;  %v46660_v39 = vand.u32 4294901760, %v39879_v13 }
 0x2af   :  { %35328 = vmatprep.subr.bf16.mxu0 %v35327_v56 }
 0x2b1   :  { %31259 = vmatmul.mubr.f32.gmra.mrb[2].mxu0 %v39777_v12 }
 0x2b2   :  { %31261 = vmatprep.mubr.f32.mxu0 %v39785_v14  ;;  %35330 = vmatpush3.bf16.msra.mxu0 %v35327_v56 }
 0x2b3   :  { %35332 = vmatprep.subr.bf16.mxu0 %v39709_v55 }
 0x2b5   :  { %31262 = vmatmul.mubr.f32.gmra.mrb[4].mxu0 %v39790_v3 }
 0x2b6   :  { %31264 = vmatprep.mubr.f32.mxu0 %v39797_v32 }
 0x2b9   :  { %31265 = vmatmul.mubr.f32.gmra.mrb[6].mxu0 %v39817_v51 }
 0x2ba   :  { %31267 = vmatprep.mubr.f32.mxu0 %v39220_v20 }
 0x2bd   :  { %31268 = vmatmul.mubr.f32.gmra.mrb[8].mxu0 %v39843_v4 }
 0x2be   :  { %31270 = vmatprep.mubr.f32.mxu0 %v39848_v36 }
 0x2c1   :  { %31271 = vmatmul.mubr.f32.gmra.mrb[10].mxu0 %v39862_v5 }
 0x2c2   :  { %31273 = vmatprep.mubr.f32.mxu0 %v39868_v11 }
 0x2c5   :  { %31274 = vmatmul.mubr.f32.gmra.mrb[12].mxu0 %v39881_v22 }
 0x2c6   :  { %31276 = vmatprep.mubr.f32.mxu0 %v39887_v49 }
 0x2c9   :  { %31277 = vmatmul.mubr.f32.gmra.mrb[14].mxu0 %v39897_v63 }
 0x2ca   :  { %31287 = vmatprep.mubr.f32.mxu0 %v39763_v57  ;;  %v46661_v57 = vand.u32 4294901760, %v39885_v0 }
 0x2cd   :  { %31288 = vmatmul.mubr.f32.vlgmr.msra.gmra.mrb[0].mxu0 %v39775_v58 }
 0x2ce   :  { %35334 = vmatpush3.bf16.msra.mxu0 %v39709_v55  ;;  %31290 = vmatprep.mubr.f32.mxu0 %v39783_v1 }
 0x2cf   :  { %35336 = vmatprep.subr.bf16.mxu0 %v39739_v31 }
 0x2d1   :  { %31291 = vmatmul.mubr.f32.gmra.mrb[2].mxu0 %v39795_v9 }
 0x2d2   :  { %31293 = vmatprep.mubr.f32.mxu0 %v39806_v25  ;;  %35338 = vmatpush3.bf16.msra.mxu0 %v39739_v31 }
 0x2d3   :  { %35340 = vmatprep.subr.bf16.mxu0 %v35339_v52 }
 0x2d5   :  { %31294 = vmatmul.mubr.f32.gmra.mrb[4].mxu0 %v39815_v27 }
 0x2d6   :  { %31296 = vmatprep.mubr.f32.mxu0 %v39825_v2 }
 0x2d9   :  { %31297 = vmatmul.mubr.f32.gmra.mrb[6].mxu0 %v39836_v41  ;;  %v5117_v41 = vld [vmem:[#allocation2 + $0x11] sm:$0xff] }
 0x2da   :  { %31299 = vmatprep.mubr.f32.mxu0 %v39238_v37  ;;  %v35343_v37 = vpack.c.bf16 %v4224_v19, %v4217_v6  ;;  %v5136_v19 = vld [vmem:[#allocation6 + $0x90] sm:$0xff] }
 0x2db   :  { %v5193_v9 = vand.u32 4294901760, %v5136_v19 }
 0x2dd   :  { %31300 = vmatmul.mubr.f32.gmra.mrb[8].mxu0 %v39860_v15  ;;  %v5120_v15 = vld [vmem:[#allocation2 + $0x41] sm:$0xff]  ;;  %v40071_v8 = vsub.f32 %v5136_v19, %v5193_v9 }
 0x2de   :  { %31302 = vmatprep.mubr.f32.mxu0 %v39866_v46 }
 0x2df   :  { %v5432_v30 = vand.u32 4294901760, %v40071_v8 }
 0x2e1   :  { %31303 = vmatmul.mubr.f32.gmra.mrb[10].mxu0 %v39879_v13 }
 0x2e2   :  { %31305 = vmatprep.mubr.f32.mxu0 %v39885_v0  ;;  %v5122_v0 = vld [vmem:[#allocation2 + $0x61] sm:$0xff] }
 0x2e5   :  { %31306 = vmatmul.mubr.f32.gmra.mrb[12].mxu0 %v39895_v42 }
 0x2e6   :  { %31308 = vmatprep.mubr.f32.mxu0 %v39904_v17 }
 0x2e9   :  { %31309 = vmatmul.mubr.f32.gmra.mrb[14].mxu0 %v39911_v29 }
 0x2ea   :  { %31319 = vmatprep.mubr.f32.mxu0 %v4042_v40 }
 0x2ed   :  { %31320 = vmatmul.mubr.f32.vlgmr.msra.gmra.mrb[0].mxu0 %v4052_v38  ;;  %v5137_v38 = vld [vmem:[#allocation6 + $0x98] sm:$0xff] }
 0x2ee   :  { %35342 = vmatpush3.bf16.msra.mxu0 %v35339_v52  ;;  %31322 = vmatprep.mubr.f32.mxu0 %v4062_v34  ;;  %v5196_v34 = vand.u32 4294901760, %v5137_v38  ;;  %v5160_v52 = vsel %vm229_vm0, %v5124_v43, 0 }
 0x2ef   :  { %35344 = vmatprep.subr.bf16.mxu0 %v35343_v37 }
 0x2f0   :  { %v40073_v17 = vsub.f32 %v5137_v38, %v5196_v34 }
 0x2f1   :  { %31323 = vmatmul.mubr.f32.gmra.mrb[2].mxu0 %v4072_v10  ;;  %v40041_v10 = vpack.c.bf16 %v5196_v34, %v5193_v9 }
 0x2f2   :  { %31325 = vmatprep.mubr.f32.mxu0 %v4082_v59  ;;  %35346 = vmatpush3.bf16.msra.mxu0 %v35343_v37  ;;  %v5439_v44 = vand.u32 4294901760, %v40073_v17 }
 0x2f3   :  { %35348 = vmatprep.subr.bf16.mxu0 %v39709_v55 }
 0x2f5   :  { %31326 = vmatmul.mubr.f32.gmra.mrb[4].mxu0 %v4092_v62 }
 0x2f6   :  { %31328 = vmatprep.mubr.f32.mxu0 %v4102_v50  ;;  %v5119_v50 = vld [vmem:[#allocation2 + $0x31] sm:$0xff] }
 0x2f9   :  { %31329 = vmatmul.mubr.f32.gmra.mrb[6].mxu0 %v46657_v53 }
 0x2fa   :  { %31331 = vmatprep.mubr.f32.mxu0 %v39259_v47  ;;  %v5135_v47 = vld [vmem:[#allocation6 + $0x88] sm:$0xff] }
 0x2fb   :  { %v5190_v58 = vand.u32 4294901760, %v5135_v47 }
 0x2fd   :  { %31332 = vmatmul.mubr.f32.gmra.mrb[8].mxu0 %v46658_v21  ;;  %v40011_v40 = vpack.c.bf16 %v5190_v58, %v5187_v23  ;;  %v40025_v1 = vsub.f32 %v5135_v47, %v5190_v58  ;;  %v40123_v47 = vand.u32 4294901760, %v5160_v52 }
 0x2fe   :  { %31334 = vmatprep.mubr.f32.mxu0 %v46659_v18  ;;  %v5433_v18 = vsub.f32 %v40071_v8, %v5432_v30 }
 0x2ff   :  { %v5425_v6 = vand.u32 4294901760, %v40025_v1 }
 0x301   :  { %31335 = vmatmul.mubr.f32.gmra.mrb[10].mxu0 %v46660_v39  ;;  %v5426_v27 = vsub.f32 %v40025_v1, %v5425_v6  ;;  %v5440_v39 = vsub.f32 %v40073_v17, %v5439_v44 }
 0x302   :  { %31337 = vmatprep.mubr.f32.mxu0 %v46661_v57 }
 0x303   :  { %v5427_v59 = vand.u32 4294901760, %v5426_v27 }
 0x305   :  { %31338 = vmatmul.mubr.f32.gmra.mrb[12].mxu0 %v4172_v61  ;;  %v5154_v61 = vsel %vm229_vm0, %v5122_v0, 0 }
 0x306   :  { %31340 = vmatprep.mubr.f32.mxu0 %v4182_v60  ;;  %v40092_v7 = vand.u32 4294901760, %v5154_v61 }
 0x308   :  { %v40118_v57 = vsub.f32 %v5154_v61, %v40092_v7 }
 0x309   :  { %31341 = vmatmul.mubr.f32.gmra.mrb[14].mxu0 %v4192_v33  ;;  %v5123_v33 = vld [vmem:[#allocation2 + $0x71] sm:$0xff] }
 0x30a   :  { %31351 = vmatprep.mubr.f32.mxu0 %v39754_v48  ;;  %v5157_v35 = vsel %vm229_vm0, %v5123_v33, 0 }
 0x30b   :  { %v40094_v26 = vand.u32 4294901760, %v5157_v35 }
 0x30d   :  { %31352 = vmatmul.mubr.f32.vlgmr.msra.gmra.mrb[0].mxu0 %v39759_v28 }
 0x30e   :  { %35350 = vmatpush3.bf16.msra.mxu0 %v39709_v55  ;;  %31354 = vmatprep.mubr.f32.mxu0 %v39765_v54  ;;  %v40023_v55 = vsub.f32 %v5134_v24, %v5187_v23  ;;  %v40121_v24 = vsub.f32 %v5157_v35, %v40094_v26  ;;  %v5127_v23 = vld [vmem:[#allocation2 + $0xd1] sm:$0xff]  ;;  %v5130_v35 = vld [vmem:[#allocation2 + $0x101] sm:$0xff] }
 0x30f   :  { %35352 = vmatprep.subr.bf16.mxu0 %v39739_v31 }
 0x311   :  { %31355 = vmatmul.mubr.f32.gmra.mrb[2].mxu0 %v39777_v12 }
 0x312   :  { %31357 = vmatprep.mubr.f32.mxu0 %v39785_v14  ;;  %35354 = vmatpush3.bf16.msra.mxu0 %v39739_v31  ;;  %v5418_v31 = vand.u32 4294901760, %v40023_v55 }
 0x313   :  { %35356 = vmatprep.subr.bf16.mxu0 %v40011_v40 }
 0x314   :  { %v5419_v25 = vsub.f32 %v40023_v55, %v5418_v31 }
 0x315   :  { %31358 = vmatmul.mubr.f32.gmra.mrb[4].mxu0 %v39790_v3 }
 0x316   :  { %31360 = vmatprep.mubr.f32.mxu0 %v39797_v32  ;;  %v5420_v2 = vand.u32 4294901760, %v5419_v25 }
 0x318   :  { %v40047_v62 = vpack.c.bf16 %v5427_v59, %v5420_v2  ;;  %v5441_v2 = vand.u32 4294901760, %v5440_v39  ;;  %v5169_v59 = vsel %vm229_vm0, %v5127_v23, 0 }
 0x319   :  { %31361 = vmatmul.mubr.f32.gmra.mrb[6].mxu0 %v39817_v51  ;;  %v40156_v33 = vand.u32 4294901760, %v5169_v59 }
 0x31a   :  { %31363 = vmatprep.mubr.f32.mxu0 %v39220_v20 }
 0x31d   :  { %31364 = vmatmul.mubr.f32.gmra.mrb[8].mxu0 %v39843_v4 }
 0x31e   :  { %31366 = vmatprep.mubr.f32.mxu0 %v39848_v36 }
 0x321   :  { %31367 = vmatmul.mubr.f32.gmra.mrb[10].mxu0 %v39862_v5 }
 0x322   :  { %31369 = vmatprep.mubr.f32.mxu0 %v39868_v11 }
 0x325   :  { %31370 = vmatmul.mubr.f32.gmra.mrb[12].mxu0 %v39881_v22 }
 0x326   :  { %31372 = vmatprep.mubr.f32.mxu0 %v39887_v49 }
 0x329   :  { %31373 = vmatmul.mubr.f32.gmra.mrb[14].mxu0 %v39897_v63 }
 0x32a   :  { %31383 = vmatprep.mubr.f32.mxu0 %v39754_v48  ;;  %v5139_v48 = vsel %vm229_vm0, %v5117_v41, 0  ;;  %v5128_v41 = vld [vmem:[#allocation2 + $0xe1] sm:$0xff] }
 0x32d   :  { %31384 = vmatmul.mubr.f32.vlgmr.msra.gmra.mrb[0].mxu0 %v39759_v28  ;;  %v5118_v28 = vld [vmem:[#allocation2 + $0x21] sm:$0xff] }
 0x32e   :  { %35358 = vmatpush3.bf16.msra.mxu0 %v40011_v40  ;;  %31386 = vmatprep.mubr.f32.mxu0 %v39765_v54  ;;  %v40056_v54 = vand.u32 4294901760, %v5139_v48  ;;  %v5142_v29 = vsel %vm229_vm0, %v5118_v28, 0  ;;  %v5317_v28 = vand.u32 4294901760, %v40121_v24 }
 0x32f   :  { %35360 = vmatprep.subr.bf16.mxu0 %v40041_v10  ;;  %v40061_v46 = vand.u32 4294901760, %v5142_v29 }
 0x330   :  { %v40065_v13 = vsub.f32 %v5139_v48, %v40056_v54  ;;  %v5307_v48 = vand.u32 4294901760, %v40118_v57 }
 0x331   :  { %31387 = vmatmul.mubr.f32.gmra.mrb[2].mxu0 %v39777_v12  ;;  %v5145_v12 = vsel %vm229_vm0, %v5119_v50, 0  ;;  %v5129_v50 = vld [vmem:[#allocation2 + $0xf1] sm:$0xff] }
 0x332   :  { %31389 = vmatprep.mubr.f32.mxu0 %v39785_v14  ;;  %35362 = vmatpush3.bf16.msra.mxu0 %v40041_v10  ;;  %v5121_v14 = vld [vmem:[#allocation2 + $0x51] sm:$0xff]  ;;  %v5257_v60 = vand.u32 4294901760, %v40065_v13  ;;  %v5175_v61 = vsel %vm229_vm0, %v5129_v50, 0  ;;  %v5308_v43 = vsub.f32 %v40118_v57, %v5307_v48 }
 0x333   :  { %35364 = vmatprep.subr.bf16.mxu0 %v40047_v62  ;;  %v5151_v42 = vsel %vm229_vm0, %v5121_v14, 0 }
 0x334   :  { %v40088_v16 = vand.u32 4294901760, %v5151_v42  ;;  %v5258_v37 = vsub.f32 %v40065_v13, %v5257_v60 }
 0x335   :  { %31390 = vmatmul.mubr.f32.gmra.mrb[4].mxu0 %v39790_v3  ;;  %v40067_v3 = vand.u32 4294901760, %v5145_v12 }
 0x336   :  { %31392 = vmatprep.mubr.f32.mxu0 %v39797_v32  ;;  %v5148_v32 = vsel %vm229_vm0, %v5120_v15, 0  ;;  %v40108_v21 = vsub.f32 %v5151_v42, %v40088_v16  ;;  %v5259_v9 = vand.u32 4294901760, %v5258_v37  ;;  %v5131_v37 = vld [vmem:[#allocation2 + $0x111] sm:$0xff] }
 0x337   :  { %v40086_v45 = vsub.f32 %v5145_v12, %v40067_v3 }
 0x338   :  { %v5297_v25 = vand.u32 4294901760, %v40108_v21 }
 0x339   :  { %31393 = vmatmul.mubr.f32.gmra.mrb[6].mxu0 %v39817_v51  ;;  %v40077_v51 = vsub.f32 %v5142_v29, %v40061_v46  ;;  %v5277_v53 = vand.u32 4294901760, %v40086_v45 }
 0x33a   :  { %31395 = vmatprep.mubr.f32.mxu0 %v39220_v20  ;;  %v40079_v20 = vand.u32 4294901760, %v5148_v32  ;;  %v5298_v0 = vsub.f32 %v40108_v21, %v5297_v25 }
 0x33b   :  { %v5278_v34 = vsub.f32 %v40086_v45, %v5277_v53 }
 0x33c   :  { %v40099_v56 = vsub.f32 %v5148_v32, %v40079_v20  ;;  %v5299_v23 = vand.u32 4294901760, %v5298_v0 }
 0x33d   :  { %31396 = vmatmul.mubr.f32.gmra.mrb[8].mxu0 %v39843_v4  ;;  %v5125_v4 = vld [vmem:[#allocation2 + $0xb1] sm:$0xff]  ;;  %v5279_v32 = vand.u32 4294901760, %v5278_v34  ;;  %v5178_v34 = vsel %vm229_vm0, %v5130_v35, 0 }
 0x33e   :  { %31398 = vmatprep.mubr.f32.mxu0 %v39848_v36  ;;  %v5267_v36 = vand.u32 4294901760, %v40077_v51  ;;  %v5287_v19 = vand.u32 4294901760, %v40099_v56 }
 0x340   :  { %v5268_v58 = vsub.f32 %v40077_v51, %v5267_v36  ;;  %v5288_v12 = vsub.f32 %v40099_v56, %v5287_v19 }
 0x341   :  { %31399 = vmatmul.mubr.f32.gmra.mrb[10].mxu0 %v39862_v5  ;;  %v5163_v5 = vsel %vm229_vm0, %v5125_v4, 0  ;;  %v5318_v4 = vsub.f32 %v40121_v24, %v5317_v28 }
 0x342   :  { %31401 = vmatprep.mubr.f32.mxu0 %v39868_v11  ;;  %v5126_v11 = vld [vmem:[#allocation2 + $0xc1] sm:$0xff]  ;;  %v40130_v38 = vand.u32 4294901760, %v5163_v5  ;;  %v5269_v29 = vand.u32 4294901760, %v5268_v58  ;;  %v40175_v58 = vsub.f32 %v5169_v59, %v40156_v33 }
 0x343   :  { %v5166_v27 = vsel %vm229_vm0, %v5126_v11, 0  ;;  %v5319_v50 = vand.u32 4294901760, %v5318_v4 }
 0x344   :  { %v40149_v15 = vsub.f32 %v5163_v5, %v40130_v38  ;;  %v40151_v14 = vand.u32 4294901760, %v5166_v27  ;;  %v5289_v5 = vand.u32 4294901760, %v5288_v12  ;;  %v46420_v0 = vand.u32 4294901760, %v40175_v58 }
 0x345   :  { %31402 = vmatmul.mubr.f32.gmra.mrb[12].mxu0 %v39881_v22  ;;  %v5434_v22 = vand.u32 4294901760, %v5433_v18 }
 0x346   :  { %31404 = vmatprep.mubr.f32.mxu0 %v39887_v49  ;;  %v40142_v49 = vsub.f32 %v5160_v52, %v40123_v47  ;;  %v46419_v18 = vand.u32 4294901760, %v40149_v15  ;;  %v40169_v39 = vsub.f32 %v5166_v27, %v40151_v14  ;;  %v35371_v27 = vpack.c.bf16 %v40025_v1, %v40023_v55 }
 0x347   :  { %v35367_v42 = vpack.c.bf16 %v5441_v2, %v5434_v22  ;;  %v5181_v22 = vsel %vm229_vm0, %v5131_v37, 0  ;;  %v5132_v2 = vld [vmem:[#allocation2 + $0x121] sm:$0xff]  ;;  %v35391_v55 = vpack.c.bf16 %v5439_v44, %v5432_v30 }
 0x348   :  { %v46422_v52 = vand.u32 4294901760, %v40142_v49  ;;  %v5338_v59 = vsub.f32 %v40149_v15, %v46419_v18  ;;  %v5184_v4 = vsel %vm229_vm0, %v5132_v2, 0  ;;  %v5358_v2 = vsub.f32 %v40175_v58, %v46420_v0 }
 0x349   :  { %31405 = vmatmul.mubr.f32.gmra.mrb[14].mxu0 %v39897_v63  ;;  %v5172_v63 = vsel %vm229_vm0, %v5128_v41, 0  ;;  %v5309_v41 = vand.u32 4294901760, %v5308_v43  ;;  %v40199_v43 = vand.u32 4294901760, %v5181_v22  ;;  %v46662_v1 = vand.u32 4294901760, %v40142_v49 }
 0x34a   :  { %31415 = vmatprep.mubr.f32.mxu0 %v5259_v9  ;;  %v40171_v11 = vand.u32 4294901760, %v5172_v63  ;;  %v40177_v9 = vand.u32 4294901760, %v5175_v61 }
 0x34c   :  { %v40191_v12 = vsub.f32 %v5172_v63, %v40171_v11  ;;  %v40197_v35 = vsub.f32 %v5175_v61, %v40177_v9  ;;  %v5339_v61 = vand.u32 4294901760, %v5338_v59  ;;  %v5359_v59 = vand.u32 4294901760, %v5358_v2 }
 0x34d   :  { %31416 = vmatmul.mubr.f32.vlgmr.msra.gmra.mrb[0].mxu0 %v5269_v29  ;;  %v46418_v29 = vand.u32 4294901760, %v40169_v39 }
 0x34e   :  { %35366 = vmatpush3.bf16.msra.mxu0 %v40047_v62  ;;  %31418 = vmatprep.mubr.f32.mxu0 %v5279_v32  ;;  %v5328_v62 = vsub.f32 %v40142_v49, %v46422_v52  ;;  %v40193_v32 = vand.u32 4294901760, %v5178_v34 }
 0x34f   :  { %35368 = vmatprep.subr.bf16.mxu0 %v35367_v42  ;;  %v5348_v63 = vsub.f32 %v40169_v39, %v46418_v29 }
 0x350   :  { %v5329_v37 = vand.u32 4294901760, %v5328_v62  ;;  %v5377_v62 = vand.u32 4294901760, %v40197_v35 }
 0x351   :  { %31419 = vmatmul.mubr.f32.gmra.mrb[2].mxu0 %v5289_v5  ;;  %v46421_v5 = vand.u32 4294901760, %v40191_v12  ;;  %v5349_v29 = vand.u32 4294901760, %v5348_v63 }
 0x352   :  { %31421 = vmatprep.mubr.f32.mxu0 %v5299_v23  ;;  %35370 = vmatpush3.bf16.msra.mxu0 %v35367_v42  ;;  %v40207_v42 = vsub.f32 %v5178_v34, %v40193_v32  ;;  %v40209_v23 = vand.u32 4294901760, %v5184_v4  ;;  %v5378_v0 = vsub.f32 %v40197_v35, %v5377_v62 }
 0x353   :  { %35372 = vmatprep.subr.bf16.mxu0 %v35371_v27  ;;  %v5368_v34 = vsub.f32 %v40191_v12, %v46421_v5 }
 0x354   :  { %v5387_v18 = vand.u32 4294901760, %v40207_v42  ;;  %v5379_v52 = vand.u32 4294901760, %v5378_v0  ;;  %v35375_v0 = vpack.c.bf16 %v40073_v17, %v40071_v8  ;;  %v46666_v8 = vand.u32 4294901760, %v40191_v12  ;;  %v6349_v17 = vld [vmem:[#allocation6 + $0xa0] sm:$0xff] }
 0x355   :  { %31422 = vmatmul.mubr.f32.gmra.mrb[4].mxu0 %v5309_v41  ;;  %v40216_v41 = vsub.f32 %v5181_v22, %v40199_v43 }
 0x356   :  { %31424 = vmatprep.mubr.f32.mxu0 %v5319_v50  ;;  %v40223_v50 = vsub.f32 %v5184_v4, %v40209_v23  ;;  %v5388_v63 = vsub.f32 %v40207_v42, %v5387_v18 }
 0x357   :  { %v5397_v22 = vand.u32 4294901760, %v40216_v41 }
 0x358   :  { %v5407_v5 = vand.u32 4294901760, %v40223_v50 }
 0x359   :  { %31425 = vmatmul.mubr.f32.gmra.mrb[6].mxu0 %v5329_v37  ;;  %v5369_v37 = vand.u32 4294901760, %v5368_v34  ;;  %v5398_v4 = vsub.f32 %v40216_v41, %v5397_v22 }
 0x35a   :  { %31427 = vmatprep.mubr.f32.mxu0 %v5339_v61  ;;  %v5389_v61 = vand.u32 4294901760, %v5388_v63  ;;  %v5408_v2 = vsub.f32 %v40223_v50, %v5407_v5 }
 0x35c   :  { %v5409_v34 = vand.u32 4294901760, %v5408_v2 }
 0x35d   :  { %31428 = vmatmul.mubr.f32.gmra.mrb[8].mxu0 %v5349_v29  ;;  %v5399_v29 = vand.u32 4294901760, %v5398_v4  ;;  %v6339_v4 = vld [vmem:[#allocation2 + $0x82] sm:$0xff] }
 0x35e   :  { %31430 = vmatprep.mubr.f32.mxu0 %v5359_v59 }
 0x361   :  { %31431 = vmatmul.mubr.f32.gmra.mrb[10].mxu0 %v5369_v37 }
 0x362   :  { %31433 = vmatprep.mubr.f32.mxu0 %v5379_v52  ;;  %v35387_v52 = vpack.c.bf16 %v5425_v6, %v5418_v31  ;;  %v46663_v31 = vand.u32 4294901760, %v40149_v15  ;;  %v46664_v6 = vand.u32 4294901760, %v40169_v39 }
 0x365   :  { %31434 = vmatmul.mubr.f32.gmra.mrb[12].mxu0 %v5389_v61 }
 0x366   :  { %31436 = vmatprep.mubr.f32.mxu0 %v5399_v29 }
 0x369   :  { %31437 = vmatmul.mubr.f32.gmra.mrb[14].mxu0 %v5409_v34 }
 0x36a   :  { %31447 = vmatprep.mubr.f32.mxu0 %v40056_v54 }
 0x36d   :  { %31448 = vmatmul.mubr.f32.vlgmr.msra.gmra.mrb[0].mxu0 %v40061_v46 }
 0x36e   :  { %35374 = vmatpush3.bf16.msra.mxu0 %v35371_v27  ;;  %31450 = vmatprep.mubr.f32.mxu0 %v40067_v3 }
 0x36f   :  { %35376 = vmatprep.subr.bf16.mxu0 %v35375_v0 }
 0x371   :  { %31451 = vmatmul.mubr.f32.gmra.mrb[2].mxu0 %v40079_v20 }
 0x372   :  { %31453 = vmatprep.mubr.f32.mxu0 %v40088_v16  ;;  %35378 = vmatpush3.bf16.msra.mxu0 %v35375_v0 }
 0x373   :  { %35380 = vmatprep.subr.bf16.mxu0 %v40011_v40 }
 0x375   :  { %31454 = vmatmul.mubr.f32.gmra.mrb[4].mxu0 %v40092_v7 }
 0x376   :  { %31456 = vmatprep.mubr.f32.mxu0 %v40094_v26 }
 0x379   :  { %31457 = vmatmul.mubr.f32.gmra.mrb[6].mxu0 %v40123_v47 }
 0x37a   :  { %31459 = vmatprep.mubr.f32.mxu0 %v40130_v38 }
 0x37d   :  { %31460 = vmatmul.mubr.f32.gmra.mrb[8].mxu0 %v40151_v14 }
 0x37e   :  { %31462 = vmatprep.mubr.f32.mxu0 %v40156_v33 }
 0x381   :  { %31463 = vmatmul.mubr.f32.gmra.mrb[10].mxu0 %v40171_v11 }
 0x382   :  { %31465 = vmatprep.mubr.f32.mxu0 %v40177_v9 }
 0x385   :  { %31466 = vmatmul.mubr.f32.gmra.mrb[12].mxu0 %v40193_v32 }
 0x386   :  { %31468 = vmatprep.mubr.f32.mxu0 %v40199_v43 }
 0x389   :  { %31469 = vmatmul.mubr.f32.gmra.mrb[14].mxu0 %v40209_v23 }
 0x38a   :  { %31479 = vmatprep.mubr.f32.mxu0 %v40065_v13  ;;  %v46665_v13 = vand.u32 4294901760, %v40175_v58 }
 0x38d   :  { %31480 = vmatmul.mubr.f32.vlgmr.msra.gmra.mrb[0].mxu0 %v40077_v51  ;;  %v6350_v51 = vld [vmem:[#allocation6 + $0xa8] sm:$0xff] }
 0x38e   :  { %35382 = vmatpush3.bf16.msra.mxu0 %v40011_v40  ;;  %31482 = vmatprep.mubr.f32.mxu0 %v40086_v45  ;;  %v6405_v45 = vand.u32 4294901760, %v6350_v51 }
 0x38f   :  { %35384 = vmatprep.subr.bf16.mxu0 %v40041_v10 }
 0x390   :  { %v40337_v44 = vsub.f32 %v6350_v51, %v6405_v45 }
 0x391   :  { %31483 = vmatmul.mubr.f32.gmra.mrb[2].mxu0 %v40099_v56  ;;  %v6351_v56 = vld [vmem:[#allocation6 + $0xb0] sm:$0xff] }
 0x392   :  { %31485 = vmatprep.mubr.f32.mxu0 %v40108_v21  ;;  %35386 = vmatpush3.bf16.msra.mxu0 %v40041_v10  ;;  %v6408_v21 = vand.u32 4294901760, %v6351_v56 }
 0x393   :  { %35388 = vmatprep.subr.bf16.mxu0 %v35387_v52 }
 0x395   :  { %31486 = vmatmul.mubr.f32.gmra.mrb[4].mxu0 %v40118_v57 }
 0x396   :  { %31488 = vmatprep.mubr.f32.mxu0 %v40121_v24 }
 0x399   :  { %31489 = vmatmul.mubr.f32.gmra.mrb[6].mxu0 %v40142_v49 }
 0x39a   :  { %31491 = vmatprep.mubr.f32.mxu0 %v40149_v15  ;;  %v6332_v15 = vld [vmem:[#allocation2 + $0x12] sm:$0xff] }
 0x39d   :  { %31492 = vmatmul.mubr.f32.gmra.mrb[8].mxu0 %v40169_v39 }
 0x39e   :  { %31494 = vmatprep.mubr.f32.mxu0 %v40175_v58  ;;  %v6335_v58 = vld [vmem:[#allocation2 + $0x42] sm:$0xff] }
 0x3a1   :  { %31495 = vmatmul.mubr.f32.gmra.mrb[10].mxu0 %v40191_v12 }
 0x3a2   :  { %31497 = vmatprep.mubr.f32.mxu0 %v40197_v35  ;;  %v6337_v35 = vld [vmem:[#allocation2 + $0x62] sm:$0xff] }
 0x3a5   :  { %31498 = vmatmul.mubr.f32.gmra.mrb[12].mxu0 %v40207_v42 }
 0x3a6   :  { %31500 = vmatprep.mubr.f32.mxu0 %v40216_v41 }
 0x3a9   :  { %31501 = vmatmul.mubr.f32.gmra.mrb[14].mxu0 %v40223_v50  ;;  %v6369_v50 = vsel %vm229_vm0, %v6337_v35, 0 }
 0x3aa   :  { %31511 = vmatprep.mubr.f32.mxu0 %v5257_v60  ;;  %v6402_v60 = vand.u32 4294901760, %v6349_v17  ;;  %v40404_v29 = vand.u32 4294901760, %v6369_v50 }
 0x3ac   :  { %v40323_v30 = vpack.c.bf16 %v6405_v45, %v6402_v60 }
 0x3ad   :  { %31512 = vmatmul.mubr.f32.vlgmr.msra.gmra.mrb[0].mxu0 %v5267_v36  ;;  %v6640_v36 = vand.u32 4294901760, %v40337_v44 }
 0x3ae   :  { %35390 = vmatpush3.bf16.msra.mxu0 %v35387_v52  ;;  %31514 = vmatprep.mubr.f32.mxu0 %v5277_v53  ;;  %v6352_v53 = vld [vmem:[#allocation6 + $0xb8] sm:$0xff]  ;;  %v6375_v52 = vsel %vm229_vm0, %v6339_v4, 0 }
 0x3af   :  { %35392 = vmatprep.subr.bf16.mxu0 %v35391_v55  ;;  %v6411_v57 = vand.u32 4294901760, %v6352_v53  ;;  %v40435_v51 = vand.u32 4294901760, %v6375_v52 }
 0x3b1   :  { %31515 = vmatmul.mubr.f32.gmra.mrb[2].mxu0 %v5287_v19  ;;  %v6641_v19 = vsub.f32 %v40337_v44, %v6640_v36  ;;  %v40385_v41 = vsub.f32 %v6352_v53, %v6411_v57 }
 0x3b2   :  { %31517 = vmatprep.mubr.f32.mxu0 %v5297_v25  ;;  %35394 = vmatpush3.bf16.msra.mxu0 %v35391_v55  ;;  %v40353_v25 = vpack.c.bf16 %v6411_v57, %v6408_v21 }
 0x3b3   :  { %35396 = vmatprep.subr.bf16.mxu0 %v40011_v40  ;;  %v6654_v2 = vand.u32 4294901760, %v40385_v41 }
 0x3b5   :  { %31518 = vmatmul.mubr.f32.gmra.mrb[4].mxu0 %v5307_v48 }
 0x3b6   :  { %31520 = vmatprep.mubr.f32.mxu0 %v5317_v28  ;;  %v6642_v28 = vand.u32 4294901760, %v6641_v19 }
 0x3b9   :  { %31521 = vmatmul.mubr.f32.gmra.mrb[6].mxu0 %v46662_v1 }
 0x3ba   :  { %31523 = vmatprep.mubr.f32.mxu0 %v46663_v31 }
 0x3bd   :  { %31524 = vmatmul.mubr.f32.gmra.mrb[8].mxu0 %v46664_v6 }
 0x3be   :  { %31526 = vmatprep.mubr.f32.mxu0 %v46665_v13  ;;  %v6655_v13 = vsub.f32 %v40385_v41, %v6654_v2 }
 0x3c1   :  { %31527 = vmatmul.mubr.f32.gmra.mrb[10].mxu0 %v46666_v8  ;;  %v40430_v8 = vsub.f32 %v6369_v50, %v40404_v29 }
 0x3c2   :  { %31529 = vmatprep.mubr.f32.mxu0 %v5377_v62  ;;  %v40383_v62 = vsub.f32 %v6351_v56, %v6408_v21 }
 0x3c4   :  { %v6647_v61 = vand.u32 4294901760, %v40383_v62 }
 0x3c5   :  { %31530 = vmatmul.mubr.f32.gmra.mrb[12].mxu0 %v5387_v18  ;;  %v6334_v18 = vld [vmem:[#allocation2 + $0x32] sm:$0xff] }
 0x3c6   :  { %31532 = vmatprep.mubr.f32.mxu0 %v5397_v22  ;;  %v6648_v6 = vsub.f32 %v40383_v62, %v6647_v61 }
 0x3c9   :  { %31533 = vmatmul.mubr.f32.gmra.mrb[14].mxu0 %v5407_v5  ;;  %v6338_v5 = vld [vmem:[#allocation2 + $0x72] sm:$0xff] }
 0x3ca   :  { %31543 = vmatprep.mubr.f32.mxu0 %v40056_v54  ;;  %v6372_v59 = vsel %vm229_vm0, %v6338_v5, 0 }
 0x3cb   :  { %v40406_v34 = vand.u32 4294901760, %v6372_v59 }
 0x3cd   :  { %31544 = vmatmul.mubr.f32.vlgmr.msra.gmra.mrb[0].mxu0 %v40061_v46 }
 0x3ce   :  { %35398 = vmatpush3.bf16.msra.mxu0 %v40011_v40  ;;  %31546 = vmatprep.mubr.f32.mxu0 %v40067_v3  ;;  %v40335_v40 = vsub.f32 %v6349_v17, %v6402_v60  ;;  %v40433_v17 = vsub.f32 %v6372_v59, %v40406_v34  ;;  %v6342_v60 = vld [vmem:[#allocation2 + $0xd2] sm:$0xff]  ;;  %v6345_v59 = vld [vmem:[#allocation2 + $0x102] sm:$0xff] }
 0x3cf   :  { %35400 = vmatprep.subr.bf16.mxu0 %v40041_v10 }
 0x3d1   :  { %31547 = vmatmul.mubr.f32.gmra.mrb[2].mxu0 %v40079_v20 }
 0x3d2   :  { %31549 = vmatprep.mubr.f32.mxu0 %v40088_v16  ;;  %35402 = vmatpush3.bf16.msra.mxu0 %v40041_v10  ;;  %v6633_v10 = vand.u32 4294901760, %v40335_v40 }
 0x3d3   :  { %35404 = vmatprep.subr.bf16.mxu0 %v40323_v30 }
 0x3d4   :  { %v6634_v24 = vsub.f32 %v40335_v40, %v6633_v10 }
 0x3d5   :  { %31550 = vmatmul.mubr.f32.gmra.mrb[4].mxu0 %v40092_v7 }
 0x3d6   :  { %31552 = vmatprep.mubr.f32.mxu0 %v40094_v26  ;;  %v6635_v48 = vand.u32 4294901760, %v6634_v24 }
 0x3d8   :  { %v40359_v49 = vpack.c.bf16 %v6642_v28, %v6635_v48  ;;  %v6656_v48 = vand.u32 4294901760, %v6655_v13  ;;  %v6384_v28 = vsel %vm229_vm0, %v6342_v60, 0 }
 0x3d9   :  { %31553 = vmatmul.mubr.f32.gmra.mrb[6].mxu0 %v40123_v47  ;;  %v40468_v5 = vand.u32 4294901760, %v6384_v28 }
 0x3da   :  { %31555 = vmatprep.mubr.f32.mxu0 %v40130_v38 }
 0x3dd   :  { %31556 = vmatmul.mubr.f32.gmra.mrb[8].mxu0 %v40151_v14 }
 0x3de   :  { %31558 = vmatprep.mubr.f32.mxu0 %v40156_v33 }
 0x3e1   :  { %31559 = vmatmul.mubr.f32.gmra.mrb[10].mxu0 %v40171_v11 }
 0x3e2   :  { %31561 = vmatprep.mubr.f32.mxu0 %v40177_v9 }
 0x3e5   :  { %31562 = vmatmul.mubr.f32.gmra.mrb[12].mxu0 %v40193_v32 }
 0x3e6   :  { %31564 = vmatprep.mubr.f32.mxu0 %v40199_v43 }
 0x3e9   :  { %31565 = vmatmul.mubr.f32.gmra.mrb[14].mxu0 %v40209_v23 }
 0x3ea   :  { %31575 = vmatprep.mubr.f32.mxu0 %v40056_v54  ;;  %v6354_v54 = vsel %vm229_vm0, %v6332_v15, 0  ;;  %v6343_v15 = vld [vmem:[#allocation2 + $0xe2] sm:$0xff] }
 0x3ed   :  { %31576 = vmatmul.mubr.f32.vlgmr.msra.gmra.mrb[0].mxu0 %v40061_v46  ;;  %v6333_v46 = vld [vmem:[#allocation2 + $0x22] sm:$0xff] }
 0x3ee   :  { %35406 = vmatpush3.bf16.msra.mxu0 %v40323_v30  ;;  %31578 = vmatprep.mubr.f32.mxu0 %v40067_v3  ;;  %v40368_v3 = vand.u32 4294901760, %v6354_v54  ;;  %v6357_v39 = vsel %vm229_vm0, %v6333_v46, 0  ;;  %v6532_v46 = vand.u32 4294901760, %v40433_v17 }
 0x3ef   :  { %35408 = vmatprep.subr.bf16.mxu0 %v40353_v25  ;;  %v40373_v27 = vand.u32 4294901760, %v6357_v39 }
 0x3f0   :  { %v40377_v12 = vsub.f32 %v6354_v54, %v40368_v3  ;;  %v6522_v54 = vand.u32 4294901760, %v40430_v8 }
 0x3f1   :  { %31579 = vmatmul.mubr.f32.gmra.mrb[2].mxu0 %v40079_v20  ;;  %v6360_v20 = vsel %vm229_vm0, %v6334_v18, 0  ;;  %v6344_v18 = vld [vmem:[#allocation2 + $0xf2] sm:$0xff] }
 0x3f2   :  { %31581 = vmatprep.mubr.f32.mxu0 %v40088_v16  ;;  %35410 = vmatpush3.bf16.msra.mxu0 %v40353_v25  ;;  %v6336_v16 = vld [vmem:[#allocation2 + $0x52] sm:$0xff]  ;;  %v6472_v22 = vand.u32 4294901760, %v40377_v12  ;;  %v6390_v50 = vsel %vm229_vm0, %v6344_v18, 0  ;;  %v6523_v4 = vsub.f32 %v40430_v8, %v6522_v54 }
 0x3f3   :  { %35412 = vmatprep.subr.bf16.mxu0 %v40359_v49  ;;  %v6366_v42 = vsel %vm229_vm0, %v6336_v16, 0 }
 0x3f4   :  { %v40400_v63 = vand.u32 4294901760, %v6366_v42  ;;  %v6473_v55 = vsub.f32 %v40377_v12, %v6472_v22 }
 0x3f5   :  { %31582 = vmatmul.mubr.f32.gmra.mrb[4].mxu0 %v40092_v7  ;;  %v40379_v7 = vand.u32 4294901760, %v6360_v20 }
 0x3f6   :  { %31584 = vmatprep.mubr.f32.mxu0 %v40094_v26  ;;  %v6363_v26 = vsel %vm229_vm0, %v6335_v58, 0  ;;  %v40420_v31 = vsub.f32 %v6366_v42, %v40400_v63  ;;  %v6474_v21 = vand.u32 4294901760, %v6473_v55  ;;  %v6346_v55 = vld [vmem:[#allocation2 + $0x112] sm:$0xff] }
 0x3f7   :  { %v40398_v37 = vsub.f32 %v6360_v20, %v40379_v7 }
 0x3f8   :  { %v6512_v24 = vand.u32 4294901760, %v40420_v31 }
 0x3f9   :  { %31585 = vmatmul.mubr.f32.gmra.mrb[6].mxu0 %v40123_v47  ;;  %v40389_v47 = vsub.f32 %v6357_v39, %v40373_v27  ;;  %v6492_v1 = vand.u32 4294901760, %v40398_v37 }
 0x3fa   :  { %31587 = vmatprep.mubr.f32.mxu0 %v40130_v38  ;;  %v40391_v38 = vand.u32 4294901760, %v6363_v26  ;;  %v6513_v35 = vsub.f32 %v40420_v31, %v6512_v24 }
 0x3fb   :  { %v6493_v57 = vsub.f32 %v40398_v37, %v6492_v1 }
 0x3fc   :  { %v40411_v0 = vsub.f32 %v6363_v26, %v40391_v38  ;;  %v6514_v60 = vand.u32 4294901760, %v6513_v35 }
 0x3fd   :  { %31588 = vmatmul.mubr.f32.gmra.mrb[8].mxu0 %v40151_v14  ;;  %v6340_v14 = vld [vmem:[#allocation2 + $0xb2] sm:$0xff]  ;;  %v6494_v26 = vand.u32 4294901760, %v6493_v57  ;;  %v6393_v57 = vsel %vm229_vm0, %v6345_v59, 0 }
 0x3fe   :  { %31590 = vmatprep.mubr.f32.mxu0 %v40156_v33  ;;  %v6482_v33 = vand.u32 4294901760, %v40389_v47  ;;  %v6502_v56 = vand.u32 4294901760, %v40411_v0 }
 0x400   :  { %v6483_v45 = vsub.f32 %v40389_v47, %v6482_v33  ;;  %v6503_v20 = vsub.f32 %v40411_v0, %v6502_v56 }
 0x401   :  { %31591 = vmatmul.mubr.f32.gmra.mrb[10].mxu0 %v40171_v11  ;;  %v6378_v11 = vsel %vm229_vm0, %v6340_v14, 0  ;;  %v6533_v14 = vsub.f32 %v40433_v17, %v6532_v46 }
 0x402   :  { %31593 = vmatprep.mubr.f32.mxu0 %v40177_v9  ;;  %v6341_v9 = vld [vmem:[#allocation2 + $0xc2] sm:$0xff]  ;;  %v40442_v53 = vand.u32 4294901760, %v6378_v11  ;;  %v6484_v39 = vand.u32 4294901760, %v6483_v45  ;;  %v40487_v45 = vsub.f32 %v6384_v28, %v40468_v5 }
 0x403   :  { %v6381_v19 = vsel %vm229_vm0, %v6341_v9, 0  ;;  %v6534_v18 = vand.u32 4294901760, %v6533_v14 }
 0x404   :  { %v40461_v58 = vsub.f32 %v6378_v11, %v40442_v53  ;;  %v40463_v16 = vand.u32 4294901760, %v6381_v19  ;;  %v6504_v11 = vand.u32 4294901760, %v6503_v20  ;;  %v46425_v35 = vand.u32 4294901760, %v40487_v45 }
 0x405   :  { %31594 = vmatmul.mubr.f32.gmra.mrb[12].mxu0 %v40193_v32  ;;  %v6649_v32 = vand.u32 4294901760, %v6648_v6 }
 0x406   :  { %31596 = vmatprep.mubr.f32.mxu0 %v40199_v43  ;;  %v40454_v43 = vsub.f32 %v6375_v52, %v40435_v51  ;;  %v46424_v6 = vand.u32 4294901760, %v40461_v58  ;;  %v40481_v13 = vsub.f32 %v6381_v19, %v40463_v16  ;;  %v35419_v19 = vpack.c.bf16 %v40337_v44, %v40335_v40 }
 0x407   :  { %v35415_v42 = vpack.c.bf16 %v6656_v48, %v6649_v32  ;;  %v6396_v32 = vsel %vm229_vm0, %v6346_v55, 0  ;;  %v6347_v48 = vld [vmem:[#allocation2 + $0x122] sm:$0xff]  ;;  %v35439_v40 = vpack.c.bf16 %v6654_v2, %v6647_v61 }
 0x408   :  { %v46427_v52 = vand.u32 4294901760, %v40454_v43  ;;  %v6553_v28 = vsub.f32 %v40461_v58, %v46424_v6  ;;  %v6399_v14 = vsel %vm229_vm0, %v6347_v48, 0  ;;  %v6573_v48 = vsub.f32 %v40487_v45, %v46425_v35 }
 0x409   :  { %31597 = vmatmul.mubr.f32.gmra.mrb[14].mxu0 %v40209_v23  ;;  %v6387_v23 = vsel %vm229_vm0, %v6343_v15, 0  ;;  %v6524_v15 = vand.u32 4294901760, %v6523_v4  ;;  %v40511_v4 = vand.u32 4294901760, %v6396_v32  ;;  %v46667_v44 = vand.u32 4294901760, %v40454_v43 }
 0x40a   :  { %31607 = vmatprep.mubr.f32.mxu0 %v6474_v21  ;;  %v40483_v9 = vand.u32 4294901760, %v6387_v23  ;;  %v40489_v21 = vand.u32 4294901760, %v6390_v50 }
 0x40c   :  { %v40503_v20 = vsub.f32 %v6387_v23, %v40483_v9  ;;  %v40509_v59 = vsub.f32 %v6390_v50, %v40489_v21  ;;  %v6554_v50 = vand.u32 4294901760, %v6553_v28  ;;  %v6574_v28 = vand.u32 4294901760, %v6573_v48 }
 0x40d   :  { %31608 = vmatmul.mubr.f32.vlgmr.msra.gmra.mrb[0].mxu0 %v6484_v39  ;;  %v46423_v39 = vand.u32 4294901760, %v40481_v13 }
 0x40e   :  { %35414 = vmatpush3.bf16.msra.mxu0 %v40359_v49  ;;  %31610 = vmatprep.mubr.f32.mxu0 %v6494_v26  ;;  %v6543_v49 = vsub.f32 %v40454_v43, %v46427_v52  ;;  %v40505_v26 = vand.u32 4294901760, %v6393_v57 }
 0x40f   :  { %35416 = vmatprep.subr.bf16.mxu0 %v35415_v42  ;;  %v6563_v23 = vsub.f32 %v40481_v13, %v46423_v39 }
 0x410   :  { %v6544_v55 = vand.u32 4294901760, %v6543_v49  ;;  %v6592_v49 = vand.u32 4294901760, %v40509_v59 }
 0x411   :  { %31611 = vmatmul.mubr.f32.gmra.mrb[2].mxu0 %v6504_v11  ;;  %v46426_v11 = vand.u32 4294901760, %v40503_v20  ;;  %v6564_v39 = vand.u32 4294901760, %v6563_v23 }
 0x412   :  { %31613 = vmatprep.mubr.f32.mxu0 %v6514_v60  ;;  %35418 = vmatpush3.bf16.msra.mxu0 %v35415_v42  ;;  %v40519_v42 = vsub.f32 %v6393_v57, %v40505_v26  ;;  %v40521_v60 = vand.u32 4294901760, %v6399_v14  ;;  %v6593_v35 = vsub.f32 %v40509_v59, %v6592_v49 }
 0x413   :  { %35420 = vmatprep.subr.bf16.mxu0 %v35419_v19  ;;  %v6583_v57 = vsub.f32 %v40503_v20, %v46426_v11 }
 0x414   :  { %v6602_v6 = vand.u32 4294901760, %v40519_v42  ;;  %v6594_v52 = vand.u32 4294901760, %v6593_v35  ;;  %v35423_v35 = vpack.c.bf16 %v40385_v41, %v40383_v62  ;;  %v46671_v62 = vand.u32 4294901760, %v40503_v20  ;;  %v7565_v41 = vld [vmem:[#allocation6 + $0xc0] sm:$0xff] }
 0x415   :  { %31614 = vmatmul.mubr.f32.gmra.mrb[4].mxu0 %v6524_v15  ;;  %v40528_v15 = vsub.f32 %v6396_v32, %v40511_v4 }
 0x416   :  { %31616 = vmatprep.mubr.f32.mxu0 %v6534_v18  ;;  %v40535_v18 = vsub.f32 %v6399_v14, %v40521_v60  ;;  %v6603_v23 = vsub.f32 %v40519_v42, %v6602_v6 }
 0x417   :  { %v6612_v32 = vand.u32 4294901760, %v40528_v15 }
 0x418   :  { %v6622_v11 = vand.u32 4294901760, %v40535_v18 }
 0x419   :  { %31617 = vmatmul.mubr.f32.gmra.mrb[6].mxu0 %v6544_v55  ;;  %v6584_v55 = vand.u32 4294901760, %v6583_v57  ;;  %v6613_v14 = vsub.f32 %v40528_v15, %v6612_v32 }
 0x41a   :  { %31619 = vmatprep.mubr.f32.mxu0 %v6554_v50  ;;  %v6604_v50 = vand.u32 4294901760, %v6603_v23  ;;  %v6623_v48 = vsub.f32 %v40535_v18, %v6622_v11 }
 0x41c   :  { %v6624_v57 = vand.u32 4294901760, %v6623_v48 }
 0x41d   :  { %31620 = vmatmul.mubr.f32.gmra.mrb[8].mxu0 %v6564_v39  ;;  %v6614_v39 = vand.u32 4294901760, %v6613_v14  ;;  %v7555_v14 = vld [vmem:[#allocation2 + $0x90] sm:$0xff] }
 0x41e   :  { %31622 = vmatprep.mubr.f32.mxu0 %v6574_v28 }
 0x421   :  { %31623 = vmatmul.mubr.f32.gmra.mrb[10].mxu0 %v6584_v55 }
 0x422   :  { %31625 = vmatprep.mubr.f32.mxu0 %v6594_v52  ;;  %v35435_v52 = vpack.c.bf16 %v6640_v36, %v6633_v10  ;;  %v46668_v10 = vand.u32 4294901760, %v40461_v58  ;;  %v46669_v36 = vand.u32 4294901760, %v40481_v13 }
 0x425   :  { %31626 = vmatmul.mubr.f32.gmra.mrb[12].mxu0 %v6604_v50 }
 0x426   :  { %31628 = vmatprep.mubr.f32.mxu0 %v6614_v39 }
 0x429   :  { %31629 = vmatmul.mubr.f32.gmra.mrb[14].mxu0 %v6624_v57 }
 0x42a   :  { %31639 = vmatprep.mubr.f32.mxu0 %v40368_v3 }
 0x42d   :  { %31640 = vmatmul.mubr.f32.vlgmr.msra.gmra.mrb[0].mxu0 %v40373_v27 }
 0x42e   :  { %35422 = vmatpush3.bf16.msra.mxu0 %v35419_v19  ;;  %31642 = vmatprep.mubr.f32.mxu0 %v40379_v7 }
 0x42f   :  { %35424 = vmatprep.subr.bf16.mxu0 %v35423_v35 }
 0x431   :  { %31643 = vmatmul.mubr.f32.gmra.mrb[2].mxu0 %v40391_v38 }
 0x432   :  { %31645 = vmatprep.mubr.f32.mxu0 %v40400_v63  ;;  %35426 = vmatpush3.bf16.msra.mxu0 %v35423_v35 }
 0x433   :  { %35428 = vmatprep.subr.bf16.mxu0 %v40323_v30 }
 0x435   :  { %31646 = vmatmul.mubr.f32.gmra.mrb[4].mxu0 %v40404_v29 }
 0x436   :  { %31648 = vmatprep.mubr.f32.mxu0 %v40406_v34 }
 0x439   :  { %31649 = vmatmul.mubr.f32.gmra.mrb[6].mxu0 %v40435_v51 }
 0x43a   :  { %31651 = vmatprep.mubr.f32.mxu0 %v40442_v53 }
 0x43d   :  { %31652 = vmatmul.mubr.f32.gmra.mrb[8].mxu0 %v40463_v16 }
 0x43e   :  { %31654 = vmatprep.mubr.f32.mxu0 %v40468_v5 }
 0x441   :  { %31655 = vmatmul.mubr.f32.gmra.mrb[10].mxu0 %v40483_v9 }
 0x442   :  { %31657 = vmatprep.mubr.f32.mxu0 %v40489_v21 }
 0x445   :  { %31658 = vmatmul.mubr.f32.gmra.mrb[12].mxu0 %v40505_v26 }
 0x446   :  { %31660 = vmatprep.mubr.f32.mxu0 %v40511_v4 }
 0x449   :  { %31661 = vmatmul.mubr.f32.gmra.mrb[14].mxu0 %v40521_v60 }
 0x44a   :  { %31671 = vmatprep.mubr.f32.mxu0 %v40377_v12  ;;  %v46670_v12 = vand.u32 4294901760, %v40487_v45 }
 0x44d   :  { %31672 = vmatmul.mubr.f32.vlgmr.msra.gmra.mrb[0].mxu0 %v40389_v47  ;;  %v7566_v47 = vld [vmem:[#allocation6 + $0xc8] sm:$0xff] }
 0x44e   :  { %35430 = vmatpush3.bf16.msra.mxu0 %v40323_v30  ;;  %31674 = vmatprep.mubr.f32.mxu0 %v40398_v37  ;;  %v7621_v37 = vand.u32 4294901760, %v7566_v47 }
 0x44f   :  { %35432 = vmatprep.subr.bf16.mxu0 %v40353_v25 }
 0x450   :  { %v40649_v2 = vsub.f32 %v7566_v47, %v7621_v37 }
 0x451   :  { %31675 = vmatmul.mubr.f32.gmra.mrb[2].mxu0 %v40411_v0  ;;  %v7567_v0 = vld [vmem:[#allocation6 + $0xd0] sm:$0xff] }
 0x452   :  { %31677 = vmatprep.mubr.f32.mxu0 %v40420_v31  ;;  %35434 = vmatpush3.bf16.msra.mxu0 %v40353_v25  ;;  %v7624_v31 = vand.u32 4294901760, %v7567_v0 }
 0x453   :  { %35436 = vmatprep.subr.bf16.mxu0 %v35435_v52 }
 0x455   :  { %31678 = vmatmul.mubr.f32.gmra.mrb[4].mxu0 %v40430_v8 }
 0x456   :  { %31680 = vmatprep.mubr.f32.mxu0 %v40433_v17 }
 0x459   :  { %31681 = vmatmul.mubr.f32.gmra.mrb[6].mxu0 %v40454_v43 }
 0x45a   :  { %31683 = vmatprep.mubr.f32.mxu0 %v40461_v58  ;;  %v7548_v58 = vld [vmem:[#allocation2 + $0x20] sm:$0xff] }
 0x45d   :  { %31684 = vmatmul.mubr.f32.gmra.mrb[8].mxu0 %v40481_v13 }
 0x45e   :  { %31686 = vmatprep.mubr.f32.mxu0 %v40487_v45  ;;  %v7551_v45 = vld [vmem:[#allocation2 + $0x50] sm:$0xff] }
 0x461   :  { %31687 = vmatmul.mubr.f32.gmra.mrb[10].mxu0 %v40503_v20 }
 0x462   :  { %31689 = vmatprep.mubr.f32.mxu0 %v40509_v59  ;;  %v7553_v59 = vld [vmem:[#allocation2 + $0x70] sm:$0xff] }
 0x465   :  { %31690 = vmatmul.mubr.f32.gmra.mrb[12].mxu0 %v40519_v42 }
 0x466   :  { %31692 = vmatprep.mubr.f32.mxu0 %v40528_v15 }
 0x469   :  { %31693 = vmatmul.mubr.f32.gmra.mrb[14].mxu0 %v40535_v18  ;;  %v7585_v18 = vsel %vm229_vm0, %v7553_v59, 0 }
 0x46a   :  { %31703 = vmatprep.mubr.f32.mxu0 %v6472_v22  ;;  %v7618_v22 = vand.u32 4294901760, %v7565_v41  ;;  %v40716_v39 = vand.u32 4294901760, %v7585_v18 }
 0x46c   :  { %v40635_v61 = vpack.c.bf16 %v7621_v37, %v7618_v22 }
 0x46d   :  { %31704 = vmatmul.mubr.f32.vlgmr.msra.gmra.mrb[0].mxu0 %v6482_v33  ;;  %v7856_v33 = vand.u32 4294901760, %v40649_v2 }
 0x46e   :  { %35438 = vmatpush3.bf16.msra.mxu0 %v35435_v52  ;;  %31706 = vmatprep.mubr.f32.mxu0 %v6492_v1  ;;  %v7568_v1 = vld [vmem:[#allocation6 + $0xd8] sm:$0xff]  ;;  %v7591_v52 = vsel %vm229_vm0, %v7555_v14, 0 }
 0x46f   :  { %35440 = vmatprep.subr.bf16.mxu0 %v35439_v40  ;;  %v7627_v8 = vand.u32 4294901760, %v7568_v1  ;;  %v40747_v47 = vand.u32 4294901760, %v7591_v52 }
 0x471   :  { %31707 = vmatmul.mubr.f32.gmra.mrb[2].mxu0 %v6502_v56  ;;  %v7857_v56 = vsub.f32 %v40649_v2, %v7856_v33  ;;  %v40697_v15 = vsub.f32 %v7568_v1, %v7627_v8 }
 0x472   :  { %31709 = vmatprep.mubr.f32.mxu0 %v6512_v24  ;;  %35442 = vmatpush3.bf16.msra.mxu0 %v35439_v40  ;;  %v40665_v24 = vpack.c.bf16 %v7627_v8, %v7624_v31 }
 0x473   :  { %35444 = vmatprep.subr.bf16.mxu0 %v40323_v30  ;;  %v7870_v48 = vand.u32 4294901760, %v40697_v15 }
 0x475   :  { %31710 = vmatmul.mubr.f32.gmra.mrb[4].mxu0 %v6522_v54 }
 0x476   :  { %31712 = vmatprep.mubr.f32.mxu0 %v6532_v46  ;;  %v7858_v46 = vand.u32 4294901760, %v7857_v56 }
 0x479   :  { %31713 = vmatmul.mubr.f32.gmra.mrb[6].mxu0 %v46667_v44 }
 0x47a   :  { %31715 = vmatprep.mubr.f32.mxu0 %v46668_v10 }
 0x47d   :  { %31716 = vmatmul.mubr.f32.gmra.mrb[8].mxu0 %v46669_v36 }
 0x47e   :  { %31718 = vmatprep.mubr.f32.mxu0 %v46670_v12  ;;  %v7871_v12 = vsub.f32 %v40697_v15, %v7870_v48 }
 0x481   :  { %31719 = vmatmul.mubr.f32.gmra.mrb[10].mxu0 %v46671_v62  ;;  %v40742_v62 = vsub.f32 %v7585_v18, %v40716_v39 }
 0x482   :  { %31721 = vmatprep.mubr.f32.mxu0 %v6592_v49  ;;  %v40695_v49 = vsub.f32 %v7567_v0, %v7624_v31 }
 0x484   :  { %v7863_v50 = vand.u32 4294901760, %v40695_v49 }
 0x485   :  { %31722 = vmatmul.mubr.f32.gmra.mrb[12].mxu0 %v6602_v6  ;;  %v7550_v6 = vld [vmem:[#allocation2 + $0x40] sm:$0xff] }
 0x486   :  { %31724 = vmatprep.mubr.f32.mxu0 %v6612_v32  ;;  %v7864_v36 = vsub.f32 %v40695_v49, %v7863_v50 }
 0x489   :  { %31725 = vmatmul.mubr.f32.gmra.mrb[14].mxu0 %v6622_v11  ;;  %v7554_v11 = vld [vmem:[#allocation2 + $0x80] sm:$0xff] }
 0x48a   :  { %31735 = vmatprep.mubr.f32.mxu0 %v40368_v3  ;;  %v7588_v28 = vsel %vm229_vm0, %v7554_v11, 0 }
 0x48b   :  { %v40718_v57 = vand.u32 4294901760, %v7588_v28 }
 0x48d   :  { %31736 = vmatmul.mubr.f32.vlgmr.msra.gmra.mrb[0].mxu0 %v40373_v27 }
 0x48e   :  { %35446 = vmatpush3.bf16.msra.mxu0 %v40323_v30  ;;  %31738 = vmatprep.mubr.f32.mxu0 %v40379_v7  ;;  %v40647_v30 = vsub.f32 %v7565_v41, %v7618_v22  ;;  %v40745_v41 = vsub.f32 %v7588_v28, %v40718_v57  ;;  %v7558_v22 = vld [vmem:[#allocation2 + $0xe0] sm:$0xff]  ;;  %v7561_v28 = vld [vmem:[#allocation2 + $0x110] sm:$0xff] }
 0x48f   :  { %35448 = vmatprep.subr.bf16.mxu0 %v40353_v25 }
 0x491   :  { %31739 = vmatmul.mubr.f32.gmra.mrb[2].mxu0 %v40391_v38 }
 0x492   :  { %31741 = vmatprep.mubr.f32.mxu0 %v40400_v63  ;;  %35450 = vmatpush3.bf16.msra.mxu0 %v40353_v25  ;;  %v7849_v25 = vand.u32 4294901760, %v40647_v30 }
 0x493   :  { %35452 = vmatprep.subr.bf16.mxu0 %v40635_v61 }
 0x494   :  { %v7850_v17 = vsub.f32 %v40647_v30, %v7849_v25 }
 0x495   :  { %31742 = vmatmul.mubr.f32.gmra.mrb[4].mxu0 %v40404_v29 }
 0x496   :  { %31744 = vmatprep.mubr.f32.mxu0 %v40406_v34  ;;  %v7851_v54 = vand.u32 4294901760, %v7850_v17 }
 0x498   :  { %v40671_v43 = vpack.c.bf16 %v7858_v46, %v7851_v54  ;;  %v7872_v54 = vand.u32 4294901760, %v7871_v12  ;;  %v7600_v46 = vsel %vm229_vm0, %v7558_v22, 0 }
 0x499   :  { %31745 = vmatmul.mubr.f32.gmra.mrb[6].mxu0 %v40435_v51  ;;  %v40780_v11 = vand.u32 4294901760, %v7600_v46 }
 0x49a   :  { %31747 = vmatprep.mubr.f32.mxu0 %v40442_v53 }
 0x49d   :  { %31748 = vmatmul.mubr.f32.gmra.mrb[8].mxu0 %v40463_v16 }
 0x49e   :  { %31750 = vmatprep.mubr.f32.mxu0 %v40468_v5 }
 0x4a1   :  { %31751 = vmatmul.mubr.f32.gmra.mrb[10].mxu0 %v40483_v9 }
 0x4a2   :  { %31753 = vmatprep.mubr.f32.mxu0 %v40489_v21 }
 0x4a5   :  { %31754 = vmatmul.mubr.f32.gmra.mrb[12].mxu0 %v40505_v26 }
 0x4a6   :  { %31756 = vmatprep.mubr.f32.mxu0 %v40511_v4 }
 0x4a9   :  { %31757 = vmatmul.mubr.f32.gmra.mrb[14].mxu0 %v40521_v60 }
 0x4aa   :  { %31767 = vmatprep.mubr.f32.mxu0 %v40368_v3  ;;  %v7570_v3 = vsel %vm229_vm0, %v7548_v58, 0  ;;  %v7559_v58 = vld [vmem:[#allocation2 + $0xf0] sm:$0xff] }
 0x4ad   :  { %31768 = vmatmul.mubr.f32.vlgmr.msra.gmra.mrb[0].mxu0 %v40373_v27  ;;  %v7549_v27 = vld [vmem:[#allocation2 + $0x30] sm:$0xff] }
 0x4ae   :  { %35454 = vmatpush3.bf16.msra.mxu0 %v40635_v61  ;;  %31770 = vmatprep.mubr.f32.mxu0 %v40379_v7  ;;  %v40680_v7 = vand.u32 4294901760, %v7570_v3  ;;  %v7573_v13 = vsel %vm229_vm0, %v7549_v27, 0  ;;  %v7748_v27 = vand.u32 4294901760, %v40745_v41 }
 0x4af   :  { %35456 = vmatprep.subr.bf16.mxu0 %v40665_v24  ;;  %v40685_v19 = vand.u32 4294901760, %v7573_v13 }
 0x4b0   :  { %v40689_v20 = vsub.f32 %v7570_v3, %v40680_v7  ;;  %v7738_v3 = vand.u32 4294901760, %v40742_v62 }
 0x4b1   :  { %31771 = vmatmul.mubr.f32.gmra.mrb[2].mxu0 %v40391_v38  ;;  %v7576_v38 = vsel %vm229_vm0, %v7550_v6, 0  ;;  %v7560_v6 = vld [vmem:[#allocation2 + $0x100] sm:$0xff] }
 0x4b2   :  { %31773 = vmatprep.mubr.f32.mxu0 %v40400_v63  ;;  %35458 = vmatpush3.bf16.msra.mxu0 %v40665_v24  ;;  %v7552_v63 = vld [vmem:[#allocation2 + $0x60] sm:$0xff]  ;;  %v7688_v32 = vand.u32 4294901760, %v40689_v20  ;;  %v7606_v18 = vsel %vm229_vm0, %v7560_v6, 0  ;;  %v7739_v14 = vsub.f32 %v40742_v62, %v7738_v3 }
 0x4b3   :  { %35460 = vmatprep.subr.bf16.mxu0 %v40671_v43  ;;  %v7582_v42 = vsel %vm229_vm0, %v7552_v63, 0 }
 0x4b4   :  { %v40712_v23 = vand.u32 4294901760, %v7582_v42  ;;  %v7689_v40 = vsub.f32 %v40689_v20, %v7688_v32 }
 0x4b5   :  { %31774 = vmatmul.mubr.f32.gmra.mrb[4].mxu0 %v40404_v29  ;;  %v40691_v29 = vand.u32 4294901760, %v7576_v38 }
 0x4b6   :  { %31776 = vmatprep.mubr.f32.mxu0 %v40406_v34  ;;  %v7579_v34 = vsel %vm229_vm0, %v7551_v45, 0  ;;  %v40732_v10 = vsub.f32 %v7582_v42, %v40712_v23  ;;  %v7690_v31 = vand.u32 4294901760, %v7689_v40  ;;  %v7562_v40 = vld [vmem:[#allocation2 + $0x120] sm:$0xff] }
 0x4b7   :  { %v40710_v55 = vsub.f32 %v7576_v38, %v40691_v29 }
 0x4b8   :  { %v7728_v17 = vand.u32 4294901760, %v40732_v10 }
 0x4b9   :  { %31777 = vmatmul.mubr.f32.gmra.mrb[6].mxu0 %v40435_v51  ;;  %v40701_v51 = vsub.f32 %v7573_v13, %v40685_v19  ;;  %v7708_v44 = vand.u32 4294901760, %v40710_v55 }
 0x4ba   :  { %31779 = vmatprep.mubr.f32.mxu0 %v40442_v53  ;;  %v40703_v53 = vand.u32 4294901760, %v7579_v34  ;;  %v7729_v59 = vsub.f32 %v40732_v10, %v7728_v17 }
 0x4bb   :  { %v7709_v8 = vsub.f32 %v40710_v55, %v7708_v44 }
 0x4bc   :  { %v40723_v35 = vsub.f32 %v7579_v34, %v40703_v53  ;;  %v7730_v22 = vand.u32 4294901760, %v7729_v59 }
 0x4bd   :  { %31780 = vmatmul.mubr.f32.gmra.mrb[8].mxu0 %v40463_v16  ;;  %v7556_v16 = vld [vmem:[#allocation2 + $0xc0] sm:$0xff]  ;;  %v7710_v34 = vand.u32 4294901760, %v7709_v8  ;;  %v7609_v8 = vsel %vm229_vm0, %v7561_v28, 0 }
 0x4be   :  { %31782 = vmatprep.mubr.f32.mxu0 %v40468_v5  ;;  %v7698_v5 = vand.u32 4294901760, %v40701_v51  ;;  %v7718_v0 = vand.u32 4294901760, %v40723_v35 }
 0x4c0   :  { %v7699_v37 = vsub.f32 %v40701_v51, %v7698_v5  ;;  %v7719_v38 = vsub.f32 %v40723_v35, %v7718_v0 }
 0x4c1   :  { %31783 = vmatmul.mubr.f32.gmra.mrb[10].mxu0 %v40483_v9  ;;  %v7594_v9 = vsel %vm229_vm0, %v7556_v16, 0  ;;  %v7749_v16 = vsub.f32 %v40745_v41, %v7748_v27 }
 0x4c2   :  { %31785 = vmatprep.mubr.f32.mxu0 %v40489_v21  ;;  %v7557_v21 = vld [vmem:[#allocation2 + $0xd0] sm:$0xff]  ;;  %v40754_v1 = vand.u32 4294901760, %v7594_v9  ;;  %v7700_v13 = vand.u32 4294901760, %v7699_v37  ;;  %v40799_v37 = vsub.f32 %v7600_v46, %v40780_v11 }
 0x4c3   :  { %v7597_v56 = vsel %vm229_vm0, %v7557_v21, 0  ;;  %v7750_v6 = vand.u32 4294901760, %v7749_v16 }
 0x4c4   :  { %v40773_v45 = vsub.f32 %v7594_v9, %v40754_v1  ;;  %v40775_v63 = vand.u32 4294901760, %v7597_v56  ;;  %v7720_v9 = vand.u32 4294901760, %v7719_v38  ;;  %v46430_v59 = vand.u32 4294901760, %v40799_v37 }
 0x4c5   :  { %31786 = vmatmul.mubr.f32.gmra.mrb[12].mxu0 %v40505_v26  ;;  %v7865_v26 = vand.u32 4294901760, %v7864_v36 }
 0x4c6   :  { %31788 = vmatprep.mubr.f32.mxu0 %v40511_v4  ;;  %v40766_v4 = vsub.f32 %v7591_v52, %v40747_v47  ;;  %v46429_v36 = vand.u32 4294901760, %v40773_v45  ;;  %v40793_v12 = vsub.f32 %v7597_v56, %v40775_v63  ;;  %v35467_v56 = vpack.c.bf16 %v40649_v2, %v40647_v30 }
 0x4c7   :  { %v35463_v42 = vpack.c.bf16 %v7872_v54, %v7865_v26  ;;  %v7612_v26 = vsel %vm229_vm0, %v7562_v40, 0  ;;  %v7563_v54 = vld [vmem:[#allocation2 + $0x130] sm:$0xff]  ;;  %v35487_v30 = vpack.c.bf16 %v7870_v48, %v7863_v50 }
 0x4c8   :  { %v46432_v52 = vand.u32 4294901760, %v40766_v4  ;;  %v7769_v46 = vsub.f32 %v40773_v45, %v46429_v36  ;;  %v7615_v16 = vsel %vm229_vm0, %v7563_v54, 0  ;;  %v7789_v54 = vsub.f32 %v40799_v37, %v46430_v59 }
 0x4c9   :  { %31789 = vmatmul.mubr.f32.gmra.mrb[14].mxu0 %v40521_v60  ;;  %v7603_v60 = vsel %vm229_vm0, %v7559_v58, 0  ;;  %v7740_v58 = vand.u32 4294901760, %v7739_v14  ;;  %v40823_v14 = vand.u32 4294901760, %v7612_v26  ;;  %v46672_v2 = vand.u32 4294901760, %v40766_v4 }
 0x4ca   :  { %31799 = vmatprep.mubr.f32.mxu0 %v7690_v31  ;;  %v40795_v21 = vand.u32 4294901760, %v7603_v60  ;;  %v40801_v31 = vand.u32 4294901760, %v7606_v18 }
 0x4cc   :  { %v40815_v38 = vsub.f32 %v7603_v60, %v40795_v21  ;;  %v40821_v28 = vsub.f32 %v7606_v18, %v40801_v31  ;;  %v7770_v18 = vand.u32 4294901760, %v7769_v46  ;;  %v7790_v46 = vand.u32 4294901760, %v7789_v54 }
 0x4cd   :  { %31800 = vmatmul.mubr.f32.vlgmr.msra.gmra.mrb[0].mxu0 %v7700_v13  ;;  %v46428_v13 = vand.u32 4294901760, %v40793_v12 }
 0x4ce   :  { %35462 = vmatpush3.bf16.msra.mxu0 %v40671_v43  ;;  %31802 = vmatprep.mubr.f32.mxu0 %v7710_v34  ;;  %v7759_v43 = vsub.f32 %v40766_v4, %v46432_v52  ;;  %v40817_v34 = vand.u32 4294901760, %v7609_v8 }
 0x4cf   :  { %35464 = vmatprep.subr.bf16.mxu0 %v35463_v42  ;;  %v7779_v60 = vsub.f32 %v40793_v12, %v46428_v13 }
 0x4d0   :  { %v7760_v40 = vand.u32 4294901760, %v7759_v43  ;;  %v7808_v43 = vand.u32 4294901760, %v40821_v28 }
 0x4d1   :  { %31803 = vmatmul.mubr.f32.gmra.mrb[2].mxu0 %v7720_v9  ;;  %v46431_v9 = vand.u32 4294901760, %v40815_v38  ;;  %v7780_v13 = vand.u32 4294901760, %v7779_v60 }
 0x4d2   :  { %31805 = vmatprep.mubr.f32.mxu0 %v7730_v22  ;;  %35466 = vmatpush3.bf16.msra.mxu0 %v35463_v42  ;;  %v40831_v42 = vsub.f32 %v7609_v8, %v40817_v34  ;;  %v40833_v22 = vand.u32 4294901760, %v7615_v16  ;;  %v7809_v59 = vsub.f32 %v40821_v28, %v7808_v43 }
 0x4d3   :  { %35468 = vmatprep.subr.bf16.mxu0 %v35467_v56  ;;  %v7799_v8 = vsub.f32 %v40815_v38, %v46431_v9 }
 0x4d4   :  { %v7818_v36 = vand.u32 4294901760, %v40831_v42  ;;  %v7810_v52 = vand.u32 4294901760, %v7809_v59  ;;  %v35471_v59 = vpack.c.bf16 %v40697_v15, %v40695_v49  ;;  %v46676_v49 = vand.u32 4294901760, %v40815_v38  ;;  %v8780_v15 = vld [vmem:[#allocation6 + $0xe0] sm:$0xff] }
 0x4d5   :  { %31806 = vmatmul.mubr.f32.gmra.mrb[4].mxu0 %v7740_v58  ;;  %v40840_v58 = vsub.f32 %v7612_v26, %v40823_v14 }
 0x4d6   :  { %31808 = vmatprep.mubr.f32.mxu0 %v7750_v6  ;;  %v40847_v6 = vsub.f32 %v7615_v16, %v40833_v22  ;;  %v7819_v60 = vsub.f32 %v40831_v42, %v7818_v36 }
 0x4d7   :  { %v7828_v26 = vand.u32 4294901760, %v40840_v58 }
 0x4d8   :  { %v7838_v9 = vand.u32 4294901760, %v40847_v6 }
 0x4d9   :  { %31809 = vmatmul.mubr.f32.gmra.mrb[6].mxu0 %v7760_v40  ;;  %v7800_v40 = vand.u32 4294901760, %v7799_v8  ;;  %v7829_v16 = vsub.f32 %v40840_v58, %v7828_v26 }
 0x4da   :  { %31811 = vmatprep.mubr.f32.mxu0 %v7770_v18  ;;  %v7820_v18 = vand.u32 4294901760, %v7819_v60  ;;  %v7839_v54 = vsub.f32 %v40847_v6, %v7838_v9 }
 0x4dc   :  { %v7840_v8 = vand.u32 4294901760, %v7839_v54 }
 0x4dd   :  { %31812 = vmatmul.mubr.f32.gmra.mrb[8].mxu0 %v7780_v13  ;;  %v7830_v13 = vand.u32 4294901760, %v7829_v16  ;;  %v8770_v16 = vld [vmem:[#allocation2 + $0x91] sm:$0xff] }
 0x4de   :  { %31814 = vmatprep.mubr.f32.mxu0 %v7790_v46 }
 0x4e1   :  { %31815 = vmatmul.mubr.f32.gmra.mrb[10].mxu0 %v7800_v40 }
 0x4e2   :  { %31817 = vmatprep.mubr.f32.mxu0 %v7810_v52  ;;  %v35483_v52 = vpack.c.bf16 %v7856_v33, %v7849_v25  ;;  %v46673_v25 = vand.u32 4294901760, %v40773_v45  ;;  %v46674_v33 = vand.u32 4294901760, %v40793_v12 }
 0x4e5   :  { %31818 = vmatmul.mubr.f32.gmra.mrb[12].mxu0 %v7820_v18 }
 0x4e6   :  { %31820 = vmatprep.mubr.f32.mxu0 %v7830_v13 }
 0x4e9   :  { %31821 = vmatmul.mubr.f32.gmra.mrb[14].mxu0 %v7840_v8 }
 0x4ea   :  { %31831 = vmatprep.mubr.f32.mxu0 %v40680_v7 }
 0x4ed   :  { %31832 = vmatmul.mubr.f32.vlgmr.msra.gmra.mrb[0].mxu0 %v40685_v19 }
 0x4ee   :  { %35470 = vmatpush3.bf16.msra.mxu0 %v35467_v56  ;;  %31834 = vmatprep.mubr.f32.mxu0 %v40691_v29 }
 0x4ef   :  { %35472 = vmatprep.subr.bf16.mxu0 %v35471_v59 }
 0x4f1   :  { %31835 = vmatmul.mubr.f32.gmra.mrb[2].mxu0 %v40703_v53 }
 0x4f2   :  { %31837 = vmatprep.mubr.f32.mxu0 %v40712_v23  ;;  %35474 = vmatpush3.bf16.msra.mxu0 %v35471_v59 }
 0x4f3   :  { %35476 = vmatprep.subr.bf16.mxu0 %v40635_v61 }
 0x4f5   :  { %31838 = vmatmul.mubr.f32.gmra.mrb[4].mxu0 %v40716_v39 }
 0x4f6   :  { %31840 = vmatprep.mubr.f32.mxu0 %v40718_v57 }
 0x4f9   :  { %31841 = vmatmul.mubr.f32.gmra.mrb[6].mxu0 %v40747_v47 }
 0x4fa   :  { %31843 = vmatprep.mubr.f32.mxu0 %v40754_v1 }
 0x4fd   :  { %31844 = vmatmul.mubr.f32.gmra.mrb[8].mxu0 %v40775_v63 }
 0x4fe   :  { %31846 = vmatprep.mubr.f32.mxu0 %v40780_v11 }
 0x501   :  { %31847 = vmatmul.mubr.f32.gmra.mrb[10].mxu0 %v40795_v21 }
 0x502   :  { %31849 = vmatprep.mubr.f32.mxu0 %v40801_v31 }
 0x505   :  { %31850 = vmatmul.mubr.f32.gmra.mrb[12].mxu0 %v40817_v34 }
 0x506   :  { %31852 = vmatprep.mubr.f32.mxu0 %v40823_v14 }
 0x509   :  { %31853 = vmatmul.mubr.f32.gmra.mrb[14].mxu0 %v40833_v22 }
 0x50a   :  { %31863 = vmatprep.mubr.f32.mxu0 %v40689_v20  ;;  %v46675_v20 = vand.u32 4294901760, %v40799_v37 }
 0x50d   :  { %31864 = vmatmul.mubr.f32.vlgmr.msra.gmra.mrb[0].mxu0 %v40701_v51  ;;  %v8781_v51 = vld [vmem:[#allocation6 + $0xe8] sm:$0xff] }
 0x50e   :  { %35478 = vmatpush3.bf16.msra.mxu0 %v40635_v61  ;;  %31866 = vmatprep.mubr.f32.mxu0 %v40710_v55  ;;  %v8836_v55 = vand.u32 4294901760, %v8781_v51 }
 0x50f   :  { %35480 = vmatprep.subr.bf16.mxu0 %v40665_v24 }
 0x510   :  { %v40961_v48 = vsub.f32 %v8781_v51, %v8836_v55 }
 0x511   :  { %31867 = vmatmul.mubr.f32.gmra.mrb[2].mxu0 %v40723_v35  ;;  %v8782_v35 = vld [vmem:[#allocation6 + $0xf0] sm:$0xff] }
 0x512   :  { %31869 = vmatprep.mubr.f32.mxu0 %v40732_v10  ;;  %35482 = vmatpush3.bf16.msra.mxu0 %v40665_v24  ;;  %v8839_v10 = vand.u32 4294901760, %v8782_v35 }
 0x513   :  { %35484 = vmatprep.subr.bf16.mxu0 %v35483_v52 }
 0x515   :  { %31870 = vmatmul.mubr.f32.gmra.mrb[4].mxu0 %v40742_v62 }
 0x516   :  { %31872 = vmatprep.mubr.f32.mxu0 %v40745_v41 }
 0x519   :  { %31873 = vmatmul.mubr.f32.gmra.mrb[6].mxu0 %v40766_v4 }
 0x51a   :  { %31875 = vmatprep.mubr.f32.mxu0 %v40773_v45  ;;  %v8763_v45 = vld [vmem:[#allocation2 + $0x21] sm:$0xff] }
 0x51d   :  { %31876 = vmatmul.mubr.f32.gmra.mrb[8].mxu0 %v40793_v12 }
 0x51e   :  { %31878 = vmatprep.mubr.f32.mxu0 %v40799_v37  ;;  %v8766_v37 = vld [vmem:[#allocation2 + $0x51] sm:$0xff] }
 0x521   :  { %31879 = vmatmul.mubr.f32.gmra.mrb[10].mxu0 %v40815_v38 }
 0x522   :  { %31881 = vmatprep.mubr.f32.mxu0 %v40821_v28  ;;  %v8768_v28 = vld [vmem:[#allocation2 + $0x71] sm:$0xff] }
 0x525   :  { %31882 = vmatmul.mubr.f32.gmra.mrb[12].mxu0 %v40831_v42 }
 0x526   :  { %31884 = vmatprep.mubr.f32.mxu0 %v40840_v58 }
 0x529   :  { %31885 = vmatmul.mubr.f32.gmra.mrb[14].mxu0 %v40847_v6  ;;  %v8800_v6 = vsel %vm229_vm0, %v8768_v28, 0 }
 0x52a   :  { %31895 = vmatprep.mubr.f32.mxu0 %v7688_v32  ;;  %v8833_v32 = vand.u32 4294901760, %v8780_v15  ;;  %v41028_v13 = vand.u32 4294901760, %v8800_v6 }
 0x52c   :  { %v40947_v50 = vpack.c.bf16 %v8836_v55, %v8833_v32 }
 0x52d   :  { %31896 = vmatmul.mubr.f32.vlgmr.msra.gmra.mrb[0].mxu0 %v7698_v5  ;;  %v9071_v5 = vand.u32 4294901760, %v40961_v48 }
 0x52e   :  { %35486 = vmatpush3.bf16.msra.mxu0 %v35483_v52  ;;  %31898 = vmatprep.mubr.f32.mxu0 %v7708_v44  ;;  %v8783_v44 = vld [vmem:[#allocation6 + $0xf8] sm:$0xff]  ;;  %v8806_v52 = vsel %vm229_vm0, %v8770_v16, 0 }
 0x52f   :  { %35488 = vmatprep.subr.bf16.mxu0 %v35487_v30  ;;  %v8842_v62 = vand.u32 4294901760, %v8783_v44  ;;  %v41059_v51 = vand.u32 4294901760, %v8806_v52 }
 0x531   :  { %31899 = vmatmul.mubr.f32.gmra.mrb[2].mxu0 %v7718_v0  ;;  %v9072_v0 = vsub.f32 %v40961_v48, %v9071_v5  ;;  %v41009_v58 = vsub.f32 %v8783_v44, %v8842_v62 }
 0x532   :  { %31901 = vmatprep.mubr.f32.mxu0 %v7728_v17  ;;  %35490 = vmatpush3.bf16.msra.mxu0 %v35487_v30  ;;  %v40977_v17 = vpack.c.bf16 %v8842_v62, %v8839_v10 }
 0x533   :  { %35492 = vmatprep.subr.bf16.mxu0 %v40635_v61  ;;  %v9085_v54 = vand.u32 4294901760, %v41009_v58 }
 0x535   :  { %31902 = vmatmul.mubr.f32.gmra.mrb[4].mxu0 %v7738_v3 }
 0x536   :  { %31904 = vmatprep.mubr.f32.mxu0 %v7748_v27  ;;  %v9073_v27 = vand.u32 4294901760, %v9072_v0 }
 0x539   :  { %31905 = vmatmul.mubr.f32.gmra.mrb[6].mxu0 %v46672_v2 }
 0x53a   :  { %31907 = vmatprep.mubr.f32.mxu0 %v46673_v25 }
 0x53d   :  { %31908 = vmatmul.mubr.f32.gmra.mrb[8].mxu0 %v46674_v33 }
 0x53e   :  { %31910 = vmatprep.mubr.f32.mxu0 %v46675_v20  ;;  %v9086_v20 = vsub.f32 %v41009_v58, %v9085_v54 }
 0x541   :  { %31911 = vmatmul.mubr.f32.gmra.mrb[10].mxu0 %v46676_v49  ;;  %v41054_v49 = vsub.f32 %v8800_v6, %v41028_v13 }
 0x542   :  { %31913 = vmatprep.mubr.f32.mxu0 %v7808_v43  ;;  %v41007_v43 = vsub.f32 %v8782_v35, %v8839_v10 }
 0x544   :  { %v9078_v18 = vand.u32 4294901760, %v41007_v43 }
 0x545   :  { %31914 = vmatmul.mubr.f32.gmra.mrb[12].mxu0 %v7818_v36  ;;  %v8765_v36 = vld [vmem:[#allocation2 + $0x41] sm:$0xff] }
 0x546   :  { %31916 = vmatprep.mubr.f32.mxu0 %v7828_v26  ;;  %v9079_v33 = vsub.f32 %v41007_v43, %v9078_v18 }
 0x549   :  { %31917 = vmatmul.mubr.f32.gmra.mrb[14].mxu0 %v7838_v9  ;;  %v8769_v9 = vld [vmem:[#allocation2 + $0x81] sm:$0xff] }
 0x54a   :  { %31927 = vmatprep.mubr.f32.mxu0 %v40680_v7  ;;  %v8803_v46 = vsel %vm229_vm0, %v8769_v9, 0 }
 0x54b   :  { %v41030_v8 = vand.u32 4294901760, %v8803_v46 }
 0x54d   :  { %31928 = vmatmul.mubr.f32.vlgmr.msra.gmra.mrb[0].mxu0 %v40685_v19 }
 0x54e   :  { %35494 = vmatpush3.bf16.msra.mxu0 %v40635_v61  ;;  %31930 = vmatprep.mubr.f32.mxu0 %v40691_v29  ;;  %v40959_v61 = vsub.f32 %v8780_v15, %v8833_v32  ;;  %v41057_v15 = vsub.f32 %v8803_v46, %v41030_v8  ;;  %v8773_v32 = vld [vmem:[#allocation2 + $0xe1] sm:$0xff]  ;;  %v8776_v46 = vld [vmem:[#allocation2 + $0x111] sm:$0xff] }
 0x54f   :  { %35496 = vmatprep.subr.bf16.mxu0 %v40665_v24 }
 0x551   :  { %31931 = vmatmul.mubr.f32.gmra.mrb[2].mxu0 %v40703_v53 }
 0x552   :  { %31933 = vmatprep.mubr.f32.mxu0 %v40712_v23  ;;  %35498 = vmatpush3.bf16.msra.mxu0 %v40665_v24  ;;  %v9064_v24 = vand.u32 4294901760, %v40959_v61 }
 0x553   :  { %35500 = vmatprep.subr.bf16.mxu0 %v40947_v50 }
 0x554   :  { %v9065_v41 = vsub.f32 %v40959_v61, %v9064_v24 }
 0x555   :  { %31934 = vmatmul.mubr.f32.gmra.mrb[4].mxu0 %v40716_v39 }
 0x556   :  { %31936 = vmatprep.mubr.f32.mxu0 %v40718_v57  ;;  %v9066_v3 = vand.u32 4294901760, %v9065_v41 }
 0x558   :  { %v40983_v4 = vpack.c.bf16 %v9073_v27, %v9066_v3  ;;  %v9087_v3 = vand.u32 4294901760, %v9086_v20  ;;  %v8815_v27 = vsel %vm229_vm0, %v8773_v32, 0 }
 0x559   :  { %31937 = vmatmul.mubr.f32.gmra.mrb[6].mxu0 %v40747_v47  ;;  %v41092_v9 = vand.u32 4294901760, %v8815_v27 }
 0x55a   :  { %31939 = vmatprep.mubr.f32.mxu0 %v40754_v1 }
 0x55d   :  { %31940 = vmatmul.mubr.f32.gmra.mrb[8].mxu0 %v40775_v63 }
 0x55e   :  { %31942 = vmatprep.mubr.f32.mxu0 %v40780_v11 }
 0x561   :  { %31943 = vmatmul.mubr.f32.gmra.mrb[10].mxu0 %v40795_v21 }
 0x562   :  { %31945 = vmatprep.mubr.f32.mxu0 %v40801_v31 }
 0x565   :  { %31946 = vmatmul.mubr.f32.gmra.mrb[12].mxu0 %v40817_v34 }
 0x566   :  { %31948 = vmatprep.mubr.f32.mxu0 %v40823_v14 }
 0x569   :  { %31949 = vmatmul.mubr.f32.gmra.mrb[14].mxu0 %v40833_v22 }
 0x56a   :  { %31959 = vmatprep.mubr.f32.mxu0 %v40680_v7  ;;  %v8785_v7 = vsel %vm229_vm0, %v8763_v45, 0  ;;  %v8774_v45 = vld [vmem:[#allocation2 + $0xf1] sm:$0xff] }
 0x56d   :  { %31960 = vmatmul.mubr.f32.vlgmr.msra.gmra.mrb[0].mxu0 %v40685_v19  ;;  %v8764_v19 = vld [vmem:[#allocation2 + $0x31] sm:$0xff] }
 0x56e   :  { %35502 = vmatpush3.bf16.msra.mxu0 %v40947_v50  ;;  %31962 = vmatprep.mubr.f32.mxu0 %v40691_v29  ;;  %v40992_v29 = vand.u32 4294901760, %v8785_v7  ;;  %v8788_v12 = vsel %vm229_vm0, %v8764_v19, 0  ;;  %v8963_v19 = vand.u32 4294901760, %v41057_v15 }
 0x56f   :  { %35504 = vmatprep.subr.bf16.mxu0 %v40977_v17  ;;  %v40997_v56 = vand.u32 4294901760, %v8788_v12 }
 0x570   :  { %v41001_v38 = vsub.f32 %v8785_v7, %v40992_v29  ;;  %v8953_v7 = vand.u32 4294901760, %v41054_v49 }
 0x571   :  { %31963 = vmatmul.mubr.f32.gmra.mrb[2].mxu0 %v40703_v53  ;;  %v8791_v53 = vsel %vm229_vm0, %v8765_v36, 0  ;;  %v8775_v36 = vld [vmem:[#allocation2 + $0x101] sm:$0xff] }
 0x572   :  { %31965 = vmatprep.mubr.f32.mxu0 %v40712_v23  ;;  %35506 = vmatpush3.bf16.msra.mxu0 %v40977_v17  ;;  %v8767_v23 = vld [vmem:[#allocation2 + $0x61] sm:$0xff]  ;;  %v8903_v26 = vand.u32 4294901760, %v41001_v38  ;;  %v8821_v6 = vsel %vm229_vm0, %v8775_v36, 0  ;;  %v8954_v16 = vsub.f32 %v41054_v49, %v8953_v7 }
 0x573   :  { %35508 = vmatprep.subr.bf16.mxu0 %v40983_v4  ;;  %v8797_v42 = vsel %vm229_vm0, %v8767_v23, 0 }
 0x574   :  { %v41024_v60 = vand.u32 4294901760, %v8797_v42  ;;  %v8904_v30 = vsub.f32 %v41001_v38, %v8903_v26 }
 0x575   :  { %31966 = vmatmul.mubr.f32.gmra.mrb[4].mxu0 %v40716_v39  ;;  %v41003_v39 = vand.u32 4294901760, %v8791_v53 }
 0x576   :  { %31968 = vmatprep.mubr.f32.mxu0 %v40718_v57  ;;  %v8794_v57 = vsel %vm229_vm0, %v8766_v37, 0  ;;  %v41044_v25 = vsub.f32 %v8797_v42, %v41024_v60  ;;  %v8905_v10 = vand.u32 4294901760, %v8904_v30  ;;  %v8777_v30 = vld [vmem:[#allocation2 + $0x121] sm:$0xff] }
 0x577   :  { %v41022_v40 = vsub.f32 %v8791_v53, %v41003_v39 }
 0x578   :  { %v8943_v41 = vand.u32 4294901760, %v41044_v25 }
 0x579   :  { %31969 = vmatmul.mubr.f32.gmra.mrb[6].mxu0 %v40747_v47  ;;  %v41013_v47 = vsub.f32 %v8788_v12, %v40997_v56  ;;  %v8923_v2 = vand.u32 4294901760, %v41022_v40 }
 0x57a   :  { %31971 = vmatprep.mubr.f32.mxu0 %v40754_v1  ;;  %v41015_v1 = vand.u32 4294901760, %v8794_v57  ;;  %v8944_v28 = vsub.f32 %v41044_v25, %v8943_v41 }
 0x57b   :  { %v8924_v62 = vsub.f32 %v41022_v40, %v8923_v2 }
 0x57c   :  { %v41035_v59 = vsub.f32 %v8794_v57, %v41015_v1  ;;  %v8945_v32 = vand.u32 4294901760, %v8944_v28 }
 0x57d   :  { %31972 = vmatmul.mubr.f32.gmra.mrb[8].mxu0 %v40775_v63  ;;  %v8771_v63 = vld [vmem:[#allocation2 + $0xc1] sm:$0xff]  ;;  %v8925_v57 = vand.u32 4294901760, %v8924_v62  ;;  %v8824_v62 = vsel %vm229_vm0, %v8776_v46, 0 }
 0x57e   :  { %31974 = vmatprep.mubr.f32.mxu0 %v40780_v11  ;;  %v8913_v11 = vand.u32 4294901760, %v41013_v47  ;;  %v8933_v35 = vand.u32 4294901760, %v41035_v59 }
 0x580   :  { %v8914_v55 = vsub.f32 %v41013_v47, %v8913_v11  ;;  %v8934_v53 = vsub.f32 %v41035_v59, %v8933_v35 }
 0x581   :  { %31975 = vmatmul.mubr.f32.gmra.mrb[10].mxu0 %v40795_v21  ;;  %v8809_v21 = vsel %vm229_vm0, %v8771_v63, 0  ;;  %v8964_v63 = vsub.f32 %v41057_v15, %v8963_v19 }
 0x582   :  { %31977 = vmatprep.mubr.f32.mxu0 %v40801_v31  ;;  %v8772_v31 = vld [vmem:[#allocation2 + $0xd1] sm:$0xff]  ;;  %v41066_v44 = vand.u32 4294901760, %v8809_v21  ;;  %v8915_v12 = vand.u32 4294901760, %v8914_v55  ;;  %v41111_v55 = vsub.f32 %v8815_v27, %v41092_v9 }
 0x583   :  { %v8812_v0 = vsel %vm229_vm0, %v8772_v31, 0  ;;  %v8965_v36 = vand.u32 4294901760, %v8964_v63 }
 0x584   :  { %v41085_v37 = vsub.f32 %v8809_v21, %v41066_v44  ;;  %v41087_v23 = vand.u32 4294901760, %v8812_v0  ;;  %v8935_v21 = vand.u32 4294901760, %v8934_v53  ;;  %v46435_v28 = vand.u32 4294901760, %v41111_v55 }
 0x585   :  { %31978 = vmatmul.mubr.f32.gmra.mrb[12].mxu0 %v40817_v34  ;;  %v9080_v34 = vand.u32 4294901760, %v9079_v33 }
 0x586   :  { %31980 = vmatprep.mubr.f32.mxu0 %v40823_v14  ;;  %v41078_v14 = vsub.f32 %v8806_v52, %v41059_v51  ;;  %v46434_v33 = vand.u32 4294901760, %v41085_v37  ;;  %v41105_v20 = vsub.f32 %v8812_v0, %v41087_v23  ;;  %v35515_v0 = vpack.c.bf16 %v40961_v48, %v40959_v61 }
 0x587   :  { %v35511_v42 = vpack.c.bf16 %v9087_v3, %v9080_v34  ;;  %v8827_v34 = vsel %vm229_vm0, %v8777_v30, 0  ;;  %v8778_v3 = vld [vmem:[#allocation2 + $0x131] sm:$0xff]  ;;  %v35535_v61 = vpack.c.bf16 %v9085_v54, %v9078_v18 }
 0x588   :  { %v46437_v52 = vand.u32 4294901760, %v41078_v14  ;;  %v8984_v27 = vsub.f32 %v41085_v37, %v46434_v33  ;;  %v8830_v63 = vsel %vm229_vm0, %v8778_v3, 0  ;;  %v9004_v3 = vsub.f32 %v41111_v55, %v46435_v28 }
 0x589   :  { %31981 = vmatmul.mubr.f32.gmra.mrb[14].mxu0 %v40833_v22  ;;  %v8818_v22 = vsel %vm229_vm0, %v8774_v45, 0  ;;  %v8955_v45 = vand.u32 4294901760, %v8954_v16  ;;  %v41135_v16 = vand.u32 4294901760, %v8827_v34  ;;  %v46677_v48 = vand.u32 4294901760, %v41078_v14 }
 0x58a   :  { %31991 = vmatprep.mubr.f32.mxu0 %v8905_v10  ;;  %v41107_v31 = vand.u32 4294901760, %v8818_v22  ;;  %v41113_v10 = vand.u32 4294901760, %v8821_v6 }
 0x58c   :  { %v41127_v53 = vsub.f32 %v8818_v22, %v41107_v31  ;;  %v41133_v46 = vsub.f32 %v8821_v6, %v41113_v10  ;;  %v8985_v6 = vand.u32 4294901760, %v8984_v27  ;;  %v9005_v27 = vand.u32 4294901760, %v9004_v3 }
 0x58d   :  { %31992 = vmatmul.mubr.f32.vlgmr.msra.gmra.mrb[0].mxu0 %v8915_v12  ;;  %v46433_v12 = vand.u32 4294901760, %v41105_v20 }
 0x58e   :  { %35510 = vmatpush3.bf16.msra.mxu0 %v40983_v4  ;;  %31994 = vmatprep.mubr.f32.mxu0 %v8925_v57  ;;  %v8974_v4 = vsub.f32 %v41078_v14, %v46437_v52  ;;  %v41129_v57 = vand.u32 4294901760, %v8824_v62 }
 0x58f   :  { %35512 = vmatprep.subr.bf16.mxu0 %v35511_v42  ;;  %v8994_v22 = vsub.f32 %v41105_v20, %v46433_v12 }
 0x590   :  { %v8975_v30 = vand.u32 4294901760, %v8974_v4  ;;  %v9023_v4 = vand.u32 4294901760, %v41133_v46 }
 0x591   :  { %31995 = vmatmul.mubr.f32.gmra.mrb[2].mxu0 %v8935_v21  ;;  %v46436_v21 = vand.u32 4294901760, %v41127_v53  ;;  %v8995_v12 = vand.u32 4294901760, %v8994_v22 }
 0x592   :  { %31997 = vmatprep.mubr.f32.mxu0 %v8945_v32  ;;  %35514 = vmatpush3.bf16.msra.mxu0 %v35511_v42  ;;  %v41143_v42 = vsub.f32 %v8824_v62, %v41129_v57  ;;  %v41145_v32 = vand.u32 4294901760, %v8830_v63  ;;  %v9024_v28 = vsub.f32 %v41133_v46, %v9023_v4 }
 0x593   :  { %35516 = vmatprep.subr.bf16.mxu0 %v35515_v0  ;;  %v9014_v62 = vsub.f32 %v41127_v53, %v46436_v21 }
 0x594   :  { %v9033_v33 = vand.u32 4294901760, %v41143_v42  ;;  %v9025_v52 = vand.u32 4294901760, %v9024_v28  ;;  %v35519_v28 = vpack.c.bf16 %v41009_v58, %v41007_v43  ;;  %v46681_v43 = vand.u32 4294901760, %v41127_v53  ;;  %v9995_v58 = vld [vmem:[#allocation6 + $0x100] sm:$0xff] }
 0x595   :  { %31998 = vmatmul.mubr.f32.gmra.mrb[4].mxu0 %v8955_v45  ;;  %v41152_v45 = vsub.f32 %v8827_v34, %v41135_v16 }
 0x596   :  { %32000 = vmatprep.mubr.f32.mxu0 %v8965_v36  ;;  %v41159_v36 = vsub.f32 %v8830_v63, %v41145_v32  ;;  %v9034_v22 = vsub.f32 %v41143_v42, %v9033_v33 }
 0x597   :  { %v9043_v34 = vand.u32 4294901760, %v41152_v45 }
 0x598   :  { %v9053_v21 = vand.u32 4294901760, %v41159_v36 }
 0x599   :  { %32001 = vmatmul.mubr.f32.gmra.mrb[6].mxu0 %v8975_v30  ;;  %v9015_v30 = vand.u32 4294901760, %v9014_v62  ;;  %v9044_v63 = vsub.f32 %v41152_v45, %v9043_v34 }
 0x59a   :  { %32003 = vmatprep.mubr.f32.mxu0 %v8985_v6  ;;  %v9035_v6 = vand.u32 4294901760, %v9034_v22  ;;  %v9054_v3 = vsub.f32 %v41159_v36, %v9053_v21 }
 0x59c   :  { %v9055_v62 = vand.u32 4294901760, %v9054_v3 }
 0x59d   :  { %32004 = vmatmul.mubr.f32.gmra.mrb[8].mxu0 %v8995_v12  ;;  %v9045_v12 = vand.u32 4294901760, %v9044_v63  ;;  %v9985_v63 = vld [vmem:[#allocation2 + $0x92] sm:$0xff] }
 0x59e   :  { %32006 = vmatprep.mubr.f32.mxu0 %v9005_v27 }
 0x5a1   :  { %32007 = vmatmul.mubr.f32.gmra.mrb[10].mxu0 %v9015_v30 }
 0x5a2   :  { %32009 = vmatprep.mubr.f32.mxu0 %v9025_v52  ;;  %v35531_v52 = vpack.c.bf16 %v9071_v5, %v9064_v24  ;;  %v46678_v24 = vand.u32 4294901760, %v41085_v37  ;;  %v46679_v5 = vand.u32 4294901760, %v41105_v20 }
 0x5a5   :  { %32010 = vmatmul.mubr.f32.gmra.mrb[12].mxu0 %v9035_v6 }
 0x5a6   :  { %32012 = vmatprep.mubr.f32.mxu0 %v9045_v12 }
 0x5a9   :  { %32013 = vmatmul.mubr.f32.gmra.mrb[14].mxu0 %v9055_v62 }
 0x5aa   :  { %32023 = vmatprep.mubr.f32.mxu0 %v40992_v29 }
 0x5ad   :  { %32024 = vmatmul.mubr.f32.vlgmr.msra.gmra.mrb[0].mxu0 %v40997_v56 }
 0x5ae   :  { %35518 = vmatpush3.bf16.msra.mxu0 %v35515_v0  ;;  %32026 = vmatprep.mubr.f32.mxu0 %v41003_v39 }
 0x5af   :  { %35520 = vmatprep.subr.bf16.mxu0 %v35519_v28 }
 0x5b1   :  { %32027 = vmatmul.mubr.f32.gmra.mrb[2].mxu0 %v41015_v1 }
 0x5b2   :  { %32029 = vmatprep.mubr.f32.mxu0 %v41024_v60  ;;  %35522 = vmatpush3.bf16.msra.mxu0 %v35519_v28 }
 0x5b3   :  { %35524 = vmatprep.subr.bf16.mxu0 %v40947_v50 }
 0x5b5   :  { %32030 = vmatmul.mubr.f32.gmra.mrb[4].mxu0 %v41028_v13 }
 0x5b6   :  { %32032 = vmatprep.mubr.f32.mxu0 %v41030_v8 }
 0x5b9   :  { %32033 = vmatmul.mubr.f32.gmra.mrb[6].mxu0 %v41059_v51 }
 0x5ba   :  { %32035 = vmatprep.mubr.f32.mxu0 %v41066_v44 }
 0x5bd   :  { %32036 = vmatmul.mubr.f32.gmra.mrb[8].mxu0 %v41087_v23 }
 0x5be   :  { %32038 = vmatprep.mubr.f32.mxu0 %v41092_v9 }
 0x5c1   :  { %32039 = vmatmul.mubr.f32.gmra.mrb[10].mxu0 %v41107_v31 }
 0x5c2   :  { %32041 = vmatprep.mubr.f32.mxu0 %v41113_v10 }
 0x5c5   :  { %32042 = vmatmul.mubr.f32.gmra.mrb[12].mxu0 %v41129_v57 }
 0x5c6   :  { %32044 = vmatprep.mubr.f32.mxu0 %v41135_v16 }
 0x5c9   :  { %32045 = vmatmul.mubr.f32.gmra.mrb[14].mxu0 %v41145_v32 }
 0x5ca   :  { %32055 = vmatprep.mubr.f32.mxu0 %v41001_v38  ;;  %v46680_v38 = vand.u32 4294901760, %v41111_v55 }
 0x5cd   :  { %32056 = vmatmul.mubr.f32.vlgmr.msra.gmra.mrb[0].mxu0 %v41013_v47  ;;  %v9996_v47 = vld [vmem:[#allocation6 + $0x108] sm:$0xff] }
 0x5ce   :  { %35526 = vmatpush3.bf16.msra.mxu0 %v40947_v50  ;;  %32058 = vmatprep.mubr.f32.mxu0 %v41022_v40  ;;  %v10051_v40 = vand.u32 4294901760, %v9996_v47 }
 0x5cf   :  { %35528 = vmatprep.subr.bf16.mxu0 %v40977_v17 }
 0x5d0   :  { %v41273_v54 = vsub.f32 %v9996_v47, %v10051_v40 }
 0x5d1   :  { %32059 = vmatmul.mubr.f32.gmra.mrb[2].mxu0 %v41035_v59  ;;  %v9997_v59 = vld [vmem:[#allocation6 + $0x110] sm:$0xff] }
 0x5d2   :  { %32061 = vmatprep.mubr.f32.mxu0 %v41044_v25  ;;  %35530 = vmatpush3.bf16.msra.mxu0 %v40977_v17  ;;  %v10054_v25 = vand.u32 4294901760, %v9997_v59 }
 0x5d3   :  { %35532 = vmatprep.subr.bf16.mxu0 %v35531_v52 }
 0x5d5   :  { %32062 = vmatmul.mubr.f32.gmra.mrb[4].mxu0 %v41054_v49 }
 0x5d6   :  { %32064 = vmatprep.mubr.f32.mxu0 %v41057_v15 }
 0x5d9   :  { %32065 = vmatmul.mubr.f32.gmra.mrb[6].mxu0 %v41078_v14 }
 0x5da   :  { %32067 = vmatprep.mubr.f32.mxu0 %v41085_v37  ;;  %v9978_v37 = vld [vmem:[#allocation2 + $0x22] sm:$0xff] }
 0x5dd   :  { %32068 = vmatmul.mubr.f32.gmra.mrb[8].mxu0 %v41105_v20 }
 0x5de   :  { %32070 = vmatprep.mubr.f32.mxu0 %v41111_v55  ;;  %v9981_v55 = vld [vmem:[#allocation2 + $0x52] sm:$0xff] }
 0x5e1   :  { %32071 = vmatmul.mubr.f32.gmra.mrb[10].mxu0 %v41127_v53 }
 0x5e2   :  { %32073 = vmatprep.mubr.f32.mxu0 %v41133_v46  ;;  %v9983_v46 = vld [vmem:[#allocation2 + $0x72] sm:$0xff] }
 0x5e5   :  { %32074 = vmatmul.mubr.f32.gmra.mrb[12].mxu0 %v41143_v42 }
 0x5e6   :  { %32076 = vmatprep.mubr.f32.mxu0 %v41152_v45 }
 0x5e9   :  { %32077 = vmatmul.mubr.f32.gmra.mrb[14].mxu0 %v41159_v36  ;;  %v10015_v36 = vsel %vm229_vm0, %v9983_v46, 0 }
 0x5ea   :  { %32087 = vmatprep.mubr.f32.mxu0 %v8903_v26  ;;  %v10048_v26 = vand.u32 4294901760, %v9995_v58  ;;  %v41340_v12 = vand.u32 4294901760, %v10015_v36 }
 0x5ec   :  { %v41259_v18 = vpack.c.bf16 %v10051_v40, %v10048_v26 }
 0x5ed   :  { %32088 = vmatmul.mubr.f32.vlgmr.msra.gmra.mrb[0].mxu0 %v8913_v11  ;;  %v10286_v11 = vand.u32 4294901760, %v41273_v54 }
 0x5ee   :  { %35534 = vmatpush3.bf16.msra.mxu0 %v35531_v52  ;;  %32090 = vmatprep.mubr.f32.mxu0 %v8923_v2  ;;  %v9998_v2 = vld [vmem:[#allocation6 + $0x118] sm:$0xff]  ;;  %v10021_v52 = vsel %vm229_vm0, %v9985_v63, 0 }
 0x5ef   :  { %35536 = vmatprep.subr.bf16.mxu0 %v35535_v61  ;;  %v10057_v49 = vand.u32 4294901760, %v9998_v2  ;;  %v41371_v47 = vand.u32 4294901760, %v10021_v52 }
 0x5f1   :  { %32091 = vmatmul.mubr.f32.gmra.mrb[2].mxu0 %v8933_v35  ;;  %v10287_v35 = vsub.f32 %v41273_v54, %v10286_v11  ;;  %v41321_v45 = vsub.f32 %v9998_v2, %v10057_v49 }
 0x5f2   :  { %32093 = vmatprep.mubr.f32.mxu0 %v8943_v41  ;;  %35538 = vmatpush3.bf16.msra.mxu0 %v35535_v61  ;;  %v41289_v41 = vpack.c.bf16 %v10057_v49, %v10054_v25 }
 0x5f3   :  { %35540 = vmatprep.subr.bf16.mxu0 %v40947_v50  ;;  %v10300_v3 = vand.u32 4294901760, %v41321_v45 }
 0x5f5   :  { %32094 = vmatmul.mubr.f32.gmra.mrb[4].mxu0 %v8953_v7 }
 0x5f6   :  { %32096 = vmatprep.mubr.f32.mxu0 %v8963_v19  ;;  %v10288_v19 = vand.u32 4294901760, %v10287_v35 }
 0x5f9   :  { %32097 = vmatmul.mubr.f32.gmra.mrb[6].mxu0 %v46677_v48 }
 0x5fa   :  { %32099 = vmatprep.mubr.f32.mxu0 %v46678_v24 }
 0x5fd   :  { %32100 = vmatmul.mubr.f32.gmra.mrb[8].mxu0 %v46679_v5 }
 0x5fe   :  { %32102 = vmatprep.mubr.f32.mxu0 %v46680_v38  ;;  %v10301_v38 = vsub.f32 %v41321_v45, %v10300_v3 }
 0x601   :  { %32103 = vmatmul.mubr.f32.gmra.mrb[10].mxu0 %v46681_v43  ;;  %v41366_v43 = vsub.f32 %v10015_v36, %v41340_v12 }
 0x602   :  { %32105 = vmatprep.mubr.f32.mxu0 %v9023_v4  ;;  %v41319_v4 = vsub.f32 %v9997_v59, %v10054_v25 }
 0x604   :  { %v10293_v6 = vand.u32 4294901760, %v41319_v4 }
 0x605   :  { %32106 = vmatmul.mubr.f32.gmra.mrb[12].mxu0 %v9033_v33  ;;  %v9980_v33 = vld [vmem:[#allocation2 + $0x42] sm:$0xff] }
 0x606   :  { %32108 = vmatprep.mubr.f32.mxu0 %v9043_v34  ;;  %v10294_v5 = vsub.f32 %v41319_v4, %v10293_v6 }
 0x609   :  { %32109 = vmatmul.mubr.f32.gmra.mrb[14].mxu0 %v9053_v21  ;;  %v9984_v21 = vld [vmem:[#allocation2 + $0x82] sm:$0xff] }
 0x60a   :  { %32119 = vmatprep.mubr.f32.mxu0 %v40992_v29  ;;  %v10018_v27 = vsel %vm229_vm0, %v9984_v21, 0 }
 0x60b   :  { %v41342_v62 = vand.u32 4294901760, %v10018_v27 }
 0x60d   :  { %32120 = vmatmul.mubr.f32.vlgmr.msra.gmra.mrb[0].mxu0 %v40997_v56 }
 0x60e   :  { %35542 = vmatpush3.bf16.msra.mxu0 %v40947_v50  ;;  %32122 = vmatprep.mubr.f32.mxu0 %v41003_v39  ;;  %v41271_v50 = vsub.f32 %v9995_v58, %v10048_v26  ;;  %v41369_v58 = vsub.f32 %v10018_v27, %v41342_v62  ;;  %v9988_v26 = vld [vmem:[#allocation2 + $0xe2] sm:$0xff]  ;;  %v9991_v27 = vld [vmem:[#allocation2 + $0x112] sm:$0xff] }
 0x60f   :  { %35544 = vmatprep.subr.bf16.mxu0 %v40977_v17 }
 0x611   :  { %32123 = vmatmul.mubr.f32.gmra.mrb[2].mxu0 %v41015_v1 }
 0x612   :  { %32125 = vmatprep.mubr.f32.mxu0 %v41024_v60  ;;  %35546 = vmatpush3.bf16.msra.mxu0 %v40977_v17  ;;  %v10279_v17 = vand.u32 4294901760, %v41271_v50 }
 0x613   :  { %35548 = vmatprep.subr.bf16.mxu0 %v41259_v18 }
 0x614   :  { %v10280_v15 = vsub.f32 %v41271_v50, %v10279_v17 }
 0x615   :  { %32126 = vmatmul.mubr.f32.gmra.mrb[4].mxu0 %v41028_v13 }
 0x616   :  { %32128 = vmatprep.mubr.f32.mxu0 %v41030_v8  ;;  %v10281_v7 = vand.u32 4294901760, %v10280_v15 }
 0x618   :  { %v41295_v14 = vpack.c.bf16 %v10288_v19, %v10281_v7  ;;  %v10302_v7 = vand.u32 4294901760, %v10301_v38  ;;  %v10030_v19 = vsel %vm229_vm0, %v9988_v26, 0 }
 0x619   :  { %32129 = vmatmul.mubr.f32.gmra.mrb[6].mxu0 %v41059_v51  ;;  %v41404_v21 = vand.u32 4294901760, %v10030_v19 }
 0x61a   :  { %32131 = vmatprep.mubr.f32.mxu0 %v41066_v44 }
 0x61d   :  { %32132 = vmatmul.mubr.f32.gmra.mrb[8].mxu0 %v41087_v23 }
 0x61e   :  { %32134 = vmatprep.mubr.f32.mxu0 %v41092_v9 }
 0x621   :  { %32135 = vmatmul.mubr.f32.gmra.mrb[10].mxu0 %v41107_v31 }
 0x622   :  { %32137 = vmatprep.mubr.f32.mxu0 %v41113_v10 }
 0x625   :  { %32138 = vmatmul.mubr.f32.gmra.mrb[12].mxu0 %v41129_v57 }
 0x626   :  { %32140 = vmatprep.mubr.f32.mxu0 %v41135_v16 }
 0x629   :  { %32141 = vmatmul.mubr.f32.gmra.mrb[14].mxu0 %v41145_v32 }
 0x62a   :  { %32151 = vmatprep.mubr.f32.mxu0 %v40992_v29  ;;  %v10000_v29 = vsel %vm229_vm0, %v9978_v37, 0  ;;  %v9989_v37 = vld [vmem:[#allocation2 + $0xf2] sm:$0xff] }
 0x62d   :  { %32152 = vmatmul.mubr.f32.vlgmr.msra.gmra.mrb[0].mxu0 %v40997_v56  ;;  %v9979_v56 = vld [vmem:[#allocation2 + $0x32] sm:$0xff] }
 0x62e   :  { %35550 = vmatpush3.bf16.msra.mxu0 %v41259_v18  ;;  %32154 = vmatprep.mubr.f32.mxu0 %v41003_v39  ;;  %v41304_v39 = vand.u32 4294901760, %v10000_v29  ;;  %v10003_v20 = vsel %vm229_vm0, %v9979_v56, 0  ;;  %v10178_v56 = vand.u32 4294901760, %v41369_v58 }
 0x62f   :  { %35552 = vmatprep.subr.bf16.mxu0 %v41289_v41  ;;  %v41309_v0 = vand.u32 4294901760, %v10003_v20 }
 0x630   :  { %v41313_v53 = vsub.f32 %v10000_v29, %v41304_v39  ;;  %v10168_v29 = vand.u32 4294901760, %v41366_v43 }
 0x631   :  { %32155 = vmatmul.mubr.f32.gmra.mrb[2].mxu0 %v41015_v1  ;;  %v10006_v1 = vsel %vm229_vm0, %v9980_v33, 0  ;;  %v9990_v33 = vld [vmem:[#allocation2 + $0x102] sm:$0xff] }
 0x632   :  { %32157 = vmatprep.mubr.f32.mxu0 %v41024_v60  ;;  %35554 = vmatpush3.bf16.msra.mxu0 %v41289_v41  ;;  %v9982_v60 = vld [vmem:[#allocation2 + $0x62] sm:$0xff]  ;;  %v10118_v34 = vand.u32 4294901760, %v41313_v53  ;;  %v10036_v36 = vsel %vm229_vm0, %v9990_v33, 0  ;;  %v10169_v63 = vsub.f32 %v41366_v43, %v10168_v29 }
 0x633   :  { %35556 = vmatprep.subr.bf16.mxu0 %v41295_v14  ;;  %v10012_v42 = vsel %vm229_vm0, %v9982_v60, 0 }
 0x634   :  { %v41336_v22 = vand.u32 4294901760, %v10012_v42  ;;  %v10119_v61 = vsub.f32 %v41313_v53, %v10118_v34 }
 0x635   :  { %32158 = vmatmul.mubr.f32.gmra.mrb[4].mxu0 %v41028_v13  ;;  %v41315_v13 = vand.u32 4294901760, %v10006_v1 }
 0x636   :  { %32160 = vmatprep.mubr.f32.mxu0 %v41030_v8  ;;  %v10009_v8 = vsel %vm229_vm0, %v9981_v55, 0  ;;  %v41356_v24 = vsub.f32 %v10012_v42, %v41336_v22  ;;  %v10120_v25 = vand.u32 4294901760, %v10119_v61  ;;  %v9992_v61 = vld [vmem:[#allocation2 + $0x122] sm:$0xff] }
 0x637   :  { %v41334_v30 = vsub.f32 %v10006_v1, %v41315_v13 }
 0x638   :  { %v10158_v15 = vand.u32 4294901760, %v41356_v24 }
 0x639   :  { %32161 = vmatmul.mubr.f32.gmra.mrb[6].mxu0 %v41059_v51  ;;  %v41325_v51 = vsub.f32 %v10003_v20, %v41309_v0  ;;  %v10138_v48 = vand.u32 4294901760, %v41334_v30 }
 0x63a   :  { %32163 = vmatprep.mubr.f32.mxu0 %v41066_v44  ;;  %v41327_v44 = vand.u32 4294901760, %v10009_v8  ;;  %v10159_v46 = vsub.f32 %v41356_v24, %v10158_v15 }
 0x63b   :  { %v10139_v49 = vsub.f32 %v41334_v30, %v10138_v48 }
 0x63c   :  { %v41347_v28 = vsub.f32 %v10009_v8, %v41327_v44  ;;  %v10160_v26 = vand.u32 4294901760, %v10159_v46 }
 0x63d   :  { %32164 = vmatmul.mubr.f32.gmra.mrb[8].mxu0 %v41087_v23  ;;  %v9986_v23 = vld [vmem:[#allocation2 + $0xc2] sm:$0xff]  ;;  %v10140_v8 = vand.u32 4294901760, %v10139_v49  ;;  %v10039_v49 = vsel %vm229_vm0, %v9991_v27, 0 }
 0x63e   :  { %32166 = vmatprep.mubr.f32.mxu0 %v41092_v9  ;;  %v10128_v9 = vand.u32 4294901760, %v41325_v51  ;;  %v10148_v59 = vand.u32 4294901760, %v41347_v28 }
 0x640   :  { %v10129_v40 = vsub.f32 %v41325_v51, %v10128_v9  ;;  %v10149_v1 = vsub.f32 %v41347_v28, %v10148_v59 }
 0x641   :  { %32167 = vmatmul.mubr.f32.gmra.mrb[10].mxu0 %v41107_v31  ;;  %v10024_v31 = vsel %vm229_vm0, %v9986_v23, 0  ;;  %v10179_v23 = vsub.f32 %v41369_v58, %v10178_v56 }
 0x642   :  { %32169 = vmatprep.mubr.f32.mxu0 %v41113_v10  ;;  %v9987_v10 = vld [vmem:[#allocation2 + $0xd2] sm:$0xff]  ;;  %v41378_v2 = vand.u32 4294901760, %v10024_v31  ;;  %v10130_v20 = vand.u32 4294901760, %v10129_v40  ;;  %v41423_v40 = vsub.f32 %v10030_v19, %v41404_v21 }
 0x643   :  { %v10027_v35 = vsel %vm229_vm0, %v9987_v10, 0  ;;  %v10180_v33 = vand.u32 4294901760, %v10179_v23 }
 0x644   :  { %v41397_v55 = vsub.f32 %v10024_v31, %v41378_v2  ;;  %v41399_v60 = vand.u32 4294901760, %v10027_v35  ;;  %v10150_v31 = vand.u32 4294901760, %v10149_v1  ;;  %v46440_v46 = vand.u32 4294901760, %v41423_v40 }
 0x645   :  { %32170 = vmatmul.mubr.f32.gmra.mrb[12].mxu0 %v41129_v57  ;;  %v10295_v57 = vand.u32 4294901760, %v10294_v5 }
 0x646   :  { %32172 = vmatprep.mubr.f32.mxu0 %v41135_v16  ;;  %v41390_v16 = vsub.f32 %v10021_v52, %v41371_v47  ;;  %v46439_v5 = vand.u32 4294901760, %v41397_v55  ;;  %v41417_v38 = vsub.f32 %v10027_v35, %v41399_v60  ;;  %v35563_v35 = vpack.c.bf16 %v41273_v54, %v41271_v50 }
 0x647   :  { %v35559_v42 = vpack.c.bf16 %v10302_v7, %v10295_v57  ;;  %v10042_v57 = vsel %vm229_vm0, %v9992_v61, 0  ;;  %v9993_v7 = vld [vmem:[#allocation2 + $0x132] sm:$0xff]  ;;  %v35583_v50 = vpack.c.bf16 %v10300_v3, %v10293_v6 }
 0x648   :  { %v46442_v52 = vand.u32 4294901760, %v41390_v16  ;;  %v10199_v19 = vsub.f32 %v41397_v55, %v46439_v5  ;;  %v10045_v23 = vsel %vm229_vm0, %v9993_v7, 0  ;;  %v10219_v7 = vsub.f32 %v41423_v40, %v46440_v46 }
 0x649   :  { %32173 = vmatmul.mubr.f32.gmra.mrb[14].mxu0 %v41145_v32  ;;  %v10033_v32 = vsel %vm229_vm0, %v9989_v37, 0  ;;  %v10170_v37 = vand.u32 4294901760, %v10169_v63  ;;  %v41447_v63 = vand.u32 4294901760, %v10042_v57  ;;  %v46682_v54 = vand.u32 4294901760, %v41390_v16 }
 0x64a   :  { %32183 = vmatprep.mubr.f32.mxu0 %v10120_v25  ;;  %v41419_v10 = vand.u32 4294901760, %v10033_v32  ;;  %v41425_v25 = vand.u32 4294901760, %v10036_v36 }
 0x64c   :  { %v41439_v1 = vsub.f32 %v10033_v32, %v41419_v10  ;;  %v41445_v27 = vsub.f32 %v10036_v36, %v41425_v25  ;;  %v10200_v36 = vand.u32 4294901760, %v10199_v19  ;;  %v10220_v19 = vand.u32 4294901760, %v10219_v7 }
 0x64d   :  { %32184 = vmatmul.mubr.f32.vlgmr.msra.gmra.mrb[0].mxu0 %v10130_v20  ;;  %v46438_v20 = vand.u32 4294901760, %v41417_v38 }
 0x64e   :  { %35558 = vmatpush3.bf16.msra.mxu0 %v41295_v14  ;;  %32186 = vmatprep.mubr.f32.mxu0 %v10140_v8  ;;  %v10189_v14 = vsub.f32 %v41390_v16, %v46442_v52  ;;  %v41441_v8 = vand.u32 4294901760, %v10039_v49 }
 0x64f   :  { %35560 = vmatprep.subr.bf16.mxu0 %v35559_v42  ;;  %v10209_v32 = vsub.f32 %v41417_v38, %v46438_v20 }
 0x650   :  { %v10190_v61 = vand.u32 4294901760, %v10189_v14  ;;  %v10238_v14 = vand.u32 4294901760, %v41445_v27 }
 0x651   :  { %32187 = vmatmul.mubr.f32.gmra.mrb[2].mxu0 %v10150_v31  ;;  %v46441_v31 = vand.u32 4294901760, %v41439_v1  ;;  %v10210_v20 = vand.u32 4294901760, %v10209_v32 }
 0x652   :  { %32189 = vmatprep.mubr.f32.mxu0 %v10160_v26  ;;  %35562 = vmatpush3.bf16.msra.mxu0 %v35559_v42  ;;  %v41455_v42 = vsub.f32 %v10039_v49, %v41441_v8  ;;  %v41457_v26 = vand.u32 4294901760, %v10045_v23  ;;  %v10239_v46 = vsub.f32 %v41445_v27, %v10238_v14 }
 0x653   :  { %35564 = vmatprep.subr.bf16.mxu0 %v35563_v35  ;;  %v10229_v49 = vsub.f32 %v41439_v1, %v46441_v31 }
 0x654   :  { %v10248_v5 = vand.u32 4294901760, %v41455_v42  ;;  %v10240_v52 = vand.u32 4294901760, %v10239_v46  ;;  %v35567_v46 = vpack.c.bf16 %v41321_v45, %v41319_v4  ;;  %v46686_v4 = vand.u32 4294901760, %v41439_v1 }
 0x655   :  { %32190 = vmatmul.mubr.f32.gmra.mrb[4].mxu0 %v10170_v37  ;;  %v41464_v37 = vsub.f32 %v10042_v57, %v41447_v63 }
 0x656   :  { %32192 = vmatprep.mubr.f32.mxu0 %v10180_v33  ;;  %v41471_v33 = vsub.f32 %v10045_v23, %v41457_v26  ;;  %v10249_v32 = vsub.f32 %v41455_v42, %v10248_v5 }
 0x657   :  { %v10258_v57 = vand.u32 4294901760, %v41464_v37 }
 0x658   :  { %v10268_v31 = vand.u32 4294901760, %v41471_v33 }
 0x659   :  { %32193 = vmatmul.mubr.f32.gmra.mrb[6].mxu0 %v10190_v61  ;;  %v10230_v61 = vand.u32 4294901760, %v10229_v49  ;;  %v10259_v23 = vsub.f32 %v41464_v37, %v10258_v57 }
 0x65a   :  { %32195 = vmatprep.mubr.f32.mxu0 %v10200_v36  ;;  %v10250_v36 = vand.u32 4294901760, %v10249_v32  ;;  %v10269_v7 = vsub.f32 %v41471_v33, %v10268_v31 }
 0x65c   :  { %v10270_v49 = vand.u32 4294901760, %v10269_v7 }
 0x65d   :  { %32196 = vmatmul.mubr.f32.gmra.mrb[8].mxu0 %v10210_v20  ;;  %v10260_v20 = vand.u32 4294901760, %v10259_v23 }
 0x65e   :  { %32198 = vmatprep.mubr.f32.mxu0 %v10220_v19 }
 0x661   :  { %32199 = vmatmul.mubr.f32.gmra.mrb[10].mxu0 %v10230_v61 }
 0x662   :  { %32201 = vmatprep.mubr.f32.mxu0 %v10240_v52  ;;  %v35579_v52 = vpack.c.bf16 %v10286_v11, %v10279_v17  ;;  %v46683_v17 = vand.u32 4294901760, %v41397_v55  ;;  %v46684_v11 = vand.u32 4294901760, %v41417_v38 }
 0x665   :  { %32202 = vmatmul.mubr.f32.gmra.mrb[12].mxu0 %v10250_v36 }
 0x666   :  { %32204 = vmatprep.mubr.f32.mxu0 %v10260_v20 }
 0x669   :  { %32205 = vmatmul.mubr.f32.gmra.mrb[14].mxu0 %v10270_v49 }
 0x66a   :  { %32215 = vmatprep.mubr.f32.mxu0 %v41304_v39 }
 0x66d   :  { %32216 = vmatmul.mubr.f32.vlgmr.msra.gmra.mrb[0].mxu0 %v41309_v0 }
 0x66e   :  { %35566 = vmatpush3.bf16.msra.mxu0 %v35563_v35  ;;  %32218 = vmatprep.mubr.f32.mxu0 %v41315_v13 }
 0x66f   :  { %35568 = vmatprep.subr.bf16.mxu0 %v35567_v46 }
 0x671   :  { %32219 = vmatmul.mubr.f32.gmra.mrb[2].mxu0 %v41327_v44 }
 0x672   :  { %32221 = vmatprep.mubr.f32.mxu0 %v41336_v22  ;;  %35570 = vmatpush3.bf16.msra.mxu0 %v35567_v46 }
 0x673   :  { %35572 = vmatprep.subr.bf16.mxu0 %v41259_v18 }
 0x675   :  { %32222 = vmatmul.mubr.f32.gmra.mrb[4].mxu0 %v41340_v12 }
 0x676   :  { %32224 = vmatprep.mubr.f32.mxu0 %v41342_v62 }
 0x679   :  { %32225 = vmatmul.mubr.f32.gmra.mrb[6].mxu0 %v41371_v47 }
 0x67a   :  { %32227 = vmatprep.mubr.f32.mxu0 %v41378_v2 }
 0x67d   :  { %32228 = vmatmul.mubr.f32.gmra.mrb[8].mxu0 %v41399_v60 }
 0x67e   :  { %32230 = vmatprep.mubr.f32.mxu0 %v41404_v21 }
 0x681   :  { %32231 = vmatmul.mubr.f32.gmra.mrb[10].mxu0 %v41419_v10 }
 0x682   :  { %32233 = vmatprep.mubr.f32.mxu0 %v41425_v25 }
 0x685   :  { %32234 = vmatmul.mubr.f32.gmra.mrb[12].mxu0 %v41441_v8 }
 0x686   :  { %32236 = vmatprep.mubr.f32.mxu0 %v41447_v63 }
 0x689   :  { %32237 = vmatmul.mubr.f32.gmra.mrb[14].mxu0 %v41457_v26 }
 0x68a   :  { %32247 = vmatprep.mubr.f32.mxu0 %v41313_v53  ;;  %v46685_v53 = vand.u32 4294901760, %v41423_v40 }
 0x68d   :  { %32248 = vmatmul.mubr.f32.vlgmr.msra.gmra.mrb[0].mxu0 %v41325_v51 }
 0x68e   :  { %35574 = vmatpush3.bf16.msra.mxu0 %v41259_v18  ;;  %32250 = vmatprep.mubr.f32.mxu0 %v41334_v30 }
 0x68f   :  { %35576 = vmatprep.subr.bf16.mxu0 %v41289_v41 }
 0x691   :  { %32251 = vmatmul.mubr.f32.gmra.mrb[2].mxu0 %v41347_v28 }
 0x692   :  { %32253 = vmatprep.mubr.f32.mxu0 %v41356_v24  ;;  %35578 = vmatpush3.bf16.msra.mxu0 %v41289_v41 }
 0x693   :  { %35580 = vmatprep.subr.bf16.mxu0 %v35579_v52 }
 0x695   :  { %32254 = vmatmul.mubr.f32.gmra.mrb[4].mxu0 %v41366_v43 }
 0x696   :  { %32256 = vmatprep.mubr.f32.mxu0 %v41369_v58  ;;  %v46715_v58 = vmov 0 }
 0x699   :  { %32257 = vmatmul.mubr.f32.gmra.mrb[6].mxu0 %v41390_v16 }
 0x69a   :  { %32259 = vmatprep.mubr.f32.mxu0 %v41397_v55 }
 0x69d   :  { %32260 = vmatmul.mubr.f32.gmra.mrb[8].mxu0 %v41417_v38 }
 0x69e   :  { %32262 = vmatprep.mubr.f32.mxu0 %v41423_v40 }
 0x6a1   :  { %32263 = vmatmul.mubr.f32.gmra.mrb[10].mxu0 %v41439_v1 }
 0x6a2   :  { %32265 = vmatprep.mubr.f32.mxu0 %v41445_v27 }
 0x6a5   :  { %32266 = vmatmul.mubr.f32.gmra.mrb[12].mxu0 %v41455_v42  ;;  %v46447_v42 = vmov 0.0|0.0  }
 0x6a6   :  { %32268 = vmatprep.mubr.f32.mxu0 %v41464_v37  ;;  %35607 = vmatprep.subr.bf16.mxu1 %v46447_v42 }
 0x6a9   :  { %32269 = vmatmul.mubr.f32.gmra.mrb[14].mxu0 %v41471_v33 }
 0x6aa   :  { %32279 = vmatprep.mubr.f32.mxu0 %v10118_v34 }
 0x6ad   :  { %32280 = vmatmul.mubr.f32.vlgmr.msra.gmra.mrb[0].mxu0 %v10128_v9 }
 0x6ae   :  { %35582 = vmatpush3.bf16.msra.mxu0 %v35579_v52  ;;  %32282 = vmatprep.mubr.f32.mxu0 %v10138_v48 }
 0x6af   :  { %35584 = vmatprep.subr.bf16.mxu0 %v35583_v50 }
 0x6b1   :  { %32283 = vmatmul.mubr.f32.gmra.mrb[2].mxu0 %v10148_v59 }
 0x6b2   :  { %32285 = vmatprep.mubr.f32.mxu0 %v10158_v15  ;;  %35586 = vmatpush3.bf16.msra.mxu0 %v35583_v50 }
 0x6b3   :  { %35588 = vmatprep.subr.bf16.mxu0 %v41259_v18 }
 0x6b5   :  { %32286 = vmatmul.mubr.f32.gmra.mrb[4].mxu0 %v10168_v29 }
 0x6b6   :  { %32288 = vmatprep.mubr.f32.mxu0 %v10178_v56 }
 0x6b9   :  { %32289 = vmatmul.mubr.f32.gmra.mrb[6].mxu0 %v46682_v54 }
 0x6ba   :  { %32291 = vmatprep.mubr.f32.mxu0 %v46683_v17 }
 0x6bd   :  { %32292 = vmatmul.mubr.f32.gmra.mrb[8].mxu0 %v46684_v11 }
 0x6be   :  { %32294 = vmatprep.mubr.f32.mxu0 %v46685_v53 }
 0x6c1   :  { %32295 = vmatmul.mubr.f32.gmra.mrb[10].mxu0 %v46686_v4 }
 0x6c2   :  { %32297 = vmatprep.mubr.f32.mxu0 %v10238_v14 }
 0x6c5   :  { %32298 = vmatmul.mubr.f32.gmra.mrb[12].mxu0 %v10248_v5 }
 0x6c6   :  { %32300 = vmatprep.mubr.f32.mxu0 %v10258_v57 }
 0x6c9   :  { %32301 = vmatmul.mubr.f32.gmra.mrb[14].mxu0 %v10268_v31 }
 0x6ca   :  { %32311 = vmatprep.mubr.f32.mxu0 %v41304_v39 }
 0x6cd   :  { %32312 = vmatmul.mubr.f32.vlgmr.msra.gmra.mrb[0].mxu0 %v41309_v0 }
 0x6ce   :  { %35590 = vmatpush3.bf16.msra.mxu0 %v41259_v18  ;;  %32314 = vmatprep.mubr.f32.mxu0 %v41315_v13  ;;  %v46687_v18 = vmov 0.0  }
 0x6cf   :  { %35592 = vmatprep.subr.bf16.mxu0 %v41289_v41  ;;  %13779 = vst.msk [vmem:[#allocation3] sm:$0xff] %vm11193_vm3, %v46687_v18  ;;  %13782 = vst.msk [vmem:[#allocation3 + $0xa0] sm:$0xff] %vm11193_vm3, %v46687_v18  ;;  %32402 = vmatprep.mubr.msk.f32.mxu1 %vm38632_vm14, %v46687_v18 }
 0x6d0   :  { %13785 = vst.msk [vmem:[#allocation3 + $0x90] sm:$0xff] %vm11193_vm3, %v46687_v18  ;;  %13787 = vst.msk [vmem:[#allocation3 + $0x130] sm:$0xff] %vm11193_vm3, %v46687_v18 }
 0x6d1   :  { %32315 = vmatmul.mubr.f32.gmra.mrb[2].mxu0 %v41327_v44 }
 0x6d2   :  { %32317 = vmatprep.mubr.f32.mxu0 %v41336_v22  ;;  %35594 = vmatpush3.bf16.msra.mxu0 %v41289_v41  ;;  %v67_v41 = vlaneseq }
 0x6d3   :  { %35595 = vmatprep.subr.bf16.mxu0 %v46447_v42 }
 0x6d4   :  { %v41613_v51 = vand.u32 127, %v67_v41 }
 0x6d5   :  { %32318 = vmatmul.mubr.f32.gmra.mrb[4].mxu0 %v41340_v12 }
 0x6d6   :  { %32320 = vmatprep.mubr.f32.mxu0 %v41342_v62 }
 0x6d9   :  { %32321 = vmatmul.mubr.f32.gmra.mrb[6].mxu0 %v41371_v47 }
 0x6da   :  { %32323 = vmatprep.mubr.f32.mxu0 %v41378_v2 }
 0x6dd   :  { %32324 = vmatmul.mubr.f32.gmra.mrb[8].mxu0 %v41399_v60 }
 0x6de   :  { %32326 = vmatprep.mubr.f32.mxu0 %v41404_v21 }
 0x6e1   :  { %32327 = vmatmul.mubr.f32.gmra.mrb[10].mxu0 %v41419_v10 }
 0x6e2   :  { %32329 = vmatprep.mubr.f32.mxu0 %v41425_v25 }
 0x6e5   :  { %32330 = vmatmul.mubr.f32.gmra.mrb[12].mxu0 %v41441_v8 }
 0x6e6   :  { %32332 = vmatprep.mubr.f32.mxu0 %v41447_v63 }
 0x6e9   :  { %32333 = vmatmul.mubr.f32.gmra.mrb[14].mxu0 %v41457_v26 }
 0x6ea   :  { %32343 = vmatprep.mubr.f32.mxu0 %v41304_v39  ;;  %v41609_v39 = vshrl.u32 %v67_v41, 7 }
 0x6ec   :  { %v70_v30 = vadd.s32 16, %v41609_v39  ;;  %v73_v15 = vadd.s32 40, %v41609_v39  ;;  %v74_v1 = vadd.s32 48, %v41609_v39 }
 0x6ed   :  { %32344 = vmatmul.mubr.f32.vlgmr.msra.gmra.mrb[0].mxu0 %v41309_v0  ;;  %v69_v0 = vadd.s32 8, %v41609_v39 }
 0x6ee   :  { %32346 = vmatprep.mubr.f32.mxu0 %v41315_v13  ;;  %v80_v13 = vand.u32 7, %v41609_v39  ;;  %v94_v9 = vand.u32 7, %v70_v30  ;;  %v122_v37 = vand.u32 7, %v74_v1 }
 0x6ef   :  { %v87_v45 = vand.u32 7, %v69_v0 }
 0x6f0   :  { %vm41616_vm4 = vcmp.eq.s32.totalorder %v80_v13, %v41613_v51  ;;  %vm41640_vm6 = vcmp.eq.s32.totalorder %v94_v9, %v41613_v51  ;;  %vm41700_vm10 = vcmp.eq.s32.totalorder %v122_v37, %v41613_v51 }
 0x6f1   :  { %32347 = vmatmul.mubr.f32.gmra.mrb[2].mxu0 %v41327_v44  ;;  %vm41621_vm5 = vcmp.eq.s32.totalorder %v87_v45, %v41613_v51  ;;  %v27852_v6 = vsel %vm41616_vm4, 1.0, %v46687_v18  ;;  %v27858_v46 = vsel %vm41700_vm10, 1.0, %v46687_v18 }
 0x6f2   :  { %32349 = vmatprep.mubr.f32.mxu0 %v41336_v22  ;;  %v71_v22 = vadd.s32 24, %v41609_v39  ;;  %v27853_v3 = vsel %vm41621_vm5, 1.0, %v46687_v18  ;;  %v11361_v50 = vsub.f32 %v27858_v46, %v27858_v46  ;;  %vm41723_vm12 = vmpackc.low %vm41621_vm5, %vm41616_vm4  ;;  %vm13780_vm4 = vcmask 517120  }
 0x6f3   :  { %13781 = vst.msk [vmem:[#allocation3 + $0x8] sm:$0x3] %vm13780_vm4, %v46687_v18  ;;  %13783 = vst.msk [vmem:[#allocation3 + $0xa8] sm:$0x3] %vm13780_vm4, %v46687_v18  ;;  %vm13790_vm5 = vcmask 516096  }
 0x6f4   :  { %v101_v28 = vand.u32 7, %v71_v22  ;;  %v11362_v53 = vand.u32 4294901760, %v11361_v50  ;;  %13786 = vst.msk [vmem:[#allocation3 + $0x98] sm:$0x3] %vm13780_vm4, %v46687_v18  ;;  %13788 = vst.msk [vmem:[#allocation3 + $0x138] sm:$0x3] %vm13780_vm4, %v46687_v18 }
 0x6f5   :  { %32350 = vmatmul.mubr.f32.gmra.mrb[4].mxu0 %v41340_v12  ;;  %v41633_v12 = vsub.f32 %v27852_v6, %v27852_v6  ;;  %v46445_v6 = vmov 1.0|1.0   ;;  %13791 = vst.msk [vmem:[#allocation3 + $0x10] sm:$0x1] %vm13790_vm5, %v46687_v18  ;;  %13792 = vst.msk [vmem:[#allocation3 + $0x20] sm:$0x1] %vm13790_vm5, %v46687_v18 }
 0x6f6   :  { %32352 = vmatprep.mubr.f32.mxu0 %v41342_v62  ;;  %v41635_v62 = vsub.f32 %v27853_v3, %v27853_v3  ;;  %vm41645_vm7 = vcmp.eq.s32.totalorder %v101_v28, %v41613_v51  ;;  %v11363_v13 = vsub.f32 %v11361_v50, %v11362_v53  ;;  %35597 = vmatpush3.bf16.msk.msra.mxu0 %vm41723_vm12, %v46445_v6 }
 0x6f7   :  { %v11320_v48 = vand.u32 4294901760, %v41633_v12  ;;  %v27855_v59 = vsel %vm41645_vm7, 1.0, %v46687_v18  ;;  %vm41736_vm13 = vmpackc.low %vm41645_vm7, %vm41640_vm6  ;;  %35598 = vmatprep.subr.bf16.mxu0 %v46447_v42  ;;  %13793 = vst.msk [vmem:[#allocation3 + $0x30] sm:$0x1] %vm13790_vm5, %v46687_v18 }
 0x6f8   :  { %v11327_v24 = vand.u32 4294901760, %v41635_v62  ;;  %v41665_v55 = vsub.f32 %v27855_v59, %v27855_v59  ;;  %v11364_v3 = vand.u32 4294901760, %v11363_v13  ;;  %v41764_v43 = vpack.c.bf16 %v41635_v62, %v41633_v12  ;;  %13794 = vst.msk [vmem:[#allocation3 + $0x40] sm:$0x1] %vm13790_vm5, %v46687_v18  ;;  %13795 = vst.msk [vmem:[#allocation3 + $0x50] sm:$0x1] %vm13790_vm5, %v46687_v18 }
 0x6f9   :  { %32353 = vmatmul.mubr.f32.gmra.mrb[6].mxu0 %v41371_v47  ;;  %v27854_v47 = vsel %vm41640_vm6, 1.0, %v46687_v18  ;;  %v11321_v29 = vsub.f32 %v41633_v12, %v11320_v48  ;;  %13796 = vst.msk [vmem:[#allocation3 + $0x60] sm:$0x1] %vm13790_vm5, %v46687_v18  ;;  %13797 = vst.msk [vmem:[#allocation3 + $0x70] sm:$0x1] %vm13790_vm5, %v46687_v18 }
 0x6fa   :  { %32355 = vmatprep.mubr.f32.mxu0 %v41378_v2  ;;  %v72_v2 = vadd.s32 32, %v41609_v39  ;;  %v11328_v56 = vsub.f32 %v41635_v62, %v11327_v24  ;;  %v41663_v16 = vsub.f32 %v27854_v47, %v27854_v47  ;;  %v11341_v40 = vand.u32 4294901760, %v41665_v55  ;;  %35600 = vmatpush3.bf16.msk.msra.mxu0 %vm41736_vm13, %v46445_v6  ;;  %46714 = vst [vmem:[#allocation15_spill] sm:$0xff] %v41764_v43 }
 0x6fb   :  { %v11322_v5 = vand.u32 4294901760, %v11321_v29  ;;  %35601 = vmatprep.subr.bf16.mxu0 %v46447_v42  ;;  %13798 = vst.msk [vmem:[#allocation3 + $0x80] sm:$0x1] %vm13790_vm5, %v46687_v18  ;;  %13799 = vst.msk [vmem:[#allocation3 + $0xb0] sm:$0x1] %vm13790_vm5, %v46687_v18 }
 0x6fc   :  { %v11329_v38 = vand.u32 4294901760, %v11328_v56  ;;  %v11342_v31 = vsub.f32 %v41665_v55, %v11341_v40  ;;  %v41781_v47 = vpack.c.bf16 %v41665_v55, %v41663_v16  ;;  %13800 = vst.msk [vmem:[#allocation3 + $0xc0] sm:$0x1] %vm13790_vm5, %v46687_v18  ;;  %13801 = vst.msk [vmem:[#allocation3 + $0xd0] sm:$0x1] %vm13790_vm5, %v46687_v18 }
 0x6fd   :  { %32356 = vmatmul.mubr.f32.gmra.mrb[8].mxu0 %v41399_v60  ;;  %v108_v60 = vand.u32 7, %v72_v2  ;;  %13802 = vst.msk [vmem:[#allocation3 + $0xe0] sm:$0x1] %vm13790_vm5, %v46687_v18  ;;  %13803 = vst.msk [vmem:[#allocation3 + $0xf0] sm:$0x1] %vm13790_vm5, %v46687_v18 }
 0x6fe   :  { %32358 = vmatprep.mubr.f32.mxu0 %v41404_v21  ;;  %v115_v21 = vand.u32 7, %v73_v15  ;;  %v41681_v27 = vpack.c.bf16 %v11329_v38, %v11322_v5  ;;  %v11343_v57 = vand.u32 4294901760, %v11342_v31  ;;  %46718 = vst [vmem:[#allocation17_spill] sm:$0xff] %v41781_v47  ;;  %v41795_v15 = vpack.c.bf16 %v11327_v24, %v11320_v48  ;;  %13804 = vst.msk [vmem:[#allocation3 + $0x100] sm:$0x1] %vm13790_vm5, %v46687_v18 }
 0x6ff   :  { %vm41670_vm8 = vcmp.eq.s32.totalorder %v108_v60, %v41613_v51  ;;  %13805 = vst.msk [vmem:[#allocation3 + $0x110] sm:$0x1] %vm13790_vm5, %v46687_v18  ;;  %13806 = vst.msk [vmem:[#allocation3 + $0x120] sm:$0x1] %vm13790_vm5, %v46687_v18 }
 0x700   :  { %vm41675_vm9 = vcmp.eq.s32.totalorder %v115_v21, %v41613_v51  ;;  %46700 = vst [vmem:[#allocation11_spill] sm:$0xff] %v41681_v27  ;;  %35609 = vmatpush3.bf16.msra.mxu1 %v41681_v27  ;;  %46721 = vst [vmem:[#allocation20_spill] sm:$0xff] %v41795_v15 }
 0x701   :  { %32359 = vmatmul.mubr.f32.gmra.mrb[10].mxu0 %v41419_v10  ;;  %v11334_v10 = vand.u32 4294901760, %v41663_v16  ;;  %v27857_v14 = vsel %vm41675_vm9, 1.0, %v46687_v18  ;;  %35610 = vmatprep.subr.bf16.mxu1 %v46447_v42  ;;  %vm41756_vm15 = vmpackc.low %vm41675_vm9, %vm41670_vm8  ;;  %13807 = vst.msk [vmem:[#allocation3 + $0x19] sm:$0x1] %vm13790_vm5, %v46687_v18 }
 0x702   :  { %32361 = vmatprep.mubr.f32.mxu0 %v41425_v25  ;;  %v11354_v32 = vsub.f32 %v27857_v14, %v27857_v14  ;;  %35603 = vmatpush3.bf16.msk.msra.mxu0 %vm41756_vm15, %v46445_v6  ;;  %13808 = vst.msk [vmem:[#allocation3 + $0x29] sm:$0x1] %vm13790_vm5, %v46687_v18  ;;  %13809 = vst.msk [vmem:[#allocation3 + $0x39] sm:$0x1] %vm13790_vm5, %v46687_v18 }
 0x703   :  { %35604 = vmatprep.subr.bf16.mxu0 %v46447_v42  ;;  %v41801_v29 = vpack.c.bf16 %v11341_v40, %v11334_v10  ;;  %13810 = vst.msk [vmem:[#allocation3 + $0x49] sm:$0x1] %vm13790_vm5, %v46687_v18  ;;  %13811 = vst.msk [vmem:[#allocation3 + $0x59] sm:$0x1] %vm13790_vm5, %v46687_v18 }
 0x704   :  { %v11355_v49 = vand.u32 4294901760, %v11354_v32  ;;  %13812 = vst.msk [vmem:[#allocation3 + $0x69] sm:$0x1] %vm13790_vm5, %v46687_v18  ;;  %13813 = vst.msk [vmem:[#allocation3 + $0x79] sm:$0x1] %vm13790_vm5, %v46687_v18 }
 0x705   :  { %32362 = vmatmul.mubr.f32.gmra.mrb[12].mxu0 %v41441_v8  ;;  %v75_v8 = vadd.s32 56, %v41609_v39  ;;  %46722 = vst [vmem:[#allocation21_spill] sm:$0xff] %v41801_v29  ;;  %13814 = vst.msk [vmem:[#allocation3 + $0x89] sm:$0x1] %vm13790_vm5, %v46687_v18 }
 0x706   :  { %32364 = vmatprep.mubr.f32.mxu0 %v41447_v63  ;;  %v11335_v63 = vsub.f32 %v41663_v16, %v11334_v10  ;;  %v11356_v17 = vsub.f32 %v11354_v32, %v11355_v49  ;;  %13815 = vst.msk [vmem:[#allocation3 + $0xb9] sm:$0x1] %vm13790_vm5, %v46687_v18  ;;  %13816 = vst.msk [vmem:[#allocation3 + $0xc9] sm:$0x1] %vm13790_vm5, %v46687_v18 }
 0x707   :  { %v129_v33 = vand.u32 7, %v75_v8  ;;  %13817 = vst.msk [vmem:[#allocation3 + $0xd9] sm:$0x1] %vm13790_vm5, %v46687_v18  ;;  %13818 = vst.msk [vmem:[#allocation3 + $0xe9] sm:$0x1] %vm13790_vm5, %v46687_v18 }
 0x708   :  { %v11336_v19 = vand.u32 4294901760, %v11335_v63  ;;  %v11357_v41 = vand.u32 4294901760, %v11356_v17  ;;  %13819 = vst.msk [vmem:[#allocation3 + $0xf9] sm:$0x1] %vm13790_vm5, %v46687_v18  ;;  %13820 = vst.msk [vmem:[#allocation3 + $0x109] sm:$0x1] %vm13790_vm5, %v46687_v18 }
 0x709   :  { %32365 = vmatmul.mubr.f32.gmra.mrb[14].mxu0 %v41457_v26  ;;  %v27856_v26 = vsel %vm41670_vm8, 1.0, %v46687_v18  ;;  %vm41705_vm11 = vcmp.eq.s32.totalorder %v129_v33, %v41613_v51  ;;  %13821 = vst.msk [vmem:[#allocation3 + $0x119] sm:$0x1] %vm13790_vm5, %v46687_v18  ;;  %13822 = vst.msk [vmem:[#allocation3 + $0x129] sm:$0x1] %vm13790_vm5, %v46687_v18 }
 0x70a   :  { %v11347_v61 = vsub.f32 %v27856_v26, %v27856_v26  ;;  %v41709_v7 = vpack.c.bf16 %v11343_v57, %v11336_v19  ;;  %v27859_v52 = vsel %vm41705_vm11, 1.0, %v46687_v18  ;;  %32383 = vmatprep.mubr.msk.f32.mxu0 %vm38632_vm14, %v46687_v18  ;;  %vm41774_vm0 = vmpackc.low %vm41705_vm11, %vm41700_vm10 }
 0x70b   :  { %v11368_v11 = vsub.f32 %v27859_v52, %v27859_v52  ;;  %v46716_v58 = vsel %vm41774_vm0, 4294967295, %v46715_v58  ;;  %35606 = vmatpush3.bf16.msk.msra.mxu0 %vm41774_vm0, %v46445_v6 }
 0x70c   :  { %46705 = vst [vmem:[#allocation12_spill] sm:$0xff] %v41709_v7  ;;  %v11348_v20 = vand.u32 4294901760, %v11347_v61  ;;  %35612 = vmatpush3.bf16.msra.mxu1 %v41709_v7  ;;  %46717 = vst [vmem:[#allocation16_spill] sm:$0xff] %v46716_v58  ;;  %32481 = vmatprep.subr.mxu0 %v46687_v18  ;;  %v41787_v59 = vpack.c.bf16 %v11354_v32, %v11347_v61 }
 0x70d   :  { %35613 = vmatprep.subr.bf16.mxu1 %v46447_v42  ;;  %v11369_v0 = vand.u32 4294901760, %v11368_v11  ;;  %v41789_v2 = vpack.c.bf16 %v11368_v11, %v11361_v50 }
 0x70e   :  { %v11349_v54 = vsub.f32 %v11347_v61, %v11348_v20  ;;  %46719 = vst [vmem:[#allocation18_spill] sm:$0xff] %v41787_v59  ;;  %v41803_v56 = vpack.c.bf16 %v11355_v49, %v11348_v20 }
 0x70f   :  { %v11370_v22 = vsub.f32 %v11368_v11, %v11369_v0  ;;  %46720 = vst [vmem:[#allocation19_spill] sm:$0xff] %v41789_v2  ;;  %v41805_v60 = vpack.c.bf16 %v11369_v0, %v11362_v53 }
 0x710   :  { %v11350_v4 = vand.u32 4294901760, %v11349_v54  ;;  %46723 = vst [vmem:[#allocation22_spill] sm:$0xff] %v41803_v56 }
 0x711   :  { %v11371_v34 = vand.u32 4294901760, %v11370_v22  ;;  %46724 = vst [vmem:[#allocation23_spill] sm:$0xff] %v41805_v60 }
 0x712   :  { %v41727_v30 = vpack.c.bf16 %v11357_v41, %v11350_v4 }
 0x713   :  { %v41745_v9 = vpack.c.bf16 %v11371_v34, %v11364_v3 }
 0x714   :  { %46708 = vst [vmem:[#allocation13_spill] sm:$0xff] %v41727_v30  ;;  %35615 = vmatpush3.bf16.msra.mxu1 %v41727_v30 }
 0x715   :  { %35616 = vmatprep.subr.bf16.mxu1 %v46447_v42  ;;  %46711 = vst [vmem:[#allocation14_spill] sm:$0xff] %v41745_v9 }
 0x718   :  { %35618 = vmatpush3.bf16.msra.mxu1 %v41745_v9 }
 0x719   :  { %35619 = vmatprep.subr.bf16.mxu1 %v46447_v42 }
 0x7c0   :  { %v41807_v21 = vpop.f32.mrb[0].mxu0 }
 0x7c1   :  { %v11195_v5 = vsel %vm11193_vm3, %v41807_v21, 0.0  ;;  %v41811_v12 = vpop.f32.mrb[1].mxu0 }
 0x7c2   :  { %v11194_v62 = vsel %vm11193_vm3, %v41811_v12, 0.0 }
 0x7c3   :  { %v11196_v48 = vadd.f32 %v11195_v5, %v11194_v62 }
 0x7c4   :  { %v41815_v24 = vpop.f32.mrb[2].mxu0 }
 0x7c5   :  { %v41817_v16 = vpop.f32.mrb[3].mxu0  ;;  %v11199_v10 = vsel %vm11193_vm3, %v41815_v24, 0.0 }
 0x7c6   :  { %v11197_v55 = vsel %vm11193_vm3, %v41817_v16, 0.0 }
 0x7c7   :  { %v11198_v38 = vadd.f32 %v11197_v55, %v11196_v48 }
 0x7c8   :  { %v41823_v40 = vpop.f32.mrb[4].mxu0 }
 0x7c9   :  { %v41825_v25 = vpop.f32.mrb[5].mxu0  ;;  %v11200_v35 = vadd.f32 %v11199_v10, %v11198_v38  ;;  %v11203_v63 = vsel %vm11193_vm3, %v41823_v40, 0.0 }
 0x7ca   :  { %v11201_v1 = vsel %vm11193_vm3, %v41825_v25, 0.0 }
 0x7cb   :  { %v11202_v8 = vadd.f32 %v11201_v1, %v11200_v35 }
 0x7cc   :  { %v41831_v31 = vpop.f32.mrb[6].mxu0 }
 0x7cd   :  { %v41833_v26 = vpop.f32.mrb[7].mxu0  ;;  %v11204_v14 = vadd.f32 %v11203_v63, %v11202_v8  ;;  %v11207_v19 = vsel %vm11193_vm3, %v41831_v31, 0.0 }
 0x7ce   :  { %v11205_v37 = vsel %vm11193_vm3, %v41833_v26, 0.0 }
 0x7cf   :  { %v11206_v33 = vadd.f32 %v11205_v37, %v11204_v14 }
 0x7d0   :  { %v41839_v57 = vpop.f32.mrb[8].mxu0 }
 0x7d1   :  { %v41841_v61 = vpop.f32.mrb[9].mxu0  ;;  %v11208_v32 = vadd.f32 %v11207_v19, %v11206_v33  ;;  %v11211_v20 = vsel %vm11193_vm3, %v41839_v57, 0.0 }
 0x7d2   :  { %v11209_v23 = vsel %vm11193_vm3, %v41841_v61, 0.0 }
 0x7d3   :  { %v11210_v36 = vadd.f32 %v11209_v23, %v11208_v32 }
 0x7d4   :  { %v41847_v49 = vpop.f32.mrb[10].mxu0 }
 0x7d5   :  { %v41849_v46 = vpop.f32.mrb[11].mxu0  ;;  %v11212_v52 = vadd.f32 %v11211_v20, %v11210_v36  ;;  %v11215_v17 = vsel %vm11193_vm3, %v41847_v49, 0.0  ;;  %v202_v36 = vand.u32 7, %v41613_v51  ;;  %v46725_v20 = vmov 0 }
 0x7d6   :  { %v11213_v50 = vsel %vm11193_vm3, %v41849_v46, 0.0  ;;  %v46443_v51 = vmov 1.0  }
 0x7d7   :  { %v11214_v54 = vadd.f32 %v11213_v50, %v11212_v52  ;;  %vm41934_vm1 = vcmp.eq.s32.totalorder %v41609_v39, %v202_v36 }
 0x7d8   :  { %v41855_v11 = vpop.f32.mrb[12].mxu0  ;;  %v46726_v20 = vsel %vm41934_vm1, 4294967295, %v46725_v20  ;;  %v27860_v52 = vsel %vm41934_vm1, 1.0, %v46687_v18 }
 0x7d9   :  { %v41857_v53 = vpop.f32.mrb[13].mxu0  ;;  %v11216_v4 = vadd.f32 %v11215_v17, %v11214_v54  ;;  %v11219_v13 = vsel %vm11193_vm3, %v41855_v11, 0.0  ;;  %46727 = vst [vmem:[#allocation24_spill] sm:$0xff] %v46726_v20  ;;  %v41941_v50 = vsub.f32 %v27860_v52, %v27860_v52 }
 0x7da   :  { %v11217_v41 = vsel %vm11193_vm3, %v41857_v53, 0.0 }
 0x7db   :  { %v11218_v0 = vadd.f32 %v11217_v41, %v11216_v4  ;;  %46728 = vst [vmem:[#allocation25_spill] sm:$0xff] %v41941_v50  ;;  %v41944_v54 = vand.u32 4294901760, %v41941_v50 }
 0x7dc   :  { %v41863_v22 = vpop.f32.mrb[14].mxu0 }
 0x7dd   :  { %v41865_v3 = vpop.f32.mrb[15].mxu0  ;;  %v11220_v34 = vadd.f32 %v11219_v13, %v11218_v0  ;;  %v11223_v48 = vsel %vm11193_vm3, %v41863_v22, 0.0  ;;  %46729 = vst [vmem:[#allocation26_spill] sm:$0xff] %v41944_v54  ;;  %v11856_v17 = vsub.f32 %v41941_v50, %v41944_v54 }
 0x7de   :  { %v11221_v5 = vsel %vm11193_vm3, %v41865_v3, 0.0 }
 0x7df   :  { %v11222_v62 = vadd.f32 %v11221_v5, %v11220_v34  ;;  %v41948_v4 = vand.u32 4294901760, %v11856_v17 }
 0x7e1   :  { %v11224_v55 = vadd.f32 %v11223_v48, %v11222_v62  ;;  %46730 = vst [vmem:[#allocation27_spill] sm:$0xff] %v41948_v4 }
 0x7e3   :  { %v11225_v38 = vrot.slane %v11224_v55, 4 }
 0x7e5   :  { %v11226_v10 = vadd.f32 %v11225_v38, %v11224_v55 }
 0x7e7   :  { %v11227_v35 = vrot.slane %v11226_v10, 2 }
 0x7e9   :  { %v11228_v1 = vadd.f32 %v11227_v35, %v11226_v10 }
 0x7eb   :  { %v11229_v8 = vrot.slane %v11228_v1, 1 }
 0x7ed   :  { %v11230_v63 = vadd.f32 %v11229_v8, %v11228_v1 }
 0x7ef   :  { %v11232_v14 = vsel %vm11193_vm3, %v11230_v63, 0 }
 0x7f0   :  { %v11307_v37 = vand.u32 4294901760, %v11232_v14 }
 0x7f2   :  { %v11308_v33 = vsub.f32 %v11232_v14, %v11307_v37  ;;  %32403 = vmatmul.mubr.f32.vlgmr.msra.gmra.mrb[0].mxu1 %v11307_v37  ;;  %v42006_v14 = vsub.s32 0, %v41609_v39 }
 0x7f3   :  { %35621 = vmatpush3.bf16.msra.mxu1 %v41764_v43  ;;  %32421 = vmatprep.mubr.msk.f32.mxu1 %vm38632_vm14, %v46687_v18 }
 0x7f4   :  { %v11309_v19 = vand.u32 4294901760, %v11308_v33  ;;  %35622 = vmatprep.subr.bf16.mxu1 %v46447_v42  ;;  %46731 = vst [vmem:[#allocation28_spill] sm:$0xff] %v42006_v14 }
 0x7f6   :  { %v11310_v32 = vsub.f32 %v11308_v33, %v11309_v19 }
 0x7f7   :  { %35624 = vmatpush3.bf16.msra.mxu1 %v41781_v47 }
 0x7f8   :  { %35625 = vmatprep.subr.bf16.mxu1 %v46447_v42  ;;  %v11311_v23 = vand.u32 4294901760, %v11310_v32 }
 0x7fa   :  { %32384 = vmatmul.mubr.f32.vlgmr.msra.gmra.mrb[16].mxu0 %v11311_v23 }
 0x7fb   :  { %35627 = vmatpush3.bf16.msra.mxu1 %v41787_v59  ;;  %32483 = vmatprep.mubr.msk.f32.mxu0 %vm38632_vm14, %v46687_v18 }
 0x7fc   :  { %35628 = vmatprep.subr.bf16.mxu1 %v46447_v42  ;;  %32482 = vmatpush3.msk.msra.mxu0 %vm41934_vm1, %v46443_v51 }
 0x7fd   :  { %36615 = vmatprep.subr.bf16.mxu0 %v46447_v42 }
 0x7ff   :  { %35630 = vmatpush3.bf16.msra.mxu1 %v41789_v2 }
 0x800   :  { %35631 = vmatprep.subr.bf16.mxu1 %v46447_v42 }
 0x802   :  { %32422 = vmatmul.mubr.f32.vlgmr.msra.gmra.mrb[0].mxu1 %v11308_v33 }
 0x803   :  { %35633 = vmatpush3.bf16.msk.msra.mxu1 %vm41723_vm12, %v46445_v6  ;;  %32440 = vmatprep.mubr.msk.f32.mxu1 %vm38632_vm14, %v46687_v18 }
 0x804   :  { %35634 = vmatprep.subr.bf16.mxu1 %v46447_v42 }
 0x807   :  { %35636 = vmatpush3.bf16.msk.msra.mxu1 %vm41736_vm13, %v46445_v6 }
 0x808   :  { %35637 = vmatprep.subr.bf16.mxu1 %v46447_v42 }
 0x80b   :  { %35639 = vmatpush3.bf16.msk.msra.mxu1 %vm41756_vm15, %v46445_v6 }
 0x80c   :  { %35640 = vmatprep.subr.bf16.mxu1 %v46447_v42 }
 0x80f   :  { %35642 = vmatpush3.bf16.msk.msra.mxu1 %vm41774_vm0, %v46445_v6 }
 0x810   :  { %35643 = vmatprep.subr.bf16.mxu1 %v46447_v42 }
 0x812   :  { %32441 = vmatmul.mubr.f32.vlgmr.msra.gmra.mrb[0].mxu1 %v11309_v19 }
 0x813   :  { %35645 = vmatpush3.bf16.msra.mxu1 %v41795_v15  ;;  %32459 = vmatprep.mubr.msk.f32.mxu1 %vm38632_vm14, %v46687_v18 }
 0x814   :  { %35646 = vmatprep.subr.bf16.mxu1 %v46447_v42 }
 0x817   :  { %35648 = vmatpush3.bf16.msra.mxu1 %v41801_v29 }
 0x818   :  { %35649 = vmatprep.subr.bf16.mxu1 %v46447_v42 }
 0x81b   :  { %35651 = vmatpush3.bf16.msra.mxu1 %v41803_v56 }
 0x81c   :  { %35652 = vmatprep.subr.bf16.mxu1 %v46447_v42 }
 0x81f   :  { %35654 = vmatpush3.bf16.msra.mxu1 %v41805_v60 }
 0x820   :  { %35655 = vmatprep.subr.bf16.mxu1 %v46447_v42 }
 0x822   :  { %32460 = vmatmul.mubr.f32.vlgmr.msra.gmra.mrb[0].mxu1 %v11307_v37 }
 0x823   :  { %35657 = vmatpush3.bf16.msk.msra.mxu1 %vm41723_vm12, %v46445_v6  ;;  %32478 = vmatprep.mubr.msk.f32.mxu1 %vm38632_vm14, %v46687_v18 }
 0x824   :  { %35658 = vmatprep.subr.bf16.mxu1 %v46447_v42 }
 0x827   :  { %35660 = vmatpush3.bf16.msk.msra.mxu1 %vm41736_vm13, %v46445_v6 }
 0x828   :  { %35661 = vmatprep.subr.bf16.mxu1 %v46447_v42 }
 0x82b   :  { %35663 = vmatpush3.bf16.msk.msra.mxu1 %vm41756_vm15, %v46445_v6 }
 0x82c   :  { %35664 = vmatprep.subr.bf16.mxu1 %v46447_v42 }
 0x82f   :  { %35666 = vmatpush3.bf16.msk.msra.mxu1 %vm41774_vm0, %v46445_v6 }
 0x830   :  { %32486 = vmatprep.subr.mxu1 %v46687_v18 }
 0x832   :  { %32479 = vmatmul.mubr.f32.vlgmr.msra.gmra.mrb[0].mxu1 %v11307_v37 }
 0x833   :  { %32488 = vmatprep.mubr.msk.f32.mxu1 %vm38632_vm14, %v46687_v18  ;;  %32487 = vmatpush3.msra.mxu1 %v41948_v4 }
 0x834   :  { %32491 = vmatprep.subr.mxu1 %v46687_v18 }
 0x8cd   :  { %v11313_v41 = vpop.f32.mrb[16].mxu0 }
 0x8ce   :  { %v32385_v0 = vpop.f32.mrb[17].mxu0 }
 0x905   :  { %v11767_v13 = vpop.f32.mrb[0].mxu1 }
 0x906   :  { %v36747_v34 = vadd.f32 %v11767_v13, %v11313_v41  ;;  %v32480_v5 = vpop.f32.mrb[1].mxu1 }
 0x908   :  { %v11771_v62 = vmul.f32 0.0009765625, %v36747_v34 }
 0x90a   :  { %v11774_v48 = vsel %vm11772_vm2, %v11771_v62, 0 }
 0x90b   :  { %v11842_v55 = vand.u32 4294901760, %v11774_v48 }
 0x90d   :  { %v11843_v38 = vsub.f32 %v11774_v48, %v11842_v55  ;;  %32489 = vmatmul.mubr.f32.vlgmr.msra.gmra.mrb[2].mxu1 %v11842_v55 }
 0x90e   :  { %32492 = vmatpush3.msra.mxu1 %v41941_v50  ;;  %32493 = vmatprep.mubr.msk.f32.mxu1 %vm38632_vm14, %v46687_v18 }
 0x90f   :  { %v11844_v10 = vand.u32 4294901760, %v11843_v38  ;;  %32496 = vmatprep.subr.mxu1 %v46687_v18 }
 0x911   :  { %v11845_v35 = vsub.f32 %v11843_v38, %v11844_v10 }
 0x913   :  { %v11846_v1 = vand.u32 4294901760, %v11845_v35 }
 0x915   :  { %32484 = vmatmul.mubr.f32.vlgmr.msra.gmra.mrb[18].mxu0 %v11846_v1  ;;  %32494 = vmatmul.mubr.f32.vlgmr.msra.gmra.mrb[2].mxu1 %v11843_v38 }
 0x916   :  { %32497 = vmatpush3.msk.msra.mxu1 %vm41934_vm1, %v46443_v51  ;;  %32498 = vmatprep.mubr.msk.f32.mxu1 %vm38632_vm14, %v46687_v18 }
 0x917   :  { %32501 = vmatprep.subr.mxu1 %v46687_v18  ;;  %36617 = vmatpush3.bf16.msra.mxu0 %v41681_v27 }
 0x918   :  { %36618 = vmatprep.subr.bf16.mxu0 %v46447_v42  ;;  %34880 = vmatprep.mubr.msk.f32.mxu0 %vm38632_vm14, %v46687_v18 }
 0x91b   :  { %36620 = vmatpush3.bf16.msra.mxu0 %v41709_v7 }
 0x91c   :  { %36621 = vmatprep.subr.bf16.mxu0 %v46447_v42 }
 0x91d   :  { %32499 = vmatmul.mubr.f32.vlgmr.msra.gmra.mrb[2].mxu1 %v11844_v10 }
 0x91e   :  { %32502 = vmatpush3.msra.mxu1 %v41944_v54  ;;  %32503 = vmatprep.mubr.msk.f32.mxu1 %vm38632_vm14, %v46687_v18 }
 0x91f   :  { %32506 = vmatprep.subr.mxu1 %v46687_v18  ;;  %36623 = vmatpush3.bf16.msra.mxu0 %v41727_v30 }
 0x920   :  { %36624 = vmatprep.subr.bf16.mxu0 %v46447_v42 }
 0x923   :  { %36626 = vmatpush3.bf16.msra.mxu0 %v41745_v9 }
 0x924   :  { %36627 = vmatprep.subr.bf16.mxu0 %v46447_v42 }
 0x925   :  { %32504 = vmatmul.mubr.f32.vlgmr.msra.gmra.mrb[2].mxu1 %v11842_v55 }
 0x926   :  { %32507 = vmatpush3.msk.msra.mxu1 %vm41934_vm1, %v46443_v51  ;;  %32508 = vmatprep.mubr.msk.f32.mxu1 %vm38632_vm14, %v46687_v18 }
 0x927   :  { %35667 = vmatprep.subr.bf16.mxu1 %v46447_v42 }
 0x92d   :  { %32509 = vmatmul.mubr.f32.vlgmr.msra.gmra.mrb[2].mxu1 %v11842_v55 }
 0x92e   :  { %35669 = vmatpush3.bf16.msk.msra.mxu1 %vm41723_vm12, %v46445_v6  ;;  %32527 = vmatprep.mubr.msk.f32.mxu1 %vm38632_vm14, %v46687_v18 }
 0x92f   :  { %35670 = vmatprep.subr.bf16.mxu1 %v46447_v42 }
 0x932   :  { %35672 = vmatpush3.bf16.msk.msra.mxu1 %vm41736_vm13, %v46445_v6 }
 0x933   :  { %35673 = vmatprep.subr.bf16.mxu1 %v46447_v42 }
 0x936   :  { %35675 = vmatpush3.bf16.msk.msra.mxu1 %vm41756_vm15, %v46445_v6 }
 0x937   :  { %35676 = vmatprep.subr.bf16.mxu1 %v46447_v42 }
 0x93a   :  { %35678 = vmatpush3.bf16.msk.msra.mxu1 %vm41774_vm0, %v46445_v6 }
 0x93b   :  { %35679 = vmatprep.subr.bf16.mxu1 %v46447_v42 }
 0x9e8   :  { %v11848_v8 = vpop.f32.mrb[18].mxu0 }
 0x9e9   :  { %v32485_v63 = vpop.f32.mrb[19].mxu0 }
 0xa00   :  { %v12218_v37 = vpop.f32.mrb[2].mxu1 }
 0xa01   :  { %v36748_v33 = vadd.f32 %v12218_v37, %v11848_v8  ;;  %v32510_v19 = vpop.f32.mrb[3].mxu1 }
 0xa03   :  { %v12225_v32 = vrot.slane %v36748_v33, %v42006_v14 }
 0xa05   :  { %v42010_v23 = vsub.f32 %v41811_v12, %v12225_v32  ;;  %v42013_v36 = vsub.f32 %v41807_v21, %v12225_v32  ;;  %v42016_v52 = vsub.f32 %v41817_v16, %v12225_v32  ;;  %v42019_v17 = vsub.f32 %v41815_v24, %v12225_v32 }
 0xa06   :  { %v42022_v39 = vsub.f32 %v41825_v25, %v12225_v32  ;;  %v42025_v41 = vsub.f32 %v41823_v40, %v12225_v32  ;;  %v42028_v0 = vsub.f32 %v41833_v26, %v12225_v32  ;;  %v42031_v12 = vsub.f32 %v41831_v31, %v12225_v32 }
 0xa07   :  { %v42034_v21 = vsub.f32 %v41841_v61, %v12225_v32  ;;  %v42037_v16 = vsub.f32 %v41839_v57, %v12225_v32  ;;  %v42040_v24 = vsub.f32 %v41849_v46, %v12225_v32  ;;  %v42043_v25 = vsub.f32 %v41847_v49, %v12225_v32 }
 0xa08   :  { %v42046_v40 = vsub.f32 %v41857_v53, %v12225_v32  ;;  %v42049_v26 = vsub.f32 %v41855_v11, %v12225_v32  ;;  %v42052_v31 = vsub.f32 %v41865_v3, %v12225_v32  ;;  %v42055_v61 = vsub.f32 %v41863_v22, %v12225_v32 }
 0xa09   :  { %v12242_v57 = vmul.f32 %v42010_v23, %v42010_v23  ;;  %v12243_v46 = vmul.f32 %v42013_v36, %v42013_v36  ;;  %v12244_v49 = vmul.f32 %v42016_v52, %v42016_v52  ;;  %v12245_v53 = vmul.f32 %v42019_v17, %v42019_v17 }
 0xa0a   :  { %v12246_v22 = vmul.f32 %v42022_v39, %v42022_v39  ;;  %v12247_v62 = vmul.f32 %v42025_v41, %v42025_v41  ;;  %v12248_v38 = vmul.f32 %v42028_v0, %v42028_v0  ;;  %v12249_v1 = vmul.f32 %v42031_v12, %v42031_v12 }
 0xa0b   :  { %v12258_v11 = vsel %vm11193_vm3, %v12242_v57, 0.0  ;;  %v12259_v3 = vsel %vm11193_vm3, %v12243_v46, 0.0  ;;  %v12261_v34 = vsel %vm11193_vm3, %v12244_v49, 0.0  ;;  %v12263_v48 = vsel %vm11193_vm3, %v12245_v53, 0.0 }
 0xa0c   :  { %v12260_v13 = vadd.f32 %v12259_v3, %v12258_v11  ;;  %v12265_v10 = vsel %vm11193_vm3, %v12246_v22, 0.0  ;;  %v12267_v8 = vsel %vm11193_vm3, %v12247_v62, 0.0  ;;  %v12250_v37 = vmul.f32 %v42034_v21, %v42034_v21 }
 0xa0d   :  { %v12269_v33 = vsel %vm11193_vm3, %v12248_v38, 0.0  ;;  %v12251_v32 = vmul.f32 %v42037_v16, %v42037_v16  ;;  %v12271_v57 = vsel %vm11193_vm3, %v12249_v1, 0.0  ;;  %v12252_v49 = vmul.f32 %v42040_v24, %v42040_v24 }
 0xa0e   :  { %v12262_v5 = vadd.f32 %v12261_v34, %v12260_v13  ;;  %v12273_v53 = vsel %vm11193_vm3, %v12250_v37, 0.0  ;;  %v12253_v3 = vmul.f32 %v42043_v25, %v42043_v25  ;;  %v12254_v34 = vmul.f32 %v42046_v40, %v42046_v40 }
 0xa0f   :  { %v12275_v13 = vsel %vm11193_vm3, %v12251_v32, 0.0 }
 0xa10   :  { %v12264_v55 = vadd.f32 %v12263_v48, %v12262_v5  ;;  %v12277_v5 = vsel %vm11193_vm3, %v12252_v49, 0.0  ;;  %v12255_v48 = vmul.f32 %v42049_v26, %v42049_v26 }
 0xa12   :  { %v12266_v35 = vadd.f32 %v12265_v10, %v12264_v55  ;;  %v12279_v55 = vsel %vm11193_vm3, %v12253_v3, 0.0  ;;  %v12256_v10 = vmul.f32 %v42052_v31, %v42052_v31 }
 0xa14   :  { %v12268_v63 = vadd.f32 %v12267_v8, %v12266_v35  ;;  %v12281_v35 = vsel %vm11193_vm3, %v12254_v34, 0.0  ;;  %v12257_v8 = vmul.f32 %v42055_v61, %v42055_v61 }
 0xa16   :  { %v12270_v19 = vadd.f32 %v12269_v33, %v12268_v63  ;;  %v12283_v63 = vsel %vm11193_vm3, %v12255_v48, 0.0  ;;  %v12285_v33 = vsel %vm11193_vm3, %v12256_v10, 0.0  ;;  %v12287_v32 = vsel %vm11193_vm3, %v12257_v8, 0.0  ;;  %v12836_v8 = vld [vmem:[%s46389_s3] sm:$0x1] }
 0xa18   :  { %v12272_v46 = vadd.f32 %v12271_v57, %v12270_v19 }
 0xa1a   :  { %v12274_v11 = vadd.f32 %v12273_v53, %v12272_v46 }
 0xa1c   :  { %v12276_v22 = vadd.f32 %v12275_v13, %v12274_v11 }
 0xa1e   :  { %v12278_v62 = vadd.f32 %v12277_v5, %v12276_v22 }
 0xa20   :  { %v12280_v38 = vadd.f32 %v12279_v55, %v12278_v62 }
 0xa22   :  { %v12282_v1 = vadd.f32 %v12281_v35, %v12280_v38 }
 0xa24   :  { %v12284_v37 = vadd.f32 %v12283_v63, %v12282_v1 }
 0xa26   :  { %v12286_v19 = vadd.f32 %v12285_v33, %v12284_v37 }
 0xa28   :  { %v12288_v57 = vadd.f32 %v12287_v32, %v12286_v19 }
 0xa2a   :  { %v12289_v46 = vrot.slane %v12288_v57, 4 }
 0xa2c   :  { %v12290_v49 = vadd.f32 %v12289_v46, %v12288_v57 }
 0xa2e   :  { %v12291_v53 = vrot.slane %v12290_v49, 2 }
 0xa30   :  { %v12292_v11 = vadd.f32 %v12291_v53, %v12290_v49  ;;  %v13309_v53 = vld [vmem:[%s46390_s4] sm:$0x1] }
 0xa32   :  { %v12293_v3 = vrot.slane %v12292_v11, 1 }
 0xa34   :  { %v12294_v13 = vadd.f32 %v12293_v3, %v12292_v11  ;;  %v13311_v11 = vsel %vm11772_vm2, %v13309_v53, 0  ;;  %v42267_v53 = vld [vmem:[#allocation8 + $0x78] sm:$0xff] }
 0xa35   :  { %v13379_v3 = vand.u32 4294901760, %v13311_v11 }
 0xa36   :  { %v12296_v22 = vsel %vm11193_vm3, %v12294_v13, 0 }
 0xa37   :  { %v12371_v34 = vand.u32 4294901760, %v12296_v22  ;;  %v13380_v13 = vsub.f32 %v13311_v11, %v13379_v3 }
 0xa39   :  { %v12372_v5 = vsub.f32 %v12296_v22, %v12371_v34  ;;  %v13381_v22 = vand.u32 4294901760, %v13380_v13 }
 0xa3b   :  { %v12373_v62 = vand.u32 4294901760, %v12372_v5 }
 0xa3d   :  { %v12374_v55 = vsub.f32 %v12372_v5, %v12373_v62 }
 0xa3f   :  { %v12375_v48 = vand.u32 4294901760, %v12374_v55  ;;  %v13881_v55 = vld [vmem:[#allocation8 + $0x48] sm:$0xff] }
 0xa41   :  { %32528 = vmatmul.mubr.f32.vlgmr.msra.gmra.mrb[4].mxu1 %v12375_v48  ;;  %v42239_v48 = vld [vmem:[#allocation8 + $0x50] sm:$0xff] }
 0xa42   :  { %35681 = vmatpush3.bf16.msra.mxu1 %v41681_v27  ;;  %32546 = vmatprep.mubr.msk.f32.mxu1 %vm38632_vm14, %v46687_v18 }
 0xa43   :  { %35682 = vmatprep.subr.bf16.mxu1 %v46447_v42 }
 0xa46   :  { %35684 = vmatpush3.bf16.msra.mxu1 %v41709_v7 }
 0xa47   :  { %35685 = vmatprep.subr.bf16.mxu1 %v46447_v42 }
 0xa4a   :  { %35687 = vmatpush3.bf16.msra.mxu1 %v41727_v30 }
 0xa4b   :  { %35688 = vmatprep.subr.bf16.mxu1 %v46447_v42 }
 0xa4e   :  { %35690 = vmatpush3.bf16.msra.mxu1 %v41745_v9 }
 0xa4f   :  { %35691 = vmatprep.subr.bf16.mxu1 %v46447_v42 }
 0xa51   :  { %32547 = vmatmul.mubr.f32.vlgmr.msra.gmra.mrb[4].mxu1 %v12371_v34 }
 0xa52   :  { %35693 = vmatpush3.bf16.msra.mxu1 %v41764_v43  ;;  %32565 = vmatprep.mubr.msk.f32.mxu1 %vm38632_vm14, %v46687_v18 }
 0xa53   :  { %35694 = vmatprep.subr.bf16.mxu1 %v46447_v42 }
 0xa56   :  { %35696 = vmatpush3.bf16.msra.mxu1 %v41781_v47 }
 0xa57   :  { %35697 = vmatprep.subr.bf16.mxu1 %v46447_v42 }
 0xa5a   :  { %35699 = vmatpush3.bf16.msra.mxu1 %v41787_v59 }
 0xa5b   :  { %35700 = vmatprep.subr.bf16.mxu1 %v46447_v42 }
 0xa5e   :  { %35702 = vmatpush3.bf16.msra.mxu1 %v41789_v2 }
 0xa5f   :  { %35703 = vmatprep.subr.bf16.mxu1 %v46447_v42 }
 0xa61   :  { %32566 = vmatmul.mubr.f32.vlgmr.msra.gmra.mrb[4].mxu1 %v12372_v5 }
 0xa62   :  { %35705 = vmatpush3.bf16.msk.msra.mxu1 %vm41723_vm12, %v46445_v6  ;;  %32584 = vmatprep.mubr.msk.f32.mxu1 %vm38632_vm14, %v46687_v18 }
 0xa63   :  { %35706 = vmatprep.subr.bf16.mxu1 %v46447_v42 }
 0xa66   :  { %35708 = vmatpush3.bf16.msk.msra.mxu1 %vm41736_vm13, %v46445_v6 }
 0xa67   :  { %35709 = vmatprep.subr.bf16.mxu1 %v46447_v42 }
 0xa6a   :  { %35711 = vmatpush3.bf16.msk.msra.mxu1 %vm41756_vm15, %v46445_v6 }
 0xa6b   :  { %35712 = vmatprep.subr.bf16.mxu1 %v46447_v42 }
 0xa6e   :  { %35714 = vmatpush3.bf16.msk.msra.mxu1 %vm41774_vm0, %v46445_v6 }
 0xa6f   :  { %35715 = vmatprep.subr.bf16.mxu1 %v46447_v42 }
 0xa71   :  { %32585 = vmatmul.mubr.f32.vlgmr.msra.gmra.mrb[4].mxu1 %v12373_v62  ;;  %v13880_v62 = vld [vmem:[#allocation8 + $0x40] sm:$0xff] }
 0xa72   :  { %35717 = vmatpush3.bf16.msra.mxu1 %v41795_v15  ;;  %32603 = vmatprep.mubr.msk.f32.mxu1 %vm38632_vm14, %v46687_v18 }
 0xa73   :  { %35718 = vmatprep.subr.bf16.mxu1 %v46447_v42 }
 0xa76   :  { %35720 = vmatpush3.bf16.msra.mxu1 %v41801_v29 }
 0xa77   :  { %35721 = vmatprep.subr.bf16.mxu1 %v46447_v42 }
 0xa7a   :  { %35723 = vmatpush3.bf16.msra.mxu1 %v41803_v56 }
 0xa7b   :  { %35724 = vmatprep.subr.bf16.mxu1 %v46447_v42 }
 0xa7e   :  { %35726 = vmatpush3.bf16.msra.mxu1 %v41805_v60 }
 0xa7f   :  { %35727 = vmatprep.subr.bf16.mxu1 %v46447_v42 }
 0xa81   :  { %32604 = vmatmul.mubr.f32.vlgmr.msra.gmra.mrb[4].mxu1 %v12371_v34 }
 0xa82   :  { %35729 = vmatpush3.bf16.msk.msra.mxu1 %vm41723_vm12, %v46445_v6  ;;  %32622 = vmatprep.mubr.msk.f32.mxu1 %vm38632_vm14, %v46687_v18 }
 0xa83   :  { %35730 = vmatprep.subr.bf16.mxu1 %v46447_v42 }
 0xa86   :  { %35732 = vmatpush3.bf16.msk.msra.mxu1 %vm41736_vm13, %v46445_v6 }
 0xa87   :  { %35733 = vmatprep.subr.bf16.mxu1 %v46447_v42 }
 0xa8a   :  { %35735 = vmatpush3.bf16.msk.msra.mxu1 %vm41756_vm15, %v46445_v6 }
 0xa8b   :  { %35736 = vmatprep.subr.bf16.mxu1 %v46447_v42 }
 0xa8e   :  { %35738 = vmatpush3.bf16.msk.msra.mxu1 %vm41774_vm0, %v46445_v6 }
 0xa8f   :  { %32625 = vmatprep.subr.mxu1 %v46687_v18 }
 0xa91   :  { %32623 = vmatmul.mubr.f32.vlgmr.msra.gmra.mrb[4].mxu1 %v12371_v34  ;;  %v13382_v34 = vsub.f32 %v13380_v13, %v13381_v22 }
 0xa92   :  { %32626 = vmatpush3.msk.msra.mxu1 %vm41934_vm1, %v46443_v51  ;;  %32627 = vmatprep.mubr.msk.f32.mxu1 %vm38632_vm14, %v46687_v18 }
 0xa93   :  { %32630 = vmatprep.subr.mxu1 %v46687_v18  ;;  %v13383_v5 = vand.u32 4294901760, %v13382_v34 }
 0xb64   :  { %v12831_v38 = vpop.f32.mrb[4].mxu1 }
 0xb65   :  { %v12835_v10 = vmul.f32 0.0009765625, %v12831_v38  ;;  %v32624_v35 = vpop.f32.mrb[5].mxu1  ;;  %v13937_v38 = vand.u32 4294901760, %v13880_v62 }
 0xb66   :  { %v42241_v35 = vld [vmem:[#allocation8 + $0x58] sm:$0xff] }
 0xb67   :  { %v12837_v1 = vadd.f32 1e-05, %v12835_v10  ;;  %v13940_v10 = vand.u32 4294901760, %v13881_v55 }
 0xb69   :  { %38550 = vrsqrt.f32 %v12837_v1  ;;  %v13943_v1 = vand.u32 4294901760, %v42239_v48  ;;  %v42269_v11 = vsub.f32 %v13881_v55, %v13940_v10  ;;  %v13863_v55 = vld [vmem:[#allocation3 + $0x1] sm:$0xff] }
 0xb73   :  { %v38551_v63 = vpop.eup %38550 }
 0xb74   :  { %v12839_v37 = vmul.f32 %v38551_v63, %v12836_v8  ;;  %v42244_v8 = vld [vmem:[#allocation8 + $0x60] sm:$0xff]  ;;  %v42246_v63 = vld [vmem:[#allocation8 + $0x68] sm:$0xff] }
 0xb76   :  { %v12841_v33 = vsel %vm11772_vm2, %v12839_v37, 0  ;;  %v13946_v37 = vand.u32 4294901760, %v42241_v35 }
 0xb77   :  { %v12909_v19 = vand.u32 4294901760, %v12841_v33 }
 0xb79   :  { %v12910_v32 = vsub.f32 %v12841_v33, %v12909_v19  ;;  %v42253_v33 = vpack.c.bf16 %v13940_v10, %v13937_v38  ;;  %v13889_v10 = vsel %vm11193_vm3, %v13863_v55, 0 }
 0xb7b   :  { %v12911_v57 = vand.u32 4294901760, %v12910_v32 }
 0xb7d   :  { %v12912_v46 = vsub.f32 %v12910_v32, %v12911_v57 }
 0xb7f   :  { %v12913_v49 = vand.u32 4294901760, %v12912_v46  ;;  %v42263_v46 = vpack.c.bf16 %v13946_v37, %v13943_v1 }
 0xb81   :  { %32628 = vmatmul.mubr.f32.vlgmr.msra.gmra.mrb[6].mxu1 %v12913_v49  ;;  %v42265_v49 = vld [vmem:[#allocation8 + $0x70] sm:$0xff] }
 0xb82   :  { %32631 = vmatpush3.msra.mxu1 %v41948_v4  ;;  %32632 = vmatprep.mubr.msk.f32.mxu1 %vm38632_vm14, %v46687_v18  ;;  %v46455_v34 = vand.u32 4294901760, %v42265_v49 }
 0xb83   :  { %32635 = vmatprep.subr.mxu1 %v46687_v18 }
 0xb89   :  { %32633 = vmatmul.mubr.f32.vlgmr.msra.gmra.mrb[6].mxu1 %v12909_v19 }
 0xb8a   :  { %32636 = vmatpush3.msra.mxu1 %v41941_v50  ;;  %32637 = vmatprep.mubr.msk.f32.mxu1 %vm38632_vm14, %v46687_v18 }
 0xb8b   :  { %32640 = vmatprep.subr.mxu1 %v46687_v18 }
 0xb91   :  { %32638 = vmatmul.mubr.f32.vlgmr.msra.gmra.mrb[6].mxu1 %v12910_v32  ;;  %v46450_v32 = vand.u32 4294901760, %v42246_v63 }
 0xb92   :  { %32641 = vmatpush3.msk.msra.mxu1 %vm41934_vm1, %v46443_v51  ;;  %32642 = vmatprep.mubr.msk.f32.mxu1 %vm38632_vm14, %v46687_v18 }
 0xb93   :  { %32645 = vmatprep.subr.mxu1 %v46687_v18 }
 0xb99   :  { %32643 = vmatmul.mubr.f32.vlgmr.msra.gmra.mrb[6].mxu1 %v12911_v57  ;;  %v42257_v57 = vsub.f32 %v13880_v62, %v13937_v38 }
 0xb9a   :  { %32646 = vmatpush3.msra.mxu1 %v41944_v54  ;;  %32647 = vmatprep.mubr.msk.f32.mxu1 %vm38632_vm14, %v46687_v18 }
 0xb9b   :  { %32650 = vmatprep.subr.mxu1 %v46687_v18 }
 0xba1   :  { %32648 = vmatmul.mubr.f32.vlgmr.msra.gmra.mrb[6].mxu1 %v12909_v19 }
 0xba2   :  { %32651 = vmatpush3.msk.msra.mxu1 %vm41934_vm1, %v46443_v51  ;;  %32652 = vmatprep.mubr.msk.f32.mxu1 %vm38632_vm14, %v46687_v18 }
 0xba3   :  { %32655 = vmatprep.subr.mxu1 %v46687_v18 }
 0xba9   :  { %32653 = vmatmul.mubr.f32.vlgmr.msra.gmra.mrb[6].mxu1 %v12909_v19  ;;  %v46452_v19 = vand.u32 4294901760, %v42244_v8 }
 0xbaa   :  { %32656 = vmatpush3.msk.msra.mxu1 %vm41934_vm1, %v46443_v51  ;;  %32657 = vmatprep.mubr.msk.f32.mxu1 %vm38632_vm14, %v46687_v18 }
 0xbab   :  { %32660 = vmatprep.subr.mxu1 %v46687_v18 }
 0xbad   :  { %32658 = vmatmul.mubr.f32.vlgmr.msra.gmra.mrb[8].mxu1 %v13383_v5  ;;  %v46453_v5 = vand.u32 4294901760, %v42267_v53 }
 0xbae   :  { %32661 = vmatpush3.msra.mxu1 %v41948_v4  ;;  %32662 = vmatprep.mubr.msk.f32.mxu1 %vm38632_vm14, %v46687_v18 }
 0xbaf   :  { %32665 = vmatprep.subr.mxu1 %v46687_v18  ;;  %v42299_v6 = vpack.c.bf16 %v46453_v5, %v46455_v34 }
 0xbb5   :  { %32663 = vmatmul.mubr.f32.vlgmr.msra.gmra.mrb[8].mxu1 %v13379_v3 }
 0xbb6   :  { %32666 = vmatpush3.msra.mxu1 %v41941_v50  ;;  %32667 = vmatprep.mubr.msk.f32.mxu1 %vm38632_vm14, %v46687_v18 }
 0xbb7   :  { %32670 = vmatprep.subr.mxu1 %v46687_v18 }
 0xbbd   :  { %32668 = vmatmul.mubr.f32.vlgmr.msra.gmra.mrb[8].mxu1 %v13380_v13  ;;  %v46451_v13 = vand.u32 4294901760, %v42269_v11 }
 0xbbe   :  { %32671 = vmatpush3.msk.msra.mxu1 %vm41934_vm1, %v46443_v51  ;;  %32672 = vmatprep.mubr.msk.f32.mxu1 %vm38632_vm14, %v46687_v18 }
 0xbbf   :  { %32675 = vmatprep.subr.mxu1 %v46687_v18  ;;  %v14180_v38 = vsub.f32 %v42269_v11, %v46451_v13 }
 0xbc5   :  { %32673 = vmatmul.mubr.f32.vlgmr.msra.gmra.mrb[8].mxu1 %v13381_v22  ;;  %v42280_v22 = vpack.c.bf16 %v46450_v32, %v46452_v19 }
 0xbc6   :  { %32676 = vmatpush3.msra.mxu1 %v41944_v54  ;;  %32677 = vmatprep.mubr.msk.f32.mxu1 %vm38632_vm14, %v46687_v18 }
 0xbc7   :  { %32680 = vmatprep.subr.mxu1 %v46687_v18 }
 0xbcd   :  { %32678 = vmatmul.mubr.f32.vlgmr.msra.gmra.mrb[8].mxu1 %v13379_v3 }
 0xbce   :  { %32681 = vmatpush3.msk.msra.mxu1 %vm41934_vm1, %v46443_v51  ;;  %32682 = vmatprep.mubr.msk.f32.mxu1 %vm38632_vm14, %v46687_v18  ;;  %v42292_v51 = vand.u32 4294901760, %v13889_v10 }
 0xbcf   :  { %35740 = vmatprep.subr.bf16.mxu1 %v42253_v33 }
 0xbd0   :  { %v42302_v32 = vsub.f32 %v13889_v10, %v42292_v51 }
 0xbd2   :  { %v46454_v55 = vand.u32 4294901760, %v42302_v32 }
 0xbd4   :  { %v14012_v19 = vsub.f32 %v42302_v32, %v46454_v55  ;;  %v46732_v55 = vand.u32 4294901760, %v42244_v8 }
 0xbd5   :  { %32683 = vmatmul.mubr.f32.vlgmr.msra.gmra.mrb[8].mxu1 %v13379_v3  ;;  %v46449_v3 = vand.u32 4294901760, %v42257_v57 }
 0xbd6   :  { %35742 = vmatpush3.bf16.msra.mxu1 %v42253_v33  ;;  %v14013_v5 = vand.u32 4294901760, %v14012_v19  ;;  %v42386_v19 = vsub.f32 %v42241_v35, %v13946_v37  ;;  %v42401_v35 = vsub.f32 %v42244_v8, %v46732_v55  ;;  %v46733_v37 = vand.u32 4294901760, %v42246_v63 }
 0xbd7   :  { %35744 = vmatprep.subr.bf16.mxu1 %v42263_v46  ;;  %v14173_v62 = vsub.f32 %v42257_v57, %v46449_v3  ;;  %v14181_v3 = vand.u32 4294901760, %v14180_v38 }
 0xbd8   :  { %32701 = vmatprep.mubr.f32.mxu1 %v14013_v5  ;;  %v42406_v34 = vsub.f32 %v42246_v63, %v46733_v37  ;;  %v46735_v37 = vand.u32 4294901760, %v42267_v53 }
 0xbd9   :  { %v14174_v42 = vand.u32 4294901760, %v14173_v62  ;;  %v46458_v62 = vand.u32 4294901760, %v42386_v19 }
 0xbda   :  { %35746 = vmatpush3.bf16.msra.mxu1 %v42263_v46  ;;  %v46463_v9 = vand.u32 4294901760, %v42406_v34 }
 0xbdb   :  { %35748 = vmatprep.subr.bf16.mxu1 %v42280_v22  ;;  %v42307_v13 = vpack.c.bf16 %v14181_v3, %v14174_v42  ;;  %v42381_v42 = vsub.f32 %v42239_v48, %v13943_v1  ;;  %v14194_v5 = vsub.f32 %v42386_v19, %v46458_v62  ;;  %v42426_v62 = vsub.f32 %v42267_v53, %v46735_v37 }
 0xbdc   :  { %v42440_v53 = vpack.c.bf16 %v42269_v11, %v42257_v57  ;;  %v42448_v37 = vpack.c.bf16 %v42406_v34, %v42401_v35 }
 0xbdd   :  { %v46456_v3 = vand.u32 4294901760, %v42381_v42  ;;  %v14195_v48 = vand.u32 4294901760, %v14194_v5  ;;  %v14208_v5 = vsub.f32 %v42406_v34, %v46463_v9  ;;  %v46462_v30 = vand.u32 4294901760, %v42426_v62 }
 0xbde   :  { %35750 = vmatpush3.bf16.msra.mxu1 %v42280_v22 }
 0xbdf   :  { %35752 = vmatprep.subr.bf16.mxu1 %v42299_v6  ;;  %v14187_v38 = vsub.f32 %v42381_v42, %v46456_v3  ;;  %v46459_v3 = vand.u32 4294901760, %v42401_v35  ;;  %v14209_v8 = vand.u32 4294901760, %v14208_v5  ;;  %v14222_v5 = vsub.f32 %v42426_v62, %v46462_v30 }
 0xbe1   :  { %v14188_v10 = vand.u32 4294901760, %v14187_v38  ;;  %v14201_v38 = vsub.f32 %v42401_v35, %v46459_v3 }
 0xbe2   :  { %35754 = vmatpush3.bf16.msra.mxu1 %v42299_v6 }
 0xbe3   :  { %35756 = vmatprep.subr.bf16.mxu1 %v42307_v13  ;;  %v42396_v1 = vpack.c.bf16 %v14195_v48, %v14188_v10  ;;  %v14202_v10 = vand.u32 4294901760, %v14201_v38  ;;  %v46734_v48 = vand.u32 4294901760, %v42265_v49 }
 0xbe5   :  { %v42416_v55 = vpack.c.bf16 %v14209_v8, %v14202_v10  ;;  %v42421_v63 = vsub.f32 %v42265_v49, %v46734_v48  ;;  %v14223_v49 = vand.u32 4294901760, %v14222_v5  ;;  %v42444_v48 = vpack.c.bf16 %v42386_v19, %v42381_v42 }
 0xbe7   :  { %v46461_v3 = vand.u32 4294901760, %v42421_v63 }
 0xbe9   :  { %v14215_v38 = vsub.f32 %v42421_v63, %v46461_v3  ;;  %v42452_v3 = vpack.c.bf16 %v42426_v62, %v42421_v63 }
 0xbeb   :  { %v14216_v10 = vand.u32 4294901760, %v14215_v38 }
 0xbed   :  { %v42436_v8 = vpack.c.bf16 %v14223_v49, %v14216_v10 }
 0xc7c   :  { %v13285_v38 = vpop.f32.mrb[6].mxu1 }
 0xc7d   :  { %v32654_v5 = vpop.f32.mrb[7].mxu1  ;;  %v13292_v10 = vrot.slane %v13285_v38, %v42006_v14 }
 0xc7f   :  { %v13293_v49 = vmul.f32 %v13292_v10, %v42010_v23  ;;  %v13294_v30 = vmul.f32 %v13292_v10, %v42013_v36  ;;  %v13295_v9 = vmul.f32 %v13292_v10, %v42016_v52  ;;  %v13296_v7 = vmul.f32 %v13292_v10, %v42019_v17 }
 0xc80   :  { %v13297_v27 = vmul.f32 %v13292_v10, %v42022_v39  ;;  %v13298_v50 = vmul.f32 %v13292_v10, %v42025_v41  ;;  %v13299_v4 = vmul.f32 %v13292_v10, %v42028_v0  ;;  %v13301_v20 = vmul.f32 %v13292_v10, %v42034_v21 }
 0xc81   :  { %v13302_v5 = vmul.f32 %v13292_v10, %v42037_v16  ;;  %v13303_v36 = vmul.f32 %v13292_v10, %v42040_v24  ;;  %v13304_v52 = vmul.f32 %v13292_v10, %v42043_v25  ;;  %v13305_v17 = vmul.f32 %v13292_v10, %v42046_v40 }
 0xc82   :  { %v13306_v39 = vmul.f32 %v13292_v10, %v42049_v26  ;;  %v13307_v60 = vmul.f32 %v13292_v10, %v42052_v31  ;;  %v13300_v41 = vmul.f32 %v13292_v10, %v42031_v12  ;;  %v13308_v0 = vmul.f32 %v13292_v10, %v42055_v61 }
 0xca8   :  { %v13755_v54 = vpop.f32.mrb[8].mxu1 }
 0xca9   :  { %v13762_v38 = vrot.slane %v13755_v54, %v42006_v14  ;;  %v32684_v23 = vpop.f32.mrb[9].mxu1 }
 0xcab   :  { %v13763_v21 = vadd.f32 %v13762_v38, %v13293_v49  ;;  %v13764_v56 = vadd.f32 %v13762_v38, %v13294_v30  ;;  %v13765_v16 = vadd.f32 %v13762_v38, %v13295_v9  ;;  %v13766_v29 = vadd.f32 %v13762_v38, %v13296_v7 }
 0xcac   :  { %v13767_v54 = vadd.f32 %v13762_v38, %v13297_v27  ;;  %v13768_v23 = vadd.f32 %v13762_v38, %v13298_v50  ;;  %v13769_v14 = vadd.f32 %v13762_v38, %v13299_v4  ;;  %v13771_v24 = vadd.f32 %v13762_v38, %v13301_v20  ;;  %v13871_v27 = vld [vmem:[#allocation3 + $0xa1] sm:$0xff] }
 0xcad   :  { %13823 = vst.msk [vmem:[#allocation3 + $0x11] sm:$0xff] %vm11193_vm3, %v13763_v21  ;;  %13824 = vst.msk [vmem:[#allocation3 + $0x21] sm:$0xff] %vm11193_vm3, %v13764_v56  ;;  %v13772_v25 = vadd.f32 %v13762_v38, %v13302_v5  ;;  %v13773_v12 = vadd.f32 %v13762_v38, %v13303_v36  ;;  %v13774_v40 = vadd.f32 %v13762_v38, %v13304_v52  ;;  %v13913_v56 = vsel %vm11193_vm3, %v13871_v27, 0 }
 0xcae   :  { %13825 = vst.msk [vmem:[#allocation3 + $0x31] sm:$0xff] %vm11193_vm3, %v13765_v16  ;;  %13826 = vst.msk [vmem:[#allocation3 + $0x41] sm:$0xff] %vm11193_vm3, %v13766_v29  ;;  %v13775_v26 = vadd.f32 %v13762_v38, %v13305_v17  ;;  %v13776_v7 = vadd.f32 %v13762_v38, %v13306_v39  ;;  %v13777_v30 = vadd.f32 %v13762_v38, %v13307_v60  ;;  %v42489_v4 = vand.u32 4294901760, %v13913_v56 }
 0xcaf   :  { %13827 = vst.msk [vmem:[#allocation3 + $0x51] sm:$0xff] %vm11193_vm3, %v13767_v54  ;;  %13828 = vst.msk [vmem:[#allocation3 + $0x61] sm:$0xff] %vm11193_vm3, %v13768_v23  ;;  %v13770_v9 = vadd.f32 %v13762_v38, %v13300_v41  ;;  %v13778_v29 = vadd.f32 %v13762_v38, %v13308_v0 }
 0xcb0   :  { %13829 = vst.msk [vmem:[#allocation3 + $0x71] sm:$0xff] %vm11193_vm3, %v13769_v14  ;;  %13831 = vst.msk [vmem:[#allocation3 + $0xb1] sm:$0xff] %vm11193_vm3, %v13771_v24 }
 0xcb1   :  { %13832 = vst.msk [vmem:[#allocation3 + $0xc1] sm:$0xff] %vm11193_vm3, %v13772_v25  ;;  %13833 = vst.msk [vmem:[#allocation3 + $0xd1] sm:$0xff] %vm11193_vm3, %v13773_v12 }
 0xcb2   :  { %13834 = vst.msk [vmem:[#allocation3 + $0xe1] sm:$0xff] %vm11193_vm3, %v13774_v40  ;;  %13835 = vst.msk [vmem:[#allocation3 + $0xf1] sm:$0xff] %vm11193_vm3, %v13775_v26 }
 0xcb3   :  { %13836 = vst.msk [vmem:[#allocation3 + $0x101] sm:$0xff] %vm11193_vm3, %v13776_v7  ;;  %13837 = vst.msk [vmem:[#allocation3 + $0x111] sm:$0xff] %vm11193_vm3, %v13777_v30 }
 0xcb4   :  { %13830 = vst.msk [vmem:[#allocation3 + $0x81] sm:$0xff] %vm11193_vm3, %v13770_v9  ;;  %13838 = vst.msk [vmem:[#allocation3 + $0x121] sm:$0xff] %vm11193_vm3, %v13778_v29  ;;  %v13864_v60 = vld [vmem:[#allocation3 + $0x11] sm:$0xff]  ;;  %v13865_v20 = vld [vmem:[#allocation3 + $0x21] sm:$0xff] }
 0xcb5   :  { %v13866_v50 = vld [vmem:[#allocation3 + $0x31] sm:$0xff]  ;;  %v13892_v14 = vsel %vm11193_vm3, %v13864_v60, 0  ;;  %v13895_v31 = vsel %vm11193_vm3, %v13865_v20, 0  ;;  %v13867_v10 = vld [vmem:[#allocation3 + $0x41] sm:$0xff] }
 0xcb6   :  { %v13898_v61 = vsel %vm11193_vm3, %v13866_v50, 0  ;;  %v13868_v49 = vld [vmem:[#allocation3 + $0x51] sm:$0xff]  ;;  %v13869_v5 = vld [vmem:[#allocation3 + $0x61] sm:$0xff]  ;;  %v42494_v38 = vand.u32 4294901760, %v13892_v14  ;;  %v42496_v36 = vand.u32 4294901760, %v13895_v31  ;;  %v13901_v17 = vsel %vm11193_vm3, %v13867_v10, 0 }
 0xcb7   :  { %v42498_v52 = vand.u32 4294901760, %v13898_v61  ;;  %v13870_v39 = vld [vmem:[#allocation3 + $0x71] sm:$0xff]  ;;  %v42501_v0 = vand.u32 4294901760, %v13901_v17  ;;  %v13904_v21 = vsel %vm11193_vm3, %v13868_v49, 0  ;;  %v13907_v16 = vsel %vm11193_vm3, %v13869_v5, 0 }
 0xcb8   :  { %v13872_v41 = vld [vmem:[#allocation3 + $0xb1] sm:$0xff]  ;;  %v13910_v54 = vsel %vm11193_vm3, %v13870_v39, 0  ;;  %v42507_v23 = vsub.f32 %v13892_v14, %v42494_v38  ;;  %v42510_v24 = vsub.f32 %v13895_v31, %v42496_v36  ;;  %v42515_v12 = vand.u32 4294901760, %v13904_v21 }
 0xcb9   :  { %v42513_v25 = vsub.f32 %v13898_v61, %v42498_v52  ;;  %v42518_v40 = vsub.f32 %v13901_v17, %v42501_v0  ;;  %v42520_v26 = vand.u32 4294901760, %v13907_v16  ;;  %v42522_v27 = vand.u32 4294901760, %v13910_v54  ;;  %v13873_v17 = vld [vmem:[#allocation3 + $0xc1] sm:$0xff]  ;;  %v13874_v39 = vld [vmem:[#allocation3 + $0xd1] sm:$0xff] }
 0xcba   :  { %v13916_v7 = vsel %vm11193_vm3, %v13872_v41, 0  ;;  %v46482_v30 = vand.u32 4294901760, %v42507_v23  ;;  %v46483_v9 = vand.u32 4294901760, %v42510_v24  ;;  %v42529_v60 = vsub.f32 %v13904_v21, %v42515_v12  ;;  %v13875_v41 = vld [vmem:[#allocation3 + $0xe1] sm:$0xff]  ;;  %v13876_v2 = vld [vmem:[#allocation3 + $0xf1] sm:$0xff] }
 0xcbb   :  { %v46484_v29 = vand.u32 4294901760, %v42513_v25  ;;  %v46489_v20 = vand.u32 4294901760, %v42518_v40  ;;  %v42533_v50 = vsub.f32 %v13907_v16, %v42520_v26  ;;  %v42545_v10 = vsub.f32 %v13910_v54, %v42522_v27  ;;  %v13878_v47 = vld [vmem:[#allocation3 + $0x111] sm:$0xff] }
 0xcbc   :  { %v14022_v14 = vsub.f32 %v42507_v23, %v46482_v30  ;;  %v14032_v31 = vsub.f32 %v42510_v24, %v46483_v9  ;;  %v42548_v49 = vsub.f32 %v13913_v56, %v42489_v4  ;;  %v42550_v5 = vand.u32 4294901760, %v13916_v7 }
 0xcbd   :  { %v14042_v61 = vsub.f32 %v42513_v25, %v46484_v29  ;;  %v14052_v29 = vsub.f32 %v42518_v40, %v46489_v20  ;;  %v13919_v54 = vsel %vm11193_vm3, %v13873_v17, 0  ;;  %v13922_v56 = vsel %vm11193_vm3, %v13874_v39, 0 }
 0xcbe   :  { %v14023_v21 = vand.u32 4294901760, %v14022_v14  ;;  %v14033_v16 = vand.u32 4294901760, %v14032_v31  ;;  %v13925_v15 = vsel %vm11193_vm3, %v13875_v41, 0  ;;  %v42564_v9 = vsub.f32 %v13916_v7, %v42550_v5 }
 0xcbf   :  { %v42566_v30 = vand.u32 4294901760, %v13919_v54  ;;  %v14043_v20 = vand.u32 4294901760, %v14042_v61  ;;  %v46736_v17 = vand.u32 4294901760, %v42529_v60  ;;  %v14053_v31 = vand.u32 4294901760, %v14052_v29 }
 0xcc0   :  { %32702 = vmatmul.mubr.f32.vlgmr.msra.gmra.mrb[10].mxu1 %v14023_v21  ;;  %v13877_v21 = vld [vmem:[#allocation3 + $0x101] sm:$0xff]  ;;  %v42580_v14 = vand.u32 4294901760, %v13925_v15  ;;  %v13928_v61 = vsel %vm11193_vm3, %v13876_v2, 0  ;;  %v46739_v29 = vand.u32 4294901760, %v42548_v49  ;;  %v46499_v43 = vand.u32 4294901760, %v42564_v9 }
 0xcc1   :  { %35758 = vmatpush3.bf16.msra.mxu1 %v42307_v13  ;;  %32704 = vmatprep.mubr.f32.mxu1 %v14033_v16  ;;  %v14062_v39 = vsub.f32 %v42529_v60, %v46736_v17  ;;  %v46737_v13 = vand.u32 4294901760, %v42533_v50  ;;  %v42575_v16 = vand.u32 4294901760, %v13922_v56  ;;  %v42578_v7 = vsub.f32 %v13919_v54, %v42566_v30 }
 0xcc2   :  { %35760 = vmatprep.subr.bf16.mxu1 %v42396_v1  ;;  %v13931_v59 = vsel %vm11193_vm3, %v13877_v21, 0  ;;  %v46738_v17 = vand.u32 4294901760, %v42545_v10  ;;  %v14092_v54 = vsub.f32 %v42548_v49, %v46739_v29 }
 0xcc3   :  { %v14072_v41 = vsub.f32 %v42533_v50, %v46737_v13  ;;  %v14063_v18 = vand.u32 4294901760, %v14062_v39  ;;  %v42594_v2 = vsub.f32 %v13922_v56, %v42575_v16  ;;  %v42602_v21 = vand.u32 4294901760, %v13931_v59 }
 0xcc4   :  { %32705 = vmatmul.mubr.f32.gmra.mrb[12].mxu1 %v14043_v20  ;;  %v14082_v13 = vsub.f32 %v42545_v10, %v46738_v17  ;;  %v42596_v20 = vand.u32 4294901760, %v13928_v61  ;;  %v13934_v17 = vsel %vm11193_vm3, %v13878_v47, 0  ;;  %v14102_v56 = vsub.f32 %v42564_v9, %v46499_v43 }
 0xcc5   :  { %32707 = vmatprep.mubr.f32.mxu1 %v14053_v31  ;;  %35762 = vmatpush3.bf16.msra.mxu1 %v42396_v1  ;;  %v14073_v58 = vand.u32 4294901760, %v14072_v41  ;;  %v42600_v31 = vsub.f32 %v13925_v15, %v42580_v14  ;;  %v14093_v41 = vand.u32 4294901760, %v14092_v54  ;;  %v46500_v29 = vand.u32 4294901760, %v42594_v2 }
 0xcc6   :  { %35764 = vmatprep.subr.bf16.mxu1 %v42416_v55  ;;  %v14083_v39 = vand.u32 4294901760, %v14082_v13  ;;  %v42612_v15 = vsub.f32 %v13928_v61, %v42596_v20  ;;  %v42614_v1 = vand.u32 4294901760, %v13934_v17  ;;  %v14103_v13 = vand.u32 4294901760, %v14102_v56 }
 0xcc7   :  { %v14131_v47 = vand.u32 4294901760, %v42600_v31  ;;  %v14122_v61 = vsub.f32 %v42594_v2, %v46500_v29 }
 0xcc8   :  { %32708 = vmatmul.mubr.f32.gmra.mrb[14].mxu1 %v14063_v18  ;;  %v46740_v18 = vand.u32 4294901760, %v42578_v7  ;;  %v14141_v54 = vand.u32 4294901760, %v42612_v15  ;;  %v42629_v43 = vsub.f32 %v13934_v17, %v42614_v1 }
 0xcc9   :  { %32710 = vmatprep.mubr.f32.mxu1 %v14073_v58  ;;  %35766 = vmatpush3.bf16.msra.mxu1 %v42416_v55  ;;  %v42621_v55 = vsub.f32 %v13931_v59, %v42602_v21  ;;  %v14132_v59 = vsub.f32 %v42600_v31, %v14131_v47 }
 0xcca   :  { %35768 = vmatprep.subr.bf16.mxu1 %v42436_v8  ;;  %v14112_v58 = vsub.f32 %v42578_v7, %v46740_v18  ;;  %v14161_v56 = vand.u32 4294901760, %v42629_v43 }
 0xccb   :  { %v14133_v17 = vand.u32 4294901760, %v14132_v59  ;;  %v46746_v59 = vand.u32 4294901760, %v42507_v23 }
 0xccc   :  { %32711 = vmatmul.mubr.f32.gmra.mrb[16].mxu1 %v14083_v39  ;;  %v14113_v18 = vand.u32 4294901760, %v14112_v58  ;;  %v14151_v39 = vand.u32 4294901760, %v42621_v55 }
 0xccd   :  { %32713 = vmatprep.mubr.f32.mxu1 %v14093_v41  ;;  %35770 = vmatpush3.bf16.msra.mxu1 %v42436_v8  ;;  %v14123_v8 = vand.u32 4294901760, %v14122_v61  ;;  %v14142_v41 = vsub.f32 %v42612_v15, %v14141_v54 }
 0xcce   :  { %35772 = vmatprep.subr.bf16.mxu1 %v42440_v53  ;;  %v14152_v58 = vsub.f32 %v42621_v55, %v14151_v39 }
 0xccf   :  { %v14143_v29 = vand.u32 4294901760, %v14142_v41  ;;  %v46748_v41 = vand.u32 4294901760, %v42401_v35  ;;  %v46755_v35 = vand.u32 4294901760, %v42533_v50 }
 0xcd0   :  { %32714 = vmatmul.mubr.f32.gmra.mrb[18].mxu1 %v14103_v13  ;;  %v14162_v13 = vsub.f32 %v42629_v43, %v14161_v56 }
 0xcd1   :  { %32716 = vmatprep.mubr.f32.mxu1 %v14113_v18  ;;  %v14153_v18 = vand.u32 4294901760, %v14152_v58 }
 0xcd2   :  { %v14163_v61 = vand.u32 4294901760, %v14162_v13  ;;  %v46754_v13 = vand.u32 4294901760, %v42529_v60 }
 0xcd4   :  { %32717 = vmatmul.mubr.f32.gmra.mrb[20].mxu1 %v14123_v8  ;;  %v46747_v8 = vand.u32 4294901760, %v42510_v24 }
 0xcd5   :  { %32719 = vmatprep.mubr.f32.mxu1 %v14133_v17  ;;  %v46749_v17 = vand.u32 4294901760, %v42406_v34  ;;  %v46756_v34 = vand.u32 4294901760, %v42545_v10 }
 0xcd7   :  { %v35811_v58 = vpack.c.bf16 %v46749_v17, %v46748_v41  ;;  %v13842_v17 = vld [vmem:[#allocation3 + $0x30] sm:$0xff] }
 0xcd8   :  { %32720 = vmatmul.mubr.f32.gmra.mrb[22].mxu1 %v14143_v29 }
 0xcd9   :  { %32722 = vmatprep.mubr.f32.mxu1 %v14153_v18  ;;  %v42785_v18 = vld [vmem:[#allocation8 + $0x38] sm:$0xff] }
 0xcdc   :  { %32723 = vmatmul.mubr.f32.gmra.mrb[24].mxu1 %v14163_v61  ;;  %v13840_v61 = vld [vmem:[#allocation3 + $0x10] sm:$0xff] }
 0xcdd   :  { %32741 = vmatprep.mubr.f32.mxu1 %v42292_v51 }
 0xce0   :  { %32742 = vmatmul.mubr.f32.vlgmr.msra.gmra.mrb[10].mxu1 %v42494_v38 }
 0xce1   :  { %35774 = vmatpush3.bf16.msra.mxu1 %v42440_v53  ;;  %32744 = vmatprep.mubr.f32.mxu1 %v42496_v36  ;;  %v46742_v53 = vand.u32 4294901760, %v42269_v11  ;;  %v46744_v11 = vand.u32 4294901760, %v42381_v42  ;;  %v46751_v42 = vand.u32 4294901760, %v42518_v40 }
 0xce2   :  { %35776 = vmatprep.subr.bf16.mxu1 %v42444_v48 }
 0xce4   :  { %32745 = vmatmul.mubr.f32.gmra.mrb[12].mxu1 %v42498_v52 }
 0xce5   :  { %32747 = vmatprep.mubr.f32.mxu1 %v42501_v0  ;;  %35778 = vmatpush3.bf16.msra.mxu1 %v42444_v48 }
 0xce6   :  { %35780 = vmatprep.subr.bf16.mxu1 %v42448_v37 }
 0xce8   :  { %32748 = vmatmul.mubr.f32.gmra.mrb[14].mxu1 %v42515_v12 }
 0xce9   :  { %32750 = vmatprep.mubr.f32.mxu1 %v42520_v26  ;;  %35782 = vmatpush3.bf16.msra.mxu1 %v42448_v37  ;;  %v46745_v37 = vand.u32 4294901760, %v42386_v19  ;;  %v46752_v19 = vand.u32 4294901760, %v42421_v63  ;;  %v46759_v63 = vand.u32 4294901760, %v42578_v7 }
 0xcea   :  { %35784 = vmatprep.subr.bf16.mxu1 %v42452_v3 }
 0xceb   :  { %v35807_v29 = vpack.c.bf16 %v46745_v37, %v46744_v11 }
 0xcec   :  { %32751 = vmatmul.mubr.f32.gmra.mrb[16].mxu1 %v42522_v27 }
 0xced   :  { %32753 = vmatprep.mubr.f32.mxu1 %v42489_v4  ;;  %35786 = vmatpush3.bf16.msra.mxu1 %v42452_v3  ;;  %v46741_v3 = vand.u32 4294901760, %v42257_v57  ;;  %v46743_v57 = vand.u32 4294901760, %v42302_v32 }
 0xcee   :  { %35788 = vmatprep.subr.bf16.mxu1 %v42253_v33 }
 0xcef   :  { %v35803_v48 = vpack.c.bf16 %v46742_v53, %v46741_v3  ;;  %v15188_v53 = vand.u32 4294901760, %v42785_v18 }
 0xcf0   :  { %32754 = vmatmul.mubr.f32.gmra.mrb[18].mxu1 %v42550_v5 }
 0xcf1   :  { %32756 = vmatprep.mubr.f32.mxu1 %v42566_v30 }
 0xcf4   :  { %32757 = vmatmul.mubr.f32.gmra.mrb[20].mxu1 %v42575_v16 }
 0xcf5   :  { %32759 = vmatprep.mubr.f32.mxu1 %v42580_v14 }
 0xcf8   :  { %32760 = vmatmul.mubr.f32.gmra.mrb[22].mxu1 %v42596_v20 }
 0xcf9   :  { %32762 = vmatprep.mubr.f32.mxu1 %v42602_v21 }
 0xcfc   :  { %32763 = vmatmul.mubr.f32.gmra.mrb[24].mxu1 %v42614_v1 }
 0xcfd   :  { %32781 = vmatprep.mubr.f32.mxu1 %v42302_v32  ;;  %v46750_v32 = vand.u32 4294901760, %v42513_v25 }
 0xd00   :  { %32782 = vmatmul.mubr.f32.vlgmr.msra.gmra.mrb[10].mxu1 %v42507_v23  ;;  %v46753_v23 = vand.u32 4294901760, %v42426_v62  ;;  %v46758_v62 = vand.u32 4294901760, %v42564_v9 }
 0xd01   :  { %35790 = vmatpush3.bf16.msra.mxu1 %v42253_v33  ;;  %32784 = vmatprep.mubr.f32.mxu1 %v42510_v24 }
 0xd02   :  { %35792 = vmatprep.subr.bf16.mxu1 %v42263_v46  ;;  %v35815_v24 = vpack.c.bf16 %v46753_v23, %v46752_v19 }
 0xd04   :  { %32785 = vmatmul.mubr.f32.gmra.mrb[12].mxu1 %v42513_v25  ;;  %v46757_v25 = vand.u32 4294901760, %v42548_v49 }
 0xd05   :  { %32787 = vmatprep.mubr.f32.mxu1 %v42518_v40  ;;  %35794 = vmatpush3.bf16.msra.mxu1 %v42263_v46  ;;  %v46760_v40 = vand.u32 4294901760, %v42594_v2 }
 0xd06   :  { %35796 = vmatprep.subr.bf16.mxu1 %v42280_v22 }
 0xd08   :  { %32788 = vmatmul.mubr.f32.gmra.mrb[14].mxu1 %v42529_v60  ;;  %v13856_v60 = vld [vmem:[#allocation8 + $0x8] sm:$0xff] }
 0xd09   :  { %32790 = vmatprep.mubr.f32.mxu1 %v42533_v50  ;;  %35798 = vmatpush3.bf16.msra.mxu1 %v42280_v22  ;;  %v15170_v50 = vand.u32 4294901760, %v13856_v60 }
 0xd0a   :  { %35800 = vmatprep.subr.bf16.mxu1 %v42299_v6 }
 0xd0c   :  { %32791 = vmatmul.mubr.f32.gmra.mrb[16].mxu1 %v42545_v10 }
 0xd0d   :  { %32793 = vmatprep.mubr.f32.mxu1 %v42548_v49  ;;  %35802 = vmatpush3.bf16.msra.mxu1 %v42299_v6 }
 0xd0e   :  { %35804 = vmatprep.subr.bf16.mxu1 %v35803_v48 }
 0xd10   :  { %32794 = vmatmul.mubr.f32.gmra.mrb[18].mxu1 %v42564_v9  ;;  %v13855_v9 = vld [vmem:[#allocation8] sm:$0xff] }
 0xd11   :  { %32796 = vmatprep.mubr.f32.mxu1 %v42578_v7  ;;  %v42767_v7 = vld [vmem:[#allocation8 + $0x20] sm:$0xff] }
 0xd14   :  { %32797 = vmatmul.mubr.f32.gmra.mrb[20].mxu1 %v42594_v2 }
 0xd15   :  { %32799 = vmatprep.mubr.f32.mxu1 %v42600_v31  ;;  %v42773_v31 = vsub.f32 %v13856_v60, %v15170_v50  ;;  %v13847_v60 = vld [vmem:[#allocation3 + $0xa0] sm:$0xff] }
 0xd18   :  { %32800 = vmatmul.mubr.f32.gmra.mrb[22].mxu1 %v42612_v15  ;;  %v15179_v15 = vand.u32 4294901760, %v42767_v7 }
 0xd19   :  { %32802 = vmatprep.mubr.f32.mxu1 %v42621_v55 }
 0xd1c   :  { %32803 = vmatmul.mubr.f32.gmra.mrb[24].mxu1 %v42629_v43  ;;  %v15167_v43 = vand.u32 4294901760, %v13855_v9 }
 0xd1d   :  { %32821 = vmatprep.mubr.f32.mxu1 %v46743_v57  ;;  %v13839_v57 = vld [vmem:[#allocation3] sm:$0xff] }
 0xd1e   :  { %v42771_v2 = vsub.f32 %v13855_v9, %v15167_v43  ;;  %v15119_v37 = vsel %vm11193_vm3, %v13839_v57, 0  ;;  %v13846_v9 = vld [vmem:[#allocation3 + $0x70] sm:$0xff] }
 0xd20   :  { %32822 = vmatmul.mubr.f32.vlgmr.msra.gmra.mrb[10].mxu1 %v46746_v59 }
 0xd21   :  { %35806 = vmatpush3.bf16.msra.mxu1 %v35803_v48  ;;  %32824 = vmatprep.mubr.f32.mxu1 %v46747_v8 }
 0xd22   :  { %35808 = vmatprep.subr.bf16.mxu1 %v35807_v29 }
 0xd24   :  { %32825 = vmatmul.mubr.f32.gmra.mrb[12].mxu1 %v46750_v32 }
 0xd25   :  { %32827 = vmatprep.mubr.f32.mxu1 %v46751_v42  ;;  %35810 = vmatpush3.bf16.msra.mxu1 %v35807_v29  ;;  %v13843_v42 = vld [vmem:[#allocation3 + $0x40] sm:$0xff] }
 0xd26   :  { %35812 = vmatprep.subr.bf16.mxu1 %v35811_v58 }
 0xd28   :  { %32828 = vmatmul.mubr.f32.gmra.mrb[14].mxu1 %v46754_v13 }
 0xd29   :  { %32830 = vmatprep.mubr.f32.mxu1 %v46755_v35  ;;  %35814 = vmatpush3.bf16.msra.mxu1 %v35811_v58  ;;  %v15131_v35 = vsel %vm11193_vm3, %v13843_v42, 0 }
 0xd2a   :  { %35816 = vmatprep.subr.bf16.mxu1 %v35815_v24 }
 0xd2c   :  { %32831 = vmatmul.mubr.f32.gmra.mrb[16].mxu1 %v46756_v34 }
 0xd2d   :  { %32833 = vmatprep.mubr.f32.mxu1 %v46757_v25  ;;  %35818 = vmatpush3.bf16.msra.mxu1 %v35815_v24  ;;  %v13844_v24 = vld [vmem:[#allocation3 + $0x50] sm:$0xff] }
 0xd2e   :  { %35820 = vmatprep.subr.bf16.mxu1 %v42253_v33 }
 0xd30   :  { %32834 = vmatmul.mubr.f32.gmra.mrb[18].mxu1 %v46758_v62 }
 0xd31   :  { %32836 = vmatprep.mubr.f32.mxu1 %v46759_v63  ;;  %v15134_v63 = vsel %vm11193_vm3, %v13844_v24, 0 }
 0xd34   :  { %32837 = vmatmul.mubr.f32.gmra.mrb[20].mxu1 %v46760_v40  ;;  %v13845_v40 = vld [vmem:[#allocation3 + $0x60] sm:$0xff] }
 0xd35   :  { %32839 = vmatprep.mubr.f32.mxu1 %v14131_v47 }
 0xd38   :  { %32840 = vmatmul.mubr.f32.gmra.mrb[22].mxu1 %v14141_v54  ;;  %v15402_v54 = vand.u32 4294901760, %v42771_v2 }
 0xd39   :  { %32842 = vmatprep.mubr.f32.mxu1 %v14151_v39  ;;  %v46513_v39 = vand.u32 4294901760, %v42773_v31 }
 0xd3a   :  { %v15403_v48 = vsub.f32 %v42771_v2, %v15402_v54 }
 0xd3c   :  { %32843 = vmatmul.mubr.f32.gmra.mrb[24].mxu1 %v14161_v56  ;;  %v42783_v56 = vld [vmem:[#allocation8 + $0x30] sm:$0xff]  ;;  %v15404_v29 = vand.u32 4294901760, %v15403_v48  ;;  %v13849_v48 = vld [vmem:[#allocation3 + $0xc0] sm:$0xff] }
 0xd3d   :  { %32861 = vmatprep.mubr.f32.mxu1 %v42292_v51  ;;  %v15185_v3 = vand.u32 4294901760, %v42783_v56 }
 0xd3f   :  { %v42810_v11 = vpack.c.bf16 %v15188_v53, %v15185_v3 }
 0xd40   :  { %32862 = vmatmul.mubr.f32.vlgmr.msra.gmra.mrb[10].mxu1 %v42494_v38 }
 0xd41   :  { %35822 = vmatpush3.bf16.msra.mxu1 %v42253_v33  ;;  %32864 = vmatprep.mubr.f32.mxu1 %v42496_v36  ;;  %v42755_v33 = vpack.c.bf16 %v15170_v50, %v15167_v43  ;;  %v42852_v43 = vsub.f32 %v42767_v7, %v15179_v15  ;;  %v15140_v7 = vsel %vm11193_vm3, %v13846_v9, 0 }
 0xd42   :  { %35824 = vmatprep.subr.bf16.mxu1 %v42263_v46 }
 0xd44   :  { %32865 = vmatmul.mubr.f32.gmra.mrb[12].mxu1 %v42498_v52 }
 0xd45   :  { %32867 = vmatprep.mubr.f32.mxu1 %v42501_v0  ;;  %35826 = vmatpush3.bf16.msra.mxu1 %v42263_v46  ;;  %v13857_v46 = vld [vmem:[#allocation8 + $0x10] sm:$0xff] }
 0xd46   :  { %35828 = vmatprep.subr.bf16.mxu1 %v42280_v22  ;;  %v15173_v10 = vand.u32 4294901760, %v13857_v46 }
 0xd48   :  { %32868 = vmatmul.mubr.f32.gmra.mrb[14].mxu1 %v42515_v12  ;;  %v42834_v19 = vsub.f32 %v13857_v46, %v15173_v10  ;;  %v42863_v46 = vand.u32 4294901760, %v15131_v35 }
 0xd49   :  { %32870 = vmatprep.mubr.f32.mxu1 %v42520_v26  ;;  %35830 = vmatpush3.bf16.msra.mxu1 %v42280_v22  ;;  %v13858_v22 = vld [vmem:[#allocation8 + $0x18] sm:$0xff] }
 0xd4a   :  { %35832 = vmatprep.subr.bf16.mxu1 %v42299_v6  ;;  %v15176_v49 = vand.u32 4294901760, %v13858_v22  ;;  %v46511_v25 = vand.u32 4294901760, %v42834_v19 }
 0xd4c   :  { %32871 = vmatmul.mubr.f32.gmra.mrb[16].mxu1 %v42522_v27  ;;  %v42779_v55 = vpack.c.bf16 %v15176_v49, %v15173_v10  ;;  %v42836_v23 = vsub.f32 %v13858_v22, %v15176_v49  ;;  %v42869_v10 = vand.u32 4294901760, %v15134_v63  ;;  %v15137_v49 = vsel %vm11193_vm3, %v13845_v40, 0 }
 0xd4d   :  { %32873 = vmatprep.mubr.f32.mxu1 %v42489_v4  ;;  %35834 = vmatpush3.bf16.msra.mxu1 %v42299_v6  ;;  %v42769_v6 = vld [vmem:[#allocation8 + $0x28] sm:$0xff] }
 0xd4e   :  { %35836 = vmatprep.subr.bf16.mxu1 %v42755_v33  ;;  %v15182_v47 = vand.u32 4294901760, %v42769_v6  ;;  %v46509_v62 = vand.u32 4294901760, %v42836_v23 }
 0xd50   :  { %32874 = vmatmul.mubr.f32.gmra.mrb[18].mxu1 %v42550_v5 }
 0xd51   :  { %32876 = vmatprep.mubr.f32.mxu1 %v42566_v30 }
 0xd54   :  { %32877 = vmatmul.mubr.f32.gmra.mrb[20].mxu1 %v42575_v16 }
 0xd55   :  { %32879 = vmatprep.mubr.f32.mxu1 %v42580_v14 }
 0xd58   :  { %32880 = vmatmul.mubr.f32.gmra.mrb[22].mxu1 %v42596_v20 }
 0xd59   :  { %32882 = vmatprep.mubr.f32.mxu1 %v42602_v21 }
 0xd5c   :  { %32883 = vmatmul.mubr.f32.gmra.mrb[24].mxu1 %v42614_v1 }
 0xd5d   :  { %32901 = vmatprep.mubr.f32.mxu1 %v42292_v51  ;;  %v42790_v51 = vpack.c.bf16 %v15182_v47, %v15179_v15 }
 0xd60   :  { %32902 = vmatmul.mubr.f32.vlgmr.msra.gmra.mrb[10].mxu1 %v42494_v38  ;;  %v15410_v38 = vsub.f32 %v42773_v31, %v46513_v39 }
 0xd61   :  { %35838 = vmatpush3.bf16.msra.mxu1 %v42755_v33  ;;  %32904 = vmatprep.mubr.f32.mxu1 %v42496_v36  ;;  %v15122_v36 = vsel %vm11193_vm3, %v13840_v61, 0  ;;  %v15143_v61 = vsel %vm11193_vm3, %v13847_v60, 0 }
 0xd62   :  { %35840 = vmatprep.subr.bf16.mxu1 %v42779_v55  ;;  %v15411_v59 = vand.u32 4294901760, %v15410_v38  ;;  %v42813_v8 = vand.u32 4294901760, %v15122_v36  ;;  %v46502_v38 = vand.u32 4294901760, %v42852_v43  ;;  %v42912_v42 = vand.u32 4294901760, %v15143_v61 }
 0xd64   :  { %32905 = vmatmul.mubr.f32.gmra.mrb[12].mxu1 %v42498_v52  ;;  %v42818_v52 = vand.u32 4294901760, %v15119_v37  ;;  %v42821_v41 = vpack.c.bf16 %v15411_v59, %v15404_v29  ;;  %v42824_v58 = vsub.f32 %v15122_v36, %v42813_v8  ;;  %v42894_v36 = vsub.f32 %v42785_v18, %v15188_v53 }
 0xd65   :  { %32907 = vmatprep.mubr.f32.mxu1 %v42501_v0  ;;  %35842 = vmatpush3.bf16.msra.mxu1 %v42779_v55  ;;  %v13841_v0 = vld [vmem:[#allocation3 + $0x20] sm:$0xff]  ;;  %v42898_v29 = vsub.f32 %v15131_v35, %v42863_v46  ;;  %v42900_v59 = vand.u32 4294901760, %v15137_v49  ;;  %v15149_v18 = vsel %vm11193_vm3, %v13849_v48, 0 }
 0xd66   :  { %35844 = vmatprep.subr.bf16.mxu1 %v42790_v51  ;;  %v15125_v32 = vsel %vm11193_vm3, %v13841_v0, 0 }
 0xd67   :  { %v42840_v13 = vand.u32 4294901760, %v15125_v32  ;;  %v46508_v40 = vand.u32 4294901760, %v42898_v29  ;;  %v42927_v9 = vsub.f32 %v15137_v49, %v42900_v59  ;;  %v42940_v49 = vsub.f32 %v15143_v61, %v42912_v42 }
 0xd68   :  { %32908 = vmatmul.mubr.f32.gmra.mrb[14].mxu1 %v42515_v12  ;;  %v42831_v12 = vsub.f32 %v15119_v37, %v42818_v52 }
 0xd69   :  { %32910 = vmatprep.mubr.f32.mxu1 %v42520_v26  ;;  %35846 = vmatpush3.bf16.msra.mxu1 %v42790_v51  ;;  %v15128_v26 = vsel %vm11193_vm3, %v13842_v17, 0  ;;  %v42861_v50 = vsub.f32 %v15125_v32, %v42840_v13  ;;  %v15301_v61 = vand.u32 4294901760, %v42927_v9 }
 0xd6a   :  { %35848 = vmatprep.subr.bf16.mxu1 %v42810_v11  ;;  %v46512_v34 = vand.u32 4294901760, %v42831_v12 }
 0xd6b   :  { %v46503_v37 = vand.u32 4294901760, %v42861_v50 }
 0xd6c   :  { %32911 = vmatmul.mubr.f32.gmra.mrb[16].mxu1 %v42522_v27  ;;  %v46506_v27 = vand.u32 4294901760, %v42824_v58  ;;  %v15242_v15 = vsub.f32 %v42831_v12, %v46512_v34  ;;  %v13854_v34 = vld [vmem:[#allocation3 + $0x110] sm:$0xff] }
 0xd6d   :  { %32913 = vmatprep.mubr.f32.mxu1 %v42489_v4  ;;  %35850 = vmatpush3.bf16.msra.mxu1 %v42810_v11  ;;  %v42843_v4 = vand.u32 4294901760, %v15128_v26 }
 0xd6e   :  { %35852 = vmatprep.subr.bf16.mxu1 %v42821_v41  ;;  %v15243_v53 = vand.u32 4294901760, %v15242_v15 }
 0xd6f   :  { %v42867_v22 = vsub.f32 %v15128_v26, %v42843_v4 }
 0xd70   :  { %32914 = vmatmul.mubr.f32.gmra.mrb[18].mxu1 %v42550_v5  ;;  %v42855_v5 = vsub.f32 %v42769_v6, %v15182_v47  ;;  %v13848_v6 = vld [vmem:[#allocation3 + $0xb0] sm:$0xff]  ;;  %v15424_v47 = vsub.f32 %v42836_v23, %v46509_v62 }
 0xd71   :  { %32916 = vmatprep.mubr.f32.mxu1 %v42566_v30  ;;  %v15252_v30 = vsub.f32 %v42824_v58, %v46506_v27  ;;  %v15146_v0 = vsel %vm11193_vm3, %v13848_v6, 0  ;;  %v46504_v17 = vand.u32 4294901760, %v42867_v22  ;;  %v13852_v27 = vld [vmem:[#allocation3 + $0xf0] sm:$0xff] }
 0xd72   :  { %v46501_v57 = vand.u32 4294901760, %v42855_v5  ;;  %v15425_v26 = vand.u32 4294901760, %v15424_v47  ;;  %v13850_v47 = vld [vmem:[#allocation3 + $0xd0] sm:$0xff] }
 0xd73   :  { %v15253_v60 = vand.u32 4294901760, %v15252_v30  ;;  %v15272_v6 = vsub.f32 %v42867_v22, %v46504_v17 }
 0xd74   :  { %32917 = vmatmul.mubr.f32.gmra.mrb[20].mxu1 %v42575_v16  ;;  %v15417_v16 = vsub.f32 %v42834_v19, %v46511_v25  ;;  %v15438_v24 = vsub.f32 %v42855_v5, %v46501_v57  ;;  %v15158_v25 = vsel %vm11193_vm3, %v13852_v27, 0 }
 0xd75   :  { %32919 = vmatprep.mubr.f32.mxu1 %v42580_v14  ;;  %v42889_v14 = vsub.f32 %v42783_v56, %v15185_v3  ;;  %v42906_v56 = vsub.f32 %v15134_v63, %v42869_v10  ;;  %v42908_v3 = vand.u32 4294901760, %v15140_v7  ;;  %v46507_v63 = vand.u32 4294901760, %v42894_v36 }
 0xd76   :  { %v15418_v32 = vand.u32 4294901760, %v15417_v16  ;;  %v42934_v16 = vand.u32 4294901760, %v15146_v0 }
 0xd77   :  { %v46505_v35 = vand.u32 4294901760, %v42889_v14  ;;  %v46510_v15 = vand.u32 4294901760, %v42906_v56  ;;  %v42937_v57 = vsub.f32 %v15140_v7, %v42908_v3  ;;  %v15282_v7 = vsub.f32 %v42898_v29, %v46508_v40 }
 0xd78   :  { %32920 = vmatmul.mubr.f32.gmra.mrb[22].mxu1 %v42596_v20  ;;  %v15431_v20 = vsub.f32 %v42852_v43, %v46502_v38  ;;  %v35855_v48 = vpack.c.bf16 %v15425_v26, %v15418_v32  ;;  %v42942_v38 = vand.u32 4294901760, %v15149_v18  ;;  %v15152_v26 = vsel %vm11193_vm3, %v13850_v47, 0 }
 0xd79   :  { %32922 = vmatprep.mubr.f32.mxu1 %v42602_v21  ;;  %v15262_v21 = vsub.f32 %v42861_v50, %v46503_v37  ;;  %v15439_v37 = vand.u32 4294901760, %v15438_v24  ;;  %v15445_v17 = vsub.f32 %v42889_v14, %v46505_v35  ;;  %v42956_v24 = vsub.f32 %v15146_v0, %v42934_v16 }
 0xd7a   :  { %v15432_v30 = vand.u32 4294901760, %v15431_v20  ;;  %v15273_v20 = vand.u32 4294901760, %v15272_v6  ;;  %v46514_v40 = vand.u32 4294901760, %v42940_v49  ;;  %v13853_v6 = vld [vmem:[#allocation3 + $0x100] sm:$0xff]  ;;  %v42968_v47 = vand.u32 4294901760, %v15152_v26 }
 0xd7b   :  { %v15263_v32 = vand.u32 4294901760, %v15262_v21  ;;  %v15292_v21 = vsub.f32 %v42906_v56, %v46510_v15 }
 0xd7c   :  { %32923 = vmatmul.mubr.f32.gmra.mrb[24].mxu1 %v42614_v1  ;;  %v13851_v1 = vld [vmem:[#allocation3 + $0xe0] sm:$0xff]  ;;  %v35859_v0 = vpack.c.bf16 %v15439_v37, %v15432_v30  ;;  %v15331_v30 = vand.u32 4294901760, %v42956_v24 }
 0xd7d   :  { %32941 = vmatprep.mubr.f32.mxu1 %v15243_v53  ;;  %v15452_v53 = vsub.f32 %v42894_v36, %v46507_v63  ;;  %v15155_v35 = vsel %vm11193_vm3, %v13851_v1, 0  ;;  %v46515_v63 = vand.u32 4294901760, %v42937_v57  ;;  %v15446_v1 = vand.u32 4294901760, %v15445_v17 }
 0xd7e   :  { %v42973_v15 = vand.u32 4294901760, %v15155_v35  ;;  %v15293_v39 = vand.u32 4294901760, %v15292_v21  ;;  %v15322_v17 = vsub.f32 %v42940_v49, %v46514_v40 }
 0xd7f   :  { %v15453_v62 = vand.u32 4294901760, %v15452_v53  ;;  %v15312_v37 = vsub.f32 %v42937_v57, %v46515_v63  ;;  %v42986_v53 = vsub.f32 %v15152_v26, %v42968_v47  ;;  %v15332_v26 = vsub.f32 %v42956_v24, %v15331_v30 }
 0xd80   :  { %32942 = vmatmul.mubr.f32.vlgmr.msra.gmra.mrb[10].mxu1 %v15253_v60  ;;  %v42966_v60 = vsub.f32 %v15149_v18, %v42942_v38  ;;  %v15161_v18 = vsel %vm11193_vm3, %v13853_v6, 0  ;;  %v42991_v21 = vsub.f32 %v15155_v35, %v42973_v15  ;;  %v15323_v63 = vand.u32 4294901760, %v15322_v17 }
 0xd81   :  { %35854 = vmatpush3.bf16.msra.mxu1 %v42821_v41  ;;  %32944 = vmatprep.mubr.f32.mxu1 %v15263_v32  ;;  %v15283_v41 = vand.u32 4294901760, %v15282_v7  ;;  %v15302_v32 = vsub.f32 %v42927_v9, %v15301_v61  ;;  %v35863_v7 = vpack.c.bf16 %v15453_v62, %v15446_v1  ;;  %v42993_v6 = vand.u32 4294901760, %v15161_v18 }
 0xd82   :  { %35856 = vmatprep.subr.bf16.mxu1 %v35855_v48  ;;  %v46516_v27 = vand.u32 4294901760, %v42966_v60  ;;  %v15313_v40 = vand.u32 4294901760, %v15312_v37  ;;  %v46517_v62 = vand.u32 4294901760, %v42986_v53 }
 0xd83   :  { %v43012_v37 = vsub.f32 %v15161_v18, %v42993_v6 }
 0xd84   :  { %32945 = vmatmul.mubr.f32.gmra.mrb[12].mxu1 %v15273_v20  ;;  %v42988_v20 = vand.u32 4294901760, %v15158_v25 }
 0xd85   :  { %32947 = vmatprep.mubr.f32.mxu1 %v15283_v41  ;;  %35858 = vmatpush3.bf16.msra.mxu1 %v35855_v48  ;;  %v15303_v48 = vand.u32 4294901760, %v15302_v32  ;;  %v15164_v41 = vsel %vm11193_vm3, %v13854_v34, 0  ;;  %v35867_v34 = vpack.c.bf16 %v42773_v31, %v42771_v2  ;;  %v15361_v32 = vand.u32 4294901760, %v42991_v21 }
 0xd86   :  { %35860 = vmatprep.subr.bf16.mxu1 %v35859_v0  ;;  %v43001_v1 = vsub.f32 %v15158_v25, %v42988_v20  ;;  %v43003_v35 = vand.u32 4294901760, %v15164_v41  ;;  %v15352_v25 = vsub.f32 %v42986_v53, %v46517_v62  ;;  %v46762_v2 = vand.u32 4294901760, %v42831_v12 }
 0xd87   :  { %v15362_v18 = vsub.f32 %v42991_v21, %v15361_v32 }
 0xd88   :  { %32948 = vmatmul.mubr.f32.gmra.mrb[14].mxu1 %v15293_v39  ;;  %v15342_v39 = vsub.f32 %v42966_v60, %v46516_v27  ;;  %v15371_v17 = vand.u32 4294901760, %v43001_v1 }
 0xd89   :  { %32950 = vmatprep.mubr.f32.mxu1 %v15303_v48  ;;  %35862 = vmatpush3.bf16.msra.mxu1 %v35859_v0  ;;  %v15333_v0 = vand.u32 4294901760, %v15332_v26  ;;  %v43019_v48 = vsub.f32 %v15164_v41, %v43003_v35  ;;  %v15363_v62 = vand.u32 4294901760, %v15362_v18  ;;  %v35871_v18 = vpack.c.bf16 %v42836_v23, %v42834_v19 }
 0xd8a   :  { %35864 = vmatprep.subr.bf16.mxu1 %v35863_v7  ;;  %v15343_v27 = vand.u32 4294901760, %v15342_v39 }
 0xd8b   :  { %v15391_v26 = vand.u32 4294901760, %v43019_v48 }
 0xd8c   :  { %32951 = vmatmul.mubr.f32.gmra.mrb[16].mxu1 %v15313_v40  ;;  %v15381_v40 = vand.u32 4294901760, %v43012_v37 }
 0xd8d   :  { %32953 = vmatprep.mubr.f32.mxu1 %v15323_v63  ;;  %35866 = vmatpush3.bf16.msra.mxu1 %v35863_v7  ;;  %v15353_v63 = vand.u32 4294901760, %v15352_v25  ;;  %v15372_v7 = vsub.f32 %v43001_v1, %v15371_v17 }
 0xd8e   :  { %35868 = vmatprep.subr.bf16.mxu1 %v35867_v34  ;;  %v15382_v41 = vsub.f32 %v43012_v37, %v15381_v40 }
 0xd8f   :  { %v15373_v39 = vand.u32 4294901760, %v15372_v7 }
 0xd90   :  { %32954 = vmatmul.mubr.f32.gmra.mrb[18].mxu1 %v15333_v0  ;;  %v15392_v0 = vsub.f32 %v43019_v48, %v15391_v26 }
 0xd91   :  { %32956 = vmatprep.mubr.f32.mxu1 %v15343_v27  ;;  %v15383_v27 = vand.u32 4294901760, %v15382_v41 }
 0xd92   :  { %v15393_v25 = vand.u32 4294901760, %v15392_v0  ;;  %v46766_v0 = vand.u32 4294901760, %v42861_v50 }
 0xd94   :  { %32957 = vmatmul.mubr.f32.gmra.mrb[20].mxu1 %v15353_v63  ;;  %v35879_v63 = vpack.c.bf16 %v42894_v36, %v42889_v14 }
 0xd95   :  { %32959 = vmatprep.mubr.f32.mxu1 %v15363_v62  ;;  %v35875_v62 = vpack.c.bf16 %v42855_v5, %v42852_v43 }
 0xd98   :  { %32960 = vmatmul.mubr.f32.gmra.mrb[22].mxu1 %v15373_v39  ;;  %v46765_v39 = vand.u32 4294901760, %v42824_v58 }
 0xd99   :  { %32962 = vmatprep.mubr.f32.mxu1 %v15383_v27  ;;  %v46767_v27 = vand.u32 4294901760, %v42852_v43  ;;  %v46774_v43 = vand.u32 4294901760, %v42937_v57 }
 0xd9c   :  { %32963 = vmatmul.mubr.f32.gmra.mrb[24].mxu1 %v15393_v25  ;;  %v46768_v25 = vand.u32 4294901760, %v42855_v5  ;;  %v46775_v5 = vand.u32 4294901760, %v42940_v49 }
 0xd9d   :  { %32981 = vmatprep.mubr.f32.mxu1 %v42818_v52 }
 0xda0   :  { %32982 = vmatmul.mubr.f32.vlgmr.msra.gmra.mrb[10].mxu1 %v42813_v8 }
 0xda1   :  { %35870 = vmatpush3.bf16.msra.mxu1 %v35867_v34  ;;  %32984 = vmatprep.mubr.f32.mxu1 %v42840_v13  ;;  %v46761_v34 = vand.u32 4294901760, %v42773_v31  ;;  %v46763_v31 = vand.u32 4294901760, %v42834_v19  ;;  %v46770_v19 = vand.u32 4294901760, %v42898_v29 }
 0xda2   :  { %35872 = vmatprep.subr.bf16.mxu1 %v35871_v18 }
 0xda3   :  { %v35899_v7 = vpack.c.bf16 %v46761_v34, %v15402_v54  ;;  %v46764_v54 = vand.u32 4294901760, %v42836_v23  ;;  %v46772_v23 = vand.u32 4294901760, %v42894_v36  ;;  %v16366_v36 = vld [vmem:[#allocation8 + $0x88] sm:$0xff] }
 0xda4   :  { %32985 = vmatmul.mubr.f32.gmra.mrb[12].mxu1 %v42843_v4 }
 0xda5   :  { %32987 = vmatprep.mubr.f32.mxu1 %v42863_v46  ;;  %35874 = vmatpush3.bf16.msra.mxu1 %v35871_v18  ;;  %v35903_v41 = vpack.c.bf16 %v46764_v54, %v46763_v31  ;;  %v35907_v18 = vpack.c.bf16 %v46768_v25, %v46767_v27  ;;  %v16350_v54 = vld [vmem:[#allocation3 + $0x22] sm:$0xff] }
 0xda6   :  { %35876 = vmatprep.subr.bf16.mxu1 %v35875_v62  ;;  %v16352_v25 = vld [vmem:[#allocation3 + $0x42] sm:$0xff] }
 0xda8   :  { %32988 = vmatmul.mubr.f32.gmra.mrb[14].mxu1 %v42869_v10 }
 0xda9   :  { %32990 = vmatprep.mubr.f32.mxu1 %v42900_v59  ;;  %35878 = vmatpush3.bf16.msra.mxu1 %v35875_v62  ;;  %v46773_v62 = vand.u32 4294901760, %v42906_v56 }
 0xdaa   :  { %35880 = vmatprep.subr.bf16.mxu1 %v35879_v63 }
 0xdac   :  { %32991 = vmatmul.mubr.f32.gmra.mrb[16].mxu1 %v42908_v3 }
 0xdad   :  { %32993 = vmatprep.mubr.f32.mxu1 %v42912_v42  ;;  %35882 = vmatpush3.bf16.msra.mxu1 %v35879_v63  ;;  %v16348_v63 = vld [vmem:[#allocation3 + $0x2] sm:$0xff] }
 0xdae   :  { %35884 = vmatprep.subr.bf16.mxu1 %v42755_v33 }
 0xdb0   :  { %32994 = vmatmul.mubr.f32.gmra.mrb[18].mxu1 %v42934_v16 }
 0xdb1   :  { %32996 = vmatprep.mubr.f32.mxu1 %v42942_v38 }
 0xdb4   :  { %32997 = vmatmul.mubr.f32.gmra.mrb[20].mxu1 %v42968_v47 }
 0xdb5   :  { %32999 = vmatprep.mubr.f32.mxu1 %v42973_v15 }
 0xdb8   :  { %33000 = vmatmul.mubr.f32.gmra.mrb[22].mxu1 %v42988_v20 }
 0xdb9   :  { %33002 = vmatprep.mubr.f32.mxu1 %v42993_v6 }
 0xdbc   :  { %33003 = vmatmul.mubr.f32.gmra.mrb[24].mxu1 %v43003_v35 }
 0xdbd   :  { %33021 = vmatprep.mubr.f32.mxu1 %v42831_v12  ;;  %v46769_v12 = vand.u32 4294901760, %v42867_v22 }
 0xdc0   :  { %33022 = vmatmul.mubr.f32.vlgmr.msra.gmra.mrb[10].mxu1 %v42824_v58  ;;  %v46771_v58 = vand.u32 4294901760, %v42889_v14  ;;  %v46777_v14 = vand.u32 4294901760, %v42986_v53 }
 0xdc1   :  { %35886 = vmatpush3.bf16.msra.mxu1 %v42755_v33  ;;  %33024 = vmatprep.mubr.f32.mxu1 %v42861_v50 }
 0xdc2   :  { %35888 = vmatprep.subr.bf16.mxu1 %v42779_v55  ;;  %v35911_v50 = vpack.c.bf16 %v46772_v23, %v46771_v58 }
 0xdc4   :  { %33025 = vmatmul.mubr.f32.gmra.mrb[12].mxu1 %v42867_v22  ;;  %v46776_v22 = vand.u32 4294901760, %v42966_v60 }
 0xdc5   :  { %33027 = vmatprep.mubr.f32.mxu1 %v42898_v29  ;;  %35890 = vmatpush3.bf16.msra.mxu1 %v42779_v55 }
 0xdc6   :  { %35892 = vmatprep.subr.bf16.mxu1 %v42790_v51 }
 0xdc8   :  { %33028 = vmatmul.mubr.f32.gmra.mrb[14].mxu1 %v42906_v56  ;;  %v16425_v56 = vand.u32 4294901760, %v16366_v36 }
 0xdc9   :  { %33030 = vmatprep.mubr.f32.mxu1 %v42927_v9  ;;  %35894 = vmatpush3.bf16.msra.mxu1 %v42790_v51 }
 0xdca   :  { %35896 = vmatprep.subr.bf16.mxu1 %v42810_v11 }
 0xdcc   :  { %33031 = vmatmul.mubr.f32.gmra.mrb[16].mxu1 %v42937_v57  ;;  %v16365_v57 = vld [vmem:[#allocation8 + $0x80] sm:$0xff] }
 0xdcd   :  { %33033 = vmatprep.mubr.f32.mxu1 %v42940_v49  ;;  %35898 = vmatpush3.bf16.msra.mxu1 %v42810_v11  ;;  %v16422_v29 = vand.u32 4294901760, %v16365_v57 }
 0xdce   :  { %35900 = vmatprep.subr.bf16.mxu1 %v35899_v7 }
 0xdd0   :  { %33034 = vmatmul.mubr.f32.gmra.mrb[18].mxu1 %v42956_v24  ;;  %v43159_v24 = vsub.f32 %v16365_v57, %v16422_v29  ;;  %v16355_v57 = vld [vmem:[#allocation3 + $0x72] sm:$0xff] }
 0xdd1   :  { %33036 = vmatprep.mubr.f32.mxu1 %v42966_v60  ;;  %v43161_v60 = vsub.f32 %v16366_v36, %v16425_v56  ;;  %v16356_v36 = vld [vmem:[#allocation3 + $0xa2] sm:$0xff] }
 0xdd4   :  { %33037 = vmatmul.mubr.f32.gmra.mrb[20].mxu1 %v42986_v53 }
 0xdd5   :  { %33039 = vmatprep.mubr.f32.mxu1 %v42991_v21 }
 0xdd8   :  { %33040 = vmatmul.mubr.f32.gmra.mrb[22].mxu1 %v43001_v1  ;;  %v16657_v1 = vand.u32 4294901760, %v43159_v24 }
 0xdd9   :  { %33042 = vmatprep.mubr.f32.mxu1 %v43012_v37  ;;  %v43171_v37 = vld [vmem:[#allocation8 + $0xb0] sm:$0xff] }
 0xddc   :  { %33043 = vmatmul.mubr.f32.gmra.mrb[24].mxu1 %v43019_v48  ;;  %v16440_v48 = vand.u32 4294901760, %v43171_v37 }
 0xddd   :  { %33061 = vmatprep.mubr.f32.mxu1 %v46762_v2 }
 0xde0   :  { %33062 = vmatmul.mubr.f32.vlgmr.msra.gmra.mrb[10].mxu1 %v46765_v39 }
 0xde1   :  { %35902 = vmatpush3.bf16.msra.mxu1 %v35899_v7  ;;  %33064 = vmatprep.mubr.f32.mxu1 %v46766_v0  ;;  %v16374_v7 = vsel %vm11193_vm3, %v16348_v63, 0 }
 0xde2   :  { %35904 = vmatprep.subr.bf16.mxu1 %v35903_v41 }
 0xde4   :  { %33065 = vmatmul.mubr.f32.gmra.mrb[12].mxu1 %v46769_v12 }
 0xde5   :  { %33067 = vmatprep.mubr.f32.mxu1 %v46770_v19  ;;  %35906 = vmatpush3.bf16.msra.mxu1 %v35903_v41  ;;  %v16351_v41 = vld [vmem:[#allocation3 + $0x32] sm:$0xff] }
 0xde6   :  { %35908 = vmatprep.subr.bf16.mxu1 %v35907_v18  ;;  %v16383_v27 = vsel %vm11193_vm3, %v16351_v41, 0  ;;  %v16353_v19 = vld [vmem:[#allocation3 + $0x52] sm:$0xff] }
 0xde8   :  { %33068 = vmatmul.mubr.f32.gmra.mrb[14].mxu1 %v46773_v62  ;;  %v16389_v62 = vsel %vm11193_vm3, %v16353_v19, 0 }
 0xde9   :  { %33070 = vmatprep.mubr.f32.mxu1 %v15301_v61  ;;  %35910 = vmatpush3.bf16.msra.mxu1 %v35907_v18  ;;  %v43155_v61 = vld [vmem:[#allocation8 + $0xa0] sm:$0xff] }
 0xdea   :  { %35912 = vmatprep.subr.bf16.mxu1 %v35911_v50 }
 0xdec   :  { %33071 = vmatmul.mubr.f32.gmra.mrb[16].mxu1 %v46774_v43 }
 0xded   :  { %33073 = vmatprep.mubr.f32.mxu1 %v46775_v5  ;;  %35914 = vmatpush3.bf16.msra.mxu1 %v35911_v50  ;;  %v16386_v50 = vsel %vm11193_vm3, %v16352_v25, 0  ;;  %v16358_v25 = vld [vmem:[#allocation3 + $0xc2] sm:$0xff] }
 0xdee   :  { %35916 = vmatprep.subr.bf16.mxu1 %v42755_v33 }
 0xdf0   :  { %33074 = vmatmul.mubr.f32.gmra.mrb[18].mxu1 %v15331_v30  ;;  %v16434_v30 = vand.u32 4294901760, %v43155_v61 }
 0xdf1   :  { %33076 = vmatprep.mubr.f32.mxu1 %v46776_v22 }
 0xdf4   :  { %33077 = vmatmul.mubr.f32.gmra.mrb[20].mxu1 %v46777_v14 }
 0xdf5   :  { %33079 = vmatprep.mubr.f32.mxu1 %v15361_v32  ;;  %v46531_v32 = vand.u32 4294901760, %v43161_v60 }
 0xdf8   :  { %33080 = vmatmul.mubr.f32.gmra.mrb[22].mxu1 %v15371_v17  ;;  %v43173_v17 = vld [vmem:[#allocation8 + $0xb8] sm:$0xff] }
 0xdf9   :  { %33082 = vmatprep.mubr.f32.mxu1 %v15381_v40  ;;  %v16443_v40 = vand.u32 4294901760, %v43173_v17 }
 0xdfb   :  { %v43197_v34 = vpack.c.bf16 %v16443_v40, %v16440_v48 }
 0xdfc   :  { %33083 = vmatmul.mubr.f32.gmra.mrb[24].mxu1 %v15391_v26  ;;  %v16658_v26 = vsub.f32 %v43159_v24, %v16657_v1 }
 0xdfd   :  { %33101 = vmatprep.mubr.f32.mxu1 %v42818_v52 }
 0xdfe   :  { %v16659_v2 = vand.u32 4294901760, %v16658_v26  ;;  %v16357_v26 = vld [vmem:[#allocation3 + $0xb2] sm:$0xff] }
 0xe00   :  { %33102 = vmatmul.mubr.f32.vlgmr.msra.gmra.mrb[10].mxu1 %v42813_v8 }
 0xe01   :  { %35918 = vmatpush3.bf16.msra.mxu1 %v42755_v33  ;;  %33104 = vmatprep.mubr.f32.mxu1 %v42840_v13  ;;  %v43143_v33 = vpack.c.bf16 %v16425_v56, %v16422_v29  ;;  %v43240_v29 = vsub.f32 %v43155_v61, %v16434_v30  ;;  %v16395_v61 = vsel %vm11193_vm3, %v16355_v57, 0 }
 0xe02   :  { %35920 = vmatprep.subr.bf16.mxu1 %v42779_v55 }
 0xe04   :  { %33105 = vmatmul.mubr.f32.gmra.mrb[12].mxu1 %v42843_v4 }
 0xe05   :  { %33107 = vmatprep.mubr.f32.mxu1 %v42863_v46  ;;  %35922 = vmatpush3.bf16.msra.mxu1 %v42779_v55  ;;  %v16367_v55 = vld [vmem:[#allocation8 + $0x90] sm:$0xff] }
 0xe06   :  { %35924 = vmatprep.subr.bf16.mxu1 %v42790_v51  ;;  %v16428_v9 = vand.u32 4294901760, %v16367_v55 }
 0xe08   :  { %33108 = vmatmul.mubr.f32.gmra.mrb[14].mxu1 %v42869_v10  ;;  %v43219_v18 = vsub.f32 %v16367_v55, %v16428_v9 }
 0xe09   :  { %33110 = vmatprep.mubr.f32.mxu1 %v42900_v59  ;;  %35926 = vmatpush3.bf16.msra.mxu1 %v42790_v51  ;;  %v16368_v51 = vld [vmem:[#allocation8 + $0x98] sm:$0xff] }
 0xe0a   :  { %35928 = vmatprep.subr.bf16.mxu1 %v42810_v11  ;;  %v16431_v49 = vand.u32 4294901760, %v16368_v51  ;;  %v46528_v5 = vand.u32 4294901760, %v43219_v18 }
 0xe0c   :  { %33111 = vmatmul.mubr.f32.gmra.mrb[16].mxu1 %v42908_v3  ;;  %v43167_v21 = vpack.c.bf16 %v16431_v49, %v16428_v9  ;;  %v43221_v12 = vsub.f32 %v16368_v51, %v16431_v49  ;;  %v43252_v51 = vand.u32 4294901760, %v16386_v50  ;;  %v43255_v9 = vand.u32 4294901760, %v16389_v62 }
 0xe0d   :  { %33113 = vmatprep.mubr.f32.mxu1 %v42912_v42  ;;  %35930 = vmatpush3.bf16.msra.mxu1 %v42810_v11  ;;  %v43157_v11 = vld [vmem:[#allocation8 + $0xa8] sm:$0xff] }
 0xe0e   :  { %35932 = vmatprep.subr.bf16.mxu1 %v43143_v33  ;;  %v16437_v53 = vand.u32 4294901760, %v43157_v11  ;;  %v46526_v22 = vand.u32 4294901760, %v43221_v12 }
 0xe10   :  { %33114 = vmatmul.mubr.f32.gmra.mrb[18].mxu1 %v42934_v16 }
 0xe11   :  { %33116 = vmatprep.mubr.f32.mxu1 %v42942_v38 }
 0xe14   :  { %33117 = vmatmul.mubr.f32.gmra.mrb[20].mxu1 %v42968_v47 }
 0xe15   :  { %33119 = vmatprep.mubr.f32.mxu1 %v42973_v15 }
 0xe18   :  { %33120 = vmatmul.mubr.f32.gmra.mrb[22].mxu1 %v42988_v20 }
 0xe19   :  { %33122 = vmatprep.mubr.f32.mxu1 %v42993_v6 }
 0xe1c   :  { %33123 = vmatmul.mubr.f32.gmra.mrb[24].mxu1 %v43003_v35 }
 0xe1d   :  { %33141 = vmatprep.mubr.f32.mxu1 %v42818_v52  ;;  %v43178_v52 = vpack.c.bf16 %v16437_v53, %v16434_v30  ;;  %v16672_v30 = vsub.f32 %v43219_v18, %v46528_v5 }
 0xe1f   :  { %v16673_v41 = vand.u32 4294901760, %v16672_v30  ;;  %v16404_v30 = vsel %vm11193_vm3, %v16358_v25, 0 }
 0xe20   :  { %33142 = vmatmul.mubr.f32.vlgmr.msra.gmra.mrb[10].mxu1 %v42813_v8  ;;  %v16665_v8 = vsub.f32 %v43161_v60, %v46531_v32 }
 0xe21   :  { %35934 = vmatpush3.bf16.msra.mxu1 %v43143_v33  ;;  %33144 = vmatprep.mubr.f32.mxu1 %v42840_v13  ;;  %v16349_v13 = vld [vmem:[#allocation3 + $0x12] sm:$0xff] }
 0xe22   :  { %35936 = vmatprep.subr.bf16.mxu1 %v43167_v21  ;;  %v16666_v31 = vand.u32 4294901760, %v16665_v8  ;;  %v46519_v8 = vand.u32 4294901760, %v43240_v29 }
 0xe24   :  { %33145 = vmatmul.mubr.f32.gmra.mrb[12].mxu1 %v42843_v4  ;;  %v16377_v4 = vsel %vm11193_vm3, %v16349_v13, 0  ;;  %v43207_v39 = vpack.c.bf16 %v16666_v31, %v16659_v2  ;;  %v43281_v13 = vsub.f32 %v43173_v17, %v16443_v40  ;;  %v43298_v17 = vand.u32 4294901760, %v16395_v61 }
 0xe25   :  { %33147 = vmatprep.mubr.f32.mxu1 %v42863_v46  ;;  %35938 = vmatpush3.bf16.msra.mxu1 %v43167_v21  ;;  %v43204_v46 = vand.u32 4294901760, %v16374_v7  ;;  %v43209_v0 = vand.u32 4294901760, %v16377_v4  ;;  %v16401_v40 = vsel %vm11193_vm3, %v16357_v26, 0 }
 0xe26   :  { %35940 = vmatprep.subr.bf16.mxu1 %v43178_v52 }
 0xe27   :  { %v43225_v58 = vsub.f32 %v16377_v4, %v43209_v0  ;;  %v43289_v4 = vsub.f32 %v16386_v50, %v43252_v51  ;;  %v46524_v50 = vand.u32 4294901760, %v43281_v13 }
 0xe28   :  { %33148 = vmatmul.mubr.f32.gmra.mrb[14].mxu1 %v42869_v10  ;;  %v16380_v10 = vsel %vm11193_vm3, %v16350_v54, 0 }
 0xe29   :  { %33150 = vmatprep.mubr.f32.mxu1 %v42900_v59  ;;  %35942 = vmatpush3.bf16.msra.mxu1 %v43178_v52  ;;  %v43217_v59 = vsub.f32 %v16374_v7, %v43204_v46  ;;  %v43227_v23 = vand.u32 4294901760, %v16380_v10  ;;  %v46522_v56 = vand.u32 4294901760, %v43225_v58 }
 0xe2a   :  { %35944 = vmatprep.subr.bf16.mxu1 %v43197_v34 }
 0xe2b   :  { %v46530_v43 = vand.u32 4294901760, %v43217_v59  ;;  %v16507_v7 = vsub.f32 %v43225_v58, %v46522_v56 }
 0xe2c   :  { %33151 = vmatmul.mubr.f32.gmra.mrb[16].mxu1 %v42908_v3  ;;  %v16354_v3 = vld [vmem:[#allocation3 + $0x62] sm:$0xff] }
 0xe2d   :  { %33153 = vmatprep.mubr.f32.mxu1 %v42912_v42  ;;  %35946 = vmatpush3.bf16.msra.mxu1 %v43197_v34  ;;  %v43229_v42 = vand.u32 4294901760, %v16383_v27  ;;  %v16392_v14 = vsel %vm11193_vm3, %v16354_v3, 0 }
 0xe2e   :  { %35948 = vmatprep.subr.bf16.mxu1 %v43207_v39  ;;  %v43257_v49 = vand.u32 4294901760, %v16392_v14 }
 0xe2f   :  { %v43250_v55 = vsub.f32 %v16383_v27, %v43229_v42 }
 0xe30   :  { %33154 = vmatmul.mubr.f32.gmra.mrb[18].mxu1 %v42934_v16  ;;  %v43243_v16 = vsub.f32 %v43157_v11, %v16437_v53  ;;  %v16497_v11 = vsub.f32 %v43217_v59, %v46530_v43  ;;  %v16398_v53 = vsel %vm11193_vm3, %v16356_v36, 0  ;;  %v16363_v43 = vld [vmem:[#allocation3 + $0x112] sm:$0xff] }
 0xe31   :  { %33156 = vmatprep.mubr.f32.mxu1 %v42942_v38  ;;  %v43247_v38 = vsub.f32 %v16380_v10, %v43227_v23  ;;  %v46521_v31 = vand.u32 4294901760, %v43250_v55  ;;  %v43302_v27 = vand.u32 4294901760, %v16398_v53 }
 0xe32   :  { %v46518_v63 = vand.u32 4294901760, %v43243_v16  ;;  %v16498_v54 = vand.u32 4294901760, %v16497_v11  ;;  %v43321_v11 = vand.u32 4294901760, %v16401_v40 }
 0xe33   :  { %v46520_v2 = vand.u32 4294901760, %v43247_v38  ;;  %v16527_v57 = vsub.f32 %v43250_v55, %v46521_v31 }
 0xe34   :  { %33157 = vmatmul.mubr.f32.gmra.mrb[20].mxu1 %v42968_v47  ;;  %v16679_v47 = vsub.f32 %v43221_v12, %v46526_v22  ;;  %v16693_v19 = vsub.f32 %v43243_v16, %v46518_v63  ;;  %v43326_v63 = vsub.f32 %v16395_v61, %v43298_v17 }
 0xe35   :  { %33159 = vmatprep.mubr.f32.mxu1 %v42973_v15  ;;  %v43276_v15 = vsub.f32 %v43171_v37, %v16440_v48  ;;  %v43293_v37 = vsub.f32 %v16389_v62, %v43255_v9  ;;  %v43296_v48 = vsub.f32 %v16392_v14, %v43257_v49  ;;  %v16508_v62 = vand.u32 4294901760, %v16507_v7 }
 0xe36   :  { %v16680_v10 = vand.u32 4294901760, %v16679_v47  ;;  %v46525_v14 = vand.u32 4294901760, %v43289_v4  ;;  %v16359_v47 = vld [vmem:[#allocation3 + $0xd2] sm:$0xff]  ;;  %v16694_v31 = vand.u32 4294901760, %v16693_v19  ;;  %v16528_v25 = vand.u32 4294901760, %v16527_v57 }
 0xe37   :  { %v46523_v3 = vand.u32 4294901760, %v43276_v15  ;;  %v46527_v36 = vand.u32 4294901760, %v43293_v37  ;;  %v46529_v7 = vand.u32 4294901760, %v43296_v48 }
 0xe38   :  { %33160 = vmatmul.mubr.f32.gmra.mrb[22].mxu1 %v42988_v20  ;;  %v16686_v20 = vsub.f32 %v43240_v29, %v46519_v8  ;;  %v35951_v26 = vpack.c.bf16 %v16680_v10, %v16673_v41  ;;  %v16360_v8 = vld [vmem:[#allocation3 + $0xe2] sm:$0xff]  ;;  %v16537_v61 = vsub.f32 %v43289_v4, %v46525_v14  ;;  %v43340_v10 = vand.u32 4294901760, %v16404_v30 }
 0xe39   :  { %33162 = vmatprep.mubr.f32.mxu1 %v42993_v6  ;;  %v16517_v6 = vsub.f32 %v43247_v38, %v46520_v2  ;;  %v16700_v56 = vsub.f32 %v43276_v15, %v46523_v3  ;;  %v16410_v19 = vsel %vm11193_vm3, %v16360_v8, 0  ;;  %v16361_v3 = vld [vmem:[#allocation3 + $0xf2] sm:$0xff] }
 0xe3a   :  { %v16687_v2 = vand.u32 4294901760, %v16686_v20  ;;  %v43344_v20 = vsub.f32 %v16401_v40, %v43321_v11  ;;  %v16362_v40 = vld [vmem:[#allocation3 + $0x102] sm:$0xff]  ;;  %v43359_v22 = vsub.f32 %v16404_v30, %v43340_v10  ;;  %v16413_v5 = vsel %vm11193_vm3, %v16361_v3, 0 }
 0xe3b   :  { %v16518_v41 = vand.u32 4294901760, %v16517_v6  ;;  %v16547_v6 = vsub.f32 %v43293_v37, %v46527_v36  ;;  %v16701_v14 = vand.u32 4294901760, %v16700_v56  ;;  %v43361_v36 = vand.u32 4294901760, %v16410_v19 }
 0xe3c   :  { %33163 = vmatmul.mubr.f32.gmra.mrb[24].mxu1 %v43003_v35  ;;  %v43329_v35 = vsub.f32 %v16398_v53, %v43302_v27  ;;  %v16407_v53 = vsel %vm11193_vm3, %v16359_v47, 0  ;;  %v35955_v47 = vpack.c.bf16 %v16694_v31, %v16687_v2  ;;  %v46532_v31 = vand.u32 4294901760, %v43344_v20 }
 0xe3d   :  { %33181 = vmatprep.mubr.f32.mxu1 %v16498_v54  ;;  %v16707_v54 = vsub.f32 %v43281_v13, %v46524_v50  ;;  %v16557_v50 = vsub.f32 %v43296_v48, %v46529_v7  ;;  %v43356_v8 = vand.u32 4294901760, %v16407_v53  ;;  %v16416_v7 = vsel %vm11193_vm3, %v16362_v40, 0 }
 0xe3e   :  { %v16576_v57 = vand.u32 4294901760, %v43329_v35  ;;  %v16548_v32 = vand.u32 4294901760, %v16547_v6  ;;  %v43381_v6 = vand.u32 4294901760, %v16416_v7  ;;  %v16419_v40 = vsel %vm11193_vm3, %v16363_v43, 0 }
 0xe3f   :  { %v16558_v30 = vand.u32 4294901760, %v16557_v50  ;;  %v43373_v3 = vsub.f32 %v16407_v53, %v43356_v8  ;;  %v16587_v53 = vsub.f32 %v43344_v20, %v46532_v31  ;;  %v35963_v43 = vpack.c.bf16 %v43161_v60, %v43159_v24 }
 0xe40   :  { %33182 = vmatmul.mubr.f32.vlgmr.msra.gmra.mrb[10].mxu1 %v16508_v62  ;;  %v16566_v62 = vand.u32 4294901760, %v43326_v63  ;;  %v16577_v2 = vsub.f32 %v43329_v35, %v16576_v57  ;;  %v46779_v24 = vand.u32 4294901760, %v43217_v59 }
 0xe41   :  { %35950 = vmatpush3.bf16.msra.mxu1 %v43207_v39  ;;  %33184 = vmatprep.mubr.f32.mxu1 %v16518_v41  ;;  %v16708_v39 = vand.u32 4294901760, %v16707_v54  ;;  %v16538_v41 = vand.u32 4294901760, %v16537_v61  ;;  %v43375_v61 = vand.u32 4294901760, %v16413_v5 }
 0xe42   :  { %35952 = vmatprep.subr.bf16.mxu1 %v35951_v26  ;;  %v16567_v56 = vsub.f32 %v43326_v63, %v16566_v62  ;;  %v16578_v50 = vand.u32 4294901760, %v16577_v2  ;;  %v43400_v2 = vsub.f32 %v16416_v7, %v43381_v6 }
 0xe43   :  { %v35959_v54 = vpack.c.bf16 %v16708_v39, %v16701_v14  ;;  %v46534_v14 = vand.u32 4294901760, %v43373_v3  ;;  %v43389_v39 = vsub.f32 %v16413_v5, %v43375_v61 }
 0xe44   :  { %33185 = vmatmul.mubr.f32.gmra.mrb[12].mxu1 %v16528_v25  ;;  %v43379_v25 = vsub.f32 %v16410_v19, %v43361_v36  ;;  %v43391_v19 = vand.u32 4294901760, %v16419_v40 }
 0xe45   :  { %33187 = vmatprep.mubr.f32.mxu1 %v16538_v41  ;;  %35954 = vmatpush3.bf16.msra.mxu1 %v35951_v26  ;;  %v46533_v26 = vand.u32 4294901760, %v43359_v22  ;;  %v16568_v41 = vand.u32 4294901760, %v16567_v56  ;;  %v16607_v5 = vsub.f32 %v43373_v3, %v46534_v14 }
 0xe46   :  { %35956 = vmatprep.subr.bf16.mxu1 %v35955_v47  ;;  %v16616_v56 = vand.u32 4294901760, %v43379_v25  ;;  %v43407_v31 = vsub.f32 %v16419_v40, %v43391_v19 }
 0xe48   :  { %33188 = vmatmul.mubr.f32.gmra.mrb[14].mxu1 %v16548_v32  ;;  %v16597_v32 = vsub.f32 %v43359_v22, %v46533_v26  ;;  %v16617_v7 = vsub.f32 %v43379_v25, %v16616_v56 }
 0xe49   :  { %33190 = vmatprep.mubr.f32.mxu1 %v16558_v30  ;;  %35958 = vmatpush3.bf16.msra.mxu1 %v35955_v47  ;;  %v16588_v47 = vand.u32 4294901760, %v16587_v53  ;;  %v16626_v30 = vand.u32 4294901760, %v43389_v39  ;;  %v16646_v53 = vand.u32 4294901760, %v43407_v31 }
 0xe4a   :  { %35960 = vmatprep.subr.bf16.mxu1 %v35959_v54  ;;  %v16598_v26 = vand.u32 4294901760, %v16597_v32  ;;  %v16618_v14 = vand.u32 4294901760, %v16617_v7  ;;  %v35967_v7 = vpack.c.bf16 %v43221_v12, %v43219_v18 }
 0xe4c   :  { %33191 = vmatmul.mubr.f32.gmra.mrb[16].mxu1 %v16568_v41  ;;  %v16636_v41 = vand.u32 4294901760, %v43400_v2 }
 0xe4d   :  { %33193 = vmatprep.mubr.f32.mxu1 %v16578_v50  ;;  %35962 = vmatpush3.bf16.msra.mxu1 %v35959_v54  ;;  %v16608_v54 = vand.u32 4294901760, %v16607_v5  ;;  %v16627_v50 = vsub.f32 %v43389_v39, %v16626_v30 }
 0xe4e   :  { %35964 = vmatprep.subr.bf16.mxu1 %v35963_v43  ;;  %v16637_v40 = vsub.f32 %v43400_v2, %v16636_v41 }
 0xe4f   :  { %v16628_v32 = vand.u32 4294901760, %v16627_v50 }
 0xe50   :  { %33194 = vmatmul.mubr.f32.gmra.mrb[18].mxu1 %v16588_v47  ;;  %v16647_v47 = vsub.f32 %v43407_v31, %v16646_v53 }
 0xe51   :  { %33196 = vmatprep.mubr.f32.mxu1 %v16598_v26  ;;  %v16638_v26 = vand.u32 4294901760, %v16637_v40 }
 0xe52   :  { %v16648_v5 = vand.u32 4294901760, %v16647_v47  ;;  %v46783_v47 = vand.u32 4294901760, %v43247_v38 }
 0xe54   :  { %33197 = vmatmul.mubr.f32.gmra.mrb[20].mxu1 %v16608_v54  ;;  %v35975_v54 = vpack.c.bf16 %v43281_v13, %v43276_v15 }
 0xe55   :  { %33199 = vmatprep.mubr.f32.mxu1 %v16618_v14  ;;  %v35971_v14 = vpack.c.bf16 %v43243_v16, %v43240_v29 }
 0xe58   :  { %33200 = vmatmul.mubr.f32.gmra.mrb[22].mxu1 %v16628_v32  ;;  %v46782_v32 = vand.u32 4294901760, %v43225_v58 }
 0xe59   :  { %33202 = vmatprep.mubr.f32.mxu1 %v16638_v26  ;;  %v46784_v26 = vand.u32 4294901760, %v43240_v29  ;;  %v46791_v29 = vand.u32 4294901760, %v43296_v48 }
 0xe5c   :  { %33203 = vmatmul.mubr.f32.gmra.mrb[24].mxu1 %v16648_v5  ;;  %v46785_v5 = vand.u32 4294901760, %v43243_v16  ;;  %v46792_v16 = vand.u32 4294901760, %v43344_v20 }
 0xe5d   :  { %33221 = vmatprep.mubr.f32.mxu1 %v43204_v46 }
 0xe60   :  { %33222 = vmatmul.mubr.f32.vlgmr.msra.gmra.mrb[10].mxu1 %v43209_v0 }
 0xe61   :  { %35966 = vmatpush3.bf16.msra.mxu1 %v35963_v43  ;;  %33224 = vmatprep.mubr.f32.mxu1 %v43227_v23  ;;  %v46778_v43 = vand.u32 4294901760, %v43161_v60  ;;  %v46780_v60 = vand.u32 4294901760, %v43219_v18  ;;  %v46787_v18 = vand.u32 4294901760, %v43289_v4 }
 0xe62   :  { %35968 = vmatprep.subr.bf16.mxu1 %v35967_v7 }
 0xe63   :  { %v35995_v50 = vpack.c.bf16 %v46778_v43, %v16657_v1  ;;  %v46781_v1 = vand.u32 4294901760, %v43221_v12  ;;  %v46788_v12 = vand.u32 4294901760, %v43276_v15  ;;  %v46794_v15 = vand.u32 4294901760, %v43373_v3 }
 0xe64   :  { %33225 = vmatmul.mubr.f32.gmra.mrb[12].mxu1 %v43229_v42 }
 0xe65   :  { %33227 = vmatprep.mubr.f32.mxu1 %v43252_v51  ;;  %35970 = vmatpush3.bf16.msra.mxu1 %v35967_v7  ;;  %v35999_v40 = vpack.c.bf16 %v46781_v1, %v46780_v60  ;;  %v36003_v7 = vpack.c.bf16 %v46785_v5, %v46784_v26  ;;  %v17621_v60 = vld [vmem:[#allocation3 + $0x30] sm:$0xff] }
 0xe66   :  { %35972 = vmatprep.subr.bf16.mxu1 %v35971_v14  ;;  %v17623_v26 = vld [vmem:[#allocation3 + $0x50] sm:$0xff] }
 0xe68   :  { %33228 = vmatmul.mubr.f32.gmra.mrb[14].mxu1 %v43255_v9 }
 0xe69   :  { %33230 = vmatprep.mubr.f32.mxu1 %v43257_v49  ;;  %35974 = vmatpush3.bf16.msra.mxu1 %v35971_v14  ;;  %v46790_v14 = vand.u32 4294901760, %v43293_v37 }
 0xe6a   :  { %35976 = vmatprep.subr.bf16.mxu1 %v35975_v54 }
 0xe6c   :  { %33231 = vmatmul.mubr.f32.gmra.mrb[16].mxu1 %v43298_v17 }
 0xe6d   :  { %33233 = vmatprep.mubr.f32.mxu1 %v43302_v27  ;;  %35978 = vmatpush3.bf16.msra.mxu1 %v35975_v54  ;;  %v17620_v54 = vld [vmem:[#allocation3 + $0x20] sm:$0xff] }
 0xe6e   :  { %35980 = vmatprep.subr.bf16.mxu1 %v43143_v33 }
 0xe70   :  { %33234 = vmatmul.mubr.f32.gmra.mrb[18].mxu1 %v43321_v11 }
 0xe71   :  { %33236 = vmatprep.mubr.f32.mxu1 %v43340_v10 }
 0xe74   :  { %33237 = vmatmul.mubr.f32.gmra.mrb[20].mxu1 %v43356_v8 }
 0xe75   :  { %33239 = vmatprep.mubr.f32.mxu1 %v43361_v36 }
 0xe78   :  { %33240 = vmatmul.mubr.f32.gmra.mrb[22].mxu1 %v43375_v61 }
 0xe79   :  { %33242 = vmatprep.mubr.f32.mxu1 %v43381_v6 }
 0xe7c   :  { %33243 = vmatmul.mubr.f32.gmra.mrb[24].mxu1 %v43391_v19 }
 0xe7d   :  { %33261 = vmatprep.mubr.f32.mxu1 %v43217_v59  ;;  %v46786_v59 = vand.u32 4294901760, %v43250_v55 }
 0xe80   :  { %33262 = vmatmul.mubr.f32.vlgmr.msra.gmra.mrb[10].mxu1 %v43225_v58  ;;  %v46789_v58 = vand.u32 4294901760, %v43281_v13 }
 0xe81   :  { %35982 = vmatpush3.bf16.msra.mxu1 %v43143_v33  ;;  %33264 = vmatprep.mubr.f32.mxu1 %v43247_v38 }
 0xe82   :  { %35984 = vmatprep.subr.bf16.mxu1 %v43167_v21  ;;  %v36007_v38 = vpack.c.bf16 %v46789_v58, %v46788_v12 }
 0xe84   :  { %33265 = vmatmul.mubr.f32.gmra.mrb[12].mxu1 %v43250_v55  ;;  %v46793_v55 = vand.u32 4294901760, %v43359_v22 }
 0xe85   :  { %33267 = vmatprep.mubr.f32.mxu1 %v43289_v4  ;;  %35986 = vmatpush3.bf16.msra.mxu1 %v43167_v21 }
 0xe86   :  { %35988 = vmatprep.subr.bf16.mxu1 %v43178_v52 }
 0xe88   :  { %33268 = vmatmul.mubr.f32.gmra.mrb[14].mxu1 %v43293_v37 }
 0xe89   :  { %33270 = vmatprep.mubr.f32.mxu1 %v43296_v48  ;;  %35990 = vmatpush3.bf16.msra.mxu1 %v43178_v52 }
 0xe8a   :  { %35992 = vmatprep.subr.bf16.mxu1 %v43197_v34 }
 0xe8c   :  { %33271 = vmatmul.mubr.f32.gmra.mrb[16].mxu1 %v43326_v63  ;;  %v17637_v63 = vld [vmem:[#allocation8 + $0xc8] sm:$0xff] }
 0xe8d   :  { %33273 = vmatprep.mubr.f32.mxu1 %v43329_v35  ;;  %35994 = vmatpush3.bf16.msra.mxu1 %v43197_v34  ;;  %v17696_v4 = vand.u32 4294901760, %v17637_v63  ;;  %v43543_v35 = vld [vmem:[#allocation8 + $0xe0] sm:$0xff] }
 0xe8e   :  { %35996 = vmatprep.subr.bf16.mxu1 %v35995_v50 }
 0xe90   :  { %33274 = vmatmul.mubr.f32.gmra.mrb[18].mxu1 %v43344_v20 }
 0xe91   :  { %33276 = vmatprep.mubr.f32.mxu1 %v43359_v22  ;;  %v17636_v22 = vld [vmem:[#allocation8 + $0xc0] sm:$0xff] }
 0xe92   :  { %v17693_v13 = vand.u32 4294901760, %v17636_v22 }
 0xe94   :  { %33277 = vmatmul.mubr.f32.gmra.mrb[20].mxu1 %v43373_v3  ;;  %v43547_v20 = vsub.f32 %v17636_v22, %v17693_v13  ;;  %v17627_v22 = vld [vmem:[#allocation3 + $0xb0] sm:$0xff] }
 0xe95   :  { %33279 = vmatprep.mubr.f32.mxu1 %v43379_v25 }
 0xe96   :  { %v17928_v25 = vand.u32 4294901760, %v43547_v20 }
 0xe98   :  { %33280 = vmatmul.mubr.f32.gmra.mrb[22].mxu1 %v43389_v39 }
 0xe99   :  { %33282 = vmatprep.mubr.f32.mxu1 %v43400_v2  ;;  %v43561_v2 = vld [vmem:[#allocation8 + $0xf8] sm:$0xff] }
 0xe9c   :  { %33283 = vmatmul.mubr.f32.gmra.mrb[24].mxu1 %v43407_v31 }
 0xe9d   :  { %33301 = vmatprep.mubr.f32.mxu1 %v46779_v24 }
 0xea0   :  { %33302 = vmatmul.mubr.f32.vlgmr.msra.gmra.mrb[10].mxu1 %v46782_v32 }
 0xea1   :  { %35998 = vmatpush3.bf16.msra.mxu1 %v35995_v50  ;;  %33304 = vmatprep.mubr.f32.mxu1 %v46783_v47 }
 0xea2   :  { %36000 = vmatprep.subr.bf16.mxu1 %v35999_v40 }
 0xea4   :  { %33305 = vmatmul.mubr.f32.gmra.mrb[12].mxu1 %v46786_v59  ;;  %v17624_v59 = vld [vmem:[#allocation3 + $0x60] sm:$0xff] }
 0xea5   :  { %33307 = vmatprep.mubr.f32.mxu1 %v46787_v18  ;;  %36002 = vmatpush3.bf16.msra.mxu1 %v35999_v40  ;;  %v17622_v40 = vld [vmem:[#allocation3 + $0x40] sm:$0xff]  ;;  %v17625_v18 = vld [vmem:[#allocation3 + $0x70] sm:$0xff] }
 0xea6   :  { %36004 = vmatprep.subr.bf16.mxu1 %v36003_v7 }
 0xea8   :  { %33308 = vmatmul.mubr.f32.gmra.mrb[14].mxu1 %v46790_v14 }
 0xea9   :  { %33310 = vmatprep.mubr.f32.mxu1 %v46791_v29  ;;  %36006 = vmatpush3.bf16.msra.mxu1 %v36003_v7 }
 0xeaa   :  { %36008 = vmatprep.subr.bf16.mxu1 %v36007_v38 }
 0xeac   :  { %33311 = vmatmul.mubr.f32.gmra.mrb[16].mxu1 %v16566_v62  ;;  %v43549_v62 = vsub.f32 %v17637_v63, %v17696_v4 }
 0xead   :  { %33313 = vmatprep.mubr.f32.mxu1 %v16576_v57  ;;  %36010 = vmatpush3.bf16.msra.mxu1 %v36007_v38  ;;  %v17705_v57 = vand.u32 4294901760, %v43543_v35  ;;  %v17657_v38 = vsel %vm11193_vm3, %v17623_v26, 0 }
 0xeae   :  { %36012 = vmatprep.subr.bf16.mxu1 %v43143_v33  ;;  %v46548_v39 = vand.u32 4294901760, %v43549_v62 }
 0xeaf   :  { %v43627_v63 = vsub.f32 %v43543_v35, %v17705_v57 }
 0xeb0   :  { %33314 = vmatmul.mubr.f32.gmra.mrb[18].mxu1 %v46792_v16  ;;  %v17660_v16 = vsel %vm11193_vm3, %v17624_v59, 0 }
 0xeb1   :  { %33316 = vmatprep.mubr.f32.mxu1 %v46793_v55  ;;  %v17663_v55 = vsel %vm11193_vm3, %v17625_v18, 0 }
 0xeb4   :  { %33317 = vmatmul.mubr.f32.gmra.mrb[20].mxu1 %v46794_v15  ;;  %v17626_v15 = vld [vmem:[#allocation3 + $0x80] sm:$0xff] }
 0xeb5   :  { %33319 = vmatprep.mubr.f32.mxu1 %v16616_v56  ;;  %v43559_v56 = vld [vmem:[#allocation8 + $0xf0] sm:$0xff] }
 0xeb8   :  { %33320 = vmatmul.mubr.f32.gmra.mrb[22].mxu1 %v16626_v30  ;;  %v17711_v30 = vand.u32 4294901760, %v43559_v56 }
 0xeb9   :  { %33322 = vmatprep.mubr.f32.mxu1 %v16636_v41  ;;  %v17714_v41 = vand.u32 4294901760, %v43561_v2 }
 0xebb   :  { %v43585_v43 = vpack.c.bf16 %v17714_v41, %v17711_v30 }
 0xebc   :  { %33323 = vmatmul.mubr.f32.gmra.mrb[24].mxu1 %v16646_v53  ;;  %v17929_v53 = vsub.f32 %v43547_v20, %v17928_v25 }
 0xebd   :  { %33341 = vmatprep.mubr.f32.mxu1 %v43204_v46 }
 0xebe   :  { %v17930_v50 = vand.u32 4294901760, %v17929_v53 }
 0xec0   :  { %33342 = vmatmul.mubr.f32.vlgmr.msra.gmra.mrb[10].mxu1 %v43209_v0 }
 0xec1   :  { %36014 = vmatpush3.bf16.msra.mxu1 %v43143_v33  ;;  %33344 = vmatprep.mubr.f32.mxu1 %v43227_v23  ;;  %v43531_v33 = vpack.c.bf16 %v17696_v4, %v17693_v13 }
 0xec2   :  { %36016 = vmatprep.subr.bf16.mxu1 %v43167_v21 }
 0xec4   :  { %33345 = vmatmul.mubr.f32.gmra.mrb[12].mxu1 %v43229_v42 }
 0xec5   :  { %33347 = vmatprep.mubr.f32.mxu1 %v43252_v51  ;;  %36018 = vmatpush3.bf16.msra.mxu1 %v43167_v21  ;;  %v17638_v21 = vld [vmem:[#allocation8 + $0xd0] sm:$0xff] }
 0xec6   :  { %36020 = vmatprep.subr.bf16.mxu1 %v43178_v52  ;;  %v17699_v37 = vand.u32 4294901760, %v17638_v21 }
 0xec8   :  { %33348 = vmatmul.mubr.f32.gmra.mrb[14].mxu1 %v43255_v9  ;;  %v43604_v5 = vsub.f32 %v17638_v21, %v17699_v37  ;;  %v43637_v21 = vand.u32 4294901760, %v17657_v38 }
 0xec9   :  { %33350 = vmatprep.mubr.f32.mxu1 %v43257_v49  ;;  %36022 = vmatpush3.bf16.msra.mxu1 %v43178_v52  ;;  %v17639_v52 = vld [vmem:[#allocation8 + $0xd8] sm:$0xff] }
 0xeca   :  { %36024 = vmatprep.subr.bf16.mxu1 %v43197_v34  ;;  %v17702_v48 = vand.u32 4294901760, %v17639_v52  ;;  %v46544_v14 = vand.u32 4294901760, %v43604_v5 }
 0xecc   :  { %33351 = vmatmul.mubr.f32.gmra.mrb[16].mxu1 %v43298_v17  ;;  %v43555_v3 = vpack.c.bf16 %v17702_v48, %v17699_v37  ;;  %v43606_v7 = vsub.f32 %v17639_v52, %v17702_v48  ;;  %v43643_v37 = vand.u32 4294901760, %v17660_v16  ;;  %v43645_v48 = vand.u32 4294901760, %v17663_v55 }
 0xecd   :  { %33353 = vmatprep.mubr.f32.mxu1 %v43302_v27  ;;  %36026 = vmatpush3.bf16.msra.mxu1 %v43197_v34  ;;  %v43545_v34 = vld [vmem:[#allocation8 + $0xe8] sm:$0xff]  ;;  %v17943_v35 = vsub.f32 %v43604_v5, %v46544_v14 }
 0xece   :  { %36028 = vmatprep.subr.bf16.mxu1 %v43531_v33  ;;  %v17708_v31 = vand.u32 4294901760, %v43545_v34  ;;  %v46543_v29 = vand.u32 4294901760, %v43606_v7 }
 0xed0   :  { %33354 = vmatmul.mubr.f32.gmra.mrb[18].mxu1 %v43321_v11 }
 0xed1   :  { %33356 = vmatprep.mubr.f32.mxu1 %v43340_v10 }
 0xed4   :  { %33357 = vmatmul.mubr.f32.gmra.mrb[20].mxu1 %v43356_v8 }
 0xed5   :  { %33359 = vmatprep.mubr.f32.mxu1 %v43361_v36 }
 0xed8   :  { %33360 = vmatmul.mubr.f32.gmra.mrb[22].mxu1 %v43375_v61 }
 0xed9   :  { %33362 = vmatprep.mubr.f32.mxu1 %v43381_v6 }
 0xedc   :  { %33363 = vmatmul.mubr.f32.gmra.mrb[24].mxu1 %v43391_v19 }
 0xedd   :  { %33381 = vmatprep.mubr.f32.mxu1 %v43204_v46  ;;  %v43566_v46 = vpack.c.bf16 %v17708_v31, %v17705_v57  ;;  %v17666_v57 = vsel %vm11193_vm3, %v17626_v15, 0 }
 0xee0   :  { %33382 = vmatmul.mubr.f32.vlgmr.msra.gmra.mrb[10].mxu1 %v43209_v0  ;;  %v17936_v0 = vsub.f32 %v43549_v62, %v46548_v39 }
 0xee1   :  { %36030 = vmatpush3.bf16.msra.mxu1 %v43531_v33  ;;  %33384 = vmatprep.mubr.f32.mxu1 %v43227_v23  ;;  %v17619_v23 = vld [vmem:[#allocation3 + $0x10] sm:$0xff] }
 0xee2   :  { %36032 = vmatprep.subr.bf16.mxu1 %v43555_v3  ;;  %v17937_v24 = vand.u32 4294901760, %v17936_v0  ;;  %v17628_v0 = vld [vmem:[#allocation3 + $0xc0] sm:$0xff] }
 0xee4   :  { %33385 = vmatmul.mubr.f32.gmra.mrb[12].mxu1 %v43229_v42  ;;  %v17645_v42 = vsel %vm11193_vm3, %v17619_v23, 0  ;;  %v43593_v1 = vpack.c.bf16 %v17937_v24, %v17930_v50  ;;  %v43666_v23 = vsub.f32 %v43561_v2, %v17714_v41  ;;  %v43681_v2 = vsub.f32 %v17660_v16, %v43643_v37 }
 0xee5   :  { %33387 = vmatprep.mubr.f32.mxu1 %v43252_v51  ;;  %36034 = vmatpush3.bf16.msra.mxu1 %v43555_v3  ;;  %v17648_v51 = vsel %vm11193_vm3, %v17620_v54, 0  ;;  %v43595_v32 = vand.u32 4294901760, %v17645_v42  ;;  %v43686_v41 = vand.u32 4294901760, %v17666_v57 }
 0xee6   :  { %36036 = vmatprep.subr.bf16.mxu1 %v43566_v46  ;;  %v43597_v47 = vand.u32 4294901760, %v17648_v51  ;;  %v46541_v18 = vand.u32 4294901760, %v43666_v23 }
 0xee7   :  { %v43610_v12 = vsub.f32 %v17645_v42, %v43595_v32  ;;  %v43676_v42 = vsub.f32 %v17657_v38, %v43637_v21 }
 0xee8   :  { %33388 = vmatmul.mubr.f32.gmra.mrb[14].mxu1 %v43255_v9  ;;  %v17651_v9 = vsel %vm11193_vm3, %v17621_v60, 0 }
 0xee9   :  { %33390 = vmatprep.mubr.f32.mxu1 %v43257_v49  ;;  %36038 = vmatpush3.bf16.msra.mxu1 %v43566_v46  ;;  %v17654_v49 = vsel %vm11193_vm3, %v17622_v40, 0  ;;  %v46547_v13 = vand.u32 4294901760, %v43610_v12 }
 0xeea   :  { %36040 = vmatprep.subr.bf16.mxu1 %v43585_v43  ;;  %v43618_v58 = vand.u32 4294901760, %v17654_v49 }
 0xeeb   :  { %v17768_v54 = vsub.f32 %v43610_v12, %v46547_v13 }
 0xeec   :  { %33391 = vmatmul.mubr.f32.gmra.mrb[16].mxu1 %v43298_v17  ;;  %v43613_v17 = vsub.f32 %v17648_v51, %v43597_v47  ;;  %v43641_v52 = vsub.f32 %v17654_v49, %v43618_v58  ;;  %v17944_v51 = vand.u32 4294901760, %v17943_v35  ;;  %v17629_v49 = vld [vmem:[#allocation3 + $0xd0] sm:$0xff]  ;;  %v43710_v35 = vsub.f32 %v17666_v57, %v43686_v41 }
 0xeed   :  { %33393 = vmatprep.mubr.f32.mxu1 %v43302_v27  ;;  %36042 = vmatpush3.bf16.msra.mxu1 %v43585_v43  ;;  %v43615_v27 = vand.u32 4294901760, %v17651_v9 }
 0xeee   :  { %36044 = vmatprep.subr.bf16.mxu1 %v43593_v1 }
 0xeef   :  { %v43635_v4 = vsub.f32 %v17651_v9, %v43615_v27  ;;  %v17672_v9 = vsel %vm11193_vm3, %v17628_v0, 0  ;;  %v17630_v0 = vld [vmem:[#allocation3 + $0xe0] sm:$0xff] }
 0xef0   :  { %33394 = vmatmul.mubr.f32.gmra.mrb[18].mxu1 %v43321_v11  ;;  %v43630_v11 = vsub.f32 %v43545_v34, %v17708_v31  ;;  %v17950_v34 = vsub.f32 %v43606_v7, %v46543_v29  ;;  %v46536_v31 = vand.u32 4294901760, %v43627_v63 }
 0xef1   :  { %33396 = vmatprep.mubr.f32.mxu1 %v43340_v10  ;;  %v46539_v10 = vand.u32 4294901760, %v43613_v17  ;;  %v46537_v24 = vand.u32 4294901760, %v43635_v4 }
 0xef2   :  { %v46535_v53 = vand.u32 4294901760, %v43630_v11  ;;  %v17951_v60 = vand.u32 4294901760, %v17950_v34  ;;  %v17675_v34 = vsel %vm11193_vm3, %v17629_v49, 0  ;;  %v17978_v49 = vsub.f32 %v43666_v23, %v46541_v18 }
 0xef3   :  { %v17778_v50 = vsub.f32 %v43613_v17, %v46539_v10  ;;  %v17788_v16 = vsub.f32 %v43635_v4, %v46537_v24 }
 0xef4   :  { %33397 = vmatmul.mubr.f32.gmra.mrb[20].mxu1 %v43356_v8  ;;  %v17669_v8 = vsel %vm11193_vm3, %v17627_v22, 0  ;;  %v17964_v26 = vsub.f32 %v43630_v11, %v46535_v53  ;;  %v46545_v22 = vand.u32 4294901760, %v43681_v2 }
 0xef5   :  { %33399 = vmatprep.mubr.f32.mxu1 %v43361_v36  ;;  %v43661_v36 = vsub.f32 %v43559_v56, %v17711_v30  ;;  %v46538_v56 = vand.u32 4294901760, %v43641_v52  ;;  %v43684_v30 = vsub.f32 %v17663_v55, %v43645_v48  ;;  %v43689_v40 = vand.u32 4294901760, %v17669_v8 }
 0xef6   :  { %v17779_v38 = vand.u32 4294901760, %v17778_v50  ;;  %v46542_v55 = vand.u32 4294901760, %v43676_v42 }
 0xef7   :  { %v46540_v59 = vand.u32 4294901760, %v43661_v36  ;;  %v17798_v15 = vsub.f32 %v43641_v52, %v46538_v56  ;;  %v46546_v50 = vand.u32 4294901760, %v43684_v30  ;;  %v43715_v53 = vsub.f32 %v17669_v8, %v43689_v40 }
 0xef8   :  { %33400 = vmatmul.mubr.f32.gmra.mrb[22].mxu1 %v43375_v61  ;;  %v17957_v61 = vsub.f32 %v43627_v63, %v46536_v31  ;;  %v17631_v31 = vld [vmem:[#allocation3 + $0xf0] sm:$0xff]  ;;  %v17965_v56 = vand.u32 4294901760, %v17964_v26  ;;  %v43728_v8 = vand.u32 4294901760, %v17675_v34  ;;  %v17837_v26 = vand.u32 4294901760, %v43710_v35 }
 0xef9   :  { %33402 = vmatprep.mubr.f32.mxu1 %v43381_v6  ;;  %v17769_v6 = vand.u32 4294901760, %v17768_v54  ;;  %v36047_v54 = vpack.c.bf16 %v17951_v60, %v17944_v51  ;;  %v17971_v57 = vsub.f32 %v43661_v36, %v46540_v59  ;;  %v17808_v51 = vsub.f32 %v43676_v42, %v46542_v55  ;;  %v17632_v59 = vld [vmem:[#allocation3 + $0x100] sm:$0xff] }
 0xefa   :  { %v17958_v24 = vand.u32 4294901760, %v17957_v61  ;;  %v17678_v60 = vsel %vm11193_vm3, %v17630_v0, 0  ;;  %v17799_v61 = vand.u32 4294901760, %v17798_v15  ;;  %v17681_v10 = vsel %vm11193_vm3, %v17631_v31, 0  ;;  %v17633_v15 = vld [vmem:[#allocation3 + $0x110] sm:$0xff] }
 0xefb   :  { %v17828_v18 = vsub.f32 %v43684_v30, %v46546_v50  ;;  %v17847_v0 = vand.u32 4294901760, %v43715_v53  ;;  %v43744_v55 = vand.u32 4294901760, %v17678_v60  ;;  %v17809_v29 = vand.u32 4294901760, %v17808_v51 }
 0xefc   :  { %33403 = vmatmul.mubr.f32.gmra.mrb[24].mxu1 %v43391_v19  ;;  %v43717_v19 = vand.u32 4294901760, %v17672_v9  ;;  %v36051_v31 = vpack.c.bf16 %v17965_v56, %v17958_v24  ;;  %v43747_v14 = vsub.f32 %v17675_v34, %v43728_v8  ;;  %v17684_v50 = vsel %vm11193_vm3, %v17632_v59, 0 }
 0xefd   :  { %33421 = vmatprep.mubr.f32.mxu1 %v17769_v6  ;;  %v17789_v6 = vand.u32 4294901760, %v17788_v16  ;;  %v17818_v16 = vsub.f32 %v43681_v2, %v46545_v22  ;;  %v43749_v22 = vand.u32 4294901760, %v17681_v10  ;;  %v17687_v13 = vsel %vm11193_vm3, %v17633_v15, 0 }
 0xefe   :  { %v17829_v24 = vand.u32 4294901760, %v17828_v18  ;;  %v17838_v56 = vsub.f32 %v43710_v35, %v17837_v26  ;;  %v17848_v34 = vsub.f32 %v43715_v53, %v17847_v0  ;;  %v43761_v59 = vsub.f32 %v17678_v60, %v43744_v55 }
 0xeff   :  { %v17819_v39 = vand.u32 4294901760, %v17818_v16  ;;  %v43763_v51 = vand.u32 4294901760, %v17684_v50  ;;  %v43767_v18 = vsub.f32 %v17681_v10, %v43749_v22 }
 0xf00   :  { %33422 = vmatmul.mubr.f32.vlgmr.msra.gmra.mrb[10].mxu1 %v17779_v38  ;;  %v43742_v38 = vsub.f32 %v17672_v9, %v43717_v19  ;;  %v17634_v9 = vld [vmem:[#allocation3 + $0x120] sm:$0xff]  ;;  %v17839_v16 = vand.u32 4294901760, %v17838_v56  ;;  %v46551_v15 = vand.u32 4294901760, %v43761_v59 }
 0xf01   :  { %36046 = vmatpush3.bf16.msra.mxu1 %v43593_v1  ;;  %33424 = vmatprep.mubr.f32.mxu1 %v17789_v6  ;;  %v17972_v1 = vand.u32 4294901760, %v17971_v57  ;;  %v17979_v6 = vand.u32 4294901760, %v17978_v49 }
 0xf02   :  { %36048 = vmatprep.subr.bf16.mxu1 %v36047_v54  ;;  %v46549_v57 = vand.u32 4294901760, %v43742_v38  ;;  %v17878_v56 = vsub.f32 %v43761_v59, %v46551_v15 }
 0xf03   :  { %v36055_v49 = vpack.c.bf16 %v17979_v6, %v17972_v1  ;;  %v43777_v1 = vsub.f32 %v17684_v50, %v43763_v51  ;;  %v36059_v6 = vpack.c.bf16 %v43549_v62, %v43547_v20  ;;  %v46796_v20 = vand.u32 4294901760, %v43610_v12 }
 0xf04   :  { %33425 = vmatmul.mubr.f32.gmra.mrb[12].mxu1 %v17799_v61  ;;  %v17690_v61 = vsel %vm11193_vm3, %v17634_v9, 0  ;;  %v17858_v60 = vsub.f32 %v43742_v38, %v46549_v57  ;;  %v17849_v9 = vand.u32 4294901760, %v17848_v34 }
 0xf05   :  { %33427 = vmatprep.mubr.f32.mxu1 %v17809_v29  ;;  %36050 = vmatpush3.bf16.msra.mxu1 %v36047_v54  ;;  %v46550_v29 = vand.u32 4294901760, %v43747_v14  ;;  %v43769_v54 = vand.u32 4294901760, %v17687_v13  ;;  %v43779_v10 = vand.u32 4294901760, %v17690_v61  ;;  %v17897_v57 = vand.u32 4294901760, %v43777_v1 }
 0xf06   :  { %36052 = vmatprep.subr.bf16.mxu1 %v36051_v31  ;;  %v17859_v50 = vand.u32 4294901760, %v17858_v60 }
 0xf07   :  { %v43795_v34 = vsub.f32 %v17690_v61, %v43779_v10  ;;  %v17898_v60 = vsub.f32 %v43777_v1, %v17897_v57 }
 0xf08   :  { %33428 = vmatmul.mubr.f32.gmra.mrb[14].mxu1 %v17819_v39  ;;  %v17868_v39 = vsub.f32 %v43747_v14, %v46550_v29 }
 0xf09   :  { %33430 = vmatprep.mubr.f32.mxu1 %v17829_v24  ;;  %36054 = vmatpush3.bf16.msra.mxu1 %v36051_v31  ;;  %v17887_v24 = vand.u32 4294901760, %v43767_v18  ;;  %v43788_v31 = vsub.f32 %v17687_v13, %v43769_v54 }
 0xf0a   :  { %36056 = vmatprep.subr.bf16.mxu1 %v36055_v49  ;;  %v17869_v29 = vand.u32 4294901760, %v17868_v39  ;;  %v17899_v39 = vand.u32 4294901760, %v17898_v60 }
 0xf0b   :  { %v17888_v13 = vsub.f32 %v43767_v18, %v17887_v24 }
 0xf0c   :  { %33431 = vmatmul.mubr.f32.gmra.mrb[16].mxu1 %v17839_v16  ;;  %v17907_v16 = vand.u32 4294901760, %v43788_v31 }
 0xf0d   :  { %33433 = vmatprep.mubr.f32.mxu1 %v17849_v9  ;;  %36058 = vmatpush3.bf16.msra.mxu1 %v36055_v49  ;;  %v17879_v49 = vand.u32 4294901760, %v17878_v56  ;;  %v17917_v9 = vand.u32 4294901760, %v43795_v34  ;;  %v17889_v15 = vand.u32 4294901760, %v17888_v13  ;;  %v36063_v13 = vpack.c.bf16 %v43606_v7, %v43604_v5 }
 0xf0e   :  { %36060 = vmatprep.subr.bf16.mxu1 %v36059_v6  ;;  %v17908_v61 = vsub.f32 %v43788_v31, %v17907_v16 }
 0xf10   :  { %33434 = vmatmul.mubr.f32.gmra.mrb[18].mxu1 %v17859_v50  ;;  %v17918_v50 = vsub.f32 %v43795_v34, %v17917_v9 }
 0xf11   :  { %33436 = vmatprep.mubr.f32.mxu1 %v17869_v29  ;;  %v17909_v29 = vand.u32 4294901760, %v17908_v61 }
 0xf12   :  { %v17919_v56 = vand.u32 4294901760, %v17918_v50  ;;  %v46800_v50 = vand.u32 4294901760, %v43635_v4 }
 0xf14   :  { %33437 = vmatmul.mubr.f32.gmra.mrb[20].mxu1 %v17879_v49  ;;  %v36071_v49 = vpack.c.bf16 %v43666_v23, %v43661_v36 }
 0xf15   :  { %33439 = vmatprep.mubr.f32.mxu1 %v17889_v15  ;;  %v36067_v15 = vpack.c.bf16 %v43630_v11, %v43627_v63 }
 0xf18   :  { %33440 = vmatmul.mubr.f32.gmra.mrb[22].mxu1 %v17899_v39  ;;  %v46799_v39 = vand.u32 4294901760, %v43613_v17 }
 0xf19   :  { %33442 = vmatprep.mubr.f32.mxu1 %v17909_v29  ;;  %v46801_v29 = vand.u32 4294901760, %v43627_v63  ;;  %v46808_v63 = vand.u32 4294901760, %v43684_v30 }
 0xf1c   :  { %33443 = vmatmul.mubr.f32.gmra.mrb[24].mxu1 %v17919_v56  ;;  %v46802_v56 = vand.u32 4294901760, %v43630_v11  ;;  %v46809_v11 = vand.u32 4294901760, %v43742_v38 }
 0xf1d   :  { %33461 = vmatprep.mubr.f32.mxu1 %v43595_v32 }
 0xf20   :  { %33462 = vmatmul.mubr.f32.vlgmr.msra.gmra.mrb[10].mxu1 %v43597_v47 }
 0xf21   :  { %36062 = vmatpush3.bf16.msra.mxu1 %v36059_v6  ;;  %33464 = vmatprep.mubr.f32.mxu1 %v43615_v27  ;;  %v46795_v6 = vand.u32 4294901760, %v43549_v62  ;;  %v46797_v62 = vand.u32 4294901760, %v43604_v5  ;;  %v46804_v5 = vand.u32 4294901760, %v43676_v42 }
 0xf22   :  { %36064 = vmatprep.subr.bf16.mxu1 %v36063_v13 }
 0xf23   :  { %v36091_v60 = vpack.c.bf16 %v46795_v6, %v17928_v25  ;;  %v46798_v25 = vand.u32 4294901760, %v43606_v7  ;;  %v46805_v7 = vand.u32 4294901760, %v43661_v36  ;;  %v46811_v36 = vand.u32 4294901760, %v43761_v59 }
 0xf24   :  { %33465 = vmatmul.mubr.f32.gmra.mrb[12].mxu1 %v43618_v58 }
 0xf25   :  { %33467 = vmatprep.mubr.f32.mxu1 %v43637_v21  ;;  %36066 = vmatpush3.bf16.msra.mxu1 %v36063_v13  ;;  %v36095_v61 = vpack.c.bf16 %v46798_v25, %v46797_v62  ;;  %v36099_v13 = vpack.c.bf16 %v46802_v56, %v46801_v29  ;;  %v18892_v62 = vld [vmem:[#allocation3 + $0x31] sm:$0xff] }
 0xf26   :  { %36068 = vmatprep.subr.bf16.mxu1 %v36067_v15  ;;  %v18894_v29 = vld [vmem:[#allocation3 + $0x51] sm:$0xff] }
 0xf28   :  { %33468 = vmatmul.mubr.f32.gmra.mrb[14].mxu1 %v43643_v37 }
 0xf29   :  { %33470 = vmatprep.mubr.f32.mxu1 %v43645_v48  ;;  %36070 = vmatpush3.bf16.msra.mxu1 %v36067_v15  ;;  %v46807_v15 = vand.u32 4294901760, %v43681_v2 }
 0xf2a   :  { %36072 = vmatprep.subr.bf16.mxu1 %v36071_v49 }
 0xf2c   :  { %33471 = vmatmul.mubr.f32.gmra.mrb[16].mxu1 %v43686_v41 }
 0xf2d   :  { %33473 = vmatprep.mubr.f32.mxu1 %v43689_v40  ;;  %36074 = vmatpush3.bf16.msra.mxu1 %v36071_v49  ;;  %v18891_v49 = vld [vmem:[#allocation3 + $0x21] sm:$0xff] }
 0xf2e   :  { %36076 = vmatprep.subr.bf16.mxu1 %v43531_v33 }
 0xf30   :  { %33474 = vmatmul.mubr.f32.gmra.mrb[18].mxu1 %v43717_v19 }
 0xf31   :  { %33476 = vmatprep.mubr.f32.mxu1 %v43728_v8 }
 0xf34   :  { %33477 = vmatmul.mubr.f32.gmra.mrb[20].mxu1 %v43744_v55 }
 0xf35   :  { %33479 = vmatprep.mubr.f32.mxu1 %v43749_v22 }
 0xf38   :  { %33480 = vmatmul.mubr.f32.gmra.mrb[22].mxu1 %v43763_v51 }
 0xf39   :  { %33482 = vmatprep.mubr.f32.mxu1 %v43769_v54 }
 0xf3c   :  { %33483 = vmatmul.mubr.f32.gmra.mrb[24].mxu1 %v43779_v10 }
 0xf3d   :  { %33501 = vmatprep.mubr.f32.mxu1 %v43610_v12  ;;  %v46803_v12 = vand.u32 4294901760, %v43641_v52 }
 0xf40   :  { %33502 = vmatmul.mubr.f32.vlgmr.msra.gmra.mrb[10].mxu1 %v43613_v17  ;;  %v46806_v17 = vand.u32 4294901760, %v43666_v23 }
 0xf41   :  { %36078 = vmatpush3.bf16.msra.mxu1 %v43531_v33  ;;  %33504 = vmatprep.mubr.f32.mxu1 %v43635_v4 }
 0xf42   :  { %36080 = vmatprep.subr.bf16.mxu1 %v43555_v3  ;;  %v36103_v4 = vpack.c.bf16 %v46806_v17, %v46805_v7 }
 0xf44   :  { %33505 = vmatmul.mubr.f32.gmra.mrb[12].mxu1 %v43641_v52  ;;  %v46810_v52 = vand.u32 4294901760, %v43747_v14 }
 0xf45   :  { %33507 = vmatprep.mubr.f32.mxu1 %v43676_v42  ;;  %36082 = vmatpush3.bf16.msra.mxu1 %v43555_v3 }
 0xf46   :  { %36084 = vmatprep.subr.bf16.mxu1 %v43566_v46 }
 0xf48   :  { %33508 = vmatmul.mubr.f32.gmra.mrb[14].mxu1 %v43681_v2 }
 0xf49   :  { %33510 = vmatprep.mubr.f32.mxu1 %v43684_v30  ;;  %36086 = vmatpush3.bf16.msra.mxu1 %v43566_v46 }
 0xf4a   :  { %36088 = vmatprep.subr.bf16.mxu1 %v43585_v43 }
 0xf4c   :  { %33511 = vmatmul.mubr.f32.gmra.mrb[16].mxu1 %v43710_v35  ;;  %v43931_v35 = vld [vmem:[#allocation8 + $0x120] sm:$0xff] }
 0xf4d   :  { %33513 = vmatprep.mubr.f32.mxu1 %v43715_v53  ;;  %36090 = vmatpush3.bf16.msra.mxu1 %v43585_v43  ;;  %v18908_v53 = vld [vmem:[#allocation8 + $0x108] sm:$0xff] }
 0xf4e   :  { %36092 = vmatprep.subr.bf16.mxu1 %v36091_v60  ;;  %v18967_v42 = vand.u32 4294901760, %v18908_v53 }
 0xf50   :  { %33514 = vmatmul.mubr.f32.gmra.mrb[18].mxu1 %v43742_v38  ;;  %v18976_v38 = vand.u32 4294901760, %v43931_v35 }
 0xf51   :  { %33516 = vmatprep.mubr.f32.mxu1 %v43747_v14  ;;  %v18907_v14 = vld [vmem:[#allocation8 + $0x100] sm:$0xff] }
 0xf52   :  { %v18964_v23 = vand.u32 4294901760, %v18907_v14 }
 0xf54   :  { %33517 = vmatmul.mubr.f32.gmra.mrb[20].mxu1 %v43761_v59 }
 0xf55   :  { %33519 = vmatprep.mubr.f32.mxu1 %v43767_v18 }
 0xf58   :  { %33520 = vmatmul.mubr.f32.gmra.mrb[22].mxu1 %v43777_v1 }
 0xf59   :  { %33522 = vmatprep.mubr.f32.mxu1 %v43788_v31  ;;  %v43949_v31 = vld [vmem:[#allocation8 + $0x138] sm:$0xff] }
 0xf5c   :  { %33523 = vmatmul.mubr.f32.gmra.mrb[24].mxu1 %v43795_v34 }
 0xf5d   :  { %33541 = vmatprep.mubr.f32.mxu1 %v46796_v20 }
 0xf60   :  { %33542 = vmatmul.mubr.f32.vlgmr.msra.gmra.mrb[10].mxu1 %v46799_v39 }
 0xf61   :  { %36094 = vmatpush3.bf16.msra.mxu1 %v36091_v60  ;;  %33544 = vmatprep.mubr.f32.mxu1 %v46800_v50 }
 0xf62   :  { %36096 = vmatprep.subr.bf16.mxu1 %v36095_v61 }
 0xf64   :  { %33545 = vmatmul.mubr.f32.gmra.mrb[12].mxu1 %v46803_v12  ;;  %v18895_v12 = vld [vmem:[#allocation3 + $0x61] sm:$0xff] }
 0xf65   :  { %33547 = vmatprep.mubr.f32.mxu1 %v46804_v5  ;;  %36098 = vmatpush3.bf16.msra.mxu1 %v36095_v61  ;;  %v18893_v61 = vld [vmem:[#allocation3 + $0x41] sm:$0xff] }
 0xf66   :  { %36100 = vmatprep.subr.bf16.mxu1 %v36099_v13 }
 0xf68   :  { %33548 = vmatmul.mubr.f32.gmra.mrb[14].mxu1 %v46807_v15 }
 0xf69   :  { %33550 = vmatprep.mubr.f32.mxu1 %v46808_v63  ;;  %36102 = vmatpush3.bf16.msra.mxu1 %v36099_v13 }
 0xf6a   :  { %36104 = vmatprep.subr.bf16.mxu1 %v36103_v4 }
 0xf6c   :  { %33551 = vmatmul.mubr.f32.gmra.mrb[16].mxu1 %v17837_v26  ;;  %v43935_v26 = vsub.f32 %v18907_v14, %v18964_v23  ;;  %v18898_v14 = vld [vmem:[#allocation3 + $0xb1] sm:$0xff] }
 0xf6d   :  { %33553 = vmatprep.mubr.f32.mxu1 %v17847_v0  ;;  %36106 = vmatpush3.bf16.msra.mxu1 %v36103_v4  ;;  %v43937_v0 = vsub.f32 %v18908_v53, %v18967_v42  ;;  %v18928_v4 = vsel %vm11193_vm3, %v18894_v29, 0  ;;  %v44015_v53 = vsub.f32 %v43931_v35, %v18976_v38 }
 0xf6e   :  { %36108 = vmatprep.subr.bf16.mxu1 %v43531_v33  ;;  %v19199_v18 = vand.u32 4294901760, %v43935_v26 }
 0xf6f   :  { %v46565_v1 = vand.u32 4294901760, %v43937_v0 }
 0xf70   :  { %33554 = vmatmul.mubr.f32.gmra.mrb[18].mxu1 %v46809_v11  ;;  %v18931_v11 = vsel %vm11193_vm3, %v18895_v12, 0 }
 0xf71   :  { %33556 = vmatprep.mubr.f32.mxu1 %v46810_v52  ;;  %v18897_v52 = vld [vmem:[#allocation3 + $0x81] sm:$0xff] }
 0xf74   :  { %33557 = vmatmul.mubr.f32.gmra.mrb[20].mxu1 %v46811_v36 }
 0xf75   :  { %33559 = vmatprep.mubr.f32.mxu1 %v17887_v24  ;;  %v43947_v24 = vld [vmem:[#allocation8 + $0x130] sm:$0xff] }
 0xf76   :  { %v18982_v34 = vand.u32 4294901760, %v43947_v24 }
 0xf78   :  { %33560 = vmatmul.mubr.f32.gmra.mrb[22].mxu1 %v17897_v57 }
 0xf79   :  { %33562 = vmatprep.mubr.f32.mxu1 %v17907_v16  ;;  %v18985_v16 = vand.u32 4294901760, %v43949_v31 }
 0xf7b   :  { %v43973_v6 = vpack.c.bf16 %v18985_v16, %v18982_v34 }
 0xf7c   :  { %33563 = vmatmul.mubr.f32.gmra.mrb[24].mxu1 %v17917_v9  ;;  %v19200_v9 = vsub.f32 %v43935_v26, %v19199_v18 }
 0xf7d   :  { %33581 = vmatprep.mubr.f32.mxu1 %v43595_v32 }
 0xf7e   :  { %v19201_v60 = vand.u32 4294901760, %v19200_v9  ;;  %v46553_v9 = vand.u32 4294901760, %v44015_v53 }
 0xf80   :  { %33582 = vmatmul.mubr.f32.vlgmr.msra.gmra.mrb[10].mxu1 %v43597_v47 }
 0xf81   :  { %36110 = vmatpush3.bf16.msra.mxu1 %v43531_v33  ;;  %33584 = vmatprep.mubr.f32.mxu1 %v43615_v27  ;;  %v43919_v33 = vpack.c.bf16 %v18967_v42, %v18964_v23 }
 0xf82   :  { %36112 = vmatprep.subr.bf16.mxu1 %v43555_v3 }
 0xf84   :  { %33585 = vmatmul.mubr.f32.gmra.mrb[12].mxu1 %v43618_v58 }
 0xf85   :  { %33587 = vmatprep.mubr.f32.mxu1 %v43637_v21  ;;  %36114 = vmatpush3.bf16.msra.mxu1 %v43555_v3  ;;  %v18909_v3 = vld [vmem:[#allocation8 + $0x110] sm:$0xff] }
 0xf86   :  { %36116 = vmatprep.subr.bf16.mxu1 %v43566_v46  ;;  %v18970_v2 = vand.u32 4294901760, %v18909_v3 }
 0xf88   :  { %33588 = vmatmul.mubr.f32.gmra.mrb[14].mxu1 %v43643_v37  ;;  %v43992_v56 = vsub.f32 %v18909_v3, %v18970_v2  ;;  %v44025_v3 = vand.u32 4294901760, %v18928_v4 }
 0xf89   :  { %33590 = vmatprep.mubr.f32.mxu1 %v43645_v48  ;;  %36118 = vmatpush3.bf16.msra.mxu1 %v43566_v46  ;;  %v18910_v46 = vld [vmem:[#allocation8 + $0x118] sm:$0xff] }
 0xf8a   :  { %36120 = vmatprep.subr.bf16.mxu1 %v43585_v43  ;;  %v18973_v30 = vand.u32 4294901760, %v18910_v46  ;;  %v46562_v15 = vand.u32 4294901760, %v43992_v56 }
 0xf8c   :  { %33591 = vmatmul.mubr.f32.gmra.mrb[16].mxu1 %v43686_v41  ;;  %v43943_v59 = vpack.c.bf16 %v18973_v30, %v18970_v2  ;;  %v43994_v13 = vsub.f32 %v18910_v46, %v18973_v30  ;;  %v44031_v2 = vand.u32 4294901760, %v18931_v11  ;;  %v18937_v30 = vsel %vm11193_vm3, %v18897_v52, 0 }
 0xf8d   :  { %33593 = vmatprep.mubr.f32.mxu1 %v43689_v40  ;;  %36122 = vmatpush3.bf16.msra.mxu1 %v43585_v43  ;;  %v43933_v43 = vld [vmem:[#allocation8 + $0x128] sm:$0xff]  ;;  %v19214_v35 = vsub.f32 %v43992_v56, %v46562_v15 }
 0xf8e   :  { %36124 = vmatprep.subr.bf16.mxu1 %v43919_v33  ;;  %v18979_v57 = vand.u32 4294901760, %v43933_v43  ;;  %v46561_v63 = vand.u32 4294901760, %v43994_v13 }
 0xf90   :  { %33594 = vmatmul.mubr.f32.gmra.mrb[18].mxu1 %v43717_v19 }
 0xf91   :  { %33596 = vmatprep.mubr.f32.mxu1 %v43728_v8 }
 0xf94   :  { %33597 = vmatmul.mubr.f32.gmra.mrb[20].mxu1 %v43744_v55 }
 0xf95   :  { %33599 = vmatprep.mubr.f32.mxu1 %v43749_v22 }
 0xf98   :  { %33600 = vmatmul.mubr.f32.gmra.mrb[22].mxu1 %v43763_v51 }
 0xf99   :  { %33602 = vmatprep.mubr.f32.mxu1 %v43769_v54 }
 0xf9c   :  { %33603 = vmatmul.mubr.f32.gmra.mrb[24].mxu1 %v43779_v10 }
 0xf9d   :  { %33621 = vmatprep.mubr.f32.mxu1 %v43595_v32  ;;  %v43954_v32 = vpack.c.bf16 %v18979_v57, %v18976_v38 }
 0xfa0   :  { %33622 = vmatmul.mubr.f32.vlgmr.msra.gmra.mrb[10].mxu1 %v43597_v47  ;;  %v19207_v47 = vsub.f32 %v43937_v0, %v46565_v1 }
 0xfa1   :  { %36126 = vmatpush3.bf16.msra.mxu1 %v43919_v33  ;;  %33624 = vmatprep.mubr.f32.mxu1 %v43615_v27  ;;  %v18890_v27 = vld [vmem:[#allocation3 + $0x11] sm:$0xff] }
 0xfa2   :  { %36128 = vmatprep.subr.bf16.mxu1 %v43943_v59  ;;  %v19208_v20 = vand.u32 4294901760, %v19207_v47 }
 0xfa4   :  { %33625 = vmatmul.mubr.f32.gmra.mrb[12].mxu1 %v43618_v58  ;;  %v18916_v58 = vsel %vm11193_vm3, %v18890_v27, 0  ;;  %v43981_v25 = vpack.c.bf16 %v19208_v20, %v19201_v60  ;;  %v44054_v27 = vsub.f32 %v43949_v31, %v18985_v16  ;;  %v44069_v31 = vsub.f32 %v18931_v11, %v44031_v2 }
 0xfa5   :  { %33627 = vmatprep.mubr.f32.mxu1 %v43637_v21  ;;  %36130 = vmatpush3.bf16.msra.mxu1 %v43943_v59  ;;  %v18919_v21 = vsel %vm11193_vm3, %v18891_v49, 0  ;;  %v43983_v39 = vand.u32 4294901760, %v18916_v58 }
 0xfa6   :  { %36132 = vmatprep.subr.bf16.mxu1 %v43954_v32  ;;  %v43985_v50 = vand.u32 4294901760, %v18919_v21 }
 0xfa7   :  { %v43998_v5 = vsub.f32 %v18916_v58, %v43983_v39  ;;  %v44064_v58 = vsub.f32 %v18928_v4, %v44025_v3 }
 0xfa8   :  { %33628 = vmatmul.mubr.f32.gmra.mrb[14].mxu1 %v43643_v37  ;;  %v18922_v37 = vsel %vm11193_vm3, %v18892_v62, 0 }
 0xfa9   :  { %33630 = vmatprep.mubr.f32.mxu1 %v43645_v48  ;;  %36134 = vmatpush3.bf16.msra.mxu1 %v43954_v32  ;;  %v18925_v48 = vsel %vm11193_vm3, %v18893_v61, 0  ;;  %v44003_v7 = vand.u32 4294901760, %v18922_v37  ;;  %v46564_v23 = vand.u32 4294901760, %v43998_v5  ;;  %v46560_v52 = vand.u32 4294901760, %v44064_v58 }
 0xfaa   :  { %36136 = vmatprep.subr.bf16.mxu1 %v43973_v6  ;;  %v44006_v17 = vand.u32 4294901760, %v18925_v48 }
 0xfab   :  { %v44023_v42 = vsub.f32 %v18922_v37, %v44003_v7  ;;  %v19039_v49 = vsub.f32 %v43998_v5, %v46564_v23 }
 0xfac   :  { %33631 = vmatmul.mubr.f32.gmra.mrb[16].mxu1 %v43686_v41  ;;  %v44001_v41 = vsub.f32 %v18919_v21, %v43985_v50  ;;  %v44029_v46 = vsub.f32 %v18925_v48, %v44006_v17  ;;  %v19215_v21 = vand.u32 4294901760, %v19214_v35  ;;  %v18900_v48 = vld [vmem:[#allocation3 + $0xd1] sm:$0xff] }
 0xfad   :  { %33633 = vmatprep.mubr.f32.mxu1 %v43689_v40  ;;  %36138 = vmatpush3.bf16.msra.mxu1 %v43973_v6  ;;  %v18896_v40 = vld [vmem:[#allocation3 + $0x71] sm:$0xff]  ;;  %v46554_v20 = vand.u32 4294901760, %v44023_v42 }
 0xfae   :  { %36140 = vmatprep.subr.bf16.mxu1 %v43981_v25  ;;  %v18934_v36 = vsel %vm11193_vm3, %v18896_v40, 0  ;;  %v19040_v40 = vand.u32 4294901760, %v19039_v49 }
 0xfaf   :  { %v44041_v38 = vand.u32 4294901760, %v18934_v36  ;;  %v19059_v11 = vsub.f32 %v44023_v42, %v46554_v20 }
 0xfb0   :  { %33634 = vmatmul.mubr.f32.gmra.mrb[18].mxu1 %v43717_v19  ;;  %v44018_v19 = vsub.f32 %v43933_v43, %v18979_v57  ;;  %v19221_v43 = vsub.f32 %v43994_v13, %v46561_v63  ;;  %v18899_v57 = vld [vmem:[#allocation3 + $0xc1] sm:$0xff] }
 0xfb1   :  { %33636 = vmatprep.mubr.f32.mxu1 %v43728_v8  ;;  %v46557_v8 = vand.u32 4294901760, %v44001_v41  ;;  %v18943_v16 = vsel %vm11193_vm3, %v18899_v57, 0  ;;  %v44076_v61 = vsub.f32 %v18934_v36, %v44041_v38  ;;  %v18901_v57 = vld [vmem:[#allocation3 + $0xe1] sm:$0xff] }
 0xfb2   :  { %v46552_v47 = vand.u32 4294901760, %v44018_v19  ;;  %v19222_v62 = vand.u32 4294901760, %v19221_v43  ;;  %v18946_v43 = vsel %vm11193_vm3, %v18900_v48, 0 }
 0xfb3   :  { %v19049_v60 = vsub.f32 %v44001_v41, %v46557_v8  ;;  %v18903_v8 = vld [vmem:[#allocation3 + $0x101] sm:$0xff] }
 0xfb4   :  { %33637 = vmatmul.mubr.f32.gmra.mrb[20].mxu1 %v43744_v55  ;;  %v18940_v55 = vsel %vm11193_vm3, %v18898_v14, 0  ;;  %v19235_v29 = vsub.f32 %v44018_v19, %v46552_v47  ;;  %v46559_v14 = vand.u32 4294901760, %v44069_v31  ;;  %v36143_v49 = vpack.c.bf16 %v19222_v62, %v19215_v21 }
 0xfb5   :  { %33639 = vmatprep.mubr.f32.mxu1 %v43749_v22  ;;  %v44049_v22 = vsub.f32 %v43947_v24, %v18982_v34  ;;  %v46555_v24 = vand.u32 4294901760, %v44029_v46  ;;  %v44071_v34 = vand.u32 4294901760, %v18937_v30  ;;  %v44078_v37 = vand.u32 4294901760, %v18940_v55 }
 0xfb6   :  { %v19050_v4 = vand.u32 4294901760, %v19049_v60  ;;  %v46563_v60 = vand.u32 4294901760, %v44076_v61  ;;  %v19079_v21 = vsub.f32 %v44064_v58, %v46560_v52  ;;  %v18949_v62 = vsel %vm11193_vm3, %v18901_v57, 0 }
 0xfb7   :  { %v46556_v12 = vand.u32 4294901760, %v44049_v22  ;;  %v19069_v36 = vsub.f32 %v44029_v46, %v46555_v24  ;;  %v44098_v35 = vsub.f32 %v18937_v30, %v44071_v34  ;;  %v44103_v47 = vsub.f32 %v18940_v55, %v44078_v37 }
 0xfb8   :  { %33640 = vmatmul.mubr.f32.gmra.mrb[22].mxu1 %v43763_v51  ;;  %v19228_v51 = vsub.f32 %v44015_v53, %v46553_v9  ;;  %v18902_v9 = vld [vmem:[#allocation3 + $0xf1] sm:$0xff]  ;;  %v19236_v24 = vand.u32 4294901760, %v19235_v29  ;;  %v44116_v55 = vand.u32 4294901760, %v18946_v43  ;;  %v19089_v29 = vsub.f32 %v44069_v31, %v46559_v14 }
 0xfb9   :  { %33642 = vmatprep.mubr.f32.mxu1 %v43769_v54  ;;  %v46558_v54 = vand.u32 4294901760, %v44054_v27  ;;  %v19242_v30 = vsub.f32 %v44049_v22, %v46556_v12  ;;  %v18952_v12 = vsel %vm11193_vm3, %v18902_v9, 0  ;;  %v19118_v57 = vand.u32 4294901760, %v44103_v47 }
 0xfba   :  { %v19229_v20 = vand.u32 4294901760, %v19228_v51  ;;  %v19070_v51 = vand.u32 4294901760, %v19069_v36  ;;  %v18904_v36 = vld [vmem:[#allocation3 + $0x111] sm:$0xff]  ;;  %v44132_v52 = vand.u32 4294901760, %v18949_v62  ;;  %v44137_v15 = vand.u32 4294901760, %v18952_v12 }
 0xfbb   :  { %v19249_v48 = vsub.f32 %v44054_v27, %v46558_v54  ;;  %v19108_v54 = vand.u32 4294901760, %v44098_v35  ;;  %v19243_v9 = vand.u32 4294901760, %v19242_v30  ;;  %v18958_v23 = vsel %vm11193_vm3, %v18904_v36, 0 }
 0xfbc   :  { %33643 = vmatmul.mubr.f32.gmra.mrb[24].mxu1 %v43779_v10  ;;  %v44105_v10 = vand.u32 4294901760, %v18943_v16  ;;  %v36147_v14 = vpack.c.bf16 %v19236_v24, %v19229_v20  ;;  %v19090_v1 = vand.u32 4294901760, %v19089_v29  ;;  %v44157_v29 = vand.u32 4294901760, %v18958_v23 }
 0xfbd   :  { %33661 = vmatprep.mubr.f32.mxu1 %v19040_v40  ;;  %v19060_v40 = vand.u32 4294901760, %v19059_v11  ;;  %v19099_v11 = vsub.f32 %v44076_v61, %v46563_v60  ;;  %v19250_v63 = vand.u32 4294901760, %v19249_v48  ;;  %v18955_v60 = vsel %vm11193_vm3, %v18903_v8, 0 }
 0xfbe   :  { %v19109_v24 = vsub.f32 %v44098_v35, %v19108_v54  ;;  %v44149_v8 = vsub.f32 %v18949_v62, %v44132_v52 }
 0xfbf   :  { %v19100_v20 = vand.u32 4294901760, %v19099_v11  ;;  %v36151_v48 = vpack.c.bf16 %v19250_v63, %v19243_v9 }
 0xfc0   :  { %33662 = vmatmul.mubr.f32.vlgmr.msra.gmra.mrb[10].mxu1 %v19050_v4  ;;  %v44130_v4 = vsub.f32 %v18943_v16, %v44105_v10  ;;  %v18905_v16 = vld [vmem:[#allocation3 + $0x121] sm:$0xff]  ;;  %v19110_v36 = vand.u32 4294901760, %v19109_v24  ;;  %v46568_v63 = vand.u32 4294901760, %v44149_v8 }
 0xfc1   :  { %36142 = vmatpush3.bf16.msra.mxu1 %v43981_v25  ;;  %33664 = vmatprep.mubr.f32.mxu1 %v19060_v40  ;;  %v19080_v25 = vand.u32 4294901760, %v19079_v21  ;;  %v44135_v40 = vsub.f32 %v18946_v43, %v44116_v55  ;;  %v19119_v43 = vsub.f32 %v44103_v47, %v19118_v57  ;;  %v44151_v21 = vand.u32 4294901760, %v18955_v60 }
 0xfc2   :  { %36144 = vmatprep.subr.bf16.mxu1 %v36143_v49  ;;  %v46566_v30 = vand.u32 4294901760, %v44130_v4  ;;  %v18961_v11 = vsel %vm11193_vm3, %v18905_v16, 0  ;;  %v19149_v24 = vsub.f32 %v44149_v8, %v46568_v63 }
 0xfc3   :  { %v44165_v9 = vsub.f32 %v18955_v60, %v44151_v21  ;;  %v19120_v16 = vand.u32 4294901760, %v19119_v43 }
 0xfc4   :  { %33665 = vmatmul.mubr.f32.gmra.mrb[12].mxu1 %v19070_v51  ;;  %v44155_v51 = vsub.f32 %v18952_v12, %v44137_v15  ;;  %v19129_v62 = vsub.f32 %v44130_v4, %v46566_v30  ;;  %v44167_v12 = vand.u32 4294901760, %v18961_v11 }
 0xfc5   :  { %33667 = vmatprep.mubr.f32.mxu1 %v19080_v25  ;;  %36146 = vmatpush3.bf16.msra.mxu1 %v36143_v49  ;;  %v46567_v49 = vand.u32 4294901760, %v44135_v40  ;;  %v36155_v25 = vpack.c.bf16 %v43937_v0, %v43935_v26  ;;  %v19168_v30 = vand.u32 4294901760, %v44165_v9  ;;  %v46813_v26 = vand.u32 4294901760, %v43998_v5 }
 0xfc6   :  { %36148 = vmatprep.subr.bf16.mxu1 %v36147_v14  ;;  %v19130_v60 = vand.u32 4294901760, %v19129_v62  ;;  %v44183_v43 = vsub.f32 %v18961_v11, %v44167_v12 }
 0xfc7   :  { %v19169_v62 = vsub.f32 %v44165_v9, %v19168_v30 }
 0xfc8   :  { %33668 = vmatmul.mubr.f32.gmra.mrb[14].mxu1 %v19090_v1  ;;  %v19139_v1 = vsub.f32 %v44135_v40, %v46567_v49 }
 0xfc9   :  { %33670 = vmatprep.mubr.f32.mxu1 %v19100_v20  ;;  %36150 = vmatpush3.bf16.msra.mxu1 %v36147_v14  ;;  %v19158_v20 = vand.u32 4294901760, %v44155_v51  ;;  %v44176_v14 = vsub.f32 %v18958_v23, %v44157_v29 }
 0xfca   :  { %36152 = vmatprep.subr.bf16.mxu1 %v36151_v48  ;;  %v19140_v49 = vand.u32 4294901760, %v19139_v1  ;;  %v19170_v1 = vand.u32 4294901760, %v19169_v62 }
 0xfcb   :  { %v19159_v23 = vsub.f32 %v44155_v51, %v19158_v20 }
 0xfcc   :  { %33671 = vmatmul.mubr.f32.gmra.mrb[16].mxu1 %v19110_v36  ;;  %v19178_v36 = vand.u32 4294901760, %v44176_v14 }
 0xfcd   :  { %33673 = vmatprep.mubr.f32.mxu1 %v19120_v16  ;;  %36154 = vmatpush3.bf16.msra.mxu1 %v36151_v48  ;;  %v19150_v48 = vand.u32 4294901760, %v19149_v24  ;;  %v19188_v16 = vand.u32 4294901760, %v44183_v43  ;;  %v19160_v63 = vand.u32 4294901760, %v19159_v23  ;;  %v36159_v23 = vpack.c.bf16 %v43994_v13, %v43992_v56 }
 0xfce   :  { %36156 = vmatprep.subr.bf16.mxu1 %v36155_v25  ;;  %v19179_v11 = vsub.f32 %v44176_v14, %v19178_v36 }
 0xfd0   :  { %33674 = vmatmul.mubr.f32.gmra.mrb[18].mxu1 %v19130_v60  ;;  %v19189_v60 = vsub.f32 %v44183_v43, %v19188_v16 }
 0xfd1   :  { %33676 = vmatprep.mubr.f32.mxu1 %v19140_v49  ;;  %v19180_v49 = vand.u32 4294901760, %v19179_v11 }
 0xfd2   :  { %v19190_v24 = vand.u32 4294901760, %v19189_v60  ;;  %v46817_v60 = vand.u32 4294901760, %v44023_v42 }
 0xfd4   :  { %33677 = vmatmul.mubr.f32.gmra.mrb[20].mxu1 %v19150_v48  ;;  %v36167_v48 = vpack.c.bf16 %v44054_v27, %v44049_v22 }
 0xfd5   :  { %33679 = vmatprep.mubr.f32.mxu1 %v19160_v63  ;;  %v36163_v63 = vpack.c.bf16 %v44018_v19, %v44015_v53 }
 0xfd8   :  { %33680 = vmatmul.mubr.f32.gmra.mrb[22].mxu1 %v19170_v1  ;;  %v46816_v1 = vand.u32 4294901760, %v44001_v41 }
 0xfd9   :  { %33682 = vmatprep.mubr.f32.mxu1 %v19180_v49  ;;  %v46818_v49 = vand.u32 4294901760, %v44015_v53  ;;  %v46825_v53 = vand.u32 4294901760, %v44076_v61 }
 0xfdc   :  { %33683 = vmatmul.mubr.f32.gmra.mrb[24].mxu1 %v19190_v24  ;;  %v46819_v24 = vand.u32 4294901760, %v44018_v19  ;;  %v46826_v19 = vand.u32 4294901760, %v44130_v4 }
 0xfdd   :  { %33701 = vmatprep.mubr.f32.mxu1 %v43983_v39 }
 0xfe0   :  { %33702 = vmatmul.mubr.f32.vlgmr.msra.gmra.mrb[10].mxu1 %v43985_v50 }
 0xfe1   :  { %36158 = vmatpush3.bf16.msra.mxu1 %v36155_v25  ;;  %33704 = vmatprep.mubr.f32.mxu1 %v44003_v7  ;;  %v46812_v25 = vand.u32 4294901760, %v43937_v0  ;;  %v46814_v0 = vand.u32 4294901760, %v43992_v56  ;;  %v46821_v56 = vand.u32 4294901760, %v44064_v58 }
 0xfe2   :  { %36160 = vmatprep.subr.bf16.mxu1 %v36159_v23 }
 0xfe3   :  { %v36187_v62 = vpack.c.bf16 %v46812_v25, %v19199_v18  ;;  %v46815_v18 = vand.u32 4294901760, %v43994_v13  ;;  %v46822_v13 = vand.u32 4294901760, %v44049_v22  ;;  %v46828_v22 = vand.u32 4294901760, %v44149_v8 }
 0xfe4   :  { %33705 = vmatmul.mubr.f32.gmra.mrb[12].mxu1 %v44006_v17 }
 0xfe5   :  { %33707 = vmatprep.mubr.f32.mxu1 %v44025_v3  ;;  %36162 = vmatpush3.bf16.msra.mxu1 %v36159_v23  ;;  %v36191_v11 = vpack.c.bf16 %v46815_v18, %v46814_v0  ;;  %v36195_v23 = vpack.c.bf16 %v46819_v24, %v46818_v49  ;;  %v20163_v0 = vld [vmem:[#allocation3 + $0x32] sm:$0xff] }
 0xfe6   :  { %36164 = vmatprep.subr.bf16.mxu1 %v36163_v63  ;;  %v20165_v49 = vld [vmem:[#allocation3 + $0x52] sm:$0xff] }
 0xfe8   :  { %33708 = vmatmul.mubr.f32.gmra.mrb[14].mxu1 %v44031_v2 }
 0xfe9   :  { %33710 = vmatprep.mubr.f32.mxu1 %v44041_v38  ;;  %36166 = vmatpush3.bf16.msra.mxu1 %v36163_v63  ;;  %v46824_v63 = vand.u32 4294901760, %v44069_v31 }
 0xfea   :  { %36168 = vmatprep.subr.bf16.mxu1 %v36167_v48 }
 0xfec   :  { %33711 = vmatmul.mubr.f32.gmra.mrb[16].mxu1 %v44071_v34 }
 0xfed   :  { %33713 = vmatprep.mubr.f32.mxu1 %v44078_v37  ;;  %36170 = vmatpush3.bf16.msra.mxu1 %v36167_v48  ;;  %v20162_v48 = vld [vmem:[#allocation3 + $0x22] sm:$0xff] }
 0xfee   :  { %36172 = vmatprep.subr.bf16.mxu1 %v43919_v33 }
 0xff0   :  { %33714 = vmatmul.mubr.f32.gmra.mrb[18].mxu1 %v44105_v10 }
 0xff1   :  { %33716 = vmatprep.mubr.f32.mxu1 %v44116_v55 }
 0xff4   :  { %33717 = vmatmul.mubr.f32.gmra.mrb[20].mxu1 %v44132_v52 }
 0xff5   :  { %33719 = vmatprep.mubr.f32.mxu1 %v44137_v15 }
 0xff8   :  { %33720 = vmatmul.mubr.f32.gmra.mrb[22].mxu1 %v44151_v21 }
 0xff9   :  { %33722 = vmatprep.mubr.f32.mxu1 %v44157_v29 }
 0xffc   :  { %33723 = vmatmul.mubr.f32.gmra.mrb[24].mxu1 %v44167_v12 }
 0xffd   :  { %33741 = vmatprep.mubr.f32.mxu1 %v43998_v5  ;;  %v46820_v5 = vand.u32 4294901760, %v44029_v46 }
0x1000   :  { %33742 = vmatmul.mubr.f32.vlgmr.msra.gmra.mrb[10].mxu1 %v44001_v41  ;;  %v46823_v41 = vand.u32 4294901760, %v44054_v27  ;;  %v20179_v27 = vld [vmem:[#allocation8 + $0x148] sm:$0xff] }
0x1001   :  { %36174 = vmatpush3.bf16.msra.mxu1 %v43919_v33  ;;  %33744 = vmatprep.mubr.f32.mxu1 %v44023_v42 }
0x1002   :  { %36176 = vmatprep.subr.bf16.mxu1 %v43943_v59  ;;  %v36199_v42 = vpack.c.bf16 %v46823_v41, %v46822_v13 }
0x1004   :  { %33745 = vmatmul.mubr.f32.gmra.mrb[12].mxu1 %v44029_v46  ;;  %v46827_v46 = vand.u32 4294901760, %v44135_v40 }
0x1005   :  { %33747 = vmatprep.mubr.f32.mxu1 %v44064_v58  ;;  %36178 = vmatpush3.bf16.msra.mxu1 %v43943_v59 }
0x1006   :  { %36180 = vmatprep.subr.bf16.mxu1 %v43954_v32 }
0x1008   :  { %33748 = vmatmul.mubr.f32.gmra.mrb[14].mxu1 %v44069_v31  ;;  %v20238_v31 = vand.u32 4294901760, %v20179_v27 }
0x1009   :  { %33750 = vmatprep.mubr.f32.mxu1 %v44076_v61  ;;  %36182 = vmatpush3.bf16.msra.mxu1 %v43954_v32 }
0x100a   :  { %36184 = vmatprep.subr.bf16.mxu1 %v43973_v6 }
0x100c   :  { %33751 = vmatmul.mubr.f32.gmra.mrb[16].mxu1 %v44098_v35  ;;  %v44319_v35 = vld [vmem:[#allocation8 + $0x160] sm:$0xff] }
0x100d   :  { %33753 = vmatprep.mubr.f32.mxu1 %v44103_v47  ;;  %36186 = vmatpush3.bf16.msra.mxu1 %v43973_v6  ;;  %v20178_v47 = vld [vmem:[#allocation8 + $0x140] sm:$0xff] }
0x100e   :  { %36188 = vmatprep.subr.bf16.mxu1 %v36187_v62  ;;  %v20235_v58 = vand.u32 4294901760, %v20178_v47 }
0x1010   :  { %33754 = vmatmul.mubr.f32.gmra.mrb[18].mxu1 %v44130_v4  ;;  %v44325_v4 = vsub.f32 %v20179_v27, %v20238_v31 }
0x1011   :  { %33756 = vmatprep.mubr.f32.mxu1 %v44135_v40  ;;  %v20247_v40 = vand.u32 4294901760, %v44319_v35 }
0x1013   :  { %v44403_v27 = vsub.f32 %v44319_v35, %v20247_v40 }
0x1014   :  { %33757 = vmatmul.mubr.f32.gmra.mrb[20].mxu1 %v44149_v8 }
0x1015   :  { %33759 = vmatprep.mubr.f32.mxu1 %v44155_v51 }
0x1018   :  { %33760 = vmatmul.mubr.f32.gmra.mrb[22].mxu1 %v44165_v9  ;;  %v46582_v9 = vand.u32 4294901760, %v44325_v4 }
0x1019   :  { %33762 = vmatprep.mubr.f32.mxu1 %v44176_v14  ;;  %v44337_v14 = vld [vmem:[#allocation8 + $0x178] sm:$0xff] }
0x101c   :  { %33763 = vmatmul.mubr.f32.gmra.mrb[24].mxu1 %v44183_v43 }
0x101d   :  { %33781 = vmatprep.mubr.f32.mxu1 %v46813_v26 }
0x1020   :  { %33782 = vmatmul.mubr.f32.vlgmr.msra.gmra.mrb[10].mxu1 %v46816_v1 }
0x1021   :  { %36190 = vmatpush3.bf16.msra.mxu1 %v36187_v62  ;;  %33784 = vmatprep.mubr.f32.mxu1 %v46817_v60 }
0x1022   :  { %36192 = vmatprep.subr.bf16.mxu1 %v36191_v11 }
0x1024   :  { %33785 = vmatmul.mubr.f32.gmra.mrb[12].mxu1 %v46820_v5  ;;  %v20166_v5 = vld [vmem:[#allocation3 + $0x62] sm:$0xff] }
0x1025   :  { %33787 = vmatprep.mubr.f32.mxu1 %v46821_v56  ;;  %36194 = vmatpush3.bf16.msra.mxu1 %v36191_v11  ;;  %v20164_v11 = vld [vmem:[#allocation3 + $0x42] sm:$0xff]  ;;  %v20167_v56 = vld [vmem:[#allocation3 + $0x72] sm:$0xff] }
0x1026   :  { %36196 = vmatprep.subr.bf16.mxu1 %v36195_v23 }
0x1028   :  { %33788 = vmatmul.mubr.f32.gmra.mrb[14].mxu1 %v46824_v63 }
0x1029   :  { %33790 = vmatprep.mubr.f32.mxu1 %v46825_v53  ;;  %36198 = vmatpush3.bf16.msra.mxu1 %v36195_v23 }
0x102a   :  { %36200 = vmatprep.subr.bf16.mxu1 %v36199_v42 }
0x102c   :  { %33791 = vmatmul.mubr.f32.gmra.mrb[16].mxu1 %v19108_v54 }
0x102d   :  { %33793 = vmatprep.mubr.f32.mxu1 %v19118_v57  ;;  %36202 = vmatpush3.bf16.msra.mxu1 %v36199_v42  ;;  %v44323_v57 = vsub.f32 %v20178_v47, %v20235_v58  ;;  %v20199_v42 = vsel %vm11193_vm3, %v20165_v49, 0  ;;  %v20169_v47 = vld [vmem:[#allocation3 + $0xb2] sm:$0xff] }
0x102e   :  { %36204 = vmatprep.subr.bf16.mxu1 %v43919_v33 }
0x102f   :  { %v20470_v51 = vand.u32 4294901760, %v44323_v57 }
0x1030   :  { %33794 = vmatmul.mubr.f32.gmra.mrb[18].mxu1 %v46826_v19  ;;  %v20202_v19 = vsel %vm11193_vm3, %v20166_v5, 0 }
0x1031   :  { %33796 = vmatprep.mubr.f32.mxu1 %v46827_v46  ;;  %v20205_v46 = vsel %vm11193_vm3, %v20167_v56, 0 }
0x1034   :  { %33797 = vmatmul.mubr.f32.gmra.mrb[20].mxu1 %v46828_v22  ;;  %v20168_v22 = vld [vmem:[#allocation3 + $0x82] sm:$0xff] }
0x1035   :  { %33799 = vmatprep.mubr.f32.mxu1 %v19158_v20  ;;  %v44335_v20 = vld [vmem:[#allocation8 + $0x170] sm:$0xff] }
0x1036   :  { %v20253_v43 = vand.u32 4294901760, %v44335_v20 }
0x1038   :  { %33800 = vmatmul.mubr.f32.gmra.mrb[22].mxu1 %v19168_v30 }
0x1039   :  { %33802 = vmatprep.mubr.f32.mxu1 %v19178_v36  ;;  %v20256_v36 = vand.u32 4294901760, %v44337_v14 }
0x103b   :  { %v44361_v25 = vpack.c.bf16 %v20256_v36, %v20253_v43 }
0x103c   :  { %33803 = vmatmul.mubr.f32.gmra.mrb[24].mxu1 %v19188_v16  ;;  %v20471_v16 = vsub.f32 %v44323_v57, %v20470_v51 }
0x103d   :  { %33821 = vmatprep.mubr.f32.mxu1 %v43983_v39 }
0x103e   :  { %v20472_v62 = vand.u32 4294901760, %v20471_v16 }
0x1040   :  { %33822 = vmatmul.mubr.f32.vlgmr.msra.gmra.mrb[10].mxu1 %v43985_v50 }
0x1041   :  { %36206 = vmatpush3.bf16.msra.mxu1 %v43919_v33  ;;  %33824 = vmatprep.mubr.f32.mxu1 %v44003_v7  ;;  %v44307_v33 = vpack.c.bf16 %v20238_v31, %v20235_v58 }
0x1042   :  { %36208 = vmatprep.subr.bf16.mxu1 %v43943_v59 }
0x1044   :  { %33825 = vmatmul.mubr.f32.gmra.mrb[12].mxu1 %v44006_v17 }
0x1045   :  { %33827 = vmatprep.mubr.f32.mxu1 %v44025_v3  ;;  %36210 = vmatpush3.bf16.msra.mxu1 %v43943_v59  ;;  %v20180_v59 = vld [vmem:[#allocation8 + $0x150] sm:$0xff] }
0x1046   :  { %36212 = vmatprep.subr.bf16.mxu1 %v43954_v32  ;;  %v20241_v61 = vand.u32 4294901760, %v20180_v59 }
0x1048   :  { %33828 = vmatmul.mubr.f32.gmra.mrb[14].mxu1 %v44031_v2  ;;  %v44380_v24 = vsub.f32 %v20180_v59, %v20241_v61  ;;  %v44413_v59 = vand.u32 4294901760, %v20199_v42 }
0x1049   :  { %33830 = vmatprep.mubr.f32.mxu1 %v44041_v38  ;;  %36214 = vmatpush3.bf16.msra.mxu1 %v43954_v32  ;;  %v20181_v32 = vld [vmem:[#allocation8 + $0x158] sm:$0xff] }
0x104a   :  { %36216 = vmatprep.subr.bf16.mxu1 %v43973_v6  ;;  %v20244_v54 = vand.u32 4294901760, %v20181_v32  ;;  %v46579_v63 = vand.u32 4294901760, %v44380_v24 }
0x104c   :  { %33831 = vmatmul.mubr.f32.gmra.mrb[16].mxu1 %v44071_v34  ;;  %v44331_v8 = vpack.c.bf16 %v20244_v54, %v20241_v61  ;;  %v44382_v23 = vsub.f32 %v20181_v32, %v20244_v54  ;;  %v44419_v61 = vand.u32 4294901760, %v20202_v19  ;;  %v44421_v54 = vand.u32 4294901760, %v20205_v46 }
0x104d   :  { %33833 = vmatprep.mubr.f32.mxu1 %v44078_v37  ;;  %36218 = vmatpush3.bf16.msra.mxu1 %v43973_v6  ;;  %v44321_v6 = vld [vmem:[#allocation8 + $0x168] sm:$0xff]  ;;  %v20485_v35 = vsub.f32 %v44380_v24, %v46579_v63 }
0x104e   :  { %36220 = vmatprep.subr.bf16.mxu1 %v44307_v33  ;;  %v20250_v30 = vand.u32 4294901760, %v44321_v6  ;;  %v46578_v53 = vand.u32 4294901760, %v44382_v23 }
0x1050   :  { %33834 = vmatmul.mubr.f32.gmra.mrb[18].mxu1 %v44105_v10 }
0x1051   :  { %33836 = vmatprep.mubr.f32.mxu1 %v44116_v55 }
0x1054   :  { %33837 = vmatmul.mubr.f32.gmra.mrb[20].mxu1 %v44132_v52 }
0x1055   :  { %33839 = vmatprep.mubr.f32.mxu1 %v44137_v15 }
0x1058   :  { %33840 = vmatmul.mubr.f32.gmra.mrb[22].mxu1 %v44151_v21 }
0x1059   :  { %33842 = vmatprep.mubr.f32.mxu1 %v44157_v29 }
0x105c   :  { %33843 = vmatmul.mubr.f32.gmra.mrb[24].mxu1 %v44167_v12 }
0x105d   :  { %33861 = vmatprep.mubr.f32.mxu1 %v43983_v39  ;;  %v44342_v39 = vpack.c.bf16 %v20250_v30, %v20247_v40  ;;  %v20208_v40 = vsel %vm11193_vm3, %v20168_v22, 0 }
0x1060   :  { %33862 = vmatmul.mubr.f32.vlgmr.msra.gmra.mrb[10].mxu1 %v43985_v50  ;;  %v20478_v50 = vsub.f32 %v44325_v4, %v46582_v9 }
0x1061   :  { %36222 = vmatpush3.bf16.msra.mxu1 %v44307_v33  ;;  %33864 = vmatprep.mubr.f32.mxu1 %v44003_v7  ;;  %v20161_v7 = vld [vmem:[#allocation3 + $0x12] sm:$0xff] }
0x1062   :  { %36224 = vmatprep.subr.bf16.mxu1 %v44331_v8  ;;  %v20479_v26 = vand.u32 4294901760, %v20478_v50  ;;  %v20170_v50 = vld [vmem:[#allocation3 + $0xc2] sm:$0xff] }
0x1064   :  { %33865 = vmatmul.mubr.f32.gmra.mrb[12].mxu1 %v44006_v17  ;;  %v20187_v17 = vsel %vm11193_vm3, %v20161_v7, 0  ;;  %v44369_v18 = vpack.c.bf16 %v20479_v26, %v20472_v62  ;;  %v44442_v7 = vsub.f32 %v44337_v14, %v20256_v36  ;;  %v44457_v14 = vsub.f32 %v20202_v19, %v44419_v61 }
0x1065   :  { %33867 = vmatprep.mubr.f32.mxu1 %v44025_v3  ;;  %36226 = vmatpush3.bf16.msra.mxu1 %v44331_v8  ;;  %v20190_v3 = vsel %vm11193_vm3, %v20162_v48, 0  ;;  %v44371_v1 = vand.u32 4294901760, %v20187_v17  ;;  %v44462_v36 = vand.u32 4294901760, %v20208_v40 }
0x1066   :  { %36228 = vmatprep.subr.bf16.mxu1 %v44342_v39  ;;  %v44373_v60 = vand.u32 4294901760, %v20190_v3  ;;  %v46575_v56 = vand.u32 4294901760, %v44442_v7 }
0x1067   :  { %v44386_v13 = vsub.f32 %v20187_v17, %v44371_v1  ;;  %v44452_v17 = vsub.f32 %v20199_v42, %v44413_v59 }
0x1068   :  { %33868 = vmatmul.mubr.f32.gmra.mrb[14].mxu1 %v44031_v2  ;;  %v20193_v2 = vsel %vm11193_vm3, %v20163_v0, 0 }
0x1069   :  { %33870 = vmatprep.mubr.f32.mxu1 %v44041_v38  ;;  %36230 = vmatpush3.bf16.msra.mxu1 %v44342_v39  ;;  %v20196_v38 = vsel %vm11193_vm3, %v20164_v11, 0  ;;  %v46581_v58 = vand.u32 4294901760, %v44386_v13 }
0x106a   :  { %36232 = vmatprep.subr.bf16.mxu1 %v44361_v25  ;;  %v44394_v41 = vand.u32 4294901760, %v20196_v38 }
0x106b   :  { %v20310_v48 = vsub.f32 %v44386_v13, %v46581_v58 }
0x106c   :  { %33871 = vmatmul.mubr.f32.gmra.mrb[16].mxu1 %v44071_v34  ;;  %v44389_v34 = vsub.f32 %v20190_v3, %v44373_v60  ;;  %v44417_v32 = vsub.f32 %v20196_v38, %v44394_v41  ;;  %v20486_v3 = vand.u32 4294901760, %v20485_v35  ;;  %v20171_v38 = vld [vmem:[#allocation3 + $0xd2] sm:$0xff] }
0x106d   :  { %33873 = vmatprep.mubr.f32.mxu1 %v44078_v37  ;;  %36234 = vmatpush3.bf16.msra.mxu1 %v44361_v25  ;;  %v44391_v37 = vand.u32 4294901760, %v20193_v2 }
0x106e   :  { %36236 = vmatprep.subr.bf16.mxu1 %v44369_v18 }
0x106f   :  { %v44411_v31 = vsub.f32 %v20193_v2, %v44391_v37  ;;  %v20214_v2 = vsel %vm11193_vm3, %v20170_v50, 0  ;;  %v20172_v50 = vld [vmem:[#allocation3 + $0xe2] sm:$0xff] }
0x1070   :  { %33874 = vmatmul.mubr.f32.gmra.mrb[18].mxu1 %v44105_v10  ;;  %v44406_v10 = vsub.f32 %v44321_v6, %v20250_v30  ;;  %v20492_v6 = vsub.f32 %v44382_v23, %v46578_v53  ;;  %v46570_v30 = vand.u32 4294901760, %v44403_v27 }
0x1071   :  { %33876 = vmatprep.mubr.f32.mxu1 %v44116_v55  ;;  %v46573_v55 = vand.u32 4294901760, %v44389_v34  ;;  %v46571_v26 = vand.u32 4294901760, %v44411_v31 }
0x1072   :  { %v46569_v16 = vand.u32 4294901760, %v44406_v10  ;;  %v20493_v0 = vand.u32 4294901760, %v20492_v6  ;;  %v20217_v6 = vsel %vm11193_vm3, %v20171_v38, 0  ;;  %v20520_v38 = vsub.f32 %v44442_v7, %v46575_v56 }
0x1073   :  { %v20320_v62 = vsub.f32 %v44389_v34, %v46573_v55  ;;  %v20330_v19 = vsub.f32 %v44411_v31, %v46571_v26 }
0x1074   :  { %33877 = vmatmul.mubr.f32.gmra.mrb[20].mxu1 %v44132_v52  ;;  %v20211_v52 = vsel %vm11193_vm3, %v20169_v47, 0  ;;  %v20506_v49 = vsub.f32 %v44406_v10, %v46569_v16  ;;  %v46576_v47 = vand.u32 4294901760, %v44457_v14  ;;  %v20521_v53 = vand.u32 4294901760, %v20520_v38 }
0x1075   :  { %33879 = vmatprep.mubr.f32.mxu1 %v44137_v15  ;;  %v44437_v15 = vsub.f32 %v44335_v20, %v20253_v43  ;;  %v46572_v20 = vand.u32 4294901760, %v44417_v32  ;;  %v44460_v43 = vsub.f32 %v20205_v46, %v44421_v54  ;;  %v44465_v11 = vand.u32 4294901760, %v20211_v52 }
0x1076   :  { %v20321_v42 = vand.u32 4294901760, %v20320_v62  ;;  %v46577_v46 = vand.u32 4294901760, %v44452_v17  ;;  %v44488_v62 = vsub.f32 %v20208_v40, %v44462_v36 }
0x1077   :  { %v46574_v5 = vand.u32 4294901760, %v44437_v15  ;;  %v20340_v22 = vsub.f32 %v44417_v32, %v46572_v20  ;;  %v46580_v35 = vand.u32 4294901760, %v44460_v43  ;;  %v44491_v16 = vsub.f32 %v20211_v52, %v44465_v11 }
0x1078   :  { %33880 = vmatmul.mubr.f32.gmra.mrb[22].mxu1 %v44151_v21  ;;  %v20499_v21 = vsub.f32 %v44403_v27, %v46570_v30  ;;  %v20173_v30 = vld [vmem:[#allocation3 + $0xf2] sm:$0xff]  ;;  %v20507_v20 = vand.u32 4294901760, %v20506_v49  ;;  %v20350_v40 = vsub.f32 %v44452_v17, %v46577_v46  ;;  %v44504_v52 = vand.u32 4294901760, %v20217_v6 }
0x1079   :  { %33882 = vmatprep.mubr.f32.mxu1 %v44157_v29  ;;  %v20311_v29 = vand.u32 4294901760, %v20310_v48  ;;  %v36239_v48 = vpack.c.bf16 %v20493_v0, %v20486_v3  ;;  %v20513_v55 = vsub.f32 %v44437_v15, %v46574_v5  ;;  %v20331_v3 = vand.u32 4294901760, %v20330_v19  ;;  %v20174_v5 = vld [vmem:[#allocation3 + $0x102] sm:$0xff] }
0x107a   :  { %v20500_v26 = vand.u32 4294901760, %v20499_v21  ;;  %v20220_v0 = vsel %vm11193_vm3, %v20172_v50, 0  ;;  %v20341_v21 = vand.u32 4294901760, %v20340_v22  ;;  %v20360_v49 = vsub.f32 %v44457_v14, %v46576_v47  ;;  %v20175_v22 = vld [vmem:[#allocation3 + $0x112] sm:$0xff] }
0x107b   :  { %v20370_v19 = vsub.f32 %v44460_v43, %v46580_v35  ;;  %v20379_v56 = vand.u32 4294901760, %v44488_v62  ;;  %v20389_v50 = vand.u32 4294901760, %v44491_v16  ;;  %v44520_v46 = vand.u32 4294901760, %v20220_v0 }
0x107c   :  { %33883 = vmatmul.mubr.f32.gmra.mrb[24].mxu1 %v44167_v12  ;;  %v44493_v12 = vand.u32 4294901760, %v20214_v2  ;;  %v36243_v47 = vpack.c.bf16 %v20507_v20, %v20500_v26  ;;  %v20226_v35 = vsel %vm11193_vm3, %v20174_v5, 0  ;;  %v20229_v58 = vsel %vm11193_vm3, %v20175_v22, 0 }
0x107d   :  { %33901 = vmatprep.mubr.f32.mxu1 %v20311_v29  ;;  %v20223_v29 = vsel %vm11193_vm3, %v20173_v30, 0  ;;  %v20514_v30 = vand.u32 4294901760, %v20513_v55  ;;  %v20361_v9 = vand.u32 4294901760, %v20360_v49  ;;  %v20371_v26 = vand.u32 4294901760, %v20370_v19 }
0x107e   :  { %v44525_v63 = vand.u32 4294901760, %v20223_v29  ;;  %v20380_v55 = vsub.f32 %v44488_v62, %v20379_v56  ;;  %v44537_v5 = vsub.f32 %v20220_v0, %v44520_v46  ;;  %v44545_v49 = vand.u32 4294901760, %v20229_v58 }
0x107f   :  { %v36247_v38 = vpack.c.bf16 %v20521_v53, %v20514_v30 }
0x1080   :  { %33902 = vmatmul.mubr.f32.vlgmr.msra.gmra.mrb[10].mxu1 %v20321_v42  ;;  %v44518_v42 = vsub.f32 %v20214_v2, %v44493_v12  ;;  %v20176_v2 = vld [vmem:[#allocation3 + $0x122] sm:$0xff]  ;;  %v20381_v22 = vand.u32 4294901760, %v20380_v55  ;;  %v46585_v53 = vand.u32 4294901760, %v44537_v5 }
0x1081   :  { %36238 = vmatpush3.bf16.msra.mxu1 %v44369_v18  ;;  %33904 = vmatprep.mubr.f32.mxu1 %v20331_v3  ;;  %v20351_v18 = vand.u32 4294901760, %v20350_v40  ;;  %v44523_v3 = vsub.f32 %v20217_v6, %v44504_v52  ;;  %v20390_v6 = vsub.f32 %v44491_v16, %v20389_v50  ;;  %v44539_v40 = vand.u32 4294901760, %v20226_v35 }
0x1082   :  { %36240 = vmatprep.subr.bf16.mxu1 %v36239_v48  ;;  %v46583_v20 = vand.u32 4294901760, %v44518_v42  ;;  %v20232_v19 = vsel %vm11193_vm3, %v20176_v2, 0  ;;  %v20420_v55 = vsub.f32 %v44537_v5, %v46585_v53 }
0x1083   :  { %v44553_v30 = vsub.f32 %v20226_v35, %v44539_v40  ;;  %v20391_v2 = vand.u32 4294901760, %v20390_v6 }
0x1084   :  { %33905 = vmatmul.mubr.f32.gmra.mrb[12].mxu1 %v20341_v21  ;;  %v44543_v21 = vsub.f32 %v20223_v29, %v44525_v63  ;;  %v20400_v0 = vsub.f32 %v44518_v42, %v46583_v20  ;;  %v44555_v29 = vand.u32 4294901760, %v20232_v19 }
0x1085   :  { %33907 = vmatprep.mubr.f32.mxu1 %v20351_v18  ;;  %36242 = vmatpush3.bf16.msra.mxu1 %v36239_v48  ;;  %v46584_v48 = vand.u32 4294901760, %v44523_v3  ;;  %v36251_v18 = vpack.c.bf16 %v44325_v4, %v44323_v57  ;;  %v20439_v20 = vand.u32 4294901760, %v44553_v30  ;;  %v46830_v57 = vand.u32 4294901760, %v44386_v13 }
0x1086   :  { %36244 = vmatprep.subr.bf16.mxu1 %v36243_v47  ;;  %v20401_v35 = vand.u32 4294901760, %v20400_v0  ;;  %v44571_v6 = vsub.f32 %v20232_v19, %v44555_v29 }
0x1087   :  { %v20440_v0 = vsub.f32 %v44553_v30, %v20439_v20 }
0x1088   :  { %33908 = vmatmul.mubr.f32.gmra.mrb[14].mxu1 %v20361_v9  ;;  %v20410_v9 = vsub.f32 %v44523_v3, %v46584_v48 }
0x1089   :  { %33910 = vmatprep.mubr.f32.mxu1 %v20371_v26  ;;  %36246 = vmatpush3.bf16.msra.mxu1 %v36243_v47  ;;  %v20429_v26 = vand.u32 4294901760, %v44543_v21  ;;  %v44564_v47 = vsub.f32 %v20229_v58, %v44545_v49 }
0x108a   :  { %36248 = vmatprep.subr.bf16.mxu1 %v36247_v38  ;;  %v20411_v48 = vand.u32 4294901760, %v20410_v9  ;;  %v20441_v9 = vand.u32 4294901760, %v20440_v0 }
0x108b   :  { %v20430_v58 = vsub.f32 %v44543_v21, %v20429_v26 }
0x108c   :  { %33911 = vmatmul.mubr.f32.gmra.mrb[16].mxu1 %v20381_v22  ;;  %v20449_v22 = vand.u32 4294901760, %v44564_v47 }
0x108d   :  { %33913 = vmatprep.mubr.f32.mxu1 %v20391_v2  ;;  %36250 = vmatpush3.bf16.msra.mxu1 %v36247_v38  ;;  %v20421_v38 = vand.u32 4294901760, %v20420_v55  ;;  %v20459_v2 = vand.u32 4294901760, %v44571_v6  ;;  %v20431_v53 = vand.u32 4294901760, %v20430_v58  ;;  %v36255_v58 = vpack.c.bf16 %v44382_v23, %v44380_v24 }
0x108e   :  { %36252 = vmatprep.subr.bf16.mxu1 %v36251_v18  ;;  %v20450_v19 = vsub.f32 %v44564_v47, %v20449_v22 }
0x1090   :  { %33914 = vmatmul.mubr.f32.gmra.mrb[18].mxu1 %v20401_v35  ;;  %v20460_v35 = vsub.f32 %v44571_v6, %v20459_v2 }
0x1091   :  { %33916 = vmatprep.mubr.f32.mxu1 %v20411_v48  ;;  %v20451_v48 = vand.u32 4294901760, %v20450_v19 }
0x1092   :  { %v20461_v55 = vand.u32 4294901760, %v20460_v35  ;;  %v46834_v35 = vand.u32 4294901760, %v44411_v31 }
0x1094   :  { %33917 = vmatmul.mubr.f32.gmra.mrb[20].mxu1 %v20421_v38  ;;  %v36263_v38 = vpack.c.bf16 %v44442_v7, %v44437_v15 }
0x1095   :  { %33919 = vmatprep.mubr.f32.mxu1 %v20431_v53  ;;  %v36259_v53 = vpack.c.bf16 %v44406_v10, %v44403_v27 }
0x1098   :  { %33920 = vmatmul.mubr.f32.gmra.mrb[22].mxu1 %v20441_v9  ;;  %v46833_v9 = vand.u32 4294901760, %v44389_v34 }
0x1099   :  { %33922 = vmatprep.mubr.f32.mxu1 %v20451_v48  ;;  %v46835_v48 = vand.u32 4294901760, %v44403_v27  ;;  %v46842_v27 = vand.u32 4294901760, %v44460_v43 }
0x109c   :  { %33923 = vmatmul.mubr.f32.gmra.mrb[24].mxu1 %v20461_v55  ;;  %v46836_v55 = vand.u32 4294901760, %v44406_v10  ;;  %v46843_v10 = vand.u32 4294901760, %v44518_v42 }
0x109d   :  { %33941 = vmatprep.mubr.f32.mxu1 %v44371_v1 }
0x10a0   :  { %33942 = vmatmul.mubr.f32.vlgmr.msra.gmra.mrb[10].mxu1 %v44373_v60 }
0x10a1   :  { %36254 = vmatpush3.bf16.msra.mxu1 %v36251_v18  ;;  %33944 = vmatprep.mubr.f32.mxu1 %v44391_v37  ;;  %v46829_v18 = vand.u32 4294901760, %v44325_v4  ;;  %v46831_v4 = vand.u32 4294901760, %v44380_v24  ;;  %v46838_v24 = vand.u32 4294901760, %v44452_v17 }
0x10a2   :  { %36256 = vmatprep.subr.bf16.mxu1 %v36255_v58 }
0x10a3   :  { %v36283_v0 = vpack.c.bf16 %v46829_v18, %v20470_v51  ;;  %v46832_v51 = vand.u32 4294901760, %v44382_v23  ;;  %v46839_v23 = vand.u32 4294901760, %v44437_v15  ;;  %v46845_v15 = vand.u32 4294901760, %v44537_v5 }
0x10a4   :  { %33945 = vmatmul.mubr.f32.gmra.mrb[12].mxu1 %v44394_v41 }
0x10a5   :  { %33947 = vmatprep.mubr.f32.mxu1 %v44413_v59  ;;  %36258 = vmatpush3.bf16.msra.mxu1 %v36255_v58  ;;  %v36287_v19 = vpack.c.bf16 %v46832_v51, %v46831_v4  ;;  %v36291_v58 = vpack.c.bf16 %v46836_v55, %v46835_v48  ;;  %v21435_v4 = vld [vmem:[#allocation3 + $0x40] sm:$0xff]  ;;  %v21436_v51 = vld [vmem:[#allocation3 + $0x50] sm:$0xff] }
0x10a6   :  { %36260 = vmatprep.subr.bf16.mxu1 %v36259_v53  ;;  %v21468_v55 = vsel %vm11193_vm3, %v21436_v51, 0 }
0x10a8   :  { %33948 = vmatmul.mubr.f32.gmra.mrb[14].mxu1 %v44419_v61 }
0x10a9   :  { %33950 = vmatprep.mubr.f32.mxu1 %v44421_v54  ;;  %36262 = vmatpush3.bf16.msra.mxu1 %v36259_v53  ;;  %v46841_v53 = vand.u32 4294901760, %v44457_v14 }
0x10aa   :  { %36264 = vmatprep.subr.bf16.mxu1 %v36263_v38 }
0x10ac   :  { %33951 = vmatmul.mubr.f32.gmra.mrb[16].mxu1 %v44462_v36 }
0x10ad   :  { %33953 = vmatprep.mubr.f32.mxu1 %v44465_v11  ;;  %36266 = vmatpush3.bf16.msra.mxu1 %v36263_v38  ;;  %v21434_v38 = vld [vmem:[#allocation3 + $0x30] sm:$0xff] }
0x10ae   :  { %36268 = vmatprep.subr.bf16.mxu1 %v44307_v33 }
0x10b0   :  { %33954 = vmatmul.mubr.f32.gmra.mrb[18].mxu1 %v44493_v12 }
0x10b1   :  { %33956 = vmatprep.mubr.f32.mxu1 %v44504_v52 }
0x10b4   :  { %33957 = vmatmul.mubr.f32.gmra.mrb[20].mxu1 %v44520_v46 }
0x10b5   :  { %33959 = vmatprep.mubr.f32.mxu1 %v44525_v63 }
0x10b8   :  { %33960 = vmatmul.mubr.f32.gmra.mrb[22].mxu1 %v44539_v40 }
0x10b9   :  { %33962 = vmatprep.mubr.f32.mxu1 %v44545_v49 }
0x10bc   :  { %33963 = vmatmul.mubr.f32.gmra.mrb[24].mxu1 %v44555_v29 }
0x10bd   :  { %33981 = vmatprep.mubr.f32.mxu1 %v44386_v13  ;;  %v46837_v13 = vand.u32 4294901760, %v44417_v32 }
0x10c0   :  { %33982 = vmatmul.mubr.f32.vlgmr.msra.gmra.mrb[10].mxu1 %v44389_v34  ;;  %v46840_v34 = vand.u32 4294901760, %v44442_v7  ;;  %v21451_v7 = vld [vmem:[#allocation8 + $0x188] sm:$0xff] }
0x10c1   :  { %36270 = vmatpush3.bf16.msra.mxu1 %v44307_v33  ;;  %33984 = vmatprep.mubr.f32.mxu1 %v44411_v31 }
0x10c2   :  { %36272 = vmatprep.subr.bf16.mxu1 %v44331_v8  ;;  %v36295_v31 = vpack.c.bf16 %v46840_v34, %v46839_v23 }
0x10c4   :  { %33985 = vmatmul.mubr.f32.gmra.mrb[12].mxu1 %v44417_v32  ;;  %v46844_v32 = vand.u32 4294901760, %v44523_v3 }
0x10c5   :  { %33987 = vmatprep.mubr.f32.mxu1 %v44452_v17  ;;  %36274 = vmatpush3.bf16.msra.mxu1 %v44331_v8 }
0x10c6   :  { %36276 = vmatprep.subr.bf16.mxu1 %v44342_v39 }
0x10c8   :  { %33988 = vmatmul.mubr.f32.gmra.mrb[14].mxu1 %v44457_v14  ;;  %v21510_v14 = vand.u32 4294901760, %v21451_v7 }
0x10c9   :  { %33990 = vmatprep.mubr.f32.mxu1 %v44460_v43  ;;  %36278 = vmatpush3.bf16.msra.mxu1 %v44342_v39 }
0x10ca   :  { %36280 = vmatprep.subr.bf16.mxu1 %v44361_v25 }
0x10cc   :  { %33991 = vmatmul.mubr.f32.gmra.mrb[16].mxu1 %v44488_v62  ;;  %v44707_v62 = vld [vmem:[#allocation8 + $0x1a0] sm:$0xff] }
0x10cd   :  { %33993 = vmatprep.mubr.f32.mxu1 %v44491_v16  ;;  %36282 = vmatpush3.bf16.msra.mxu1 %v44361_v25  ;;  %v21450_v16 = vld [vmem:[#allocation8 + $0x180] sm:$0xff] }
0x10ce   :  { %36284 = vmatprep.subr.bf16.mxu1 %v36283_v0  ;;  %v21507_v17 = vand.u32 4294901760, %v21450_v16 }
0x10d0   :  { %33994 = vmatmul.mubr.f32.gmra.mrb[18].mxu1 %v44518_v42  ;;  %v44713_v42 = vsub.f32 %v21451_v7, %v21510_v14 }
0x10d1   :  { %33996 = vmatprep.mubr.f32.mxu1 %v44523_v3  ;;  %v21519_v3 = vand.u32 4294901760, %v44707_v62 }
0x10d3   :  { %v44793_v7 = vsub.f32 %v44707_v62, %v21519_v3 }
0x10d4   :  { %33997 = vmatmul.mubr.f32.gmra.mrb[20].mxu1 %v44537_v5 }
0x10d5   :  { %33999 = vmatprep.mubr.f32.mxu1 %v44543_v21 }
0x10d8   :  { %34000 = vmatmul.mubr.f32.gmra.mrb[22].mxu1 %v44553_v30  ;;  %v21749_v30 = vand.u32 4294901760, %v44713_v42 }
0x10d9   :  { %34002 = vmatprep.mubr.f32.mxu1 %v44564_v47  ;;  %v44725_v47 = vld [vmem:[#allocation8 + $0x1b8] sm:$0xff] }
0x10dc   :  { %34003 = vmatmul.mubr.f32.gmra.mrb[24].mxu1 %v44571_v6 }
0x10dd   :  { %34021 = vmatprep.mubr.f32.mxu1 %v46830_v57 }
0x10e0   :  { %34022 = vmatmul.mubr.f32.vlgmr.msra.gmra.mrb[10].mxu1 %v46833_v9  ;;  %v21437_v9 = vld [vmem:[#allocation3 + $0x60] sm:$0xff] }
0x10e1   :  { %36286 = vmatpush3.bf16.msra.mxu1 %v36283_v0  ;;  %34024 = vmatprep.mubr.f32.mxu1 %v46834_v35 }
0x10e2   :  { %36288 = vmatprep.subr.bf16.mxu1 %v36287_v19 }
0x10e4   :  { %34025 = vmatmul.mubr.f32.gmra.mrb[12].mxu1 %v46837_v13 }
0x10e5   :  { %34027 = vmatprep.mubr.f32.mxu1 %v46838_v24  ;;  %36290 = vmatpush3.bf16.msra.mxu1 %v36287_v19  ;;  %v21438_v24 = vld [vmem:[#allocation3 + $0x70] sm:$0xff] }
0x10e6   :  { %36292 = vmatprep.subr.bf16.mxu1 %v36291_v58 }
0x10e8   :  { %34028 = vmatmul.mubr.f32.gmra.mrb[14].mxu1 %v46841_v53 }
0x10e9   :  { %34030 = vmatprep.mubr.f32.mxu1 %v46842_v27  ;;  %36294 = vmatpush3.bf16.msra.mxu1 %v36291_v58 }
0x10ea   :  { %36296 = vmatprep.subr.bf16.mxu1 %v36295_v31 }
0x10ec   :  { %34031 = vmatmul.mubr.f32.gmra.mrb[16].mxu1 %v20379_v56 }
0x10ed   :  { %34033 = vmatprep.mubr.f32.mxu1 %v20389_v50  ;;  %36298 = vmatpush3.bf16.msra.mxu1 %v36295_v31  ;;  %v44711_v50 = vsub.f32 %v21450_v16, %v21507_v17  ;;  %v21439_v31 = vld [vmem:[#allocation3 + $0x80] sm:$0xff]  ;;  %v21440_v16 = vld [vmem:[#allocation3 + $0x90] sm:$0xff] }
0x10ee   :  { %36300 = vmatprep.subr.bf16.mxu1 %v44307_v33 }
0x10ef   :  { %v21742_v21 = vand.u32 4294901760, %v44711_v50 }
0x10f0   :  { %34034 = vmatmul.mubr.f32.gmra.mrb[18].mxu1 %v46843_v10 }
0x10f1   :  { %34036 = vmatprep.mubr.f32.mxu1 %v46844_v32  ;;  %v21474_v32 = vsel %vm11193_vm3, %v21438_v24, 0 }
0x10f4   :  { %34037 = vmatmul.mubr.f32.gmra.mrb[20].mxu1 %v46845_v15  ;;  %v21477_v15 = vsel %vm11193_vm3, %v21439_v31, 0 }
0x10f5   :  { %34039 = vmatprep.mubr.f32.mxu1 %v20429_v26  ;;  %v44723_v26 = vld [vmem:[#allocation8 + $0x1b0] sm:$0xff] }
0x10f6   :  { %v21525_v6 = vand.u32 4294901760, %v44723_v26 }
0x10f8   :  { %34040 = vmatmul.mubr.f32.gmra.mrb[22].mxu1 %v20439_v20 }
0x10f9   :  { %34042 = vmatprep.mubr.f32.mxu1 %v20449_v22  ;;  %v21528_v22 = vand.u32 4294901760, %v44725_v47 }
0x10fb   :  { %v44749_v18 = vpack.c.bf16 %v21528_v22, %v21525_v6 }
0x10fc   :  { %34043 = vmatmul.mubr.f32.gmra.mrb[24].mxu1 %v20459_v2  ;;  %v21743_v2 = vsub.f32 %v44711_v50, %v21742_v21 }
0x10fd   :  { %34061 = vmatprep.mubr.f32.mxu1 %v44371_v1 }
0x10fe   :  { %v21744_v0 = vand.u32 4294901760, %v21743_v2  ;;  %v46587_v2 = vand.u32 4294901760, %v44793_v7 }
0x1100   :  { %34062 = vmatmul.mubr.f32.vlgmr.msra.gmra.mrb[10].mxu1 %v44373_v60 }
0x1101   :  { %36302 = vmatpush3.bf16.msra.mxu1 %v44307_v33  ;;  %34064 = vmatprep.mubr.f32.mxu1 %v44391_v37  ;;  %v44695_v33 = vpack.c.bf16 %v21510_v14, %v21507_v17 }
0x1102   :  { %36304 = vmatprep.subr.bf16.mxu1 %v44331_v8 }
0x1104   :  { %34065 = vmatmul.mubr.f32.gmra.mrb[12].mxu1 %v44394_v41 }
0x1105   :  { %34067 = vmatprep.mubr.f32.mxu1 %v44413_v59  ;;  %36306 = vmatpush3.bf16.msra.mxu1 %v44331_v8  ;;  %v21452_v8 = vld [vmem:[#allocation8 + $0x190] sm:$0xff] }
0x1106   :  { %36308 = vmatprep.subr.bf16.mxu1 %v44342_v39  ;;  %v21513_v43 = vand.u32 4294901760, %v21452_v8 }
0x1108   :  { %34068 = vmatmul.mubr.f32.gmra.mrb[14].mxu1 %v44419_v61  ;;  %v44769_v58 = vsub.f32 %v21452_v8, %v21513_v43 }
0x1109   :  { %34070 = vmatprep.mubr.f32.mxu1 %v44421_v54  ;;  %36310 = vmatpush3.bf16.msra.mxu1 %v44342_v39  ;;  %v21453_v39 = vld [vmem:[#allocation8 + $0x198] sm:$0xff] }
0x110a   :  { %36312 = vmatprep.subr.bf16.mxu1 %v44361_v25  ;;  %v21516_v56 = vand.u32 4294901760, %v21453_v39  ;;  %v46595_v27 = vand.u32 4294901760, %v44769_v58 }
0x110c   :  { %34071 = vmatmul.mubr.f32.gmra.mrb[16].mxu1 %v44462_v36  ;;  %v44719_v5 = vpack.c.bf16 %v21516_v56, %v21513_v43  ;;  %v44771_v13 = vsub.f32 %v21453_v39, %v21516_v56  ;;  %v44810_v43 = vand.u32 4294901760, %v21474_v32  ;;  %v21757_v56 = vsub.f32 %v44769_v58, %v46595_v27 }
0x110d   :  { %34073 = vmatprep.mubr.f32.mxu1 %v44465_v11  ;;  %36314 = vmatpush3.bf16.msra.mxu1 %v44361_v25  ;;  %v44709_v25 = vld [vmem:[#allocation8 + $0x1a8] sm:$0xff] }
0x110e   :  { %36316 = vmatprep.subr.bf16.mxu1 %v44695_v33  ;;  %v21522_v20 = vand.u32 4294901760, %v44709_v25  ;;  %v46592_v10 = vand.u32 4294901760, %v44771_v13 }
0x1110   :  { %34074 = vmatmul.mubr.f32.gmra.mrb[18].mxu1 %v44493_v12  ;;  %v44796_v17 = vsub.f32 %v44709_v25, %v21522_v20  ;;  %v21764_v62 = vsub.f32 %v44771_v13, %v46592_v10  ;;  %v44819_v25 = vand.u32 4294901760, %v21477_v15  ;;  %v21446_v10 = vld [vmem:[#allocation3 + $0x110] sm:$0xff] }
0x1111   :  { %34076 = vmatprep.mubr.f32.mxu1 %v44504_v52 }
0x1112   :  { %v21765_v51 = vand.u32 4294901760, %v21764_v62 }
0x1114   :  { %34077 = vmatmul.mubr.f32.gmra.mrb[20].mxu1 %v44520_v46 }
0x1115   :  { %34079 = vmatprep.mubr.f32.mxu1 %v44525_v63 }
0x1118   :  { %34080 = vmatmul.mubr.f32.gmra.mrb[22].mxu1 %v44539_v40 }
0x1119   :  { %34082 = vmatprep.mubr.f32.mxu1 %v44545_v49 }
0x111c   :  { %34083 = vmatmul.mubr.f32.gmra.mrb[24].mxu1 %v44555_v29 }
0x111d   :  { %34101 = vmatprep.mubr.f32.mxu1 %v44371_v1  ;;  %v44730_v1 = vpack.c.bf16 %v21522_v20, %v21519_v3  ;;  %v21480_v3 = vsel %vm11193_vm3, %v21440_v16, 0  ;;  %v21442_v20 = vld [vmem:[#allocation3 + $0xd0] sm:$0xff] }
0x1120   :  { %34102 = vmatmul.mubr.f32.vlgmr.msra.gmra.mrb[10].mxu1 %v44373_v60  ;;  %v21750_v60 = vsub.f32 %v44713_v42, %v21749_v30 }
0x1121   :  { %36318 = vmatpush3.bf16.msra.mxu1 %v44695_v33  ;;  %34104 = vmatprep.mubr.f32.mxu1 %v44391_v37  ;;  %v21433_v37 = vld [vmem:[#allocation3 + $0x20] sm:$0xff] }
0x1122   :  { %36320 = vmatprep.subr.bf16.mxu1 %v44719_v5  ;;  %v21751_v57 = vand.u32 4294901760, %v21750_v60  ;;  %v46586_v60 = vand.u32 4294901760, %v44796_v17 }
0x1124   :  { %34105 = vmatmul.mubr.f32.gmra.mrb[12].mxu1 %v44394_v41  ;;  %v21459_v41 = vsel %vm11193_vm3, %v21433_v37, 0  ;;  %v44757_v19 = vpack.c.bf16 %v21751_v57, %v21744_v0  ;;  %v44832_v37 = vsub.f32 %v44725_v47, %v21528_v22  ;;  %v21486_v22 = vsel %vm11193_vm3, %v21442_v20, 0  ;;  %v21444_v20 = vld [vmem:[#allocation3 + $0xf0] sm:$0xff] }
0x1125   :  { %34107 = vmatprep.mubr.f32.mxu1 %v44413_v59  ;;  %36322 = vmatpush3.bf16.msra.mxu1 %v44719_v5  ;;  %v21462_v59 = vsel %vm11193_vm3, %v21434_v38, 0  ;;  %v44759_v35 = vand.u32 4294901760, %v21459_v41 }
0x1126   :  { %36324 = vmatprep.subr.bf16.mxu1 %v44730_v1  ;;  %v44761_v48 = vand.u32 4294901760, %v21462_v59 }
0x1127   :  { %v44775_v23 = vsub.f32 %v21459_v41, %v44759_v35 }
0x1128   :  { %34108 = vmatmul.mubr.f32.gmra.mrb[14].mxu1 %v44419_v61  ;;  %v21465_v61 = vsel %vm11193_vm3, %v21435_v4, 0  ;;  %v21758_v4 = vand.u32 4294901760, %v21757_v56 }
0x1129   :  { %34110 = vmatprep.mubr.f32.mxu1 %v44421_v54  ;;  %36326 = vmatpush3.bf16.msra.mxu1 %v44730_v1  ;;  %v21471_v54 = vsel %vm11193_vm3, %v21437_v9, 0  ;;  %v44780_v34 = vand.u32 4294901760, %v21465_v61  ;;  %v44853_v9 = vsub.f32 %v21477_v15, %v44819_v25 }
0x112a   :  { %36328 = vmatprep.subr.bf16.mxu1 %v44749_v18  ;;  %v44785_v53 = vand.u32 4294901760, %v21471_v54 }
0x112c   :  { %34111 = vmatmul.mubr.f32.gmra.mrb[16].mxu1 %v44462_v36  ;;  %v44778_v36 = vsub.f32 %v21462_v59, %v44761_v48  ;;  %v44808_v39 = vsub.f32 %v21471_v54, %v44785_v53 }
0x112d   :  { %34113 = vmatprep.mubr.f32.mxu1 %v44465_v11  ;;  %36330 = vmatpush3.bf16.msra.mxu1 %v44749_v18  ;;  %v44782_v11 = vand.u32 4294901760, %v21468_v55 }
0x112e   :  { %36332 = vmatprep.subr.bf16.mxu1 %v44757_v19  ;;  %v46590_v14 = vand.u32 4294901760, %v44778_v36  ;;  %v46591_v59 = vand.u32 4294901760, %v44808_v39 }
0x112f   :  { %v44804_v8 = vsub.f32 %v21468_v55, %v44782_v11  ;;  %v21778_v55 = vsub.f32 %v44796_v17, %v46586_v60  ;;  %v44881_v60 = vand.u32 4294901760, %v21486_v22 }
0x1130   :  { %34114 = vmatmul.mubr.f32.gmra.mrb[18].mxu1 %v44493_v12  ;;  %v46598_v12 = vand.u32 4294901760, %v44775_v23  ;;  %v21592_v0 = vsub.f32 %v44778_v36, %v46590_v14 }
0x1131   :  { %34116 = vmatprep.mubr.f32.mxu1 %v44504_v52  ;;  %v44801_v52 = vsub.f32 %v21465_v61, %v44780_v34  ;;  %v46588_v41 = vand.u32 4294901760, %v44804_v8  ;;  %v21443_v61 = vld [vmem:[#allocation3 + $0xe0] sm:$0xff] }
0x1132   :  { %v21582_v38 = vsub.f32 %v44775_v23, %v46598_v12  ;;  %v21593_v31 = vand.u32 4294901760, %v21592_v0  ;;  %v36335_v0 = vpack.c.bf16 %v21765_v51, %v21758_v4  ;;  %v21492_v51 = vsel %vm11193_vm3, %v21444_v20, 0 }
0x1133   :  { %v46589_v57 = vand.u32 4294901760, %v44801_v52  ;;  %v21612_v16 = vsub.f32 %v44804_v8, %v46588_v41 }
0x1134   :  { %34117 = vmatmul.mubr.f32.gmra.mrb[20].mxu1 %v44520_v46  ;;  %v21441_v46 = vld [vmem:[#allocation3 + $0xc0] sm:$0xff]  ;;  %v21583_v24 = vand.u32 4294901760, %v21582_v38  ;;  %v21622_v38 = vsub.f32 %v44808_v39, %v46591_v59 }
0x1135   :  { %34119 = vmatprep.mubr.f32.mxu1 %v44525_v63  ;;  %v44827_v63 = vsub.f32 %v44723_v26, %v21525_v6  ;;  %v44844_v26 = vsub.f32 %v21474_v32, %v44810_v43  ;;  %v44846_v6 = vand.u32 4294901760, %v21480_v3  ;;  %v21483_v47 = vsel %vm11193_vm3, %v21441_v46, 0 }
0x1136   :  { %v21602_v32 = vsub.f32 %v44801_v52, %v46589_v57  ;;  %v44866_v15 = vand.u32 4294901760, %v21483_v47  ;;  %v21489_v46 = vsel %vm11193_vm3, %v21443_v61, 0  ;;  %v21779_v57 = vand.u32 4294901760, %v21778_v55 }
0x1137   :  { %v46593_v54 = vand.u32 4294901760, %v44827_v63  ;;  %v46596_v56 = vand.u32 4294901760, %v44844_v26  ;;  %v44874_v62 = vsub.f32 %v21480_v3, %v44846_v6  ;;  %v44892_v4 = vand.u32 4294901760, %v21489_v46 }
0x1138   :  { %34120 = vmatmul.mubr.f32.gmra.mrb[22].mxu1 %v44539_v40  ;;  %v21771_v40 = vsub.f32 %v44793_v7, %v46587_v2  ;;  %v21445_v2 = vld [vmem:[#allocation3 + $0x100] sm:$0xff]  ;;  %v44890_v14 = vsub.f32 %v21483_v47, %v44866_v15  ;;  %v21613_v59 = vand.u32 4294901760, %v21612_v16 }
0x1139   :  { %34122 = vmatprep.mubr.f32.mxu1 %v44545_v49  ;;  %v46594_v49 = vand.u32 4294901760, %v44832_v37  ;;  %v21785_v3 = vsub.f32 %v44827_v63, %v46593_v54  ;;  %v21495_v55 = vsel %vm11193_vm3, %v21445_v2, 0  ;;  %v21623_v54 = vand.u32 4294901760, %v21622_v38  ;;  %v21447_v16 = vld [vmem:[#allocation3 + $0x120] sm:$0xff] }
0x113a   :  { %v21772_v41 = vand.u32 4294901760, %v21771_v40  ;;  %v46599_v40 = vand.u32 4294901760, %v44874_v62  ;;  %v21632_v47 = vsub.f32 %v44844_v26, %v46596_v56  ;;  %v44907_v2 = vand.u32 4294901760, %v21492_v51 }
0x113b   :  { %v21792_v61 = vsub.f32 %v44832_v37, %v46594_v49  ;;  %v21786_v49 = vand.u32 4294901760, %v21785_v3  ;;  %v21661_v38 = vand.u32 4294901760, %v44890_v14  ;;  %v44911_v27 = vsub.f32 %v21489_v46, %v44892_v4 }
0x113c   :  { %34123 = vmatmul.mubr.f32.gmra.mrb[24].mxu1 %v44555_v29  ;;  %v46597_v29 = vand.u32 4294901760, %v44853_v9  ;;  %v36339_v20 = vpack.c.bf16 %v21779_v57, %v21772_v41  ;;  %v44913_v56 = vand.u32 4294901760, %v21495_v55  ;;  %v21501_v57 = vsel %vm11193_vm3, %v21447_v16, 0 }
0x113d   :  { %34141 = vmatprep.mubr.f32.mxu1 %v21583_v24  ;;  %v21603_v24 = vand.u32 4294901760, %v21602_v32  ;;  %v21633_v41 = vand.u32 4294901760, %v21632_v47  ;;  %v44923_v12 = vsub.f32 %v21492_v51, %v44907_v2  ;;  %v44934_v47 = vand.u32 4294901760, %v21501_v57 }
0x113e   :  { %v21642_v32 = vsub.f32 %v44853_v9, %v46597_v29  ;;  %v21498_v29 = vsel %vm11193_vm3, %v21446_v10, 0 }
0x113f   :  { %v46603_v51 = vand.u32 4294901760, %v44923_v12 }
0x1140   :  { %34142 = vmatmul.mubr.f32.vlgmr.msra.gmra.mrb[10].mxu1 %v21593_v31  ;;  %v44905_v31 = vsub.f32 %v21486_v22, %v44881_v60  ;;  %v21652_v22 = vsub.f32 %v44874_v62, %v46599_v40  ;;  %v21643_v46 = vand.u32 4294901760, %v21642_v32  ;;  %v21662_v40 = vsub.f32 %v44890_v14, %v21661_v38 }
0x1141   :  { %36334 = vmatpush3.bf16.msra.mxu1 %v44757_v19  ;;  %34144 = vmatprep.mubr.f32.mxu1 %v21603_v24  ;;  %v21793_v19 = vand.u32 4294901760, %v21792_v61  ;;  %v21448_v24 = vld [vmem:[#allocation3 + $0x130] sm:$0xff] }
0x1142   :  { %36336 = vmatprep.subr.bf16.mxu1 %v36335_v0  ;;  %v46600_v3 = vand.u32 4294901760, %v44905_v31  ;;  %v21504_v61 = vsel %vm11193_vm3, %v21448_v24, 0  ;;  %v21653_v32 = vand.u32 4294901760, %v21652_v22  ;;  %v21663_v24 = vand.u32 4294901760, %v21662_v40 }
0x1143   :  { %v36343_v10 = vpack.c.bf16 %v21793_v19, %v21786_v49  ;;  %v44936_v16 = vand.u32 4294901760, %v21504_v61  ;;  %v21692_v40 = vsub.f32 %v44923_v12, %v46603_v51 }
0x1144   :  { %34145 = vmatmul.mubr.f32.gmra.mrb[12].mxu1 %v21613_v59  ;;  %v44925_v59 = vand.u32 4294901760, %v21498_v29  ;;  %v21672_v49 = vsub.f32 %v44905_v31, %v46600_v3 }
0x1145   :  { %34147 = vmatprep.mubr.f32.mxu1 %v21623_v54  ;;  %36338 = vmatpush3.bf16.msra.mxu1 %v36335_v0  ;;  %v46601_v54 = vand.u32 4294901760, %v44911_v27  ;;  %v44932_v0 = vsub.f32 %v21495_v55, %v44913_v56  ;;  %v36347_v55 = vpack.c.bf16 %v44713_v42, %v44711_v50  ;;  %v46846_v50 = vand.u32 4294901760, %v44775_v23 }
0x1146   :  { %36340 = vmatprep.subr.bf16.mxu1 %v36339_v20  ;;  %v44943_v19 = vsub.f32 %v21498_v29, %v44925_v59  ;;  %v21673_v29 = vand.u32 4294901760, %v21672_v49  ;;  %v46847_v42 = vand.u32 4294901760, %v44769_v58 }
0x1147   :  { %v21682_v22 = vsub.f32 %v44911_v27, %v46601_v54 }
0x1148   :  { %34148 = vmatmul.mubr.f32.gmra.mrb[14].mxu1 %v21633_v41  ;;  %v44952_v41 = vsub.f32 %v21501_v57, %v44934_v47  ;;  %v21711_v3 = vand.u32 4294901760, %v44943_v19 }
0x1149   :  { %34150 = vmatprep.mubr.f32.mxu1 %v21643_v46  ;;  %36342 = vmatpush3.bf16.msra.mxu1 %v36339_v20  ;;  %v46602_v20 = vand.u32 4294901760, %v44932_v0  ;;  %v44955_v46 = vsub.f32 %v21504_v61, %v44936_v16  ;;  %v21683_v54 = vand.u32 4294901760, %v21682_v22 }
0x114a   :  { %36344 = vmatprep.subr.bf16.mxu1 %v36343_v10  ;;  %v21712_v49 = vsub.f32 %v44943_v19, %v21711_v3 }
0x114b   :  { %v21702_v57 = vsub.f32 %v44932_v0, %v46602_v20  ;;  %v21731_v61 = vand.u32 4294901760, %v44955_v46 }
0x114c   :  { %34151 = vmatmul.mubr.f32.gmra.mrb[16].mxu1 %v21653_v32  ;;  %v21721_v32 = vand.u32 4294901760, %v44952_v41 }
0x114d   :  { %34153 = vmatprep.mubr.f32.mxu1 %v21663_v24  ;;  %36346 = vmatpush3.bf16.msra.mxu1 %v36343_v10  ;;  %v21693_v10 = vand.u32 4294901760, %v21692_v40  ;;  %v21703_v24 = vand.u32 4294901760, %v21702_v57  ;;  %v21732_v20 = vsub.f32 %v44955_v46, %v21731_v61  ;;  %v36351_v40 = vpack.c.bf16 %v44771_v13, %v44769_v58 }
0x114e   :  { %36348 = vmatprep.subr.bf16.mxu1 %v36347_v55  ;;  %v21722_v22 = vsub.f32 %v44952_v41, %v21721_v32  ;;  %v36355_v57 = vpack.c.bf16 %v44796_v17, %v44793_v7  ;;  %v46854_v58 = vand.u32 4294901760, %v44808_v39 }
0x1150   :  { %34154 = vmatmul.mubr.f32.gmra.mrb[18].mxu1 %v21673_v29  ;;  %v21713_v29 = vand.u32 4294901760, %v21712_v49  ;;  %v21723_v51 = vand.u32 4294901760, %v21722_v22  ;;  %v46851_v49 = vand.u32 4294901760, %v44793_v7  ;;  %v46858_v7 = vand.u32 4294901760, %v44853_v9 }
0x1151   :  { %34156 = vmatprep.mubr.f32.mxu1 %v21683_v54  ;;  %v21733_v54 = vand.u32 4294901760, %v21732_v20  ;;  %v46849_v20 = vand.u32 4294901760, %v44778_v36 }
0x1154   :  { %34157 = vmatmul.mubr.f32.gmra.mrb[20].mxu1 %v21693_v10  ;;  %v46850_v10 = vand.u32 4294901760, %v44801_v52 }
0x1155   :  { %34159 = vmatprep.mubr.f32.mxu1 %v21703_v24  ;;  %v46852_v24 = vand.u32 4294901760, %v44796_v17  ;;  %v46859_v17 = vand.u32 4294901760, %v44874_v62 }
0x1157   :  { %v36387_v22 = vpack.c.bf16 %v46852_v24, %v46851_v49  ;;  %v22708_v49 = vld [vmem:[#allocation3 + $0x61] sm:$0xff] }
0x1158   :  { %34160 = vmatmul.mubr.f32.gmra.mrb[22].mxu1 %v21713_v29  ;;  %v46857_v29 = vand.u32 4294901760, %v44844_v26 }
0x1159   :  { %34162 = vmatprep.mubr.f32.mxu1 %v21723_v51  ;;  %v36359_v51 = vpack.c.bf16 %v44832_v37, %v44827_v63 }
0x115c   :  { %34163 = vmatmul.mubr.f32.gmra.mrb[24].mxu1 %v21733_v54  ;;  %v45113_v54 = vld [vmem:[#allocation8 + $0x1f8] sm:$0xff] }
0x115d   :  { %34181 = vmatprep.mubr.f32.mxu1 %v44759_v35 }
0x1160   :  { %34182 = vmatmul.mubr.f32.vlgmr.msra.gmra.mrb[10].mxu1 %v44761_v48 }
0x1161   :  { %36350 = vmatpush3.bf16.msra.mxu1 %v36347_v55  ;;  %34184 = vmatprep.mubr.f32.mxu1 %v44780_v34  ;;  %v36379_v55 = vpack.c.bf16 %v21749_v30, %v21742_v21  ;;  %v46848_v21 = vand.u32 4294901760, %v44771_v13  ;;  %v46855_v13 = vand.u32 4294901760, %v44827_v63  ;;  %v46862_v63 = vand.u32 4294901760, %v44923_v12 }
0x1162   :  { %36352 = vmatprep.subr.bf16.mxu1 %v36351_v40 }
0x1163   :  { %v36383_v30 = vpack.c.bf16 %v46848_v21, %v46847_v42 }
0x1164   :  { %34185 = vmatmul.mubr.f32.gmra.mrb[12].mxu1 %v44782_v11 }
0x1165   :  { %34187 = vmatprep.mubr.f32.mxu1 %v44785_v53  ;;  %36354 = vmatpush3.bf16.msra.mxu1 %v36351_v40 }
0x1166   :  { %36356 = vmatprep.subr.bf16.mxu1 %v36355_v57 }
0x1168   :  { %34188 = vmatmul.mubr.f32.gmra.mrb[14].mxu1 %v44810_v43 }
0x1169   :  { %34190 = vmatprep.mubr.f32.mxu1 %v44819_v25  ;;  %36358 = vmatpush3.bf16.msra.mxu1 %v36355_v57  ;;  %v22799_v57 = vand.u32 4294901760, %v45113_v54 }
0x116a   :  { %36360 = vmatprep.subr.bf16.mxu1 %v36359_v51 }
0x116c   :  { %34191 = vmatmul.mubr.f32.gmra.mrb[16].mxu1 %v44846_v6 }
0x116d   :  { %34193 = vmatprep.mubr.f32.mxu1 %v44866_v15  ;;  %36362 = vmatpush3.bf16.msra.mxu1 %v36359_v51 }
0x116e   :  { %36364 = vmatprep.subr.bf16.mxu1 %v44695_v33 }
0x1170   :  { %34194 = vmatmul.mubr.f32.gmra.mrb[18].mxu1 %v44881_v60 }
0x1171   :  { %34196 = vmatprep.mubr.f32.mxu1 %v44892_v4 }
0x1174   :  { %34197 = vmatmul.mubr.f32.gmra.mrb[20].mxu1 %v44907_v2 }
0x1175   :  { %34199 = vmatprep.mubr.f32.mxu1 %v44913_v56 }
0x1178   :  { %34200 = vmatmul.mubr.f32.gmra.mrb[22].mxu1 %v44925_v59 }
0x1179   :  { %34202 = vmatprep.mubr.f32.mxu1 %v44934_v47 }
0x117c   :  { %34203 = vmatmul.mubr.f32.gmra.mrb[24].mxu1 %v44936_v16 }
0x117d   :  { %34221 = vmatprep.mubr.f32.mxu1 %v44775_v23  ;;  %v46853_v23 = vand.u32 4294901760, %v44804_v8 }
0x1180   :  { %34222 = vmatmul.mubr.f32.vlgmr.msra.gmra.mrb[10].mxu1 %v44778_v36  ;;  %v46856_v36 = vand.u32 4294901760, %v44832_v37  ;;  %v46863_v37 = vand.u32 4294901760, %v44932_v0 }
0x1181   :  { %36366 = vmatpush3.bf16.msra.mxu1 %v44695_v33  ;;  %34224 = vmatprep.mubr.f32.mxu1 %v44801_v52 }
0x1182   :  { %36368 = vmatprep.subr.bf16.mxu1 %v44719_v5  ;;  %v36391_v52 = vpack.c.bf16 %v46856_v36, %v46855_v13  ;;  %v22709_v36 = vld [vmem:[#allocation3 + $0x71] sm:$0xff] }
0x1184   :  { %34225 = vmatmul.mubr.f32.gmra.mrb[12].mxu1 %v44804_v8  ;;  %v46860_v8 = vand.u32 4294901760, %v44905_v31 }
0x1185   :  { %34227 = vmatprep.mubr.f32.mxu1 %v44808_v39  ;;  %36370 = vmatpush3.bf16.msra.mxu1 %v44719_v5  ;;  %v46861_v39 = vand.u32 4294901760, %v44911_v27 }
0x1186   :  { %36372 = vmatprep.subr.bf16.mxu1 %v44730_v1 }
0x1188   :  { %34228 = vmatmul.mubr.f32.gmra.mrb[14].mxu1 %v44844_v26 }
0x1189   :  { %34230 = vmatprep.mubr.f32.mxu1 %v44853_v9  ;;  %36374 = vmatpush3.bf16.msra.mxu1 %v44730_v1 }
0x118a   :  { %36376 = vmatprep.subr.bf16.mxu1 %v44749_v18 }
0x118c   :  { %34231 = vmatmul.mubr.f32.gmra.mrb[16].mxu1 %v44874_v62 }
0x118d   :  { %34233 = vmatprep.mubr.f32.mxu1 %v44890_v14  ;;  %36378 = vmatpush3.bf16.msra.mxu1 %v44749_v18 }
0x118e   :  { %36380 = vmatprep.subr.bf16.mxu1 %v36379_v55 }
0x1190   :  { %34234 = vmatmul.mubr.f32.gmra.mrb[18].mxu1 %v44905_v31  ;;  %v45095_v31 = vld [vmem:[#allocation8 + $0x1e0] sm:$0xff] }
0x1191   :  { %34236 = vmatprep.mubr.f32.mxu1 %v44911_v27  ;;  %v22721_v27 = vld [vmem:[#allocation8 + $0x1c0] sm:$0xff] }
0x1192   :  { %v22778_v14 = vand.u32 4294901760, %v22721_v27 }
0x1194   :  { %34237 = vmatmul.mubr.f32.gmra.mrb[20].mxu1 %v44923_v12  ;;  %v22722_v12 = vld [vmem:[#allocation8 + $0x1c8] sm:$0xff] }
0x1195   :  { %34239 = vmatprep.mubr.f32.mxu1 %v44932_v0  ;;  %v22781_v26 = vand.u32 4294901760, %v22722_v12  ;;  %v22790_v0 = vand.u32 4294901760, %v45095_v31 }
0x1198   :  { %34240 = vmatmul.mubr.f32.gmra.mrb[22].mxu1 %v44943_v19 }
0x1199   :  { %34242 = vmatprep.mubr.f32.mxu1 %v44952_v41 }
0x119c   :  { %34243 = vmatmul.mubr.f32.gmra.mrb[24].mxu1 %v44955_v46 }
0x119d   :  { %34261 = vmatprep.mubr.f32.mxu1 %v46846_v50 }
0x11a0   :  { %34262 = vmatmul.mubr.f32.vlgmr.msra.gmra.mrb[10].mxu1 %v46849_v20  ;;  %v22707_v20 = vld [vmem:[#allocation3 + $0x51] sm:$0xff] }
0x11a1   :  { %36382 = vmatpush3.bf16.msra.mxu1 %v36379_v55  ;;  %34264 = vmatprep.mubr.f32.mxu1 %v46850_v10  ;;  %v22705_v55 = vld [vmem:[#allocation3 + $0x31] sm:$0xff] }
0x11a2   :  { %36384 = vmatprep.subr.bf16.mxu1 %v36383_v30 }
0x11a4   :  { %34265 = vmatmul.mubr.f32.gmra.mrb[12].mxu1 %v46853_v23  ;;  %v22739_v23 = vsel %vm11193_vm3, %v22707_v20, 0 }
0x11a5   :  { %34267 = vmatprep.mubr.f32.mxu1 %v46854_v58  ;;  %36386 = vmatpush3.bf16.msra.mxu1 %v36383_v30  ;;  %v22706_v30 = vld [vmem:[#allocation3 + $0x41] sm:$0xff] }
0x11a6   :  { %36388 = vmatprep.subr.bf16.mxu1 %v36387_v22 }
0x11a8   :  { %34268 = vmatmul.mubr.f32.gmra.mrb[14].mxu1 %v46857_v29 }
0x11a9   :  { %34270 = vmatprep.mubr.f32.mxu1 %v46858_v7  ;;  %36390 = vmatpush3.bf16.msra.mxu1 %v36387_v22  ;;  %v22710_v7 = vld [vmem:[#allocation3 + $0x81] sm:$0xff] }
0x11aa   :  { %36392 = vmatprep.subr.bf16.mxu1 %v36391_v52 }
0x11ac   :  { %34271 = vmatmul.mubr.f32.gmra.mrb[16].mxu1 %v46859_v17 }
0x11ad   :  { %34273 = vmatprep.mubr.f32.mxu1 %v21661_v38  ;;  %36394 = vmatpush3.bf16.msra.mxu1 %v36391_v52  ;;  %v45099_v38 = vsub.f32 %v22721_v27, %v22778_v14  ;;  %v22711_v27 = vld [vmem:[#allocation3 + $0x91] sm:$0xff] }
0x11ae   :  { %36396 = vmatprep.subr.bf16.mxu1 %v44695_v33 }
0x11af   :  { %v23013_v46 = vand.u32 4294901760, %v45099_v38 }
0x11b0   :  { %34274 = vmatmul.mubr.f32.gmra.mrb[18].mxu1 %v46860_v8 }
0x11b1   :  { %34276 = vmatprep.mubr.f32.mxu1 %v46861_v39  ;;  %v23014_v51 = vsub.f32 %v45099_v38, %v23013_v46 }
0x11b3   :  { %v23015_v42 = vand.u32 4294901760, %v23014_v51 }
0x11b4   :  { %34277 = vmatmul.mubr.f32.gmra.mrb[20].mxu1 %v46862_v63  ;;  %v22745_v63 = vsel %vm11193_vm3, %v22709_v36, 0 }
0x11b5   :  { %34279 = vmatprep.mubr.f32.mxu1 %v46863_v37  ;;  %v22748_v37 = vsel %vm11193_vm3, %v22710_v7, 0 }
0x11b8   :  { %34280 = vmatmul.mubr.f32.gmra.mrb[22].mxu1 %v21711_v3  ;;  %v45101_v3 = vsub.f32 %v22722_v12, %v22781_v26  ;;  %v45181_v12 = vsub.f32 %v45095_v31, %v22790_v0 }
0x11b9   :  { %34282 = vmatprep.mubr.f32.mxu1 %v21721_v32 }
0x11ba   :  { %v23020_v32 = vand.u32 4294901760, %v45101_v3 }
0x11bc   :  { %34283 = vmatmul.mubr.f32.gmra.mrb[24].mxu1 %v21731_v61  ;;  %v45111_v61 = vld [vmem:[#allocation8 + $0x1f0] sm:$0xff] }
0x11bd   :  { %34301 = vmatprep.mubr.f32.mxu1 %v44759_v35  ;;  %v22796_v40 = vand.u32 4294901760, %v45111_v61 }
0x11bf   :  { %v45137_v50 = vpack.c.bf16 %v22799_v57, %v22796_v40 }
0x11c0   :  { %34302 = vmatmul.mubr.f32.vlgmr.msra.gmra.mrb[10].mxu1 %v44761_v48 }
0x11c1   :  { %36398 = vmatpush3.bf16.msra.mxu1 %v44695_v33  ;;  %34304 = vmatprep.mubr.f32.mxu1 %v44780_v34  ;;  %v45083_v33 = vpack.c.bf16 %v22781_v26, %v22778_v14 }
0x11c2   :  { %36400 = vmatprep.subr.bf16.mxu1 %v44719_v5 }
0x11c4   :  { %34305 = vmatmul.mubr.f32.gmra.mrb[12].mxu1 %v44782_v11 }
0x11c5   :  { %34307 = vmatprep.mubr.f32.mxu1 %v44785_v53  ;;  %36402 = vmatpush3.bf16.msra.mxu1 %v44719_v5  ;;  %v22723_v5 = vld [vmem:[#allocation8 + $0x1d0] sm:$0xff] }
0x11c6   :  { %36404 = vmatprep.subr.bf16.mxu1 %v44730_v1  ;;  %v22784_v9 = vand.u32 4294901760, %v22723_v5 }
0x11c8   :  { %34308 = vmatmul.mubr.f32.gmra.mrb[14].mxu1 %v44810_v43  ;;  %v45157_v58 = vsub.f32 %v22723_v5, %v22784_v9 }
0x11c9   :  { %34310 = vmatprep.mubr.f32.mxu1 %v44819_v25  ;;  %36406 = vmatpush3.bf16.msra.mxu1 %v44730_v1  ;;  %v22724_v1 = vld [vmem:[#allocation8 + $0x1d8] sm:$0xff] }
0x11ca   :  { %36408 = vmatprep.subr.bf16.mxu1 %v44749_v18  ;;  %v22787_v62 = vand.u32 4294901760, %v22724_v1  ;;  %v46613_v8 = vand.u32 4294901760, %v45157_v58 }
0x11cc   :  { %34311 = vmatmul.mubr.f32.gmra.mrb[16].mxu1 %v44846_v6  ;;  %v45107_v41 = vpack.c.bf16 %v22787_v62, %v22784_v9  ;;  %v45159_v13 = vsub.f32 %v22724_v1, %v22787_v62  ;;  %v45198_v9 = vand.u32 4294901760, %v22745_v63  ;;  %v23028_v62 = vsub.f32 %v45157_v58, %v46613_v8 }
0x11cd   :  { %34313 = vmatprep.mubr.f32.mxu1 %v44866_v15  ;;  %36410 = vmatpush3.bf16.msra.mxu1 %v44749_v18  ;;  %v45097_v18 = vld [vmem:[#allocation8 + $0x1e8] sm:$0xff] }
0x11ce   :  { %36412 = vmatprep.subr.bf16.mxu1 %v45083_v33  ;;  %v22793_v19 = vand.u32 4294901760, %v45097_v18  ;;  %v46610_v39 = vand.u32 4294901760, %v45159_v13 }
0x11d0   :  { %34314 = vmatmul.mubr.f32.gmra.mrb[18].mxu1 %v44881_v60  ;;  %v45184_v14 = vsub.f32 %v45097_v18, %v22793_v19  ;;  %v23035_v31 = vsub.f32 %v45159_v13, %v46610_v39  ;;  %v45207_v18 = vand.u32 4294901760, %v22748_v37  ;;  %v22717_v39 = vld [vmem:[#allocation3 + $0x111] sm:$0xff] }
0x11d1   :  { %34316 = vmatprep.mubr.f32.mxu1 %v44892_v4 }
0x11d2   :  { %v46604_v51 = vand.u32 4294901760, %v45184_v14  ;;  %v45240_v20 = vsub.f32 %v22748_v37, %v45207_v18 }
0x11d4   :  { %34317 = vmatmul.mubr.f32.gmra.mrb[20].mxu1 %v44907_v2 }
0x11d5   :  { %34319 = vmatprep.mubr.f32.mxu1 %v44913_v56 }
0x11d8   :  { %34320 = vmatmul.mubr.f32.gmra.mrb[22].mxu1 %v44925_v59 }
0x11d9   :  { %34322 = vmatprep.mubr.f32.mxu1 %v44934_v47 }
0x11dc   :  { %34323 = vmatmul.mubr.f32.gmra.mrb[24].mxu1 %v44936_v16 }
0x11dd   :  { %34341 = vmatprep.mubr.f32.mxu1 %v44759_v35  ;;  %v45118_v35 = vpack.c.bf16 %v22793_v19, %v22790_v0  ;;  %v22751_v0 = vsel %vm11193_vm3, %v22711_v27, 0  ;;  %v46605_v19 = vand.u32 4294901760, %v45181_v12 }
0x11e0   :  { %34342 = vmatmul.mubr.f32.vlgmr.msra.gmra.mrb[10].mxu1 %v44761_v48  ;;  %v23021_v48 = vsub.f32 %v45101_v3, %v23020_v32 }
0x11e1   :  { %36414 = vmatpush3.bf16.msra.mxu1 %v45083_v33  ;;  %34344 = vmatprep.mubr.f32.mxu1 %v44780_v34  ;;  %v22704_v34 = vld [vmem:[#allocation3 + $0x21] sm:$0xff] }
0x11e2   :  { %36416 = vmatprep.subr.bf16.mxu1 %v45107_v41  ;;  %v23022_v21 = vand.u32 4294901760, %v23021_v48  ;;  %v22713_v48 = vld [vmem:[#allocation3 + $0xd1] sm:$0xff] }
0x11e4   :  { %34345 = vmatmul.mubr.f32.gmra.mrb[12].mxu1 %v44782_v11  ;;  %v22730_v11 = vsel %vm11193_vm3, %v22704_v34, 0  ;;  %v45145_v10 = vpack.c.bf16 %v23022_v21, %v23015_v42  ;;  %v45220_v34 = vsub.f32 %v45113_v54, %v22799_v57  ;;  %v45235_v54 = vand.u32 4294901760, %v22751_v0 }
0x11e5   :  { %34347 = vmatprep.mubr.f32.mxu1 %v44785_v53  ;;  %36418 = vmatpush3.bf16.msra.mxu1 %v45107_v41  ;;  %v22733_v53 = vsel %vm11193_vm3, %v22705_v55, 0  ;;  %v45147_v24 = vand.u32 4294901760, %v22730_v11 }
0x11e6   :  { %36420 = vmatprep.subr.bf16.mxu1 %v45118_v35  ;;  %v45149_v22 = vand.u32 4294901760, %v22733_v53 }
0x11e7   :  { %v45163_v52 = vsub.f32 %v22730_v11, %v45147_v24 }
0x11e8   :  { %34348 = vmatmul.mubr.f32.gmra.mrb[14].mxu1 %v44810_v43  ;;  %v22736_v43 = vsel %vm11193_vm3, %v22706_v30, 0  ;;  %v23036_v30 = vand.u32 4294901760, %v23035_v31  ;;  %v45264_v31 = vsub.f32 %v22751_v0, %v45235_v54 }
0x11e9   :  { %34350 = vmatprep.mubr.f32.mxu1 %v44819_v25  ;;  %36422 = vmatpush3.bf16.msra.mxu1 %v45118_v35  ;;  %v22742_v25 = vsel %vm11193_vm3, %v22708_v49, 0  ;;  %v45168_v29 = vand.u32 4294901760, %v22736_v43  ;;  %v22757_v49 = vsel %vm11193_vm3, %v22713_v48, 0  ;;  %v22715_v48 = vld [vmem:[#allocation3 + $0xf1] sm:$0xff] }
0x11ea   :  { %36424 = vmatprep.subr.bf16.mxu1 %v45137_v50  ;;  %v45173_v17 = vand.u32 4294901760, %v22742_v25 }
0x11ec   :  { %34351 = vmatmul.mubr.f32.gmra.mrb[16].mxu1 %v44846_v6  ;;  %v45166_v6 = vsub.f32 %v22733_v53, %v45149_v22  ;;  %v45196_v1 = vsub.f32 %v22742_v25, %v45173_v17  ;;  %v23029_v53 = vand.u32 4294901760, %v23028_v62 }
0x11ed   :  { %34353 = vmatprep.mubr.f32.mxu1 %v44866_v15  ;;  %36426 = vmatpush3.bf16.msra.mxu1 %v45137_v50  ;;  %v45170_v15 = vand.u32 4294901760, %v22739_v23 }
0x11ee   :  { %36428 = vmatprep.subr.bf16.mxu1 %v45145_v10  ;;  %v46609_v26 = vand.u32 4294901760, %v45166_v6 }
0x11ef   :  { %v45192_v5 = vsub.f32 %v22739_v23, %v45170_v15  ;;  %v23049_v23 = vsub.f32 %v45184_v14, %v46604_v51  ;;  %v45269_v51 = vand.u32 4294901760, %v22757_v49 }
0x11f0   :  { %34354 = vmatmul.mubr.f32.gmra.mrb[18].mxu1 %v44881_v60  ;;  %v46616_v60 = vand.u32 4294901760, %v45163_v52  ;;  %v22863_v42 = vsub.f32 %v45166_v6, %v46609_v26 }
0x11f1   :  { %34356 = vmatprep.mubr.f32.mxu1 %v44892_v4  ;;  %v45189_v4 = vsub.f32 %v22736_v43, %v45168_v29  ;;  %v46606_v11 = vand.u32 4294901760, %v45192_v5  ;;  %v22714_v43 = vld [vmem:[#allocation3 + $0xe1] sm:$0xff] }
0x11f2   :  { %v22853_v55 = vsub.f32 %v45163_v52, %v46616_v60  ;;  %v22864_v7 = vand.u32 4294901760, %v22863_v42 }
0x11f3   :  { %v46607_v21 = vand.u32 4294901760, %v45189_v4  ;;  %v22883_v27 = vsub.f32 %v45192_v5, %v46606_v11 }
0x11f4   :  { %34357 = vmatmul.mubr.f32.gmra.mrb[20].mxu1 %v44907_v2  ;;  %v22712_v2 = vld [vmem:[#allocation3 + $0xc1] sm:$0xff]  ;;  %v22854_v36 = vand.u32 4294901760, %v22853_v55  ;;  %v36431_v55 = vpack.c.bf16 %v23036_v30, %v23029_v53 }
0x11f5   :  { %34359 = vmatprep.mubr.f32.mxu1 %v44913_v56  ;;  %v45215_v56 = vsub.f32 %v45111_v61, %v22796_v40  ;;  %v46608_v61 = vand.u32 4294901760, %v45196_v1  ;;  %v45233_v40 = vsub.f32 %v22745_v63, %v45198_v9  ;;  %v22754_v57 = vsel %vm11193_vm3, %v22712_v2, 0 }
0x11f6   :  { %v22873_v63 = vsub.f32 %v45189_v4, %v46607_v21  ;;  %v45254_v37 = vand.u32 4294901760, %v22754_v57  ;;  %v22760_v2 = vsel %vm11193_vm3, %v22714_v43, 0  ;;  %v23050_v21 = vand.u32 4294901760, %v23049_v23 }
0x11f7   :  { %v46611_v25 = vand.u32 4294901760, %v45215_v56  ;;  %v22893_v62 = vsub.f32 %v45196_v1, %v46608_v61  ;;  %v46614_v42 = vand.u32 4294901760, %v45233_v40  ;;  %v45280_v30 = vand.u32 4294901760, %v22760_v2 }
0x11f8   :  { %34360 = vmatmul.mubr.f32.gmra.mrb[22].mxu1 %v44925_v59  ;;  %v23042_v59 = vsub.f32 %v45181_v12, %v46605_v19  ;;  %v22716_v19 = vld [vmem:[#allocation3 + $0x101] sm:$0xff]  ;;  %v22874_v43 = vand.u32 4294901760, %v22873_v63  ;;  %v45278_v53 = vsub.f32 %v22754_v57, %v45254_v37  ;;  %v22884_v26 = vand.u32 4294901760, %v22883_v27 }
0x11f9   :  { %34362 = vmatprep.mubr.f32.mxu1 %v44934_v47  ;;  %v46612_v47 = vand.u32 4294901760, %v45220_v34  ;;  %v23056_v61 = vsub.f32 %v45215_v56, %v46611_v25  ;;  %v22766_v23 = vsel %vm11193_vm3, %v22716_v19, 0  ;;  %v22894_v25 = vand.u32 4294901760, %v22893_v62  ;;  %v22718_v27 = vld [vmem:[#allocation3 + $0x121] sm:$0xff] }
0x11fa   :  { %v23043_v11 = vand.u32 4294901760, %v23042_v59  ;;  %v46617_v59 = vand.u32 4294901760, %v45264_v31  ;;  %v22903_v57 = vsub.f32 %v45233_v40, %v46614_v42  ;;  %v22932_v62 = vand.u32 4294901760, %v45278_v53 }
0x11fb   :  { %v23063_v0 = vsub.f32 %v45220_v34, %v46612_v47  ;;  %v23057_v47 = vand.u32 4294901760, %v23056_v61  ;;  %v45299_v8 = vsub.f32 %v22760_v2, %v45280_v30  ;;  %v45301_v42 = vand.u32 4294901760, %v22766_v23 }
0x11fc   :  { %34363 = vmatmul.mubr.f32.gmra.mrb[24].mxu1 %v44936_v16  ;;  %v46615_v16 = vand.u32 4294901760, %v45240_v20 }
0x11fd   :  { %34381 = vmatprep.mubr.f32.mxu1 %v22854_v36  ;;  %v22763_v36 = vsel %vm11193_vm3, %v22715_v48, 0  ;;  %v36435_v48 = vpack.c.bf16 %v23050_v21, %v23043_v11  ;;  %v22772_v21 = vsel %vm11193_vm3, %v22718_v27, 0  ;;  %v22904_v11 = vand.u32 4294901760, %v22903_v57 }
0x11fe   :  { %v22913_v63 = vsub.f32 %v45240_v20, %v46615_v16  ;;  %v45295_v19 = vand.u32 4294901760, %v22763_v36  ;;  %v22769_v16 = vsel %vm11193_vm3, %v22717_v39, 0  ;;  %v45322_v57 = vand.u32 4294901760, %v22772_v21 }
0x1200   :  { %34382 = vmatmul.mubr.f32.vlgmr.msra.gmra.mrb[10].mxu1 %v22864_v7  ;;  %v45293_v7 = vsub.f32 %v22757_v49, %v45269_v51  ;;  %v22923_v49 = vsub.f32 %v45264_v31, %v46617_v59  ;;  %v22914_v2 = vand.u32 4294901760, %v22913_v63  ;;  %v45311_v60 = vsub.f32 %v22763_v36, %v45295_v19 }
0x1201   :  { %36430 = vmatpush3.bf16.msra.mxu1 %v45145_v10  ;;  %34384 = vmatprep.mubr.f32.mxu1 %v22874_v43  ;;  %v23064_v10 = vand.u32 4294901760, %v23063_v0  ;;  %v22719_v43 = vld [vmem:[#allocation3 + $0x131] sm:$0xff]  ;;  %v22933_v59 = vsub.f32 %v45278_v53, %v22932_v62 }
0x1202   :  { %36432 = vmatprep.subr.bf16.mxu1 %v36431_v55  ;;  %v46618_v61 = vand.u32 4294901760, %v45293_v7  ;;  %v22775_v0 = vsel %vm11193_vm3, %v22719_v43, 0  ;;  %v22924_v63 = vand.u32 4294901760, %v22923_v49  ;;  %v46621_v36 = vand.u32 4294901760, %v45311_v60 }
0x1203   :  { %v36439_v39 = vpack.c.bf16 %v23064_v10, %v23057_v47  ;;  %v45324_v27 = vand.u32 4294901760, %v22775_v0  ;;  %v22934_v43 = vand.u32 4294901760, %v22933_v59 }
0x1204   :  { %34385 = vmatmul.mubr.f32.gmra.mrb[12].mxu1 %v22884_v26  ;;  %v45313_v26 = vand.u32 4294901760, %v22769_v16  ;;  %v22943_v47 = vsub.f32 %v45293_v7, %v46618_v61  ;;  %v22963_v59 = vsub.f32 %v45311_v60, %v46621_v36 }
0x1205   :  { %34387 = vmatprep.mubr.f32.mxu1 %v22894_v25  ;;  %36434 = vmatpush3.bf16.msra.mxu1 %v36431_v55  ;;  %v46619_v25 = vand.u32 4294901760, %v45299_v8  ;;  %v45320_v55 = vsub.f32 %v22766_v23, %v45301_v42  ;;  %v36443_v23 = vpack.c.bf16 %v45101_v3, %v45099_v38  ;;  %v46864_v38 = vand.u32 4294901760, %v45163_v52 }
0x1206   :  { %36436 = vmatprep.subr.bf16.mxu1 %v36435_v48  ;;  %v45331_v10 = vsub.f32 %v22769_v16, %v45313_v26  ;;  %v22944_v16 = vand.u32 4294901760, %v22943_v47  ;;  %v46865_v3 = vand.u32 4294901760, %v45157_v58 }
0x1207   :  { %v22953_v49 = vsub.f32 %v45299_v8, %v46619_v25 }
0x1208   :  { %34388 = vmatmul.mubr.f32.gmra.mrb[14].mxu1 %v22904_v11  ;;  %v45340_v11 = vsub.f32 %v22772_v21, %v45322_v57  ;;  %v22982_v61 = vand.u32 4294901760, %v45331_v10 }
0x1209   :  { %34390 = vmatprep.mubr.f32.mxu1 %v22914_v2  ;;  %36438 = vmatpush3.bf16.msra.mxu1 %v36435_v48  ;;  %v46620_v48 = vand.u32 4294901760, %v45320_v55  ;;  %v45343_v2 = vsub.f32 %v22775_v0, %v45324_v27  ;;  %v22954_v25 = vand.u32 4294901760, %v22953_v49 }
0x120a   :  { %36440 = vmatprep.subr.bf16.mxu1 %v36439_v39  ;;  %v22983_v47 = vsub.f32 %v45331_v10, %v22982_v61 }
0x120b   :  { %v22973_v21 = vsub.f32 %v45320_v55, %v46620_v48  ;;  %v23002_v0 = vand.u32 4294901760, %v45343_v2 }
0x120c   :  { %34391 = vmatmul.mubr.f32.gmra.mrb[16].mxu1 %v22924_v63  ;;  %v22992_v63 = vand.u32 4294901760, %v45340_v11 }
0x120d   :  { %34393 = vmatprep.mubr.f32.mxu1 %v22934_v43  ;;  %36442 = vmatpush3.bf16.msra.mxu1 %v36439_v39  ;;  %v22964_v39 = vand.u32 4294901760, %v22963_v59  ;;  %v22974_v43 = vand.u32 4294901760, %v22973_v21  ;;  %v23003_v48 = vsub.f32 %v45343_v2, %v23002_v0  ;;  %v36447_v59 = vpack.c.bf16 %v45159_v13, %v45157_v58 }
0x120e   :  { %36444 = vmatprep.subr.bf16.mxu1 %v36443_v23  ;;  %v22993_v49 = vsub.f32 %v45340_v11, %v22992_v63  ;;  %v36451_v21 = vpack.c.bf16 %v45184_v14, %v45181_v12  ;;  %v46872_v58 = vand.u32 4294901760, %v45196_v1 }
0x1210   :  { %34394 = vmatmul.mubr.f32.gmra.mrb[18].mxu1 %v22944_v16  ;;  %v22984_v16 = vand.u32 4294901760, %v22983_v47  ;;  %v22994_v36 = vand.u32 4294901760, %v22993_v49  ;;  %v46869_v47 = vand.u32 4294901760, %v45181_v12  ;;  %v46876_v12 = vand.u32 4294901760, %v45240_v20 }
0x1211   :  { %34396 = vmatprep.mubr.f32.mxu1 %v22954_v25  ;;  %v23004_v25 = vand.u32 4294901760, %v23003_v48  ;;  %v46867_v48 = vand.u32 4294901760, %v45166_v6 }
0x1214   :  { %34397 = vmatmul.mubr.f32.gmra.mrb[20].mxu1 %v22964_v39  ;;  %v46868_v39 = vand.u32 4294901760, %v45189_v4 }
0x1215   :  { %34399 = vmatprep.mubr.f32.mxu1 %v22974_v43  ;;  %v46870_v43 = vand.u32 4294901760, %v45184_v14  ;;  %v46877_v14 = vand.u32 4294901760, %v45264_v31 }
0x1217   :  { %v36483_v49 = vpack.c.bf16 %v46870_v43, %v46869_v47  ;;  %v23979_v47 = vld [vmem:[#allocation3 + $0x62] sm:$0xff] }
0x1218   :  { %34400 = vmatmul.mubr.f32.gmra.mrb[22].mxu1 %v22984_v16  ;;  %v46875_v16 = vand.u32 4294901760, %v45233_v40 }
0x1219   :  { %34402 = vmatprep.mubr.f32.mxu1 %v22994_v36  ;;  %v36455_v36 = vpack.c.bf16 %v45220_v34, %v45215_v56 }
0x121c   :  { %34403 = vmatmul.mubr.f32.gmra.mrb[24].mxu1 %v23004_v25  ;;  %v45501_v25 = vld [vmem:[#allocation8 + $0x238] sm:$0xff] }
0x121d   :  { %34421 = vmatprep.mubr.f32.mxu1 %v45147_v24 }
0x1220   :  { %34422 = vmatmul.mubr.f32.vlgmr.msra.gmra.mrb[10].mxu1 %v45149_v22 }
0x1221   :  { %36446 = vmatpush3.bf16.msra.mxu1 %v36443_v23  ;;  %34424 = vmatprep.mubr.f32.mxu1 %v45168_v29  ;;  %v36475_v23 = vpack.c.bf16 %v23020_v32, %v23013_v46  ;;  %v46866_v46 = vand.u32 4294901760, %v45159_v13  ;;  %v46873_v13 = vand.u32 4294901760, %v45215_v56  ;;  %v46880_v56 = vand.u32 4294901760, %v45311_v60 }
0x1222   :  { %36448 = vmatprep.subr.bf16.mxu1 %v36447_v59 }
0x1223   :  { %v36479_v32 = vpack.c.bf16 %v46866_v46, %v46865_v3 }
0x1224   :  { %34425 = vmatmul.mubr.f32.gmra.mrb[12].mxu1 %v45170_v15 }
0x1225   :  { %34427 = vmatprep.mubr.f32.mxu1 %v45173_v17  ;;  %36450 = vmatpush3.bf16.msra.mxu1 %v36447_v59 }
0x1226   :  { %36452 = vmatprep.subr.bf16.mxu1 %v36451_v21 }
0x1228   :  { %34428 = vmatmul.mubr.f32.gmra.mrb[14].mxu1 %v45198_v9 }
0x1229   :  { %34430 = vmatprep.mubr.f32.mxu1 %v45207_v18  ;;  %36454 = vmatpush3.bf16.msra.mxu1 %v36451_v21  ;;  %v24070_v21 = vand.u32 4294901760, %v45501_v25 }
0x122a   :  { %36456 = vmatprep.subr.bf16.mxu1 %v36455_v36 }
0x122c   :  { %34431 = vmatmul.mubr.f32.gmra.mrb[16].mxu1 %v45235_v54 }
0x122d   :  { %34433 = vmatprep.mubr.f32.mxu1 %v45254_v37  ;;  %36458 = vmatpush3.bf16.msra.mxu1 %v36455_v36 }
0x122e   :  { %36460 = vmatprep.subr.bf16.mxu1 %v45083_v33 }
0x1230   :  { %34434 = vmatmul.mubr.f32.gmra.mrb[18].mxu1 %v45269_v51 }
0x1231   :  { %34436 = vmatprep.mubr.f32.mxu1 %v45280_v30 }
0x1234   :  { %34437 = vmatmul.mubr.f32.gmra.mrb[20].mxu1 %v45295_v19 }
0x1235   :  { %34439 = vmatprep.mubr.f32.mxu1 %v45301_v42 }
0x1238   :  { %34440 = vmatmul.mubr.f32.gmra.mrb[22].mxu1 %v45313_v26 }
0x1239   :  { %34442 = vmatprep.mubr.f32.mxu1 %v45322_v57 }
0x123c   :  { %34443 = vmatmul.mubr.f32.gmra.mrb[24].mxu1 %v45324_v27 }
0x123d   :  { %34461 = vmatprep.mubr.f32.mxu1 %v45163_v52  ;;  %v46871_v52 = vand.u32 4294901760, %v45192_v5 }
0x1240   :  { %34462 = vmatmul.mubr.f32.vlgmr.msra.gmra.mrb[10].mxu1 %v45166_v6  ;;  %v46874_v6 = vand.u32 4294901760, %v45220_v34  ;;  %v46881_v34 = vand.u32 4294901760, %v45320_v55 }
0x1241   :  { %36462 = vmatpush3.bf16.msra.mxu1 %v45083_v33  ;;  %34464 = vmatprep.mubr.f32.mxu1 %v45189_v4 }
0x1242   :  { %36464 = vmatprep.subr.bf16.mxu1 %v45107_v41  ;;  %v36487_v4 = vpack.c.bf16 %v46874_v6, %v46873_v13  ;;  %v23980_v6 = vld [vmem:[#allocation3 + $0x72] sm:$0xff] }
0x1244   :  { %34465 = vmatmul.mubr.f32.gmra.mrb[12].mxu1 %v45192_v5  ;;  %v46878_v5 = vand.u32 4294901760, %v45293_v7 }
0x1245   :  { %34467 = vmatprep.mubr.f32.mxu1 %v45196_v1  ;;  %36466 = vmatpush3.bf16.msra.mxu1 %v45107_v41  ;;  %v46879_v1 = vand.u32 4294901760, %v45299_v8 }
0x1246   :  { %36468 = vmatprep.subr.bf16.mxu1 %v45118_v35 }
0x1248   :  { %34468 = vmatmul.mubr.f32.gmra.mrb[14].mxu1 %v45233_v40 }
0x1249   :  { %34470 = vmatprep.mubr.f32.mxu1 %v45240_v20  ;;  %36470 = vmatpush3.bf16.msra.mxu1 %v45118_v35 }
0x124a   :  { %36472 = vmatprep.subr.bf16.mxu1 %v45137_v50 }
0x124c   :  { %34471 = vmatmul.mubr.f32.gmra.mrb[16].mxu1 %v45264_v31 }
0x124d   :  { %34473 = vmatprep.mubr.f32.mxu1 %v45278_v53  ;;  %36474 = vmatpush3.bf16.msra.mxu1 %v45137_v50 }
0x124e   :  { %36476 = vmatprep.subr.bf16.mxu1 %v36475_v23 }
0x1250   :  { %34474 = vmatmul.mubr.f32.gmra.mrb[18].mxu1 %v45293_v7  ;;  %v45483_v7 = vld [vmem:[#allocation8 + $0x220] sm:$0xff] }
0x1251   :  { %34476 = vmatprep.mubr.f32.mxu1 %v45299_v8  ;;  %v23992_v8 = vld [vmem:[#allocation8 + $0x200] sm:$0xff] }
0x1252   :  { %v24049_v40 = vand.u32 4294901760, %v23992_v8 }
0x1254   :  { %34477 = vmatmul.mubr.f32.gmra.mrb[20].mxu1 %v45311_v60  ;;  %v23993_v60 = vld [vmem:[#allocation8 + $0x208] sm:$0xff] }
0x1255   :  { %34479 = vmatprep.mubr.f32.mxu1 %v45320_v55  ;;  %v24052_v20 = vand.u32 4294901760, %v23993_v60  ;;  %v24061_v55 = vand.u32 4294901760, %v45483_v7 }
0x1258   :  { %34480 = vmatmul.mubr.f32.gmra.mrb[22].mxu1 %v45331_v10 }
0x1259   :  { %34482 = vmatprep.mubr.f32.mxu1 %v45340_v11 }
0x125c   :  { %34483 = vmatmul.mubr.f32.gmra.mrb[24].mxu1 %v45343_v2 }
0x125d   :  { %34501 = vmatprep.mubr.f32.mxu1 %v46864_v38 }
0x1260   :  { %34502 = vmatmul.mubr.f32.vlgmr.msra.gmra.mrb[10].mxu1 %v46867_v48 }
0x1261   :  { %36478 = vmatpush3.bf16.msra.mxu1 %v36475_v23  ;;  %34504 = vmatprep.mubr.f32.mxu1 %v46868_v39  ;;  %v23976_v23 = vld [vmem:[#allocation3 + $0x32] sm:$0xff] }
0x1262   :  { %36480 = vmatprep.subr.bf16.mxu1 %v36479_v32  ;;  %v23978_v39 = vld [vmem:[#allocation3 + $0x52] sm:$0xff] }
0x1264   :  { %34505 = vmatmul.mubr.f32.gmra.mrb[12].mxu1 %v46871_v52  ;;  %v24013_v52 = vsel %vm11193_vm3, %v23979_v47, 0 }
0x1265   :  { %34507 = vmatprep.mubr.f32.mxu1 %v46872_v58  ;;  %36482 = vmatpush3.bf16.msra.mxu1 %v36479_v32  ;;  %v23977_v32 = vld [vmem:[#allocation3 + $0x42] sm:$0xff] }
0x1266   :  { %36484 = vmatprep.subr.bf16.mxu1 %v36483_v49 }
0x1268   :  { %34508 = vmatmul.mubr.f32.gmra.mrb[14].mxu1 %v46875_v16 }
0x1269   :  { %34510 = vmatprep.mubr.f32.mxu1 %v46876_v12  ;;  %36486 = vmatpush3.bf16.msra.mxu1 %v36483_v49  ;;  %v45561_v12 = vand.u32 4294901760, %v24013_v52 }
0x126a   :  { %36488 = vmatprep.subr.bf16.mxu1 %v36487_v4 }
0x126c   :  { %34511 = vmatmul.mubr.f32.gmra.mrb[16].mxu1 %v46877_v14 }
0x126d   :  { %34513 = vmatprep.mubr.f32.mxu1 %v22932_v62  ;;  %36490 = vmatpush3.bf16.msra.mxu1 %v36487_v4  ;;  %v45487_v62 = vsub.f32 %v23992_v8, %v24049_v40  ;;  %v23983_v8 = vld [vmem:[#allocation3 + $0xc2] sm:$0xff] }
0x126e   :  { %36492 = vmatprep.subr.bf16.mxu1 %v45083_v33 }
0x126f   :  { %v24284_v2 = vand.u32 4294901760, %v45487_v62 }
0x1270   :  { %34514 = vmatmul.mubr.f32.gmra.mrb[18].mxu1 %v46878_v5 }
0x1271   :  { %34516 = vmatprep.mubr.f32.mxu1 %v46879_v1  ;;  %v24285_v36 = vsub.f32 %v45487_v62, %v24284_v2  ;;  %v24016_v1 = vsel %vm11193_vm3, %v23980_v6, 0 }
0x1273   :  { %v24286_v3 = vand.u32 4294901760, %v24285_v36 }
0x1274   :  { %34517 = vmatmul.mubr.f32.gmra.mrb[20].mxu1 %v46880_v56  ;;  %v23981_v56 = vld [vmem:[#allocation3 + $0x82] sm:$0xff] }
0x1275   :  { %34519 = vmatprep.mubr.f32.mxu1 %v46881_v34  ;;  %v23982_v34 = vld [vmem:[#allocation3 + $0x92] sm:$0xff] }
0x1278   :  { %34520 = vmatmul.mubr.f32.gmra.mrb[22].mxu1 %v22982_v61  ;;  %v45489_v61 = vsub.f32 %v23993_v60, %v24052_v20  ;;  %v45568_v60 = vsub.f32 %v45483_v7, %v24061_v55 }
0x1279   :  { %34522 = vmatprep.mubr.f32.mxu1 %v22992_v63 }
0x127a   :  { %v24291_v63 = vand.u32 4294901760, %v45489_v61 }
0x127c   :  { %34523 = vmatmul.mubr.f32.gmra.mrb[24].mxu1 %v23002_v0  ;;  %v45499_v0 = vld [vmem:[#allocation8 + $0x230] sm:$0xff] }
0x127d   :  { %34541 = vmatprep.mubr.f32.mxu1 %v45147_v24  ;;  %v24067_v59 = vand.u32 4294901760, %v45499_v0 }
0x127f   :  { %v45525_v38 = vpack.c.bf16 %v24070_v21, %v24067_v59 }
0x1280   :  { %34542 = vmatmul.mubr.f32.vlgmr.msra.gmra.mrb[10].mxu1 %v45149_v22 }
0x1281   :  { %36494 = vmatpush3.bf16.msra.mxu1 %v45083_v33  ;;  %34544 = vmatprep.mubr.f32.mxu1 %v45168_v29  ;;  %v45471_v33 = vpack.c.bf16 %v24052_v20, %v24049_v40 }
0x1282   :  { %36496 = vmatprep.subr.bf16.mxu1 %v45107_v41 }
0x1284   :  { %34545 = vmatmul.mubr.f32.gmra.mrb[12].mxu1 %v45170_v15 }
0x1285   :  { %34547 = vmatprep.mubr.f32.mxu1 %v45173_v17  ;;  %36498 = vmatpush3.bf16.msra.mxu1 %v45107_v41  ;;  %v23994_v41 = vld [vmem:[#allocation8 + $0x210] sm:$0xff] }
0x1286   :  { %36500 = vmatprep.subr.bf16.mxu1 %v45118_v35  ;;  %v24055_v31 = vand.u32 4294901760, %v23994_v41 }
0x1288   :  { %34548 = vmatmul.mubr.f32.gmra.mrb[14].mxu1 %v45198_v9  ;;  %v45545_v58 = vsub.f32 %v23994_v41, %v24055_v31 }
0x1289   :  { %34550 = vmatprep.mubr.f32.mxu1 %v45207_v18  ;;  %36502 = vmatpush3.bf16.msra.mxu1 %v45118_v35  ;;  %v23995_v35 = vld [vmem:[#allocation8 + $0x218] sm:$0xff] }
0x128a   :  { %36504 = vmatprep.subr.bf16.mxu1 %v45137_v50  ;;  %v24058_v53 = vand.u32 4294901760, %v23995_v35  ;;  %v46631_v14 = vand.u32 4294901760, %v45545_v58 }
0x128c   :  { %34551 = vmatmul.mubr.f32.gmra.mrb[16].mxu1 %v45235_v54  ;;  %v45495_v11 = vpack.c.bf16 %v24058_v53, %v24055_v31  ;;  %v45547_v13 = vsub.f32 %v23995_v35, %v24058_v53  ;;  %v45583_v35 = vsub.f32 %v24013_v52, %v45561_v12  ;;  %v45585_v31 = vand.u32 4294901760, %v24016_v1 }
0x128d   :  { %34553 = vmatprep.mubr.f32.mxu1 %v45254_v37  ;;  %36506 = vmatpush3.bf16.msra.mxu1 %v45137_v50  ;;  %v45485_v50 = vld [vmem:[#allocation8 + $0x228] sm:$0xff]  ;;  %v24019_v53 = vsel %vm11193_vm3, %v23981_v56, 0  ;;  %v24299_v7 = vsub.f32 %v45545_v58, %v46631_v14 }
0x128e   :  { %36508 = vmatprep.subr.bf16.mxu1 %v45471_v33  ;;  %v24064_v10 = vand.u32 4294901760, %v45485_v50  ;;  %v46630_v5 = vand.u32 4294901760, %v45547_v13 }
0x1290   :  { %34554 = vmatmul.mubr.f32.gmra.mrb[18].mxu1 %v45269_v51 }
0x1291   :  { %34556 = vmatprep.mubr.f32.mxu1 %v45280_v30 }
0x1294   :  { %34557 = vmatmul.mubr.f32.gmra.mrb[20].mxu1 %v45295_v19 }
0x1295   :  { %34559 = vmatprep.mubr.f32.mxu1 %v45301_v42 }
0x1298   :  { %34560 = vmatmul.mubr.f32.gmra.mrb[22].mxu1 %v45313_v26 }
0x1299   :  { %34562 = vmatprep.mubr.f32.mxu1 %v45322_v57 }
0x129c   :  { %34563 = vmatmul.mubr.f32.gmra.mrb[24].mxu1 %v45324_v27 }
0x129d   :  { %34581 = vmatprep.mubr.f32.mxu1 %v45147_v24  ;;  %v45506_v24 = vpack.c.bf16 %v24064_v10, %v24061_v55  ;;  %v24025_v55 = vsel %vm11193_vm3, %v23983_v8, 0 }
0x12a0   :  { %34582 = vmatmul.mubr.f32.vlgmr.msra.gmra.mrb[10].mxu1 %v45149_v22  ;;  %v24292_v22 = vsub.f32 %v45489_v61, %v24291_v63 }
0x12a1   :  { %36510 = vmatpush3.bf16.msra.mxu1 %v45471_v33  ;;  %34584 = vmatprep.mubr.f32.mxu1 %v45168_v29  ;;  %v23975_v29 = vld [vmem:[#allocation3 + $0x22] sm:$0xff] }
0x12a2   :  { %36512 = vmatprep.subr.bf16.mxu1 %v45495_v11  ;;  %v24293_v46 = vand.u32 4294901760, %v24292_v22  ;;  %v23984_v22 = vld [vmem:[#allocation3 + $0xd2] sm:$0xff] }
0x12a3   :  { %v24028_v47 = vsel %vm11193_vm3, %v23984_v22, 0 }
0x12a4   :  { %34585 = vmatmul.mubr.f32.gmra.mrb[12].mxu1 %v45170_v15  ;;  %v24001_v15 = vsel %vm11193_vm3, %v23975_v29, 0  ;;  %v45533_v48 = vpack.c.bf16 %v24293_v46, %v24286_v3  ;;  %v45607_v29 = vsub.f32 %v45501_v25, %v24070_v21  ;;  %v45625_v21 = vand.u32 4294901760, %v24025_v55 }
0x12a5   :  { %34587 = vmatprep.mubr.f32.mxu1 %v45173_v17  ;;  %36514 = vmatpush3.bf16.msra.mxu1 %v45495_v11  ;;  %v24004_v17 = vsel %vm11193_vm3, %v23976_v23, 0  ;;  %v45535_v43 = vand.u32 4294901760, %v24001_v15 }
0x12a6   :  { %36516 = vmatprep.subr.bf16.mxu1 %v45506_v24  ;;  %v45537_v49 = vand.u32 4294901760, %v24004_v17  ;;  %v46629_v6 = vand.u32 4294901760, %v45607_v29 }
0x12a7   :  { %v45551_v4 = vsub.f32 %v24001_v15, %v45535_v43  ;;  %v45616_v15 = vand.u32 4294901760, %v24019_v53 }
0x12a8   :  { %34588 = vmatmul.mubr.f32.gmra.mrb[14].mxu1 %v45198_v9  ;;  %v24007_v9 = vsel %vm11193_vm3, %v23977_v32, 0  ;;  %v24300_v32 = vand.u32 4294901760, %v24299_v7 }
0x12a9   :  { %34590 = vmatprep.mubr.f32.mxu1 %v45207_v18  ;;  %36518 = vmatpush3.bf16.msra.mxu1 %v45506_v24  ;;  %v24010_v18 = vsel %vm11193_vm3, %v23978_v39, 0  ;;  %v46632_v40 = vand.u32 4294901760, %v45551_v4 }
0x12aa   :  { %36520 = vmatprep.subr.bf16.mxu1 %v45525_v38  ;;  %v45559_v16 = vand.u32 4294901760, %v24010_v18 }
0x12ab   :  { %v24124_v23 = vsub.f32 %v45551_v4, %v46632_v40  ;;  %v23990_v40 = vld [vmem:[#allocation3 + $0x132] sm:$0xff] }
0x12ac   :  { %34591 = vmatmul.mubr.f32.gmra.mrb[16].mxu1 %v45235_v54  ;;  %v45554_v54 = vsub.f32 %v24004_v17, %v45537_v49  ;;  %v45580_v41 = vsub.f32 %v24010_v18, %v45559_v16  ;;  %v46626_v17 = vand.u32 4294901760, %v45583_v35 }
0x12ad   :  { %34593 = vmatprep.mubr.f32.mxu1 %v45254_v37  ;;  %36522 = vmatpush3.bf16.msra.mxu1 %v45525_v38  ;;  %v45556_v37 = vand.u32 4294901760, %v24007_v9 }
0x12ae   :  { %36524 = vmatprep.subr.bf16.mxu1 %v45533_v48  ;;  %v46627_v20 = vand.u32 4294901760, %v45554_v54 }
0x12b0   :  { %34594 = vmatmul.mubr.f32.gmra.mrb[18].mxu1 %v45269_v51  ;;  %v45571_v51 = vsub.f32 %v45485_v50, %v24064_v10  ;;  %v24022_v50 = vsel %vm11193_vm3, %v23982_v34, 0  ;;  %v46624_v10 = vand.u32 4294901760, %v45568_v60  ;;  %v24134_v3 = vsub.f32 %v45554_v54, %v46627_v20  ;;  %v23988_v20 = vld [vmem:[#allocation3 + $0x112] sm:$0xff] }
0x12b1   :  { %34596 = vmatprep.mubr.f32.mxu1 %v45280_v30  ;;  %v45576_v30 = vsub.f32 %v24007_v9, %v45556_v37  ;;  %v45623_v25 = vand.u32 4294901760, %v24022_v50  ;;  %v23985_v9 = vld [vmem:[#allocation3 + $0xe2] sm:$0xff]  ;;  %v45642_v34 = vsub.f32 %v24019_v53, %v45616_v15  ;;  %v24164_v53 = vsub.f32 %v45583_v35, %v46626_v17 }
0x12b2   :  { %v46622_v36 = vand.u32 4294901760, %v45571_v51  ;;  %v24031_v22 = vsel %vm11193_vm3, %v23985_v9, 0  ;;  %v24334_v9 = vsub.f32 %v45607_v29, %v46629_v6 }
0x12b3   :  { %v46625_v46 = vand.u32 4294901760, %v45576_v30  ;;  %v46633_v17 = vand.u32 4294901760, %v45642_v34 }
0x12b4   :  { %34597 = vmatmul.mubr.f32.gmra.mrb[20].mxu1 %v45295_v19  ;;  %v24306_v19 = vsub.f32 %v45547_v13, %v46630_v5  ;;  %v24320_v18 = vsub.f32 %v45571_v51, %v46622_v36  ;;  %v45659_v36 = vand.u32 4294901760, %v24028_v47  ;;  %v24335_v14 = vand.u32 4294901760, %v24334_v9 }
0x12b5   :  { %34599 = vmatprep.mubr.f32.mxu1 %v45301_v42  ;;  %v45602_v42 = vsub.f32 %v45499_v0, %v24067_v59  ;;  %v46623_v0 = vand.u32 4294901760, %v45580_v41  ;;  %v45621_v59 = vsub.f32 %v24016_v1, %v45585_v31  ;;  %v24135_v1 = vand.u32 4294901760, %v24134_v3 }
0x12b6   :  { %v24307_v39 = vand.u32 4294901760, %v24306_v19  ;;  %v24144_v56 = vsub.f32 %v45576_v30, %v46625_v46  ;;  %v45650_v19 = vsub.f32 %v24022_v50, %v45623_v25  ;;  %v24321_v46 = vand.u32 4294901760, %v24320_v18 }
0x12b7   :  { %v46628_v52 = vand.u32 4294901760, %v45602_v42  ;;  %v24154_v8 = vsub.f32 %v45580_v41, %v46623_v0  ;;  %v46634_v7 = vand.u32 4294901760, %v45621_v59  ;;  %v23987_v0 = vld [vmem:[#allocation3 + $0x102] sm:$0xff]  ;;  %v45679_v5 = vsub.f32 %v24028_v47, %v45659_v36 }
0x12b8   :  { %34600 = vmatmul.mubr.f32.gmra.mrb[22].mxu1 %v45313_v26  ;;  %v24313_v26 = vsub.f32 %v45568_v60, %v46624_v10  ;;  %v36527_v3 = vpack.c.bf16 %v24307_v39, %v24300_v32  ;;  %v45668_v32 = vand.u32 4294901760, %v24031_v22  ;;  %v24037_v18 = vsel %vm11193_vm3, %v23987_v0, 0 }
0x12b9   :  { %34602 = vmatprep.mubr.f32.mxu1 %v45322_v57  ;;  %v24125_v57 = vand.u32 4294901760, %v24124_v23  ;;  %v23986_v23 = vld [vmem:[#allocation3 + $0xf2] sm:$0xff]  ;;  %v24327_v50 = vsub.f32 %v45602_v42, %v46628_v52  ;;  %v24155_v39 = vand.u32 4294901760, %v24154_v8  ;;  %v24165_v52 = vand.u32 4294901760, %v24164_v53 }
0x12ba   :  { %v24314_v10 = vand.u32 4294901760, %v24313_v26  ;;  %v46635_v26 = vand.u32 4294901760, %v45650_v19  ;;  %v45687_v53 = vsub.f32 %v24031_v22, %v45668_v32  ;;  %v24040_v47 = vsel %vm11193_vm3, %v23988_v20, 0 }
0x12bb   :  { %v24328_v0 = vand.u32 4294901760, %v24327_v50  ;;  %v24046_v22 = vsel %vm11193_vm3, %v23990_v40, 0 }
0x12bc   :  { %34603 = vmatmul.mubr.f32.gmra.mrb[24].mxu1 %v45324_v27  ;;  %v45657_v27 = vsub.f32 %v24025_v55, %v45625_v21  ;;  %v24034_v55 = vsel %vm11193_vm3, %v23986_v23, 0  ;;  %v36531_v8 = vpack.c.bf16 %v24321_v46, %v24314_v10  ;;  %v24194_v10 = vsub.f32 %v45650_v19, %v46635_v26 }
0x12bd   :  { %34621 = vmatprep.mubr.f32.mxu1 %v24125_v57  ;;  %v24145_v57 = vand.u32 4294901760, %v24144_v56  ;;  %v24174_v56 = vsub.f32 %v45621_v59, %v46634_v7  ;;  %v45681_v23 = vand.u32 4294901760, %v24034_v55  ;;  %v45704_v7 = vand.u32 4294901760, %v24040_v47 }
0x12be   :  { %v24203_v6 = vand.u32 4294901760, %v45657_v27  ;;  %v45712_v40 = vand.u32 4294901760, %v24046_v22 }
0x12bf   :  { %v24175_v50 = vand.u32 4294901760, %v24174_v56  ;;  %v45702_v20 = vsub.f32 %v24034_v55, %v45681_v23 }
0x12c0   :  { %34622 = vmatmul.mubr.f32.vlgmr.msra.gmra.mrb[10].mxu1 %v24135_v1  ;;  %v23989_v1 = vld [vmem:[#allocation3 + $0x122] sm:$0xff]  ;;  %v24204_v9 = vsub.f32 %v45657_v27, %v24203_v6 }
0x12c1   :  { %36526 = vmatpush3.bf16.msra.mxu1 %v45533_v48  ;;  %34624 = vmatprep.mubr.f32.mxu1 %v24145_v57  ;;  %v24184_v48 = vsub.f32 %v45642_v34, %v46633_v17  ;;  %v45689_v57 = vand.u32 4294901760, %v24037_v18  ;;  %v24043_v46 = vsel %vm11193_vm3, %v23989_v1, 0  ;;  %v46636_v17 = vand.u32 4294901760, %v45679_v5 }
0x12c2   :  { %36528 = vmatprep.subr.bf16.mxu1 %v36527_v3  ;;  %v45710_v56 = vand.u32 4294901760, %v24043_v46  ;;  %v24195_v1 = vand.u32 4294901760, %v24194_v10  ;;  %v46639_v55 = vand.u32 4294901760, %v45702_v20 }
0x12c3   :  { %v24185_v26 = vand.u32 4294901760, %v24184_v48  ;;  %v24205_v48 = vand.u32 4294901760, %v24204_v9 }
0x12c4   :  { %34625 = vmatmul.mubr.f32.gmra.mrb[12].mxu1 %v24155_v39  ;;  %v36535_v39 = vpack.c.bf16 %v24335_v14, %v24328_v0  ;;  %v24214_v14 = vsub.f32 %v45679_v5, %v46636_v17  ;;  %v45719_v0 = vsub.f32 %v24040_v47, %v45704_v7  ;;  %v24234_v9 = vsub.f32 %v45702_v20, %v46639_v55 }
0x12c5   :  { %34627 = vmatprep.mubr.f32.mxu1 %v24165_v52  ;;  %36530 = vmatpush3.bf16.msra.mxu1 %v36527_v3  ;;  %v46637_v52 = vand.u32 4294901760, %v45687_v53  ;;  %v45708_v3 = vsub.f32 %v24037_v18, %v45689_v57  ;;  %v36539_v18 = vpack.c.bf16 %v45489_v61, %v45487_v62  ;;  %v46882_v62 = vand.u32 4294901760, %v45551_v4 }
0x12c6   :  { %36532 = vmatprep.subr.bf16.mxu1 %v36531_v8  ;;  %v24215_v47 = vand.u32 4294901760, %v24214_v14  ;;  %v24253_v17 = vand.u32 4294901760, %v45719_v0  ;;  %v46883_v61 = vand.u32 4294901760, %v45545_v58 }
0x12c7   :  { %v24224_v10 = vsub.f32 %v45687_v53, %v46637_v52 }
0x12c8   :  { %34628 = vmatmul.mubr.f32.gmra.mrb[14].mxu1 %v24175_v50  ;;  %v45731_v50 = vsub.f32 %v24046_v22, %v45712_v40  ;;  %v24254_v14 = vsub.f32 %v45719_v0, %v24253_v17 }
0x12c9   :  { %34630 = vmatprep.mubr.f32.mxu1 %v24185_v26  ;;  %36534 = vmatpush3.bf16.msra.mxu1 %v36531_v8  ;;  %v46638_v26 = vand.u32 4294901760, %v45708_v3  ;;  %v45728_v8 = vsub.f32 %v24043_v46, %v45710_v56  ;;  %v24225_v52 = vand.u32 4294901760, %v24224_v10 }
0x12ca   :  { %36536 = vmatprep.subr.bf16.mxu1 %v36535_v39  ;;  %v24273_v22 = vand.u32 4294901760, %v45731_v50 }
0x12cb   :  { %v24244_v46 = vsub.f32 %v45708_v3, %v46638_v26 }
0x12cc   :  { %34631 = vmatmul.mubr.f32.gmra.mrb[16].mxu1 %v24195_v1  ;;  %v24263_v1 = vand.u32 4294901760, %v45728_v8  ;;  %v24274_v26 = vsub.f32 %v45731_v50, %v24273_v22 }
0x12cd   :  { %34633 = vmatprep.mubr.f32.mxu1 %v24205_v48  ;;  %36538 = vmatpush3.bf16.msra.mxu1 %v36535_v39  ;;  %v24235_v39 = vand.u32 4294901760, %v24234_v9  ;;  %v24245_v48 = vand.u32 4294901760, %v24244_v46  ;;  %v36543_v9 = vpack.c.bf16 %v45547_v13, %v45545_v58  ;;  %v36547_v46 = vpack.c.bf16 %v45571_v51, %v45568_v60 }
0x12ce   :  { %36540 = vmatprep.subr.bf16.mxu1 %v36539_v18  ;;  %v24264_v10 = vsub.f32 %v45728_v8, %v24263_v1  ;;  %v46890_v58 = vand.u32 4294901760, %v45583_v35 }
0x12d0   :  { %34634 = vmatmul.mubr.f32.gmra.mrb[18].mxu1 %v24215_v47  ;;  %v24255_v47 = vand.u32 4294901760, %v24254_v14  ;;  %v24265_v55 = vand.u32 4294901760, %v24264_v10  ;;  %v46887_v14 = vand.u32 4294901760, %v45568_v60  ;;  %v46894_v60 = vand.u32 4294901760, %v45642_v34 }
0x12d1   :  { %34636 = vmatprep.mubr.f32.mxu1 %v24225_v52  ;;  %v24275_v52 = vand.u32 4294901760, %v24274_v26  ;;  %v46885_v26 = vand.u32 4294901760, %v45554_v54 }
0x12d4   :  { %34637 = vmatmul.mubr.f32.gmra.mrb[20].mxu1 %v24235_v39  ;;  %v46886_v39 = vand.u32 4294901760, %v45576_v30 }
0x12d5   :  { %34639 = vmatprep.mubr.f32.mxu1 %v24245_v48  ;;  %v46888_v48 = vand.u32 4294901760, %v45571_v51  ;;  %v46895_v51 = vand.u32 4294901760, %v45650_v19 }
0x12d7   :  { %v36579_v10 = vpack.c.bf16 %v46888_v48, %v46887_v14 }
0x12d8   :  { %34640 = vmatmul.mubr.f32.gmra.mrb[22].mxu1 %v24255_v47  ;;  %v46893_v47 = vand.u32 4294901760, %v45621_v59 }
0x12d9   :  { %34642 = vmatprep.mubr.f32.mxu1 %v24265_v55  ;;  %v36551_v55 = vpack.c.bf16 %v45607_v29, %v45602_v42 }
0x12dc   :  { %34643 = vmatmul.mubr.f32.gmra.mrb[24].mxu1 %v24275_v52 }
0x12dd   :  { %34661 = vmatprep.mubr.f32.mxu1 %v45535_v43 }
0x12e0   :  { %34662 = vmatmul.mubr.f32.vlgmr.msra.gmra.mrb[10].mxu1 %v45537_v49 }
0x12e1   :  { %36542 = vmatpush3.bf16.msra.mxu1 %v36539_v18  ;;  %34664 = vmatprep.mubr.f32.mxu1 %v45556_v37  ;;  %v36571_v18 = vpack.c.bf16 %v24291_v63, %v24284_v2  ;;  %v46884_v2 = vand.u32 4294901760, %v45547_v13  ;;  %v46891_v13 = vand.u32 4294901760, %v45602_v42  ;;  %v46898_v42 = vand.u32 4294901760, %v45702_v20 }
0x12e2   :  { %36544 = vmatprep.subr.bf16.mxu1 %v36543_v9 }
0x12e3   :  { %v36575_v63 = vpack.c.bf16 %v46884_v2, %v46883_v61 }
0x12e4   :  { %34665 = vmatmul.mubr.f32.gmra.mrb[12].mxu1 %v45559_v16 }
0x12e5   :  { %34667 = vmatprep.mubr.f32.mxu1 %v45561_v12  ;;  %36546 = vmatpush3.bf16.msra.mxu1 %v36543_v9 }
0x12e6   :  { %36548 = vmatprep.subr.bf16.mxu1 %v36547_v46 }
0x12e8   :  { %34668 = vmatmul.mubr.f32.gmra.mrb[14].mxu1 %v45585_v31 }
0x12e9   :  { %34670 = vmatprep.mubr.f32.mxu1 %v45616_v15  ;;  %36550 = vmatpush3.bf16.msra.mxu1 %v36547_v46 }
0x12ea   :  { %36552 = vmatprep.subr.bf16.mxu1 %v36551_v55 }
0x12ec   :  { %34671 = vmatmul.mubr.f32.gmra.mrb[16].mxu1 %v45623_v25 }
0x12ed   :  { %34673 = vmatprep.mubr.f32.mxu1 %v45625_v21  ;;  %36554 = vmatpush3.bf16.msra.mxu1 %v36551_v55 }
0x12ee   :  { %36556 = vmatprep.subr.bf16.mxu1 %v45471_v33 }
0x12f0   :  { %34674 = vmatmul.mubr.f32.gmra.mrb[18].mxu1 %v45659_v36 }
0x12f1   :  { %34676 = vmatprep.mubr.f32.mxu1 %v45668_v32 }
0x12f4   :  { %34677 = vmatmul.mubr.f32.gmra.mrb[20].mxu1 %v45681_v23 }
0x12f5   :  { %34679 = vmatprep.mubr.f32.mxu1 %v45689_v57 }
0x12f8   :  { %34680 = vmatmul.mubr.f32.gmra.mrb[22].mxu1 %v45704_v7 }
0x12f9   :  { %34682 = vmatprep.mubr.f32.mxu1 %v45710_v56 }
0x12fc   :  { %34683 = vmatmul.mubr.f32.gmra.mrb[24].mxu1 %v45712_v40 }
0x12fd   :  { %34701 = vmatprep.mubr.f32.mxu1 %v45551_v4  ;;  %v46889_v4 = vand.u32 4294901760, %v45580_v41 }
0x1300   :  { %34702 = vmatmul.mubr.f32.vlgmr.msra.gmra.mrb[10].mxu1 %v45554_v54  ;;  %v46892_v54 = vand.u32 4294901760, %v45607_v29  ;;  %v46899_v29 = vand.u32 4294901760, %v45708_v3 }
0x1301   :  { %36558 = vmatpush3.bf16.msra.mxu1 %v45471_v33  ;;  %34704 = vmatprep.mubr.f32.mxu1 %v45576_v30 }
0x1302   :  { %36560 = vmatprep.subr.bf16.mxu1 %v45495_v11  ;;  %v36583_v30 = vpack.c.bf16 %v46892_v54, %v46891_v13 }
0x1304   :  { %34705 = vmatmul.mubr.f32.gmra.mrb[12].mxu1 %v45580_v41  ;;  %v46896_v41 = vand.u32 4294901760, %v45679_v5 }
0x1305   :  { %34707 = vmatprep.mubr.f32.mxu1 %v45583_v35  ;;  %36562 = vmatpush3.bf16.msra.mxu1 %v45495_v11  ;;  %v46897_v35 = vand.u32 4294901760, %v45687_v53 }
0x1306   :  { %36564 = vmatprep.subr.bf16.mxu1 %v45506_v24 }
0x1308   :  { %34708 = vmatmul.mubr.f32.gmra.mrb[14].mxu1 %v45621_v59 }
0x1309   :  { %34710 = vmatprep.mubr.f32.mxu1 %v45642_v34  ;;  %36566 = vmatpush3.bf16.msra.mxu1 %v45506_v24 }
0x130a   :  { %36568 = vmatprep.subr.bf16.mxu1 %v45525_v38 }
0x130c   :  { %34711 = vmatmul.mubr.f32.gmra.mrb[16].mxu1 %v45650_v19 }
0x130d   :  { %34713 = vmatprep.mubr.f32.mxu1 %v45657_v27  ;;  %36570 = vmatpush3.bf16.msra.mxu1 %v45525_v38 }
0x130e   :  { %36572 = vmatprep.subr.bf16.mxu1 %v36571_v18 }
0x1310   :  { %34714 = vmatmul.mubr.f32.gmra.mrb[18].mxu1 %v45679_v5 }
0x1311   :  { %34716 = vmatprep.mubr.f32.mxu1 %v45687_v53 }
0x1314   :  { %34717 = vmatmul.mubr.f32.gmra.mrb[20].mxu1 %v45702_v20 }
0x1315   :  { %34719 = vmatprep.mubr.f32.mxu1 %v45708_v3 }
0x1318   :  { %34720 = vmatmul.mubr.f32.gmra.mrb[22].mxu1 %v45719_v0 }
0x1319   :  { %34722 = vmatprep.mubr.f32.mxu1 %v45728_v8 }
0x131c   :  { %34723 = vmatmul.mubr.f32.gmra.mrb[24].mxu1 %v45731_v50 }
0x131d   :  { %34741 = vmatprep.mubr.f32.mxu1 %v46882_v62 }
0x1320   :  { %34742 = vmatmul.mubr.f32.vlgmr.msra.gmra.mrb[10].mxu1 %v46885_v26 }
0x1321   :  { %36574 = vmatpush3.bf16.msra.mxu1 %v36571_v18  ;;  %34744 = vmatprep.mubr.f32.mxu1 %v46886_v39 }
0x1322   :  { %36576 = vmatprep.subr.bf16.mxu1 %v36575_v63 }
0x1324   :  { %34745 = vmatmul.mubr.f32.gmra.mrb[12].mxu1 %v46889_v4 }
0x1325   :  { %34747 = vmatprep.mubr.f32.mxu1 %v46890_v58  ;;  %36578 = vmatpush3.bf16.msra.mxu1 %v36575_v63 }
0x1326   :  { %36580 = vmatprep.subr.bf16.mxu1 %v36579_v10 }
0x1328   :  { %34748 = vmatmul.mubr.f32.gmra.mrb[14].mxu1 %v46893_v47 }
0x1329   :  { %34750 = vmatprep.mubr.f32.mxu1 %v46894_v60  ;;  %36582 = vmatpush3.bf16.msra.mxu1 %v36579_v10 }
0x132a   :  { %36584 = vmatprep.subr.bf16.mxu1 %v36583_v30 }
0x132c   :  { %34751 = vmatmul.mubr.f32.gmra.mrb[16].mxu1 %v46895_v51 }
0x132d   :  { %34753 = vmatprep.mubr.f32.mxu1 %v24203_v6  ;;  %36586 = vmatpush3.bf16.msra.mxu1 %v36583_v30 }
0x132e   :  { %36588 = vmatprep.subr.bf16.mxu1 %v45471_v33 }
0x1330   :  { %34754 = vmatmul.mubr.f32.gmra.mrb[18].mxu1 %v46896_v41 }
0x1331   :  { %34756 = vmatprep.mubr.f32.mxu1 %v46897_v35 }
0x1334   :  { %34757 = vmatmul.mubr.f32.gmra.mrb[20].mxu1 %v46898_v42 }
0x1335   :  { %34759 = vmatprep.mubr.f32.mxu1 %v46899_v29  ;;  %v46904_v29 = vld [vmem:[#allocation15_spill] sm:$0xff] }
0x1338   :  { %34760 = vmatmul.mubr.f32.gmra.mrb[22].mxu1 %v24253_v17 }
0x1339   :  { %34762 = vmatprep.mubr.f32.mxu1 %v24263_v1 }
0x133c   :  { %34763 = vmatmul.mubr.f32.gmra.mrb[24].mxu1 %v24273_v22 }
0x133d   :  { %34781 = vmatprep.mubr.f32.mxu1 %v45535_v43 }
0x1340   :  { %34782 = vmatmul.mubr.f32.vlgmr.msra.gmra.mrb[10].mxu1 %v45537_v49 }
0x1341   :  { %36590 = vmatpush3.bf16.msra.mxu1 %v45471_v33  ;;  %34784 = vmatprep.mubr.f32.mxu1 %v45556_v37  ;;  %v46900_v33 = vmov 0.0|0.0  }
0x1342   :  { %36592 = vmatprep.subr.bf16.mxu1 %v45495_v11 }
0x1344   :  { %34785 = vmatmul.mubr.f32.gmra.mrb[12].mxu1 %v45559_v16 }
0x1345   :  { %34787 = vmatprep.mubr.f32.mxu1 %v45561_v12  ;;  %36594 = vmatpush3.bf16.msra.mxu1 %v45495_v11  ;;  %v46901_v11 = vmov 1.0|1.0  }
0x1346   :  { %36596 = vmatprep.subr.bf16.mxu1 %v45506_v24 }
0x1348   :  { %34788 = vmatmul.mubr.f32.gmra.mrb[14].mxu1 %v45585_v31 }
0x1349   :  { %34790 = vmatprep.mubr.f32.mxu1 %v45616_v15  ;;  %36598 = vmatpush3.bf16.msra.mxu1 %v45506_v24 }
0x134a   :  { %36600 = vmatprep.subr.bf16.mxu1 %v45525_v38 }
0x134c   :  { %34791 = vmatmul.mubr.f32.gmra.mrb[16].mxu1 %v45623_v25 }
0x134d   :  { %34793 = vmatprep.mubr.f32.mxu1 %v45625_v21  ;;  %36602 = vmatpush3.bf16.msra.mxu1 %v45525_v38  ;;  %v46903_v38 = vmov 0.0  }
0x134e   :  { %36603 = vmatprep.subr.bf16.mxu1 %v46900_v33 }
0x1350   :  { %34794 = vmatmul.mubr.f32.gmra.mrb[18].mxu1 %v45659_v36 }
0x1351   :  { %34796 = vmatprep.mubr.f32.mxu1 %v45668_v32 }
0x1354   :  { %34797 = vmatmul.mubr.f32.gmra.mrb[20].mxu1 %v45681_v23 }
0x1355   :  { %34799 = vmatprep.mubr.f32.mxu1 %v45689_v57 }
0x1358   :  { %34800 = vmatmul.mubr.f32.gmra.mrb[22].mxu1 %v45704_v7 }
0x1359   :  { %34802 = vmatprep.mubr.f32.mxu1 %v45710_v56 }
0x135c   :  { %34803 = vmatmul.mubr.f32.gmra.mrb[24].mxu1 %v45712_v40 }
0x135d   :  { %34821 = vmatprep.mubr.f32.mxu1 %v45535_v43 }
0x1360   :  { %34822 = vmatmul.mubr.f32.vlgmr.msra.gmra.mrb[10].mxu1 %v45537_v49 }
0x1361   :  { %34824 = vmatprep.mubr.f32.mxu1 %v45556_v37  ;;  %36605 = vmatpush3.bf16.msk.msra.mxu1 %vm41723_vm12, %v46901_v11 }
0x1362   :  { %36606 = vmatprep.subr.bf16.mxu1 %v46900_v33 }
0x1364   :  { %34825 = vmatmul.mubr.f32.gmra.mrb[12].mxu1 %v45559_v16 }
0x1365   :  { %34827 = vmatprep.mubr.f32.mxu1 %v45561_v12  ;;  %36608 = vmatpush3.bf16.msk.msra.mxu1 %vm41736_vm13, %v46901_v11 }
0x1366   :  { %36609 = vmatprep.subr.bf16.mxu1 %v46900_v33 }
0x1368   :  { %34828 = vmatmul.mubr.f32.gmra.mrb[14].mxu1 %v45585_v31 }
0x1369   :  { %34830 = vmatprep.mubr.f32.mxu1 %v45616_v15  ;;  %36611 = vmatpush3.bf16.msk.msra.mxu1 %vm41756_vm15, %v46901_v11 }
0x136a   :  { %36612 = vmatprep.subr.bf16.mxu1 %v46900_v33 }
0x136c   :  { %34831 = vmatmul.mubr.f32.gmra.mrb[16].mxu1 %v45623_v25 }
0x136d   :  { %34833 = vmatprep.mubr.f32.mxu1 %v45625_v21  ;;  %36614 = vmatpush3.bf16.msk.msra.mxu1 %vm41774_vm0, %v46901_v11 }
0x1370   :  { %34834 = vmatmul.mubr.f32.gmra.mrb[18].mxu1 %v45659_v36 }
0x1371   :  { %34836 = vmatprep.mubr.f32.mxu1 %v45668_v32 }
0x1374   :  { %34837 = vmatmul.mubr.f32.gmra.mrb[20].mxu1 %v45681_v23 }
0x1375   :  { %34839 = vmatprep.mubr.f32.mxu1 %v45689_v57 }
0x1378   :  { %34840 = vmatmul.mubr.f32.gmra.mrb[22].mxu1 %v45704_v7 }
0x1379   :  { %34842 = vmatprep.mubr.f32.mxu1 %v45710_v56 }
0x137c   :  { %34843 = vmatmul.mubr.f32.gmra.mrb[24].mxu1 %v45712_v40 }
0x137d   :  { %34861 = vmatprep.mubr.msk.f32.mxu1 %vm38632_vm14, %v46903_v38 }
0x1433   :  { %v45903_v43 = vpop.f32.mrb[10].mxu1 }
0x1434   :  { %v25247_v49 = vsel %vm11193_vm3, %v45903_v43, 0.0  ;;  %v45907_v37 = vpop.f32.mrb[11].mxu1 }
0x1435   :  { %v25246_v16 = vsel %vm11193_vm3, %v45907_v37, 0.0 }
0x1436   :  { %v25248_v12 = vadd.f32 %v25247_v49, %v25246_v16 }
0x1437   :  { %v45911_v5 = vpop.f32.mrb[12].mxu1 }
0x1438   :  { %v45913_v31 = vpop.f32.mrb[13].mxu1  ;;  %v25251_v59 = vsel %vm11193_vm3, %v45911_v5, 0.0 }
0x1439   :  { %v25249_v36 = vsel %vm11193_vm3, %v45913_v31, 0.0 }
0x143a   :  { %v25250_v15 = vadd.f32 %v25249_v36, %v25248_v12  ;;  %v46905_v12 = vld [vmem:[#allocation17_spill] sm:$0xff] }
0x143b   :  { %v45919_v25 = vpop.f32.mrb[14].mxu1 }
0x143c   :  { %v45921_v21 = vpop.f32.mrb[15].mxu1  ;;  %v25252_v17 = vadd.f32 %v25251_v59, %v25250_v15  ;;  %v25255_v7 = vsel %vm11193_vm3, %v45919_v25, 0.0  ;;  %v46906_v15 = vld [vmem:[#allocation18_spill] sm:$0xff]  ;;  %v46907_v59 = vld [vmem:[#allocation19_spill] sm:$0xff] }
0x143d   :  { %v25253_v6 = vsel %vm11193_vm3, %v45921_v21, 0.0 }
0x143e   :  { %v25254_v34 = vadd.f32 %v25253_v6, %v25252_v17  ;;  %v46908_v17 = vld [vmem:[#allocation20_spill] sm:$0xff]  ;;  %v46909_v6 = vld [vmem:[#allocation21_spill] sm:$0xff] }
0x143f   :  { %v45927_v19 = vpop.f32.mrb[16].mxu1 }
0x1440   :  { %v45929_v27 = vpop.f32.mrb[17].mxu1  ;;  %v25256_v32 = vadd.f32 %v25255_v7, %v25254_v34  ;;  %v25259_v57 = vsel %vm11193_vm3, %v45927_v19, 0.0  ;;  %v46910_v34 = vld [vmem:[#allocation22_spill] sm:$0xff]  ;;  %v46911_v7 = vld [vmem:[#allocation23_spill] sm:$0xff] }
0x1441   :  { %v25257_v23 = vsel %vm11193_vm3, %v45929_v27, 0.0 }
0x1442   :  { %v25258_v53 = vadd.f32 %v25257_v23, %v25256_v32  ;;  %v46912_v32 = vmov 1.0  }
0x1443   :  { %v45935_v20 = vpop.f32.mrb[18].mxu1 }
0x1444   :  { %v45937_v3 = vpop.f32.mrb[19].mxu1  ;;  %v25260_v56 = vadd.f32 %v25259_v57, %v25258_v53  ;;  %v25263_v8 = vsel %vm11193_vm3, %v45935_v20, 0.0 }
0x1445   :  { %v25261_v40 = vsel %vm11193_vm3, %v45937_v3, 0.0 }
0x1446   :  { %v25262_v0 = vadd.f32 %v25261_v40, %v25260_v56 }
0x1447   :  { %v45943_v50 = vpop.f32.mrb[20].mxu1 }
0x1448   :  { %v45945_v1 = vpop.f32.mrb[21].mxu1  ;;  %v25264_v22 = vadd.f32 %v25263_v8, %v25262_v0  ;;  %v25267_v46 = vsel %vm11193_vm3, %v45943_v50, 0.0 }
0x1449   :  { %v25265_v52 = vsel %vm11193_vm3, %v45945_v1, 0.0 }
0x144a   :  { %v25266_v9 = vadd.f32 %v25265_v52, %v25264_v22 }
0x144b   :  { %v45951_v55 = vpop.f32.mrb[22].mxu1 }
0x144c   :  { %v45953_v18 = vpop.f32.mrb[23].mxu1  ;;  %v25268_v62 = vadd.f32 %v25267_v46, %v25266_v9  ;;  %v25271_v63 = vsel %vm11193_vm3, %v45951_v55, 0.0 }
0x144d   :  { %v25269_v61 = vsel %vm11193_vm3, %v45953_v18, 0.0 }
0x144e   :  { %v25270_v2 = vadd.f32 %v25269_v61, %v25268_v62 }
0x144f   :  { %v45959_v26 = vpop.f32.mrb[24].mxu1 }
0x1450   :  { %v45961_v39 = vpop.f32.mrb[25].mxu1  ;;  %v25272_v14 = vadd.f32 %v25271_v63, %v25270_v2  ;;  %v25275_v4 = vsel %vm11193_vm3, %v45959_v26, 0.0  ;;  %v46914_v2 = vld [vmem:[#allocation27_spill] sm:$0xff]  ;;  %v46915_v63 = vld [vmem:[#allocation25_spill] sm:$0xff] }
0x1451   :  { %v25273_v48 = vsel %vm11193_vm3, %v45961_v39, 0.0 }
0x1452   :  { %v25274_v10 = vadd.f32 %v25273_v48, %v25272_v14  ;;  %v46916_v14 = vld [vmem:[#allocation26_spill] sm:$0xff] }
0x1454   :  { %v25276_v58 = vadd.f32 %v25275_v4, %v25274_v10  ;;  %v46917_v10 = vld [vmem:[#allocation28_spill] sm:$0xff] }
0x1456   :  { %v25277_v13 = vrot.slane %v25276_v58, 4 }
0x1458   :  { %v25278_v54 = vadd.f32 %v25277_v13, %v25276_v58 }
0x145a   :  { %v25279_v30 = vrot.slane %v25278_v54, 2 }
0x145c   :  { %v25280_v47 = vadd.f32 %v25279_v30, %v25278_v54 }
0x145e   :  { %v25281_v60 = vrot.slane %v25280_v47, 1 }
0x1460   :  { %v25282_v51 = vadd.f32 %v25281_v60, %v25280_v47 }
0x1462   :  { %v25284_v41 = vsel %vm11193_vm3, %v25282_v51, 0 }
0x1463   :  { %v25359_v35 = vand.u32 4294901760, %v25284_v41 }
0x1465   :  { %v25360_v42 = vsub.f32 %v25284_v41, %v25359_v35  ;;  %34881 = vmatmul.mubr.f32.vlgmr.msra.gmra.mrb[20].mxu0 %v25359_v35 }
0x1466   :  { %36629 = vmatpush3.bf16.msra.mxu0 %v46904_v29  ;;  %34899 = vmatprep.mubr.msk.f32.mxu0 %vm38632_vm14, %v46903_v38 }
0x1467   :  { %v25361_v49 = vand.u32 4294901760, %v25360_v42  ;;  %36630 = vmatprep.subr.bf16.mxu0 %v46900_v33 }
0x1469   :  { %v25362_v16 = vsub.f32 %v25360_v42, %v25361_v49 }
0x146a   :  { %36632 = vmatpush3.bf16.msra.mxu0 %v46905_v12 }
0x146b   :  { %36633 = vmatprep.subr.bf16.mxu0 %v46900_v33  ;;  %v25363_v36 = vand.u32 4294901760, %v25362_v16 }
0x146d   :  { %34862 = vmatmul.mubr.f32.vlgmr.msra.gmra.mrb[26].mxu1 %v25363_v36 }
0x146e   :  { %36635 = vmatpush3.bf16.msra.mxu0 %v46906_v15 }
0x146f   :  { %36636 = vmatprep.subr.bf16.mxu0 %v46900_v33 }
0x1472   :  { %36638 = vmatpush3.bf16.msra.mxu0 %v46907_v59 }
0x1473   :  { %36639 = vmatprep.subr.bf16.mxu0 %v46900_v33 }
0x1475   :  { %34900 = vmatmul.mubr.f32.vlgmr.msra.gmra.mrb[20].mxu0 %v25360_v42 }
0x1476   :  { %36641 = vmatpush3.bf16.msk.msra.mxu0 %vm41723_vm12, %v46901_v11  ;;  %34918 = vmatprep.mubr.msk.f32.mxu0 %vm38632_vm14, %v46903_v38 }
0x1477   :  { %36642 = vmatprep.subr.bf16.mxu0 %v46900_v33 }
0x147a   :  { %36644 = vmatpush3.bf16.msk.msra.mxu0 %vm41736_vm13, %v46901_v11 }
0x147b   :  { %36645 = vmatprep.subr.bf16.mxu0 %v46900_v33 }
0x147e   :  { %36647 = vmatpush3.bf16.msk.msra.mxu0 %vm41756_vm15, %v46901_v11 }
0x147f   :  { %36648 = vmatprep.subr.bf16.mxu0 %v46900_v33 }
0x1482   :  { %36650 = vmatpush3.bf16.msk.msra.mxu0 %vm41774_vm0, %v46901_v11 }
0x1483   :  { %36651 = vmatprep.subr.bf16.mxu0 %v46900_v33 }
0x1485   :  { %34919 = vmatmul.mubr.f32.vlgmr.msra.gmra.mrb[20].mxu0 %v25361_v49 }
0x1486   :  { %36653 = vmatpush3.bf16.msra.mxu0 %v46908_v17  ;;  %34937 = vmatprep.mubr.msk.f32.mxu0 %vm38632_vm14, %v46903_v38 }
0x1487   :  { %36654 = vmatprep.subr.bf16.mxu0 %v46900_v33 }
0x148a   :  { %36656 = vmatpush3.bf16.msra.mxu0 %v46909_v6 }
0x148b   :  { %36657 = vmatprep.subr.bf16.mxu0 %v46900_v33 }
0x148e   :  { %36659 = vmatpush3.bf16.msra.mxu0 %v46910_v34 }
0x148f   :  { %36660 = vmatprep.subr.bf16.mxu0 %v46900_v33 }
0x1492   :  { %36662 = vmatpush3.bf16.msra.mxu0 %v46911_v7 }
0x1493   :  { %36663 = vmatprep.subr.bf16.mxu0 %v46900_v33 }
0x1495   :  { %34938 = vmatmul.mubr.f32.vlgmr.msra.gmra.mrb[20].mxu0 %v25359_v35 }
0x1496   :  { %36665 = vmatpush3.bf16.msk.msra.mxu0 %vm41723_vm12, %v46901_v11  ;;  %34956 = vmatprep.mubr.msk.f32.mxu0 %vm38632_vm14, %v46903_v38 }
0x1497   :  { %36666 = vmatprep.subr.bf16.mxu0 %v46900_v33 }
0x149a   :  { %36668 = vmatpush3.bf16.msk.msra.mxu0 %vm41736_vm13, %v46901_v11 }
0x149b   :  { %36669 = vmatprep.subr.bf16.mxu0 %v46900_v33 }
0x149e   :  { %36671 = vmatpush3.bf16.msk.msra.mxu0 %vm41756_vm15, %v46901_v11 }
0x149f   :  { %36672 = vmatprep.subr.bf16.mxu0 %v46900_v33 }
0x14a2   :  { %36674 = vmatpush3.bf16.msk.msra.mxu0 %vm41774_vm0, %v46901_v11 }
0x14a3   :  { %34959 = vmatprep.subr.mxu0 %v46903_v38 }
0x14a5   :  { %34957 = vmatmul.mubr.f32.vlgmr.msra.gmra.mrb[20].mxu0 %v25359_v35 }
0x14a6   :  { %34960 = vmatpush3.msk.msra.mxu0 %vm41934_vm1, %v46912_v32  ;;  %34961 = vmatprep.mubr.msk.f32.mxu0 %vm38632_vm14, %v46903_v38 }
0x14a7   :  { %34964 = vmatprep.subr.mxu0 %v46903_v38 }
0x1540   :  { %v25365_v53 = vpop.f32.mrb[26].mxu1 }
0x1541   :  { %v34863_v57 = vpop.f32.mrb[27].mxu1 }
0x1578   :  { %v25819_v56 = vpop.f32.mrb[20].mxu0 }
0x1579   :  { %v36749_v40 = vadd.f32 %v25819_v56, %v25365_v53  ;;  %v34958_v0 = vpop.f32.mrb[21].mxu0 }
0x157b   :  { %v25823_v8 = vmul.f32 0.0009765625, %v36749_v40 }
0x157d   :  { %v25825_v22 = vsel %vm11772_vm2, %v25823_v8, 0 }
0x157e   :  { %v25893_v52 = vand.u32 4294901760, %v25825_v22 }
0x1580   :  { %v25894_v9 = vsub.f32 %v25825_v22, %v25893_v52 }
0x1582   :  { %v25895_v46 = vand.u32 4294901760, %v25894_v9 }
0x1584   :  { %v25896_v62 = vsub.f32 %v25894_v9, %v25895_v46 }
0x1586   :  { %v25897_v61 = vand.u32 4294901760, %v25896_v62 }
0x1588   :  { %34962 = vmatmul.mubr.f32.vlgmr.msra.gmra.mrb[22].mxu0 %v25897_v61 }
0x1589   :  { %34965 = vmatpush3.msra.mxu0 %v46914_v2  ;;  %34966 = vmatprep.mubr.msk.f32.mxu0 %vm38632_vm14, %v46903_v38 }
0x158a   :  { %34969 = vmatprep.subr.mxu0 %v46903_v38 }
0x1590   :  { %34967 = vmatmul.mubr.f32.vlgmr.msra.gmra.mrb[22].mxu0 %v25893_v52 }
0x1591   :  { %34970 = vmatpush3.msra.mxu0 %v46915_v63  ;;  %34971 = vmatprep.mubr.msk.f32.mxu0 %vm38632_vm14, %v46903_v38 }
0x1592   :  { %34974 = vmatprep.subr.mxu0 %v46903_v38 }
0x1598   :  { %34972 = vmatmul.mubr.f32.vlgmr.msra.gmra.mrb[22].mxu0 %v25894_v9 }
0x1599   :  { %34975 = vmatpush3.msk.msra.mxu0 %vm41934_vm1, %v46912_v32  ;;  %34976 = vmatprep.mubr.msk.f32.mxu0 %vm38632_vm14, %v46903_v38 }
0x159a   :  { %34979 = vmatprep.subr.mxu0 %v46903_v38 }
0x15a0   :  { %34977 = vmatmul.mubr.f32.vlgmr.msra.gmra.mrb[22].mxu0 %v25895_v46 }
0x15a1   :  { %34980 = vmatpush3.msra.mxu0 %v46916_v14  ;;  %34981 = vmatprep.mubr.msk.f32.mxu0 %vm38632_vm14, %v46903_v38 }
0x15a2   :  { %34984 = vmatprep.subr.mxu0 %v46903_v38 }
0x15a8   :  { %34982 = vmatmul.mubr.f32.vlgmr.msra.gmra.mrb[22].mxu0 %v25893_v52 }
0x15a9   :  { %34985 = vmatpush3.msk.msra.mxu0 %vm41934_vm1, %v46912_v32  ;;  %34986 = vmatprep.mubr.msk.f32.mxu0 %vm38632_vm14, %v46903_v38 }
0x15aa   :  { %36675 = vmatprep.subr.bf16.mxu0 %v46900_v33 }
0x15b0   :  { %34987 = vmatmul.mubr.f32.vlgmr.msra.gmra.mrb[22].mxu0 %v25893_v52 }
0x15b1   :  { %36677 = vmatpush3.bf16.msk.msra.mxu0 %vm41723_vm12, %v46901_v11  ;;  %35005 = vmatprep.mubr.msk.f32.mxu0 %vm38632_vm14, %v46903_v38 }
0x15b2   :  { %36678 = vmatprep.subr.bf16.mxu0 %v46900_v33 }
0x15b5   :  { %36680 = vmatpush3.bf16.msk.msra.mxu0 %vm41736_vm13, %v46901_v11 }
0x15b6   :  { %36681 = vmatprep.subr.bf16.mxu0 %v46900_v33 }
0x15b9   :  { %36683 = vmatpush3.bf16.msk.msra.mxu0 %vm41756_vm15, %v46901_v11 }
0x15ba   :  { %36684 = vmatprep.subr.bf16.mxu0 %v46900_v33 }
0x15bd   :  { %36686 = vmatpush3.bf16.msk.msra.mxu0 %vm41774_vm0, %v46901_v11 }
0x15be   :  { %36687 = vmatprep.subr.bf16.mxu0 %v46900_v33 }
0x1683   :  { %v26269_v48 = vpop.f32.mrb[22].mxu0 }
0x1684   :  { %v26276_v4 = vrot.slane %v26269_v48, %v46917_v10  ;;  %v34988_v58 = vpop.f32.mrb[23].mxu0 }
0x1686   :  { %v46075_v13 = vsub.f32 %v45907_v37, %v26276_v4  ;;  %v46078_v54 = vsub.f32 %v45903_v43, %v26276_v4  ;;  %v46081_v30 = vsub.f32 %v45913_v31, %v26276_v4  ;;  %v46084_v47 = vsub.f32 %v45911_v5, %v26276_v4 }
0x1687   :  { %v46087_v60 = vsub.f32 %v45921_v21, %v26276_v4  ;;  %v46090_v51 = vsub.f32 %v45919_v25, %v26276_v4  ;;  %v46093_v41 = vsub.f32 %v45929_v27, %v26276_v4  ;;  %v46096_v37 = vsub.f32 %v45927_v19, %v26276_v4 }
0x1688   :  { %v46099_v43 = vsub.f32 %v45937_v3, %v26276_v4  ;;  %v46102_v31 = vsub.f32 %v45935_v20, %v26276_v4  ;;  %v46105_v5 = vsub.f32 %v45945_v1, %v26276_v4  ;;  %v46108_v21 = vsub.f32 %v45943_v50, %v26276_v4 }
0x1689   :  { %v46111_v25 = vsub.f32 %v45953_v18, %v26276_v4  ;;  %v46114_v27 = vsub.f32 %v45951_v55, %v26276_v4  ;;  %v46117_v19 = vsub.f32 %v45961_v39, %v26276_v4  ;;  %v46120_v3 = vsub.f32 %v45959_v26, %v26276_v4 }
0x168a   :  { %v26293_v20 = vmul.f32 %v46075_v13, %v46075_v13  ;;  %v26294_v1 = vmul.f32 %v46078_v54, %v46078_v54  ;;  %v26295_v50 = vmul.f32 %v46081_v30, %v46081_v30  ;;  %v26296_v18 = vmul.f32 %v46084_v47, %v46084_v47 }
0x168b   :  { %v26297_v26 = vmul.f32 %v46087_v60, %v46087_v60  ;;  %v26298_v16 = vmul.f32 %v46090_v51, %v46090_v51  ;;  %v26299_v57 = vmul.f32 %v46093_v41, %v46093_v41  ;;  %v26300_v0 = vmul.f32 %v46096_v37, %v46096_v37 }
0x168c   :  { %v26309_v55 = vsel %vm11193_vm3, %v26293_v20, 0.0  ;;  %v26310_v39 = vsel %vm11193_vm3, %v26294_v1, 0.0  ;;  %v26312_v42 = vsel %vm11193_vm3, %v26295_v50, 0.0  ;;  %v26314_v36 = vsel %vm11193_vm3, %v26296_v18, 0.0 }
0x168d   :  { %v26311_v35 = vadd.f32 %v26310_v39, %v26309_v55  ;;  %v26316_v56 = vsel %vm11193_vm3, %v26297_v26, 0.0  ;;  %v26318_v8 = vsel %vm11193_vm3, %v26298_v16, 0.0  ;;  %v26301_v52 = vmul.f32 %v46099_v43, %v46099_v43 }
0x168e   :  { %v26320_v9 = vsel %vm11193_vm3, %v26299_v57, 0.0  ;;  %v26302_v62 = vmul.f32 %v46102_v31, %v46102_v31  ;;  %v26322_v61 = vsel %vm11193_vm3, %v26300_v0, 0.0  ;;  %v26303_v4 = vmul.f32 %v46105_v5, %v46105_v5 }
0x168f   :  { %v26313_v49 = vadd.f32 %v26312_v42, %v26311_v35  ;;  %v26324_v58 = vsel %vm11193_vm3, %v26301_v52, 0.0  ;;  %v26304_v1 = vmul.f32 %v46108_v21, %v46108_v21  ;;  %v26305_v55 = vmul.f32 %v46111_v25, %v46111_v25 }
0x1690   :  { %v26326_v50 = vsel %vm11193_vm3, %v26302_v62, 0.0  ;;  %v26328_v39 = vsel %vm11193_vm3, %v26303_v4, 0.0  ;;  %v26306_v26 = vmul.f32 %v46114_v27, %v46114_v27  ;;  %v26307_v16 = vmul.f32 %v46117_v19, %v46117_v19 }
0x1691   :  { %v26315_v53 = vadd.f32 %v26314_v36, %v26313_v49  ;;  %v26330_v42 = vsel %vm11193_vm3, %v26304_v1, 0.0  ;;  %v26332_v36 = vsel %vm11193_vm3, %v26305_v55, 0.0  ;;  %v26308_v57 = vmul.f32 %v46120_v3, %v46120_v3 }
0x1692   :  { %v26336_v0 = vsel %vm11193_vm3, %v26307_v16, 0.0 }
0x1693   :  { %v26317_v40 = vadd.f32 %v26316_v56, %v26315_v53  ;;  %v26334_v56 = vsel %vm11193_vm3, %v26306_v26, 0.0  ;;  %v46920_v26 = vld [vmem:[#allocation13_spill] sm:$0xff] }
0x1695   :  { %v26319_v22 = vadd.f32 %v26318_v8, %v26317_v40 }
0x1697   :  { %v26321_v46 = vadd.f32 %v26320_v9, %v26319_v22  ;;  %v26338_v22 = vsel %vm11193_vm3, %v26308_v57, 0.0 }
0x1699   :  { %v26323_v48 = vadd.f32 %v26322_v61, %v26321_v46 }
0x169b   :  { %v26325_v20 = vadd.f32 %v26324_v58, %v26323_v48 }
0x169d   :  { %v26327_v18 = vadd.f32 %v26326_v50, %v26325_v20 }
0x169f   :  { %v26329_v35 = vadd.f32 %v26328_v39, %v26327_v18  ;;  %v46918_v39 = vld [vmem:[#allocation11_spill] sm:$0xff] }
0x16a1   :  { %v26331_v49 = vadd.f32 %v26330_v42, %v26329_v35  ;;  %v46919_v35 = vld [vmem:[#allocation12_spill] sm:$0xff]  ;;  %v46921_v42 = vld [vmem:[#allocation14_spill] sm:$0xff] }
0x16a3   :  { %v26333_v53 = vadd.f32 %v26332_v36, %v26331_v49 }
0x16a5   :  { %v26335_v40 = vadd.f32 %v26334_v56, %v26333_v53 }
0x16a7   :  { %v26337_v8 = vadd.f32 %v26336_v0, %v26335_v40 }
0x16a9   :  { %v26339_v52 = vadd.f32 %v26338_v22, %v26337_v8 }
0x16ab   :  { %v26340_v9 = vrot.slane %v26339_v52, 4 }
0x16ad   :  { %v26341_v46 = vadd.f32 %v26340_v9, %v26339_v52 }
0x16af   :  { %v26342_v62 = vrot.slane %v26341_v46, 2 }
0x16b1   :  { %v26343_v61 = vadd.f32 %v26342_v62, %v26341_v46 }
0x16b3   :  { %v26344_v48 = vrot.slane %v26343_v61, 1 }
0x16b5   :  { %v26345_v4 = vadd.f32 %v26344_v48, %v26343_v61 }
0x16b7   :  { %v26347_v58 = vsel %vm11193_vm3, %v26345_v4, 0 }
0x16b8   :  { %v26422_v20 = vand.u32 4294901760, %v26347_v58 }
0x16ba   :  { %v26423_v1 = vsub.f32 %v26347_v58, %v26422_v20 }
0x16bc   :  { %v26424_v50 = vand.u32 4294901760, %v26423_v1 }
0x16be   :  { %v26425_v18 = vsub.f32 %v26423_v1, %v26424_v50 }
0x16c0   :  { %v26426_v55 = vand.u32 4294901760, %v26425_v18 }
0x16c2   :  { %35006 = vmatmul.mubr.f32.vlgmr.msra.gmra.mrb[24].mxu0 %v26426_v55 }
0x16c3   :  { %36689 = vmatpush3.bf16.msra.mxu0 %v46918_v39  ;;  %35024 = vmatprep.mubr.msk.f32.mxu0 %vm38632_vm14, %v46903_v38 }
0x16c4   :  { %36690 = vmatprep.subr.bf16.mxu0 %v46900_v33 }
0x16c7   :  { %36692 = vmatpush3.bf16.msra.mxu0 %v46919_v35 }
0x16c8   :  { %36693 = vmatprep.subr.bf16.mxu0 %v46900_v33 }
0x16cb   :  { %36695 = vmatpush3.bf16.msra.mxu0 %v46920_v26 }
0x16cc   :  { %36696 = vmatprep.subr.bf16.mxu0 %v46900_v33 }
0x16cf   :  { %36698 = vmatpush3.bf16.msra.mxu0 %v46921_v42 }
0x16d0   :  { %36699 = vmatprep.subr.bf16.mxu0 %v46900_v33 }
0x16d2   :  { %35025 = vmatmul.mubr.f32.vlgmr.msra.gmra.mrb[24].mxu0 %v26422_v20 }
0x16d3   :  { %36701 = vmatpush3.bf16.msra.mxu0 %v46904_v29  ;;  %35043 = vmatprep.mubr.msk.f32.mxu0 %vm38632_vm14, %v46903_v38 }
0x16d4   :  { %36702 = vmatprep.subr.bf16.mxu0 %v46900_v33 }
0x16d7   :  { %36704 = vmatpush3.bf16.msra.mxu0 %v46905_v12 }
0x16d8   :  { %36705 = vmatprep.subr.bf16.mxu0 %v46900_v33 }
0x16db   :  { %36707 = vmatpush3.bf16.msra.mxu0 %v46906_v15 }
0x16dc   :  { %36708 = vmatprep.subr.bf16.mxu0 %v46900_v33 }
0x16df   :  { %36710 = vmatpush3.bf16.msra.mxu0 %v46907_v59 }
0x16e0   :  { %36711 = vmatprep.subr.bf16.mxu0 %v46900_v33 }
0x16e2   :  { %35044 = vmatmul.mubr.f32.vlgmr.msra.gmra.mrb[24].mxu0 %v26423_v1 }
0x16e3   :  { %36713 = vmatpush3.bf16.msk.msra.mxu0 %vm41723_vm12, %v46901_v11  ;;  %35062 = vmatprep.mubr.msk.f32.mxu0 %vm38632_vm14, %v46903_v38 }
0x16e4   :  { %36714 = vmatprep.subr.bf16.mxu0 %v46900_v33 }
0x16e7   :  { %36716 = vmatpush3.bf16.msk.msra.mxu0 %vm41736_vm13, %v46901_v11 }
0x16e8   :  { %36717 = vmatprep.subr.bf16.mxu0 %v46900_v33 }
0x16eb   :  { %36719 = vmatpush3.bf16.msk.msra.mxu0 %vm41756_vm15, %v46901_v11 }
0x16ec   :  { %36720 = vmatprep.subr.bf16.mxu0 %v46900_v33 }
0x16ef   :  { %36722 = vmatpush3.bf16.msk.msra.mxu0 %vm41774_vm0, %v46901_v11 }
0x16f0   :  { %36723 = vmatprep.subr.bf16.mxu0 %v46900_v33 }
0x16f2   :  { %35063 = vmatmul.mubr.f32.vlgmr.msra.gmra.mrb[24].mxu0 %v26424_v50 }
0x16f3   :  { %36725 = vmatpush3.bf16.msra.mxu0 %v46908_v17  ;;  %35081 = vmatprep.mubr.msk.f32.mxu0 %vm38632_vm14, %v46903_v38 }
0x16f4   :  { %36726 = vmatprep.subr.bf16.mxu0 %v46900_v33 }
0x16f7   :  { %36728 = vmatpush3.bf16.msra.mxu0 %v46909_v6 }
0x16f8   :  { %36729 = vmatprep.subr.bf16.mxu0 %v46900_v33 }
0x16fb   :  { %36731 = vmatpush3.bf16.msra.mxu0 %v46910_v34 }
0x16fc   :  { %36732 = vmatprep.subr.bf16.mxu0 %v46900_v33 }
0x16ff   :  { %36734 = vmatpush3.bf16.msra.mxu0 %v46911_v7  ;;  %v27360_v7 = vld [vmem:[%s46392_s6] sm:$0x1] }
0x1700   :  { %36735 = vmatprep.subr.bf16.mxu0 %v46900_v33  ;;  %v27362_v49 = vsel %vm11772_vm2, %v27360_v7, 0 }
0x1701   :  { %v27430_v16 = vand.u32 4294901760, %v27362_v49 }
0x1702   :  { %35082 = vmatmul.mubr.f32.vlgmr.msra.gmra.mrb[24].mxu0 %v26422_v20 }
0x1703   :  { %36737 = vmatpush3.bf16.msk.msra.mxu0 %vm41723_vm12, %v46901_v11  ;;  %35100 = vmatprep.mubr.msk.f32.mxu0 %vm38632_vm14, %v46903_v38  ;;  %v27431_v36 = vsub.f32 %v27362_v49, %v27430_v16 }
0x1704   :  { %36738 = vmatprep.subr.bf16.mxu0 %v46900_v33 }
0x1705   :  { %v27432_v53 = vand.u32 4294901760, %v27431_v36 }
0x1707   :  { %36740 = vmatpush3.bf16.msk.msra.mxu0 %vm41736_vm13, %v46901_v11  ;;  %v27433_v57 = vsub.f32 %v27431_v36, %v27432_v53 }
0x1708   :  { %36741 = vmatprep.subr.bf16.mxu0 %v46900_v33 }
0x1709   :  { %v27434_v56 = vand.u32 4294901760, %v27433_v57 }
0x170b   :  { %36743 = vmatpush3.bf16.msk.msra.mxu0 %vm41756_vm15, %v46901_v11 }
0x170c   :  { %36744 = vmatprep.subr.bf16.mxu0 %v46900_v33 }
0x170f   :  { %36746 = vmatpush3.bf16.msk.msra.mxu0 %vm41774_vm0, %v46901_v11  ;;  %v26887_v11 = vld [vmem:[%s46391_s5] sm:$0x1] }
0x1710   :  { %35103 = vmatprep.subr.mxu0 %v46903_v38 }
0x1712   :  { %35101 = vmatmul.mubr.f32.vlgmr.msra.gmra.mrb[24].mxu0 %v26422_v20 }
0x1713   :  { %35104 = vmatpush3.msk.msra.mxu0 %vm41934_vm1, %v46912_v32  ;;  %35105 = vmatprep.mubr.msk.f32.mxu0 %vm38632_vm14, %v46903_v38 }
0x1714   :  { %35108 = vmatprep.subr.mxu0 %v46903_v38 }
0x17e5   :  { %v26882_v45 = vpop.f32.mrb[24].mxu0 }
0x17e6   :  { %v26886_v44 = vmul.f32 0.0009765625, %v26882_v45  ;;  %v35102_v28 = vpop.f32.mrb[25].mxu0 }
0x17e8   :  { %v26888_v33 = vadd.f32 1e-05, %v26886_v44 }
0x17ea   :  { %38552 = vrsqrt.f32 %v26888_v33 }
0x17f4   :  { %v38553_v24 = vpop.eup %38552 }
0x17f5   :  { %v26890_v29 = vmul.f32 %v38553_v24, %v26887_v11 }
0x17f7   :  { %v26892_v12 = vsel %vm11772_vm2, %v26890_v29, 0 }
0x17f8   :  { %v26960_v15 = vand.u32 4294901760, %v26892_v12 }
0x17fa   :  { %v26961_v59 = vsub.f32 %v26892_v12, %v26960_v15 }
0x17fc   :  { %v26962_v17 = vand.u32 4294901760, %v26961_v59 }
0x17fe   :  { %v26963_v6 = vsub.f32 %v26961_v59, %v26962_v17 }
0x1800   :  { %v26964_v34 = vand.u32 4294901760, %v26963_v6 }
0x1802   :  { %35106 = vmatmul.mubr.f32.vlgmr.msra.gmra.mrb[26].mxu0 %v26964_v34 }
0x1803   :  { %35109 = vmatpush3.msra.mxu0 %v46914_v2  ;;  %35110 = vmatprep.mubr.msk.f32.mxu0 %vm38632_vm14, %v46903_v38 }
0x1804   :  { %35113 = vmatprep.subr.mxu0 %v46903_v38 }
0x180a   :  { %35111 = vmatmul.mubr.f32.vlgmr.msra.gmra.mrb[26].mxu0 %v26960_v15 }
0x180b   :  { %35114 = vmatpush3.msra.mxu0 %v46915_v63  ;;  %35115 = vmatprep.mubr.msk.f32.mxu0 %vm38632_vm14, %v46903_v38 }
0x180c   :  { %35118 = vmatprep.subr.mxu0 %v46903_v38 }
0x1812   :  { %35116 = vmatmul.mubr.f32.vlgmr.msra.gmra.mrb[26].mxu0 %v26961_v59 }
0x1813   :  { %35119 = vmatpush3.msk.msra.mxu0 %vm41934_vm1, %v46912_v32  ;;  %35120 = vmatprep.mubr.msk.f32.mxu0 %vm38632_vm14, %v46903_v38 }
0x1814   :  { %35123 = vmatprep.subr.mxu0 %v46903_v38 }
0x181a   :  { %35121 = vmatmul.mubr.f32.vlgmr.msra.gmra.mrb[26].mxu0 %v26962_v17 }
0x181b   :  { %35124 = vmatpush3.msra.mxu0 %v46916_v14  ;;  %35125 = vmatprep.mubr.msk.f32.mxu0 %vm38632_vm14, %v46903_v38 }
0x181c   :  { %35128 = vmatprep.subr.mxu0 %v46903_v38 }
0x1822   :  { %35126 = vmatmul.mubr.f32.vlgmr.msra.gmra.mrb[26].mxu0 %v26960_v15 }
0x1823   :  { %35129 = vmatpush3.msk.msra.mxu0 %vm41934_vm1, %v46912_v32  ;;  %35130 = vmatprep.mubr.msk.f32.mxu0 %vm38632_vm14, %v46903_v38 }
0x1824   :  { %35133 = vmatprep.subr.mxu0 %v46903_v38 }
0x182a   :  { %35131 = vmatmul.mubr.f32.vlgmr.msra.gmra.mrb[26].mxu0 %v26960_v15 }
0x182b   :  { %35134 = vmatpush3.msk.msra.mxu0 %vm41934_vm1, %v46912_v32  ;;  %35135 = vmatprep.mubr.msk.f32.mxu0 %vm38632_vm14, %v46903_v38 }
0x182c   :  { %35138 = vmatprep.subr.mxu0 %v46903_v38 }
0x182e   :  { %35136 = vmatmul.mubr.f32.vlgmr.msra.gmra.mrb[28].mxu0 %v27434_v56 }
0x182f   :  { %35139 = vmatpush3.msra.mxu0 %v46914_v2  ;;  %35140 = vmatprep.mubr.msk.f32.mxu0 %vm38632_vm14, %v46903_v38 }
0x1830   :  { %35143 = vmatprep.subr.mxu0 %v46903_v38 }
0x1836   :  { %35141 = vmatmul.mubr.f32.vlgmr.msra.gmra.mrb[28].mxu0 %v27430_v16 }
0x1837   :  { %35144 = vmatpush3.msra.mxu0 %v46915_v63  ;;  %35145 = vmatprep.mubr.msk.f32.mxu0 %vm38632_vm14, %v46903_v38 }
0x1838   :  { %35148 = vmatprep.subr.mxu0 %v46903_v38 }
0x183e   :  { %35146 = vmatmul.mubr.f32.vlgmr.msra.gmra.mrb[28].mxu0 %v27431_v36 }
0x183f   :  { %35149 = vmatpush3.msk.msra.mxu0 %vm41934_vm1, %v46912_v32  ;;  %35150 = vmatprep.mubr.msk.f32.mxu0 %vm38632_vm14, %v46903_v38 }
0x1840   :  { %35153 = vmatprep.subr.mxu0 %v46903_v38 }
0x1846   :  { %35151 = vmatmul.mubr.f32.vlgmr.msra.gmra.mrb[28].mxu0 %v27432_v53 }
0x1847   :  { %35154 = vmatpush3.msra.mxu0 %v46916_v14  ;;  %35155 = vmatprep.mubr.msk.f32.mxu0 %vm38632_vm14, %v46903_v38 }
0x1848   :  { %35158 = vmatprep.subr.mxu0 %v46903_v38 }
0x184e   :  { %35156 = vmatmul.mubr.f32.vlgmr.msra.gmra.mrb[28].mxu0 %v27430_v16 }
0x184f   :  { %35159 = vmatpush3.msk.msra.mxu0 %vm41934_vm1, %v46912_v32  ;;  %35160 = vmatprep.mubr.msk.f32.mxu0 %vm38632_vm14, %v46903_v38 }
0x1856   :  { %35161 = vmatmul.mubr.f32.vlgmr.msra.gmra.mrb[28].mxu0 %v27430_v16 }
0x18fd   :  { %v27336_v2 = vpop.f32.mrb[26].mxu0 }
0x18fe   :  { %v35132_v63 = vpop.f32.mrb[27].mxu0  ;;  %v27343_v40 = vrot.slane %v27336_v2, %v46917_v10 }
0x1900   :  { %v27344_v14 = vmul.f32 %v27343_v40, %v46075_v13  ;;  %v27345_v0 = vmul.f32 %v27343_v40, %v46078_v54  ;;  %v27346_v8 = vmul.f32 %v27343_v40, %v46081_v30  ;;  %v27347_v22 = vmul.f32 %v27343_v40, %v46084_v47 }
0x1901   :  { %v27348_v52 = vmul.f32 %v27343_v40, %v46087_v60  ;;  %v27349_v32 = vmul.f32 %v27343_v40, %v46090_v51  ;;  %v27350_v23 = vmul.f32 %v27343_v40, %v46093_v41  ;;  %v27351_v38 = vmul.f32 %v27343_v40, %v46096_v37 }
0x1902   :  { %v27352_v9 = vmul.f32 %v27343_v40, %v46099_v43  ;;  %v27353_v62 = vmul.f32 %v27343_v40, %v46102_v31  ;;  %v27354_v13 = vmul.f32 %v27343_v40, %v46105_v5  ;;  %v27355_v54 = vmul.f32 %v27343_v40, %v46108_v21 }
0x1903   :  { %v27356_v60 = vmul.f32 %v27343_v40, %v46111_v25  ;;  %v27357_v51 = vmul.f32 %v27343_v40, %v46114_v27  ;;  %v27358_v41 = vmul.f32 %v27343_v40, %v46117_v19  ;;  %v27359_v37 = vmul.f32 %v27343_v40, %v46120_v3 }
0x1929   :  { %v27806_v46 = vpop.f32.mrb[28].mxu0 }
0x192a   :  { %v27813_v30 = vrot.slane %v27806_v46, %v46917_v10  ;;  %v35162_v47 = vpop.f32.mrb[29].mxu0 }
0x192c   :  { %v27814_v61 = vadd.f32 %v27813_v30, %v27344_v14  ;;  %v27815_v43 = vadd.f32 %v27813_v30, %v27345_v0  ;;  %v27816_v48 = vadd.f32 %v27813_v30, %v27346_v8  ;;  %v27817_v4 = vadd.f32 %v27813_v30, %v27347_v22 }
0x192d   :  { %v27818_v31 = vadd.f32 %v27813_v30, %v27348_v52  ;;  %v27819_v58 = vadd.f32 %v27813_v30, %v27349_v32  ;;  %v27820_v5 = vadd.f32 %v27813_v30, %v27350_v23  ;;  %v27821_v20 = vadd.f32 %v27813_v30, %v27351_v38 }
0x192e   :  { %v27822_v21 = vadd.f32 %v27813_v30, %v27352_v9  ;;  %v27823_v1 = vadd.f32 %v27813_v30, %v27353_v62  ;;  %v27824_v10 = vadd.f32 %v27813_v30, %v27354_v13  ;;  %v27825_v50 = vadd.f32 %v27813_v30, %v27355_v54  ;;  %27830 = vst.msk [vmem:[%s46393_s7] sm:$0xff] %vm11193_vm3, %v27814_v61 }
0x192f   :  { %27831 = vst.msk [vmem:[%s46393_s7 + $0x8] sm:$0xff] %vm11193_vm3, %v27815_v43  ;;  %27832 = vst.msk [vmem:[%s46393_s7 + $0x10] sm:$0xff] %vm11193_vm3, %v27816_v48  ;;  %v27826_v25 = vadd.f32 %v27813_v30, %v27356_v60  ;;  %v27827_v27 = vadd.f32 %v27813_v30, %v27357_v51  ;;  %v27828_v19 = vadd.f32 %v27813_v30, %v27358_v41 }
0x1930   :  { %27833 = vst.msk [vmem:[%s46393_s7 + $0x18] sm:$0xff] %vm11193_vm3, %v27817_v4  ;;  %v27829_v3 = vadd.f32 %v27813_v30, %v27359_v37  ;;  %27834 = vst.msk [vmem:[%s46393_s7 + $0x20] sm:$0xff] %vm11193_vm3, %v27818_v31 }
0x1931   :  { %27835 = vst.msk [vmem:[%s46393_s7 + $0x28] sm:$0xff] %vm11193_vm3, %v27819_v58  ;;  %27836 = vst.msk [vmem:[%s46393_s7 + $0x30] sm:$0xff] %vm11193_vm3, %v27820_v5 }
0x1932   :  { %27837 = vst.msk [vmem:[%s46393_s7 + $0x38] sm:$0xff] %vm11193_vm3, %v27821_v20  ;;  %27838 = vst.msk [vmem:[%s46393_s7 + $0x40] sm:$0xff] %vm11193_vm3, %v27822_v21 }
0x1933   :  { %27839 = vst.msk [vmem:[%s46393_s7 + $0x48] sm:$0xff] %vm11193_vm3, %v27823_v1  ;;  %27840 = vst.msk [vmem:[%s46393_s7 + $0x50] sm:$0xff] %vm11193_vm3, %v27824_v10 }
0x1934   :  { %27841 = vst.msk [vmem:[%s46393_s7 + $0x58] sm:$0xff] %vm11193_vm3, %v27825_v50  ;;  %27842 = vst.msk [vmem:[%s46393_s7 + $0x60] sm:$0xff] %vm11193_vm3, %v27826_v25 }
0x1935   :  { %27843 = vst.msk [vmem:[%s46393_s7 + $0x68] sm:$0xff] %vm11193_vm3, %v27827_v27  ;;  %27844 = vst.msk [vmem:[%s46393_s7 + $0x70] sm:$0xff] %vm11193_vm3, %v27828_v19 }
0x1936   :  { %27845 = vst.msk [vmem:[%s46393_s7 + $0x78] sm:$0xff] %vm11193_vm3, %v27829_v3 }
0x1937   :  { %27850 = vsyncpa [#allocation5], 1 }
0x1938   :  { %27851 = vsyncpa [#allocation7], 1 }

</bundles_post_ra>
